<compile_context>
chip_gen: v5e
topology: v5e:2x2
jax: 0.10.0
libtpu: 0.0.40
codegen_flags: <defaults>
</compile_context>

<pallas_src>
import functools

import jax
import jax.numpy as jnp
from jax import lax
from jax.experimental import pallas as pl
from jax.experimental.pallas import tpu as pltpu


# ---------------------------------------------------------------------------
# helpers
# ---------------------------------------------------------------------------
def _round_up(v, m):
    return (v + m - 1) // m * m


def _vmem_limit_bytes():
    """Generation-aware VMEM limit (~80% of physical, capped for the compiler)."""
    try:
        cap = int(pltpu.get_tpu_info().vmem_capacity_bytes)
    except Exception:  # pragma: no cover - conservative fallback (fits every gen)
        cap = 64 * 1024 * 1024
    return int(min(max(cap * 0.8, 32 * 1024 * 1024), 100 * 1024 * 1024))


def _pick_row_tile(Hs, est, budget, cap=256):
    """Largest even row-strip that fits the budget; prefer an even divisor of Hs."""
    max_th = 2
    hi = max(2, min(Hs, cap))
    for cand in range(2, hi + 1, 2):
        if est(cand) <= budget:
            max_th = cand
    for cand in range(max_th, 1, -2):
        if Hs % cand == 0 and cand * 2 >= max_th:
            return cand          # no wrapper padding needed
    return max_th                # wrapper pads the rows


def _fold_bn(gamma, beta, mean, var, eps=1e-5):
    scale = gamma * lax.rsqrt(var + eps)
    bias = beta - mean * scale
    return scale, bias


# ---------------------------------------------------------------------------
# 3x3 conv as nine row-offset slices of the collapsed padded strip (MXU matmuls)
# ---------------------------------------------------------------------------
def _conv3x3_taps(q, w_taps, Wp, M):
    """q: (R*Wp, Cin) collapsed zero-padded strip (compute dtype);
       w_taps: (9, Cin, Cout) tap-major weights (k = dy*3 + dx).
       Returns the (M, Cout) f32 conv result; accumulation grouped into 3 partials."""
    parts = []
    for dx in range(3):
        part = None
        for dy in range(3):
            s = dy * Wp + dx
            d = jnp.dot(q[s:s + M, :], w_taps[dy * 3 + dx],
                        preferred_element_type=jnp.float32)
            part = d if part is None else part + d
        parts.append(part)
    return (parts[0] + parts[1]) + parts[2]


# ---------------------------------------------------------------------------
# fused DecoderBlock kernel: upsample + concat + conv1+BN+ReLU + conv2+BN+ReLU
# ---------------------------------------------------------------------------
def _decoder_block_kernel(xm_ref, xt_ref, xb_ref, sm_ref, st_ref, sb_ref,
                          w1_ref, b1_ref, w2_ref, b2_ref,
                          o_ref, p1_ref, p2_ref, *, overhang):
    t = pl.program_id(1)
    n_t = pl.num_programs(1)

    TH, Ws, Cout = o_ref.shape[1], o_ref.shape[2], o_ref.shape[3]
    TH2, Wx, Cx = xm_ref.shape[1], xm_ref.shape[2], xm_ref.shape[3]
    Cs = sm_ref.shape[3]
    C = Cx + Cs
    R1, Wp = p1_ref.shape[0], p1_ref.shape[1]        # R1 = TH + 5 (1 slack row)
    R2 = p2_ref.shape[0]                             # R2 = TH + 3 (1 slack row)
    cdt = p1_ref.dtype
    assert TH == 2 * TH2 and Ws == 2 * Wx and Wp >= Ws + 2

    # ---- zero only the pad ring (left/right pad columns) and the slack rows ----
    p1_ref[:, 0:1, :] = jnp.zeros((R1, 1, C), cdt)
    p1_ref[:, Ws + 1:Wp, :] = jnp.zeros((R1, Wp - Ws - 1, C), cdt)
    p1_ref[TH + 4:R1, 1:Ws + 1, :] = jnp.zeros((1, Ws, C), cdt)
    p2_ref[:, 0:1, :] = jnp.zeros((R2, 1, Cout), cdt)
    p2_ref[:, Ws + 1:Wp, :] = jnp.zeros((R2, Wp - Ws - 1, Cout), cdt)
    p2_ref[TH + 2:R2, 1:Ws + 1, :] = jnp.zeros((1, Ws, Cout), cdt)

    # ---- interior: fused nearest 2x (H & W) upsample of x + channel concat with skip
    xm = xm_ref[0].astype(cdt)                                          # (TH2, Wx, Cx)
    xu = jnp.broadcast_to(xm[:, None, :, None, :],
                          (TH2, 2, Wx, 2, Cx)).reshape(TH, Ws, Cx)
    p1_ref[2:TH + 2, 1:Ws + 1, 0:Cx] = xu
    p1_ref[2:TH + 2, 1:Ws + 1, Cx:C] = sm_ref[0].astype(cdt)

    # ---- 2-row halo bands (real neighbour rows inside the image, zeros at the edges)
    @pl.when(t > 0)
    def _():
        xt = xt_ref[0, 0].astype(cdt)                                   # (Wx, Cx)
        band = jnp.broadcast_to(xt[None, :, None, :],
                                (2, Wx, 2, Cx)).reshape(2, Ws, Cx)
        p1_ref[0:2, 1:Ws + 1, 0:Cx] = band
        p1_ref[0:2, 1:Ws + 1, Cx:C] = st_ref[0].astype(cdt)

    @pl.when(t == 0)
    def _():
        p1_ref[0:2, 1:Ws + 1, :] = jnp.zeros((2, Ws, C), cdt)

    @pl.when(t < n_t - 1)
    def _():
        xb = xb_ref[0, 0].astype(cdt)
        band = jnp.broadcast_to(xb[None, :, None, :],
                                (2, Wx, 2, Cx)).reshape(2, Ws, Cx)
        p1_ref[TH + 2:TH + 4, 1:Ws + 1, 0:Cx] = band
        p1_ref[TH + 2:TH + 4, 1:Ws + 1, Cx:C] = sb_ref[0].astype(cdt)

    @pl.when(t == n_t - 1)
    def _():
        p1_ref[TH + 2:TH + 4, 1:Ws + 1, :] = jnp.zeros((2, Ws, C), cdt)

    # ---- conv1 (+ bias + ReLU) over TH+2 rows, kept resident in VMEM (p2) ----
    M1 = (TH + 2) * Wp
    q1 = p1_ref[...].reshape(R1 * Wp, C)
    h = _conv3x3_taps(q1, w1_ref[...], Wp, M1)
    h = jnp.maximum(h + b1_ref[0], 0.0)
    h = h.reshape(TH + 2, Wp, Cout)
    p2_ref[0:TH + 2, 1:Ws + 1, :] = h[:, 0:Ws, :].astype(cdt)

    # conv1 rows outside the image serve as conv2's zero padding -> force them to zero
    @pl.when(t == 0)
    def _():
        p2_ref[0:1, :, :] = jnp.zeros((1, Wp, Cout), cdt)

    @pl.when(t == n_t - 1)
    def _():
        p2_ref[TH + 1 - overhang:TH + 2, :, :] = jnp.zeros(
            (overhang + 1, Wp, Cout), cdt)

    # ---- conv2 (+ bias + ReLU) ----
    M2 = TH * Wp
    q2 = p2_ref[...].reshape(R2 * Wp, Cout)
    y = _conv3x3_taps(q2, w2_ref[...], Wp, M2)
    y = jnp.maximum(y + b2_ref[0], 0.0)
    y = y.reshape(TH, Wp, Cout)
    o_ref[0] = y[:, 0:Ws, :].astype(o_ref.dtype)


# ---------------------------------------------------------------------------
# wrapper
# ---------------------------------------------------------------------------
def _decoder_block_forward_impl(params, x, skip, row_tile=None,
                                compute_dtype=jnp.bfloat16):
    N, Hx, Wx, Cx = x.shape
    Ns, Hs, Ws, Cs = skip.shape
    assert Ns == N and Hs == 2 * Hx and Ws == 2 * Wx
    C = Cx + Cs
    Cout = params["conv1_w"].shape[-1]
    out_dtype = x.dtype
    Wp = _round_up(Ws + 2, 8)

    # fold inference BatchNorm: scale into the conv weights, bias stays a vector
    s1, b1 = _fold_bn(params["bn1_gamma"], params["bn1_beta"],
                      params["bn1_mean"], params["bn1_var"])
    s2, b2 = _fold_bn(params["bn2_gamma"], params["bn2_beta"],
                      params["bn2_mean"], params["bn2_var"])
    w1 = (params["conv1_w"] * s1).reshape(9, C, Cout).astype(compute_dtype)
    w2 = (params["conv2_w"] * s2).reshape(9, Cout, Cout).astype(compute_dtype)
    b1 = b1.reshape(1, Cout).astype(jnp.float32)
    b2 = b2.reshape(1, Cout).astype(jnp.float32)

    vmem_limit = _vmem_limit_bytes()
    xb_ = jnp.dtype(x.dtype).itemsize
    sb_ = jnp.dtype(skip.dtype).itemsize
    ob_ = jnp.dtype(out_dtype).itemsize

    def est(th):                       # rough per-step live-VMEM estimate (bytes)
        r1, r2 = th + 5, th + 3
        ins = ((th // 2) * Wx * Cx + 2 * Wx * Cx) * xb_ \
            + (th * Ws * Cs + 4 * Ws * Cs) * sb_ \
            + 9 * C * Cout * 2 + 9 * Cout * Cout * 2 + 8 * Cout
        outs = th * Ws * Cout * ob_
        scratch = r1 * Wp * C * 2 + r2 * Wp * Cout * 2
        live = 3 * r1 * Wp * Cout * 4 + r1 * Wp * C * 2 \
            + 2 * r2 * Wp * Cout * 2 + th * Wp * Cout * 4
        return 2 * (ins + outs) + scratch + live

    if row_tile is None:
        TH = _pick_row_tile(Hs, est, int(vmem_limit * 0.6))
    else:
        TH = int(row_tile)
    assert TH >= 2 and TH % 2 == 0, TH
    TH2 = TH // 2

    n_t = -(-Hs // TH)                 # cdiv
    Hs_pad = n_t * TH
    overhang = Hs_pad - Hs             # static; handled in-kernel + sliced off below
    Hx_pad = Hs_pad // 2

    if overhang:
        skip_in = jnp.pad(skip, ((0, 0), (0, overhang), (0, 0), (0, 0)))
        x_in = jnp.pad(x, ((0, 0), (0, overhang // 2), (0, 0), (0, 0)))
    else:
        skip_in, x_in = skip, x

    kernel = functools.partial(_decoder_block_kernel, overhang=overhang)

    in_specs = [
        # x: interior rows of the strip (at original resolution) + 1-row halos
        pl.BlockSpec((1, TH2, Wx, Cx), lambda n, t: (n, t, 0, 0)),
        pl.BlockSpec((1, 1, Wx, Cx),
                     lambda n, t: (n, jnp.maximum(t * TH2 - 1, 0), 0, 0)),
        pl.BlockSpec((1, 1, Wx, Cx),
                     lambda n, t: (n, jnp.minimum((t + 1) * TH2, Hx_pad - 1), 0, 0)),
        # skip: interior rows + 2-row halos
        pl.BlockSpec((1, TH, Ws, Cs), lambda n, t: (n, t, 0, 0)),
        pl.BlockSpec((1, 2, Ws, Cs),
                     lambda n, t: (n, jnp.maximum(t * TH2 - 1, 0), 0, 0)),
        pl.BlockSpec((1, 2, Ws, Cs),
                     lambda n, t: (n, jnp.minimum((t + 1) * TH2, Hs_pad // 2 - 1), 0, 0)),
        # weights (BN scale pre-folded) + biases
        pl.BlockSpec((9, C, Cout), lambda n, t: (0, 0, 0)),
        pl.BlockSpec((1, Cout), lambda n, t: (0, 0)),
        pl.BlockSpec((9, Cout, Cout), lambda n, t: (0, 0, 0)),
        pl.BlockSpec((1, Cout), lambda n, t: (0, 0)),
    ]

    out = pl.pallas_call(
        kernel,
        out_shape=jax.ShapeDtypeStruct((N, Hs_pad, Ws, Cout), out_dtype),
        grid=(N, n_t),
        in_specs=in_specs,
        out_specs=pl.BlockSpec((1, TH, Ws, Cout), lambda n, t: (n, t, 0, 0)),
        scratch_shapes=[pltpu.VMEM((TH + 5, Wp, C), compute_dtype),
                        pltpu.VMEM((TH + 3, Wp, Cout), compute_dtype)],
        compiler_params=pltpu.CompilerParams(
            dimension_semantics=("parallel", "parallel"),
            vmem_limit_bytes=vmem_limit),
    )(x_in, x_in, x_in, skip_in, skip_in, skip_in, w1, b1, w2, b2)

    if overhang:
        out = out[:, :Hs]
    return out


@functools.partial(jax.jit, static_argnames=("row_tile",))
def decoder_block_forward(params, x, skip, row_tile=None):
    """DecoderBlock.forward for the canonical path: upscale=True, skip given,
    attention_type=None, use_batchnorm=True (inference statistics), NHWC layout."""
    return _decoder_block_forward_impl(params, x, skip, row_tile=row_tile)


# ---------------------------------------------------------------------------
# parameter init (shapes follow DecoderBlock.__init__; HWIO conv weights)
# ---------------------------------------------------------------------------
def init_decoder_block_params(key, in_channels, skip_channels, out_channels):
    c1_in = in_channels + skip_channels
    ks = jax.random.split(key, 10)

    def conv_w(k, cin, cout):
        return (jax.random.normal(k, (3, 3, cin, cout), jnp.float32)
                * (1.0 / jnp.sqrt(9.0 * cin)))

    return {
        "conv1_w": conv_w(ks[0], c1_in, out_channels),
        "bn1_gamma": 1.0 + 0.1 * jax.random.normal(ks[1], (out_channels,), jnp.float32),
        "bn1_beta": 0.1 * jax.random.normal(ks[2], (out_channels,), jnp.float32),
        "bn1_mean": 0.1 * jax.random.normal(ks[3], (out_channels,), jnp.float32),
        "bn1_var": jax.random.uniform(ks[4], (out_channels,), jnp.float32, 0.5, 1.5),
        "conv2_w": conv_w(ks[5], out_channels, out_channels),
        "bn2_gamma": 1.0 + 0.1 * jax.random.normal(ks[6], (out_channels,), jnp.float32),
        "bn2_beta": 0.1 * jax.random.normal(ks[7], (out_channels,), jnp.float32),
        "bn2_mean": 0.1 * jax.random.normal(ks[8], (out_channels,), jnp.float32),
        "bn2_var": jax.random.uniform(ks[9], (out_channels,), jnp.float32, 0.5, 1.5),
    }


# ---------------------------------------------------------------------------
# pure-JAX reference (lax.conv) mirroring the kernel's bf16 matmul numerics
# ---------------------------------------------------------------------------
def _reference_forward(params, x, skip, compute_dtype=jnp.bfloat16):
    s1, b1 = _fold_bn(params["bn1_gamma"], params["bn1_beta"],
                      params["bn1_mean"], params["bn1_var"])
    s2, b2 = _fold_bn(params["bn2_gamma"], params["bn2_beta"],
                      params["bn2_mean"], params["bn2_var"])
    w1 = (params["conv1_w"] * s1).astype(compute_dtype)
    w2 = (params["conv2_w"] * s2).astype(compute_dtype)

    xu = jnp.repeat(jnp.repeat(x, 2, axis=1), 2, axis=2)
    z = jnp.concatenate([xu, skip], axis=-1).astype(compute_dtype)

    dn1 = lax.conv_dimension_numbers(z.shape, w1.shape, ("NHWC", "HWIO", "NHWC"))
    h = lax.conv_general_dilated(z, w1, (1, 1), "SAME", dimension_numbers=dn1,
                                 preferred_element_type=jnp.float32)
    h = jnp.maximum(h + b1, 0.0).astype(compute_dtype)

    dn2 = lax.conv_dimension_numbers(h.shape, w2.shape, ("NHWC", "HWIO", "NHWC"))
    y = lax.conv_general_dilated(h, w2, (1, 1), "SAME", dimension_numbers=dn2,
                                 preferred_element_type=jnp.float32)
    return jnp.maximum(y + b2, 0.0).astype(x.dtype)


if __name__ == "__main__":
    # batch=2, in_channels=4, skip_channels=4, out_channels=8,
    # x spatial 8x8 (-> 16x16 after 2x upsample), skip spatial 16x16 (NHWC).
    N, Cin, Cskip, Cout = 2, 4, 4, 8
    H, W = 8, 8

    key = jax.random.PRNGKey(0)
    kx, ks, kp = jax.random.split(key, 3)
    x = jax.random.normal(kx, (N, H, W, Cin), jnp.float32)
    skip = jax.random.normal(ks, (N, 2 * H, 2 * W, Cskip), jnp.float32)
    params = init_decoder_block_params(kp, Cin, Cskip, Cout)

    ref = jax.block_until_ready(_reference_forward(params, x, skip))

    # auto row-strip selection (single strip at these tiny shapes)
    out = jax.block_until_ready(decoder_block_forward(params, x, skip))
    assert out.shape == (N, 2 * H, 2 * W, Cout), out.shape
    assert jnp.allclose(out, ref, atol=2e-2, rtol=2e-2), \
        float(jnp.max(jnp.abs(out - ref)))

    # forced multi-strip tiling: exercises the 2-row halo path across 4 strips
    out4 = jax.block_until_ready(decoder_block_forward(params, x, skip, row_tile=4))
    assert jnp.allclose(out4, ref, atol=2e-2, rtol=2e-2), \
        float(jnp.max(jnp.abs(out4 - ref)))

    # non-divisible strip height: exercises the wrapper row-padding + edge masking path
    out6 = jax.block_until_ready(decoder_block_forward(params, x, skip, row_tile=6))
    assert jnp.allclose(out6, ref, atol=2e-2, rtol=2e-2), \
        float(jnp.max(jnp.abs(out6 - ref)))

    print("KERNEL_OK")
</pallas_src>

<mosaic_0001>
module attributes {stable_mosaic.version = 11 : i64} {
  func.func @_decoder_block_kernel(%arg0: i32, %arg1: i32, %arg2: memref<1x8x8x4xf32, #tpu.memory_space<vmem>>, %arg3: memref<1x1x8x4xf32, #tpu.memory_space<vmem>>, %arg4: memref<1x1x8x4xf32, #tpu.memory_space<vmem>>, %arg5: memref<1x16x16x4xf32, #tpu.memory_space<vmem>>, %arg6: memref<1x2x16x4xf32, #tpu.memory_space<vmem>>, %arg7: memref<1x2x16x4xf32, #tpu.memory_space<vmem>>, %arg8: memref<9x8x8xbf16, #tpu.memory_space<vmem>>, %arg9: memref<1x8xf32, #tpu.memory_space<vmem>>, %arg10: memref<9x8x8xbf16, #tpu.memory_space<vmem>>, %arg11: memref<1x8xf32, #tpu.memory_space<vmem>>, %arg12: memref<1x16x16x8xf32, #tpu.memory_space<vmem>>, %arg13: memref<21x24x8xbf16, #tpu.memory_space<vmem>>, %arg14: memref<19x24x8xbf16, #tpu.memory_space<vmem>>) attributes {dimension_semantics = [#tpu.dimension_semantics<parallel>, #tpu.dimension_semantics<parallel>], iteration_bounds = array<i64: 2, 1>, scalar_prefetch = 0 : i64, scratch_operands = 2 : i64, tpu.core_type = #tpu.core_type<tc>, window_params = [{transform_indices = @transform_0, window_bounds = array<i64: 1, 8, 8, 4>}, {transform_indices = @transform_1, window_bounds = array<i64: 1, 1, 8, 4>}, {transform_indices = @transform_2, window_bounds = array<i64: 1, 1, 8, 4>}, {transform_indices = @transform_3, window_bounds = array<i64: 1, 16, 16, 4>}, {transform_indices = @transform_4, window_bounds = array<i64: 1, 2, 16, 4>}, {transform_indices = @transform_5, window_bounds = array<i64: 1, 2, 16, 4>}, {pipeline_mode = #tpu.pipeline_mode<synchronous>, transform_indices = @transform_6, window_bounds = array<i64: 9, 8, 8>}, {pipeline_mode = #tpu.pipeline_mode<synchronous>, transform_indices = @transform_7, window_bounds = array<i64: 1, 8>}, {pipeline_mode = #tpu.pipeline_mode<synchronous>, transform_indices = @transform_8, window_bounds = array<i64: 9, 8, 8>}, {pipeline_mode = #tpu.pipeline_mode<synchronous>, transform_indices = @transform_9, window_bounds = array<i64: 1, 8>}, {transform_indices = @transform_10, window_bounds = array<i64: 1, 16, 16, 8>}]} {
    %cst = arith.constant 0.000000e+00 : bf16
    %0 = vector.broadcast %cst : bf16 to vector<21x1x8xbf16>
    %c0 = arith.constant 0 : index
    %c0_0 = arith.constant 0 : index
    %c0_1 = arith.constant 0 : index
    %1 = vector.load %arg13[%c0, %c0_0, %c0_1] : memref<21x24x8xbf16, #tpu.memory_space<vmem>>, vector<21x1x8xbf16>
    tpu.vector_store %arg13[%c0, %c0_0, %c0_1], %0 {strides = array<i32>} : memref<21x24x8xbf16, #tpu.memory_space<vmem>>, vector<21x1x8xbf16>,
    %cst_2 = arith.constant 0.000000e+00 : bf16
    %2 = vector.broadcast %cst_2 : bf16 to vector<21x7x8xbf16>
    %c0_3 = arith.constant 0 : index
    %c17 = arith.constant 17 : index
    %c0_4 = arith.constant 0 : index
    %3 = vector.load %arg13[%c0_3, %c17, %c0_4] : memref<21x24x8xbf16, #tpu.memory_space<vmem>>, vector<21x7x8xbf16>
    tpu.vector_store %arg13[%c0_3, %c17, %c0_4], %2 {strides = array<i32>} : memref<21x24x8xbf16, #tpu.memory_space<vmem>>, vector<21x7x8xbf16>,
    %cst_5 = arith.constant 0.000000e+00 : bf16
    %4 = vector.broadcast %cst_5 : bf16 to vector<1x16x8xbf16>
    %c20 = arith.constant 20 : index
    %c1 = arith.constant 1 : index
    %c0_6 = arith.constant 0 : index
    %5 = vector.load %arg13[%c20, %c1, %c0_6] : memref<21x24x8xbf16, #tpu.memory_space<vmem>>, vector<1x16x8xbf16>
    tpu.vector_store %arg13[%c20, %c1, %c0_6], %4 {strides = array<i32>} : memref<21x24x8xbf16, #tpu.memory_space<vmem>>, vector<1x16x8xbf16>,
    %cst_7 = arith.constant 0.000000e+00 : bf16
    %6 = vector.broadcast %cst_7 : bf16 to vector<19x1x8xbf16>
    %c0_8 = arith.constant 0 : index
    %c0_9 = arith.constant 0 : index
    %c0_10 = arith.constant 0 : index
    %7 = vector.load %arg14[%c0_8, %c0_9, %c0_10] : memref<19x24x8xbf16, #tpu.memory_space<vmem>>, vector<19x1x8xbf16>
    tpu.vector_store %arg14[%c0_8, %c0_9, %c0_10], %6 {strides = array<i32>} : memref<19x24x8xbf16, #tpu.memory_space<vmem>>, vector<19x1x8xbf16>,
    %cst_11 = arith.constant 0.000000e+00 : bf16
    %8 = vector.broadcast %cst_11 : bf16 to vector<19x7x8xbf16>
    %c0_12 = arith.constant 0 : index
    %c17_13 = arith.constant 17 : index
    %c0_14 = arith.constant 0 : index
    %9 = vector.load %arg14[%c0_12, %c17_13, %c0_14] : memref<19x24x8xbf16, #tpu.memory_space<vmem>>, vector<19x7x8xbf16>
    tpu.vector_store %arg14[%c0_12, %c17_13, %c0_14], %8 {strides = array<i32>} : memref<19x24x8xbf16, #tpu.memory_space<vmem>>, vector<19x7x8xbf16>,
    %cst_15 = arith.constant 0.000000e+00 : bf16
    %10 = vector.broadcast %cst_15 : bf16 to vector<1x16x8xbf16>
    %c18 = arith.constant 18 : index
    %c1_16 = arith.constant 1 : index
    %c0_17 = arith.constant 0 : index
    %11 = vector.load %arg14[%c18, %c1_16, %c0_17] : memref<19x24x8xbf16, #tpu.memory_space<vmem>>, vector<1x16x8xbf16>
    tpu.vector_store %arg14[%c18, %c1_16, %c0_17], %10 {strides = array<i32>} : memref<19x24x8xbf16, #tpu.memory_space<vmem>>, vector<1x16x8xbf16>,
    %c0_18 = arith.constant 0 : index
    %c0_19 = arith.constant 0 : index
    %c0_20 = arith.constant 0 : index
    %c0_21 = arith.constant 0 : index
    %12 = vector.load %arg2[%c0_18, %c0_19, %c0_20, %c0_21] : memref<1x8x8x4xf32, #tpu.memory_space<vmem>>, vector<1x8x8x4xf32>
    %13 = vector.shape_cast %12 : vector<1x8x8x4xf32> to vector<8x8x4xf32>
    %14 = arith.truncf %13 : vector<8x8x4xf32> to vector<8x8x4xbf16>
    %15 = vector.shape_cast %14 : vector<8x8x4xbf16> to vector<8x1x8x1x4xbf16>
    %16 = vector.shape_cast %15 : vector<8x1x8x1x4xbf16> to vector<8x1x8x1x4xbf16>
    %17 = vector.broadcast %16 : vector<8x1x8x1x4xbf16> to vector<8x2x8x2x4xbf16>
    %18 = vector.shape_cast %17 : vector<8x2x8x2x4xbf16> to vector<16x16x4xbf16>
    %c2 = arith.constant 2 : index
    %c1_22 = arith.constant 1 : index
    %c0_23 = arith.constant 0 : index
    %19 = vector.load %arg13[%c2, %c1_22, %c0_23] : memref<21x24x8xbf16, #tpu.memory_space<vmem>>, vector<16x16x4xbf16>
    tpu.vector_store %arg13[%c2, %c1_22, %c0_23], %18 {strides = array<i32>} : memref<21x24x8xbf16, #tpu.memory_space<vmem>>, vector<16x16x4xbf16>,
    %c0_24 = arith.constant 0 : index
    %c0_25 = arith.constant 0 : index
    %c0_26 = arith.constant 0 : index
    %c0_27 = arith.constant 0 : index
    %20 = vector.load %arg5[%c0_24, %c0_25, %c0_26, %c0_27] : memref<1x16x16x4xf32, #tpu.memory_space<vmem>>, vector<1x16x16x4xf32>
    %21 = vector.shape_cast %20 : vector<1x16x16x4xf32> to vector<16x16x4xf32>
    %22 = arith.truncf %21 : vector<16x16x4xf32> to vector<16x16x4xbf16>
    %c2_28 = arith.constant 2 : index
    %c1_29 = arith.constant 1 : index
    %c4 = arith.constant 4 : index
    %23 = vector.load %arg13[%c2_28, %c1_29, %c4] : memref<21x24x8xbf16, #tpu.memory_space<vmem>>, vector<16x16x4xbf16>
    tpu.vector_store %arg13[%c2_28, %c1_29, %c4], %22 {strides = array<i32>} : memref<21x24x8xbf16, #tpu.memory_space<vmem>>, vector<16x16x4xbf16>,
    %c0_i32 = arith.constant 0 : i32
    %24 = arith.cmpi sgt, %arg1, %c0_i32 : i32
    %25 = arith.extui %24 : i1 to i32
    %c0_i32_30 = arith.constant 0 : i32
    %26 = arith.cmpi ne, %25, %c0_i32_30 : i32
    scf.if %26 {
      %c0_84 = arith.constant 0 : index
      %c0_85 = arith.constant 0 : index
      %c0_86 = arith.constant 0 : index
      %c0_87 = arith.constant 0 : index
      %159 = vector.load %arg3[%c0_84, %c0_85, %c0_86, %c0_87] : memref<1x1x8x4xf32, #tpu.memory_space<vmem>>, vector<1x1x8x4xf32>
      %160 = vector.shape_cast %159 : vector<1x1x8x4xf32> to vector<8x4xf32>
      %161 = arith.truncf %160 : vector<8x4xf32> to vector<8x4xbf16>
      %162 = vector.shape_cast %161 : vector<8x4xbf16> to vector<1x8x1x4xbf16>
      %163 = vector.shape_cast %162 : vector<1x8x1x4xbf16> to vector<1x8x1x4xbf16>
      %164 = vector.broadcast %163 : vector<1x8x1x4xbf16> to vector<2x8x2x4xbf16>
      %165 = vector.shape_cast %164 : vector<2x8x2x4xbf16> to vector<2x16x4xbf16>
      %c0_88 = arith.constant 0 : index
      %c1_89 = arith.constant 1 : index
      %c0_90 = arith.constant 0 : index
      %166 = vector.load %arg13[%c0_88, %c1_89, %c0_90] : memref<21x24x8xbf16, #tpu.memory_space<vmem>>, vector<2x16x4xbf16>
      tpu.vector_store %arg13[%c0_88, %c1_89, %c0_90], %165 {strides = array<i32>} : memref<21x24x8xbf16, #tpu.memory_space<vmem>>, vector<2x16x4xbf16>,
      %c0_91 = arith.constant 0 : index
      %c0_92 = arith.constant 0 : index
      %c0_93 = arith.constant 0 : index
      %c0_94 = arith.constant 0 : index
      %167 = vector.load %arg6[%c0_91, %c0_92, %c0_93, %c0_94] : memref<1x2x16x4xf32, #tpu.memory_space<vmem>>, vector<1x2x16x4xf32>
      %168 = vector.shape_cast %167 : vector<1x2x16x4xf32> to vector<2x16x4xf32>
      %169 = arith.truncf %168 : vector<2x16x4xf32> to vector<2x16x4xbf16>
      %c0_95 = arith.constant 0 : index
      %c1_96 = arith.constant 1 : index
      %c4_97 = arith.constant 4 : index
      %170 = vector.load %arg13[%c0_95, %c1_96, %c4_97] : memref<21x24x8xbf16, #tpu.memory_space<vmem>>, vector<2x16x4xbf16>
      tpu.vector_store %arg13[%c0_95, %c1_96, %c4_97], %169 {strides = array<i32>} : memref<21x24x8xbf16, #tpu.memory_space<vmem>>, vector<2x16x4xbf16>,
    } else {
    }
    %c0_i32_31 = arith.constant 0 : i32
    %27 = arith.cmpi eq, %arg1, %c0_i32_31 : i32
    %28 = arith.extui %27 : i1 to i32
    %c0_i32_32 = arith.constant 0 : i32
    %29 = arith.cmpi ne, %28, %c0_i32_32 : i32
    scf.if %29 {
      %cst_84 = arith.constant 0.000000e+00 : bf16
      %159 = vector.broadcast %cst_84 : bf16 to vector<2x16x8xbf16>
      %c0_85 = arith.constant 0 : index
      %c1_86 = arith.constant 1 : index
      %c0_87 = arith.constant 0 : index
      %160 = vector.load %arg13[%c0_85, %c1_86, %c0_87] : memref<21x24x8xbf16, #tpu.memory_space<vmem>>, vector<2x16x8xbf16>
      tpu.vector_store %arg13[%c0_85, %c1_86, %c0_87], %159 {strides = array<i32>} : memref<21x24x8xbf16, #tpu.memory_space<vmem>>, vector<2x16x8xbf16>,
    } else {
    }
    %c0_i32_33 = arith.constant 0 : i32
    %30 = arith.cmpi slt, %arg1, %c0_i32_33 : i32
    %31 = arith.extui %30 : i1 to i32
    %c0_i32_34 = arith.constant 0 : i32
    %32 = arith.cmpi ne, %31, %c0_i32_34 : i32
    scf.if %32 {
      %c0_84 = arith.constant 0 : index
      %c0_85 = arith.constant 0 : index
      %c0_86 = arith.constant 0 : index
      %c0_87 = arith.constant 0 : index
      %159 = vector.load %arg4[%c0_84, %c0_85, %c0_86, %c0_87] : memref<1x1x8x4xf32, #tpu.memory_space<vmem>>, vector<1x1x8x4xf32>
      %160 = vector.shape_cast %159 : vector<1x1x8x4xf32> to vector<8x4xf32>
      %161 = arith.truncf %160 : vector<8x4xf32> to vector<8x4xbf16>
      %162 = vector.shape_cast %161 : vector<8x4xbf16> to vector<1x8x1x4xbf16>
      %163 = vector.shape_cast %162 : vector<1x8x1x4xbf16> to vector<1x8x1x4xbf16>
      %164 = vector.broadcast %163 : vector<1x8x1x4xbf16> to vector<2x8x2x4xbf16>
      %165 = vector.shape_cast %164 : vector<2x8x2x4xbf16> to vector<2x16x4xbf16>
      %c18_88 = arith.constant 18 : index
      %c1_89 = arith.constant 1 : index
      %c0_90 = arith.constant 0 : index
      %166 = vector.load %arg13[%c18_88, %c1_89, %c0_90] : memref<21x24x8xbf16, #tpu.memory_space<vmem>>, vector<2x16x4xbf16>
      tpu.vector_store %arg13[%c18_88, %c1_89, %c0_90], %165 {strides = array<i32>} : memref<21x24x8xbf16, #tpu.memory_space<vmem>>, vector<2x16x4xbf16>,
      %c0_91 = arith.constant 0 : index
      %c0_92 = arith.constant 0 : index
      %c0_93 = arith.constant 0 : index
      %c0_94 = arith.constant 0 : index
      %167 = vector.load %arg7[%c0_91, %c0_92, %c0_93, %c0_94] : memref<1x2x16x4xf32, #tpu.memory_space<vmem>>, vector<1x2x16x4xf32>
      %168 = vector.shape_cast %167 : vector<1x2x16x4xf32> to vector<2x16x4xf32>
      %169 = arith.truncf %168 : vector<2x16x4xf32> to vector<2x16x4xbf16>
      %c18_95 = arith.constant 18 : index
      %c1_96 = arith.constant 1 : index
      %c4_97 = arith.constant 4 : index
      %170 = vector.load %arg13[%c18_95, %c1_96, %c4_97] : memref<21x24x8xbf16, #tpu.memory_space<vmem>>, vector<2x16x4xbf16>
      tpu.vector_store %arg13[%c18_95, %c1_96, %c4_97], %169 {strides = array<i32>} : memref<21x24x8xbf16, #tpu.memory_space<vmem>>, vector<2x16x4xbf16>,
    } else {
    }
    %c0_i32_35 = arith.constant 0 : i32
    %33 = arith.cmpi eq, %arg1, %c0_i32_35 : i32
    %34 = arith.extui %33 : i1 to i32
    %c0_i32_36 = arith.constant 0 : i32
    %35 = arith.cmpi ne, %34, %c0_i32_36 : i32
    scf.if %35 {
      %cst_84 = arith.constant 0.000000e+00 : bf16
      %159 = vector.broadcast %cst_84 : bf16 to vector<2x16x8xbf16>
      %c18_85 = arith.constant 18 : index
      %c1_86 = arith.constant 1 : index
      %c0_87 = arith.constant 0 : index
      %160 = vector.load %arg13[%c18_85, %c1_86, %c0_87] : memref<21x24x8xbf16, #tpu.memory_space<vmem>>, vector<2x16x8xbf16>
      tpu.vector_store %arg13[%c18_85, %c1_86, %c0_87], %159 {strides = array<i32>} : memref<21x24x8xbf16, #tpu.memory_space<vmem>>, vector<2x16x8xbf16>,
    } else {
    }
    %c0_37 = arith.constant 0 : index
    %c0_38 = arith.constant 0 : index
    %c0_39 = arith.constant 0 : index
    %36 = vector.load %arg13[%c0_37, %c0_38, %c0_39] : memref<21x24x8xbf16, #tpu.memory_space<vmem>>, vector<21x24x8xbf16>
    %37 = vector.shape_cast %36 : vector<21x24x8xbf16> to vector<504x8xbf16>
    %c0_40 = arith.constant 0 : index
    %c0_41 = arith.constant 0 : index
    %c0_42 = arith.constant 0 : index
    %38 = vector.load %arg8[%c0_40, %c0_41, %c0_42] : memref<9x8x8xbf16, #tpu.memory_space<vmem>>, vector<9x8x8xbf16>
    %39 = vector.extract_strided_slice %37 {offsets = [0, 0], sizes = [432, 8], strides = [1, 1]} : vector<504x8xbf16> to vector<432x8xbf16>
    %40 = vector.extract_strided_slice %38 {offsets = [0, 0, 0], sizes = [1, 8, 8], strides = [1, 1, 1]} : vector<9x8x8xbf16> to vector<1x8x8xbf16>
    %41 = vector.shape_cast %40 : vector<1x8x8xbf16> to vector<8x8xbf16>
    %cst_43 = arith.constant dense<0.000000e+00> : vector<432x8xf32>
    %42 = tpu.matmul %39, %41, %cst_43 {dimension_numbers = #tpu.dot_dimension_numbers<[1], [0], [0], [1], [0, 0, 1, 1], [], []>} : vector<432x8xbf16>, vector<8x8xbf16>, vector<432x8xf32> -> vector<432x8xf32>
    %43 = vector.extract_strided_slice %37 {offsets = [24, 0], sizes = [432, 8], strides = [1, 1]} : vector<504x8xbf16> to vector<432x8xbf16>
    %44 = vector.extract_strided_slice %38 {offsets = [3, 0, 0], sizes = [1, 8, 8], strides = [1, 1, 1]} : vector<9x8x8xbf16> to vector<1x8x8xbf16>
    %45 = vector.shape_cast %44 : vector<1x8x8xbf16> to vector<8x8xbf16>
    %cst_44 = arith.constant dense<0.000000e+00> : vector<432x8xf32>
    %46 = tpu.matmul %43, %45, %cst_44 {dimension_numbers = #tpu.dot_dimension_numbers<[1], [0], [0], [1], [0, 0, 1, 1], [], []>} : vector<432x8xbf16>, vector<8x8xbf16>, vector<432x8xf32> -> vector<432x8xf32>
    %47 = arith.addf %42, %46 : vector<432x8xf32>
    %48 = vector.extract_strided_slice %37 {offsets = [48, 0], sizes = [432, 8], strides = [1, 1]} : vector<504x8xbf16> to vector<432x8xbf16>
    %49 = vector.extract_strided_slice %38 {offsets = [6, 0, 0], sizes = [1, 8, 8], strides = [1, 1, 1]} : vector<9x8x8xbf16> to vector<1x8x8xbf16>
    %50 = vector.shape_cast %49 : vector<1x8x8xbf16> to vector<8x8xbf16>
    %cst_45 = arith.constant dense<0.000000e+00> : vector<432x8xf32>
    %51 = tpu.matmul %48, %50, %cst_45 {dimension_numbers = #tpu.dot_dimension_numbers<[1], [0], [0], [1], [0, 0, 1, 1], [], []>} : vector<432x8xbf16>, vector<8x8xbf16>, vector<432x8xf32> -> vector<432x8xf32>
    %52 = arith.addf %47, %51 : vector<432x8xf32>
    %53 = vector.extract_strided_slice %37 {offsets = [1, 0], sizes = [432, 8], strides = [1, 1]} : vector<504x8xbf16> to vector<432x8xbf16>
    %54 = vector.extract_strided_slice %38 {offsets = [1, 0, 0], sizes = [1, 8, 8], strides = [1, 1, 1]} : vector<9x8x8xbf16> to vector<1x8x8xbf16>
    %55 = vector.shape_cast %54 : vector<1x8x8xbf16> to vector<8x8xbf16>
    %cst_46 = arith.constant dense<0.000000e+00> : vector<432x8xf32>
    %56 = tpu.matmul %53, %55, %cst_46 {dimension_numbers = #tpu.dot_dimension_numbers<[1], [0], [0], [1], [0, 0, 1, 1], [], []>} : vector<432x8xbf16>, vector<8x8xbf16>, vector<432x8xf32> -> vector<432x8xf32>
    %57 = vector.extract_strided_slice %37 {offsets = [25, 0], sizes = [432, 8], strides = [1, 1]} : vector<504x8xbf16> to vector<432x8xbf16>
    %58 = vector.extract_strided_slice %38 {offsets = [4, 0, 0], sizes = [1, 8, 8], strides = [1, 1, 1]} : vector<9x8x8xbf16> to vector<1x8x8xbf16>
    %59 = vector.shape_cast %58 : vector<1x8x8xbf16> to vector<8x8xbf16>
    %cst_47 = arith.constant dense<0.000000e+00> : vector<432x8xf32>
    %60 = tpu.matmul %57, %59, %cst_47 {dimension_numbers = #tpu.dot_dimension_numbers<[1], [0], [0], [1], [0, 0, 1, 1], [], []>} : vector<432x8xbf16>, vector<8x8xbf16>, vector<432x8xf32> -> vector<432x8xf32>
    %61 = arith.addf %56, %60 : vector<432x8xf32>
    %62 = vector.extract_strided_slice %37 {offsets = [49, 0], sizes = [432, 8], strides = [1, 1]} : vector<504x8xbf16> to vector<432x8xbf16>
    %63 = vector.extract_strided_slice %38 {offsets = [7, 0, 0], sizes = [1, 8, 8], strides = [1, 1, 1]} : vector<9x8x8xbf16> to vector<1x8x8xbf16>
    %64 = vector.shape_cast %63 : vector<1x8x8xbf16> to vector<8x8xbf16>
    %cst_48 = arith.constant dense<0.000000e+00> : vector<432x8xf32>
    %65 = tpu.matmul %62, %64, %cst_48 {dimension_numbers = #tpu.dot_dimension_numbers<[1], [0], [0], [1], [0, 0, 1, 1], [], []>} : vector<432x8xbf16>, vector<8x8xbf16>, vector<432x8xf32> -> vector<432x8xf32>
    %66 = arith.addf %61, %65 : vector<432x8xf32>
    %67 = vector.extract_strided_slice %37 {offsets = [2, 0], sizes = [432, 8], strides = [1, 1]} : vector<504x8xbf16> to vector<432x8xbf16>
    %68 = vector.extract_strided_slice %38 {offsets = [2, 0, 0], sizes = [1, 8, 8], strides = [1, 1, 1]} : vector<9x8x8xbf16> to vector<1x8x8xbf16>
    %69 = vector.shape_cast %68 : vector<1x8x8xbf16> to vector<8x8xbf16>
    %cst_49 = arith.constant dense<0.000000e+00> : vector<432x8xf32>
    %70 = tpu.matmul %67, %69, %cst_49 {dimension_numbers = #tpu.dot_dimension_numbers<[1], [0], [0], [1], [0, 0, 1, 1], [], []>} : vector<432x8xbf16>, vector<8x8xbf16>, vector<432x8xf32> -> vector<432x8xf32>
    %71 = vector.extract_strided_slice %37 {offsets = [26, 0], sizes = [432, 8], strides = [1, 1]} : vector<504x8xbf16> to vector<432x8xbf16>
    %72 = vector.extract_strided_slice %38 {offsets = [5, 0, 0], sizes = [1, 8, 8], strides = [1, 1, 1]} : vector<9x8x8xbf16> to vector<1x8x8xbf16>
    %73 = vector.shape_cast %72 : vector<1x8x8xbf16> to vector<8x8xbf16>
    %cst_50 = arith.constant dense<0.000000e+00> : vector<432x8xf32>
    %74 = tpu.matmul %71, %73, %cst_50 {dimension_numbers = #tpu.dot_dimension_numbers<[1], [0], [0], [1], [0, 0, 1, 1], [], []>} : vector<432x8xbf16>, vector<8x8xbf16>, vector<432x8xf32> -> vector<432x8xf32>
    %75 = arith.addf %70, %74 : vector<432x8xf32>
    %76 = vector.extract_strided_slice %37 {offsets = [50, 0], sizes = [432, 8], strides = [1, 1]} : vector<504x8xbf16> to vector<432x8xbf16>
    %77 = vector.extract_strided_slice %38 {offsets = [8, 0, 0], sizes = [1, 8, 8], strides = [1, 1, 1]} : vector<9x8x8xbf16> to vector<1x8x8xbf16>
    %78 = vector.shape_cast %77 : vector<1x8x8xbf16> to vector<8x8xbf16>
    %cst_51 = arith.constant dense<0.000000e+00> : vector<432x8xf32>
    %79 = tpu.matmul %76, %78, %cst_51 {dimension_numbers = #tpu.dot_dimension_numbers<[1], [0], [0], [1], [0, 0, 1, 1], [], []>} : vector<432x8xbf16>, vector<8x8xbf16>, vector<432x8xf32> -> vector<432x8xf32>
    %80 = arith.addf %75, %79 : vector<432x8xf32>
    %81 = arith.addf %52, %66 : vector<432x8xf32>
    %82 = arith.addf %81, %80 : vector<432x8xf32>
    %c0_52 = arith.constant 0 : index
    %c0_53 = arith.constant 0 : index
    %83 = vector.load %arg9[%c0_52, %c0_53] : memref<1x8xf32, #tpu.memory_space<vmem>>, vector<1x8xf32>
    %84 = vector.shape_cast %83 : vector<1x8xf32> to vector<8xf32>
    %85 = vector.shape_cast %84 : vector<8xf32> to vector<1x8xf32>
    %86 = vector.broadcast %85 : vector<1x8xf32> to vector<432x8xf32>
    %87 = arith.addf %82, %86 : vector<432x8xf32>
    %cst_54 = arith.constant 0.000000e+00 : f32
    %88 = vector.broadcast %cst_54 : f32 to vector<432x8xf32>
    %89 = arith.maximumf %87, %88 : vector<432x8xf32>
    %90 = vector.shape_cast %89 : vector<432x8xf32> to vector<18x24x8xf32>
    %91 = vector.extract_strided_slice %90 {offsets = [0, 0, 0], sizes = [18, 16, 8], strides = [1, 1, 1]} : vector<18x24x8xf32> to vector<18x16x8xf32>
    %92 = arith.truncf %91 : vector<18x16x8xf32> to vector<18x16x8xbf16>
    %c0_55 = arith.constant 0 : index
    %c1_56 = arith.constant 1 : index
    %c0_57 = arith.constant 0 : index
    %93 = vector.load %arg14[%c0_55, %c1_56, %c0_57] : memref<19x24x8xbf16, #tpu.memory_space<vmem>>, vector<18x16x8xbf16>
    tpu.vector_store %arg14[%c0_55, %c1_56, %c0_57], %92 {strides = array<i32>} : memref<19x24x8xbf16, #tpu.memory_space<vmem>>, vector<18x16x8xbf16>,
    %c0_i32_58 = arith.constant 0 : i32
    %94 = arith.cmpi eq, %arg1, %c0_i32_58 : i32
    %95 = arith.extui %94 : i1 to i32
    %c0_i32_59 = arith.constant 0 : i32
    %96 = arith.cmpi ne, %95, %c0_i32_59 : i32
    scf.if %96 {
      %cst_84 = arith.constant 0.000000e+00 : bf16
      %159 = vector.broadcast %cst_84 : bf16 to vector<1x24x8xbf16>
      %c0_85 = arith.constant 0 : index
      %c0_86 = arith.constant 0 : index
      %c0_87 = arith.constant 0 : index
      %160 = vector.load %arg14[%c0_85, %c0_86, %c0_87] : memref<19x24x8xbf16, #tpu.memory_space<vmem>>, vector<1x24x8xbf16>
      tpu.vector_store %arg14[%c0_85, %c0_86, %c0_87], %159 {strides = array<i32>} : memref<19x24x8xbf16, #tpu.memory_space<vmem>>, vector<1x24x8xbf16>,
    } else {
    }
    %c0_i32_60 = arith.constant 0 : i32
    %97 = arith.cmpi eq, %arg1, %c0_i32_60 : i32
    %98 = arith.extui %97 : i1 to i32
    %c0_i32_61 = arith.constant 0 : i32
    %99 = arith.cmpi ne, %98, %c0_i32_61 : i32
    scf.if %99 {
      %cst_84 = arith.constant 0.000000e+00 : bf16
      %159 = vector.broadcast %cst_84 : bf16 to vector<1x24x8xbf16>
      %c17_85 = arith.constant 17 : index
      %c0_86 = arith.constant 0 : index
      %c0_87 = arith.constant 0 : index
      %160 = vector.load %arg14[%c17_85, %c0_86, %c0_87] : memref<19x24x8xbf16, #tpu.memory_space<vmem>>, vector<1x24x8xbf16>
      tpu.vector_store %arg14[%c17_85, %c0_86, %c0_87], %159 {strides = array<i32>} : memref<19x24x8xbf16, #tpu.memory_space<vmem>>, vector<1x24x8xbf16>,
    } else {
    }
    %c0_62 = arith.constant 0 : index
    %c0_63 = arith.constant 0 : index
    %c0_64 = arith.constant 0 : index
    %100 = vector.load %arg14[%c0_62, %c0_63, %c0_64] : memref<19x24x8xbf16, #tpu.memory_space<vmem>>, vector<19x24x8xbf16>
    %101 = vector.shape_cast %100 : vector<19x24x8xbf16> to vector<456x8xbf16>
    %c0_65 = arith.constant 0 : index
    %c0_66 = arith.constant 0 : index
    %c0_67 = arith.constant 0 : index
    %102 = vector.load %arg10[%c0_65, %c0_66, %c0_67] : memref<9x8x8xbf16, #tpu.memory_space<vmem>>, vector<9x8x8xbf16>
    %103 = vector.extract_strided_slice %101 {offsets = [0, 0], sizes = [384, 8], strides = [1, 1]} : vector<456x8xbf16> to vector<384x8xbf16>
    %104 = vector.extract_strided_slice %102 {offsets = [0, 0, 0], sizes = [1, 8, 8], strides = [1, 1, 1]} : vector<9x8x8xbf16> to vector<1x8x8xbf16>
    %105 = vector.shape_cast %104 : vector<1x8x8xbf16> to vector<8x8xbf16>
    %cst_68 = arith.constant dense<0.000000e+00> : vector<384x8xf32>
    %106 = tpu.matmul %103, %105, %cst_68 {dimension_numbers = #tpu.dot_dimension_numbers<[1], [0], [0], [1], [0, 0, 1, 1], [], []>} : vector<384x8xbf16>, vector<8x8xbf16>, vector<384x8xf32> -> vector<384x8xf32>
    %107 = vector.extract_strided_slice %101 {offsets = [24, 0], sizes = [384, 8], strides = [1, 1]} : vector<456x8xbf16> to vector<384x8xbf16>
    %108 = vector.extract_strided_slice %102 {offsets = [3, 0, 0], sizes = [1, 8, 8], strides = [1, 1, 1]} : vector<9x8x8xbf16> to vector<1x8x8xbf16>
    %109 = vector.shape_cast %108 : vector<1x8x8xbf16> to vector<8x8xbf16>
    %cst_69 = arith.constant dense<0.000000e+00> : vector<384x8xf32>
    %110 = tpu.matmul %107, %109, %cst_69 {dimension_numbers = #tpu.dot_dimension_numbers<[1], [0], [0], [1], [0, 0, 1, 1], [], []>} : vector<384x8xbf16>, vector<8x8xbf16>, vector<384x8xf32> -> vector<384x8xf32>
    %111 = arith.addf %106, %110 : vector<384x8xf32>
    %112 = vector.extract_strided_slice %101 {offsets = [48, 0], sizes = [384, 8], strides = [1, 1]} : vector<456x8xbf16> to vector<384x8xbf16>
    %113 = vector.extract_strided_slice %102 {offsets = [6, 0, 0], sizes = [1, 8, 8], strides = [1, 1, 1]} : vector<9x8x8xbf16> to vector<1x8x8xbf16>
    %114 = vector.shape_cast %113 : vector<1x8x8xbf16> to vector<8x8xbf16>
    %cst_70 = arith.constant dense<0.000000e+00> : vector<384x8xf32>
    %115 = tpu.matmul %112, %114, %cst_70 {dimension_numbers = #tpu.dot_dimension_numbers<[1], [0], [0], [1], [0, 0, 1, 1], [], []>} : vector<384x8xbf16>, vector<8x8xbf16>, vector<384x8xf32> -> vector<384x8xf32>
    %116 = arith.addf %111, %115 : vector<384x8xf32>
    %117 = vector.extract_strided_slice %101 {offsets = [1, 0], sizes = [384, 8], strides = [1, 1]} : vector<456x8xbf16> to vector<384x8xbf16>
    %118 = vector.extract_strided_slice %102 {offsets = [1, 0, 0], sizes = [1, 8, 8], strides = [1, 1, 1]} : vector<9x8x8xbf16> to vector<1x8x8xbf16>
    %119 = vector.shape_cast %118 : vector<1x8x8xbf16> to vector<8x8xbf16>
    %cst_71 = arith.constant dense<0.000000e+00> : vector<384x8xf32>
    %120 = tpu.matmul %117, %119, %cst_71 {dimension_numbers = #tpu.dot_dimension_numbers<[1], [0], [0], [1], [0, 0, 1, 1], [], []>} : vector<384x8xbf16>, vector<8x8xbf16>, vector<384x8xf32> -> vector<384x8xf32>
    %121 = vector.extract_strided_slice %101 {offsets = [25, 0], sizes = [384, 8], strides = [1, 1]} : vector<456x8xbf16> to vector<384x8xbf16>
    %122 = vector.extract_strided_slice %102 {offsets = [4, 0, 0], sizes = [1, 8, 8], strides = [1, 1, 1]} : vector<9x8x8xbf16> to vector<1x8x8xbf16>
    %123 = vector.shape_cast %122 : vector<1x8x8xbf16> to vector<8x8xbf16>
    %cst_72 = arith.constant dense<0.000000e+00> : vector<384x8xf32>
    %124 = tpu.matmul %121, %123, %cst_72 {dimension_numbers = #tpu.dot_dimension_numbers<[1], [0], [0], [1], [0, 0, 1, 1], [], []>} : vector<384x8xbf16>, vector<8x8xbf16>, vector<384x8xf32> -> vector<384x8xf32>
    %125 = arith.addf %120, %124 : vector<384x8xf32>
    %126 = vector.extract_strided_slice %101 {offsets = [49, 0], sizes = [384, 8], strides = [1, 1]} : vector<456x8xbf16> to vector<384x8xbf16>
    %127 = vector.extract_strided_slice %102 {offsets = [7, 0, 0], sizes = [1, 8, 8], strides = [1, 1, 1]} : vector<9x8x8xbf16> to vector<1x8x8xbf16>
    %128 = vector.shape_cast %127 : vector<1x8x8xbf16> to vector<8x8xbf16>
    %cst_73 = arith.constant dense<0.000000e+00> : vector<384x8xf32>
    %129 = tpu.matmul %126, %128, %cst_73 {dimension_numbers = #tpu.dot_dimension_numbers<[1], [0], [0], [1], [0, 0, 1, 1], [], []>} : vector<384x8xbf16>, vector<8x8xbf16>, vector<384x8xf32> -> vector<384x8xf32>
    %130 = arith.addf %125, %129 : vector<384x8xf32>
    %131 = vector.extract_strided_slice %101 {offsets = [2, 0], sizes = [384, 8], strides = [1, 1]} : vector<456x8xbf16> to vector<384x8xbf16>
    %132 = vector.extract_strided_slice %102 {offsets = [2, 0, 0], sizes = [1, 8, 8], strides = [1, 1, 1]} : vector<9x8x8xbf16> to vector<1x8x8xbf16>
    %133 = vector.shape_cast %132 : vector<1x8x8xbf16> to vector<8x8xbf16>
    %cst_74 = arith.constant dense<0.000000e+00> : vector<384x8xf32>
    %134 = tpu.matmul %131, %133, %cst_74 {dimension_numbers = #tpu.dot_dimension_numbers<[1], [0], [0], [1], [0, 0, 1, 1], [], []>} : vector<384x8xbf16>, vector<8x8xbf16>, vector<384x8xf32> -> vector<384x8xf32>
    %135 = vector.extract_strided_slice %101 {offsets = [26, 0], sizes = [384, 8], strides = [1, 1]} : vector<456x8xbf16> to vector<384x8xbf16>
    %136 = vector.extract_strided_slice %102 {offsets = [5, 0, 0], sizes = [1, 8, 8], strides = [1, 1, 1]} : vector<9x8x8xbf16> to vector<1x8x8xbf16>
    %137 = vector.shape_cast %136 : vector<1x8x8xbf16> to vector<8x8xbf16>
    %cst_75 = arith.constant dense<0.000000e+00> : vector<384x8xf32>
    %138 = tpu.matmul %135, %137, %cst_75 {dimension_numbers = #tpu.dot_dimension_numbers<[1], [0], [0], [1], [0, 0, 1, 1], [], []>} : vector<384x8xbf16>, vector<8x8xbf16>, vector<384x8xf32> -> vector<384x8xf32>
    %139 = arith.addf %134, %138 : vector<384x8xf32>
    %140 = vector.extract_strided_slice %101 {offsets = [50, 0], sizes = [384, 8], strides = [1, 1]} : vector<456x8xbf16> to vector<384x8xbf16>
    %141 = vector.extract_strided_slice %102 {offsets = [8, 0, 0], sizes = [1, 8, 8], strides = [1, 1, 1]} : vector<9x8x8xbf16> to vector<1x8x8xbf16>
    %142 = vector.shape_cast %141 : vector<1x8x8xbf16> to vector<8x8xbf16>
    %cst_76 = arith.constant dense<0.000000e+00> : vector<384x8xf32>
    %143 = tpu.matmul %140, %142, %cst_76 {dimension_numbers = #tpu.dot_dimension_numbers<[1], [0], [0], [1], [0, 0, 1, 1], [], []>} : vector<384x8xbf16>, vector<8x8xbf16>, vector<384x8xf32> -> vector<384x8xf32>
    %144 = arith.addf %139, %143 : vector<384x8xf32>
    %145 = arith.addf %116, %130 : vector<384x8xf32>
    %146 = arith.addf %145, %144 : vector<384x8xf32>
    %c0_77 = arith.constant 0 : index
    %c0_78 = arith.constant 0 : index
    %147 = vector.load %arg11[%c0_77, %c0_78] : memref<1x8xf32, #tpu.memory_space<vmem>>, vector<1x8xf32>
    %148 = vector.shape_cast %147 : vector<1x8xf32> to vector<8xf32>
    %149 = vector.shape_cast %148 : vector<8xf32> to vector<1x8xf32>
    %150 = vector.broadcast %149 : vector<1x8xf32> to vector<384x8xf32>
    %151 = arith.addf %146, %150 : vector<384x8xf32>
    %cst_79 = arith.constant 0.000000e+00 : f32
    %152 = vector.broadcast %cst_79 : f32 to vector<384x8xf32>
    %153 = arith.maximumf %151, %152 : vector<384x8xf32>
    %154 = vector.shape_cast %153 : vector<384x8xf32> to vector<16x24x8xf32>
    %155 = vector.extract_strided_slice %154 {offsets = [0, 0, 0], sizes = [16, 16, 8], strides = [1, 1, 1]} : vector<16x24x8xf32> to vector<16x16x8xf32>
    %c0_80 = arith.constant 0 : index
    %c0_81 = arith.constant 0 : index
    %c0_82 = arith.constant 0 : index
    %c0_83 = arith.constant 0 : index
    %156 = vector.load %arg12[%c0_80, %c0_81, %c0_82, %c0_83] : memref<1x16x16x8xf32, #tpu.memory_space<vmem>>, vector<1x16x16x8xf32>
    %157 = vector.shape_cast %156 : vector<1x16x16x8xf32> to vector<16x16x8xf32>
    %158 = vector.shape_cast %155 : vector<16x16x8xf32> to vector<1x16x16x8xf32>
    tpu.vector_store %arg12[%c0_80, %c0_81, %c0_82, %c0_83], %158 {strides = array<i32>} : memref<1x16x16x8xf32, #tpu.memory_space<vmem>>, vector<1x16x16x8xf32>,
    return
  }
  func.func @transform_0(%arg0: i32, %arg1: i32) -> (i32, i32, i32, i32) {
    %c0_i32 = arith.constant 0 : i32
    %c0_i32_0 = arith.constant 0 : i32
    %c0_i32_1 = arith.constant 0 : i32
    return %arg0, %arg1, %c0_i32, %c0_i32_0 : i32, i32, i32, i32
  }
  func.func @transform_1(%arg0: i32, %arg1: i32) -> (i32, i32, i32, i32) {
    %c8_i32 = arith.constant 8 : i32
    %0 = arith.muli %arg1, %c8_i32 : i32
    %c1_i32 = arith.constant 1 : i32
    %1 = arith.subi %0, %c1_i32 : i32
    %c0_i32 = arith.constant 0 : i32
    %2 = arith.maxsi %1, %c0_i32 : i32
    %c0_i32_0 = arith.constant 0 : i32
    %c0_i32_1 = arith.constant 0 : i32
    %c0_i32_2 = arith.constant 0 : i32
    return %arg0, %2, %c0_i32_0, %c0_i32_1 : i32, i32, i32, i32
  }
  func.func @transform_2(%arg0: i32, %arg1: i32) -> (i32, i32, i32, i32) {
    %c1_i32 = arith.constant 1 : i32
    %0 = arith.addi %arg1, %c1_i32 : i32
    %c8_i32 = arith.constant 8 : i32
    %1 = arith.muli %0, %c8_i32 : i32
    %c7_i32 = arith.constant 7 : i32
    %2 = arith.minsi %1, %c7_i32 : i32
    %c0_i32 = arith.constant 0 : i32
    %c0_i32_0 = arith.constant 0 : i32
    %c0_i32_1 = arith.constant 0 : i32
    return %arg0, %2, %c0_i32, %c0_i32_0 : i32, i32, i32, i32
  }
  func.func @transform_3(%arg0: i32, %arg1: i32) -> (i32, i32, i32, i32) {
    %c0_i32 = arith.constant 0 : i32
    %c0_i32_0 = arith.constant 0 : i32
    %c0_i32_1 = arith.constant 0 : i32
    return %arg0, %arg1, %c0_i32, %c0_i32_0 : i32, i32, i32, i32
  }
  func.func @transform_4(%arg0: i32, %arg1: i32) -> (i32, i32, i32, i32) {
    %c8_i32 = arith.constant 8 : i32
    %0 = arith.muli %arg1, %c8_i32 : i32
    %c1_i32 = arith.constant 1 : i32
    %1 = arith.subi %0, %c1_i32 : i32
    %c0_i32 = arith.constant 0 : i32
    %2 = arith.maxsi %1, %c0_i32 : i32
    %c0_i32_0 = arith.constant 0 : i32
    %c0_i32_1 = arith.constant 0 : i32
    %c0_i32_2 = arith.constant 0 : i32
    return %arg0, %2, %c0_i32_0, %c0_i32_1 : i32, i32, i32, i32
  }
  func.func @transform_5(%arg0: i32, %arg1: i32) -> (i32, i32, i32, i32) {
    %c1_i32 = arith.constant 1 : i32
    %0 = arith.addi %arg1, %c1_i32 : i32
    %c8_i32 = arith.constant 8 : i32
    %1 = arith.muli %0, %c8_i32 : i32
    %c7_i32 = arith.constant 7 : i32
    %2 = arith.minsi %1, %c7_i32 : i32
    %c0_i32 = arith.constant 0 : i32
    %c0_i32_0 = arith.constant 0 : i32
    %c0_i32_1 = arith.constant 0 : i32
    return %arg0, %2, %c0_i32, %c0_i32_0 : i32, i32, i32, i32
  }
  func.func @transform_6(%arg0: i32, %arg1: i32) -> (i32, i32, i32) {
    %c0_i32 = arith.constant 0 : i32
    %c0_i32_0 = arith.constant 0 : i32
    %c0_i32_1 = arith.constant 0 : i32
    %c0_i32_2 = arith.constant 0 : i32
    return %c0_i32, %c0_i32_0, %c0_i32_1 : i32, i32, i32
  }
  func.func @transform_7(%arg0: i32, %arg1: i32) -> (i32, i32) {
    %c0_i32 = arith.constant 0 : i32
    %c0_i32_0 = arith.constant 0 : i32
    %c0_i32_1 = arith.constant 0 : i32
    return %c0_i32, %c0_i32_0 : i32, i32
  }
  func.func @transform_8(%arg0: i32, %arg1: i32) -> (i32, i32, i32) {
    %c0_i32 = arith.constant 0 : i32
    %c0_i32_0 = arith.constant 0 : i32
    %c0_i32_1 = arith.constant 0 : i32
    %c0_i32_2 = arith.constant 0 : i32
    return %c0_i32, %c0_i32_0, %c0_i32_1 : i32, i32, i32
  }
  func.func @transform_9(%arg0: i32, %arg1: i32) -> (i32, i32) {
    %c0_i32 = arith.constant 0 : i32
    %c0_i32_0 = arith.constant 0 : i32
    %c0_i32_1 = arith.constant 0 : i32
    return %c0_i32, %c0_i32_0 : i32, i32
  }
  func.func @transform_10(%arg0: i32, %arg1: i32) -> (i32, i32, i32, i32) {
    %c0_i32 = arith.constant 0 : i32
    %c0_i32_0 = arith.constant 0 : i32
    %c0_i32_1 = arith.constant 0 : i32
    return %arg0, %arg1, %c0_i32, %c0_i32_0 : i32, i32, i32, i32
  }
}

</mosaic_0001>

<bundles_post_ra>
// kernel: decoder_block_forward.1
= control target key start
LH: loop header
LB: loop body
LE: loop exit
PB: predicated region body
PF: predicated region fallthrough
CT: control target
= control target key end

     0   :  { %s10532_s11 = smov 0   ;;  %s10534_s4 = smov 0   ;;  %s15597_s0 = inlined_call_operand.vmem [shape: f32[2,8,8,4], index: 0, kind: input, shape index: {}, may-alias: {0,1,2}]   ;;  %s15598_s1 = inlined_call_operand.vmem [shape: f32[2,8,8,4], index: 1, kind: input, shape index: {}, may-alias: {0,1,2}]   ;;  %s15599_s2 = inlined_call_operand.vmem [shape: f32[2,8,8,4], index: 2, kind: input, shape index: {}, may-alias: {0,1,2}]   ;;  %s15600_s3 = inlined_call_operand.vmem [shape: f32[2,16,16,4], index: 3, kind: input, shape index: {}, may-alias: {3,4,5}]   ;;  %s15601_s4 = inlined_call_operand.vmem [shape: f32[2,16,16,4], index: 4, kind: input, shape index: {}, may-alias: {3,4,5}]   ;;  %s15602_s5 = inlined_call_operand.vmem [shape: f32[2,16,16,4], index: 5, kind: input, shape index: {}, may-alias: {3,4,5}]   ;;  %s15603_s6 = inlined_call_operand.vmem [shape: bf16[9,8,8], index: 6, kind: input, shape index: {}]   ;;  %s15604_s7 = inlined_call_operand.vmem [shape: f32[1,8], index: 7, kind: input, shape index: {}]   ;;  %s15605_s8 = inlined_call_operand.vmem [shape: bf16[9,8,8], index: 8, kind: input, shape index: {}]   ;;  %s15606_s9 = inlined_call_operand.vmem [shape: f32[1,8], index: 9, kind: input, shape index: {}]   ;;  %s15607_s10 = inlined_call_operand.vmem [shape: f32[2,16,16,8], index: 10, kind: output, shape index: {}]  }
   0x1   :  { %s10536_s5 = smov 0  }
   0x2 LB: > { %s32_s12 = sadd.s32 1, %s10469_s4  ;;  %p9212_p0 = scmp.ge.s32.totalorder %s10473_s5, 1  ;;  %s10473_s5 = sphi %s10536_s5, %s20_s5   ;;  %s10469_s4 = sphi %s10534_s4, %s16436_s4   ;;  %s10465_s11 = sphi %s10532_s11, %s16435_s11  }
   0x3   : > { %p34_p1 = scmp.ge.s32.totalorder %s32_s12, 2  ;;  %p481_p2 = scmp.lt.s32.totalorder %s10473_s5, 3 }
   0x5   : > { %s16438_s12 = smov (%p34_p1, %s32_s12), 0  ;;  %p482_p3 = pnand %p9212_p0, %p481_p2 }
   0x7   : > { %485 = sbr.rel (%p482_p3) target bundleno = 2635 (0xa4b), region = 60 }
   0xc   : > { %p591_p4 = scmp.lt.s32.totalorder %s10465_s11, 1  ;;  %s10475_s21 = smov 4   ;;  %vm993_vm0 = vcmask 1041409   ;;  %vm997_vm1 = vcmask 1042434   ;;  %vm1001_vm2 = vcmask 1043459   ;;  %vm988_vm3 = vcmask 1040384  }
   0xd   : > { %vm694_vm4 = vsmask.f32 256  ;;  %vm1775_vm5 = vsmask.f32 4368  ;;  %vm693_vm7 = vcmask 57344   ;;  %vm15609_vm9 = vcmask 1043456  }
   0xe   : > { %s16440_s11 = smov (!%p591_p4, %s10465_s11), 1  ;;  %vm10637_vm6 = vmor %vm694_vm4, %vm1775_vm5  ;;  %vm15608_vm10 = vcmask 60416   ;;  %vm760_vm11 = vsmask.f32 7938  ;;  %vm3494_vm13 = vcmask 64512   ;;  %vm2066_vm14 = vcmask 27648  }
   0xf   : > { %s9748_s13 = sshll.u32 %s16440_s11, 8  ;;  %s9744_s17 = sshll.u32 %s16440_s11, 6  ;;  %vm10823_vm8 = vmand %vm693_vm7, %vm694_vm4  ;;  %vm2663_vm5 = vcmask 60448   ;;  %vm2073_vm7 = vcmask 24576  }
  0x10   : > { %s10558_s16 = scalar_lea.vmem %s15600_s3, %s9748_s13  ;;  %s10568_s20 = scalar_lea.vmem %s15597_s0, %s9744_s17  ;;  %vm10908_vm12 = vmand %vm15608_vm10, %vm760_vm11 }
  0x11   : > { %v2183_v0 = vld [vmem:[%s10558_s16] sm:$0xff]  ;;  %v957_v19 = vld [vmem:[%s10568_s20 + $0x8] sm:$0xff]  ;;  %v958_v57 = vld [vmem:[%s10568_s20 + $0x10] sm:$0xff]  ;;  %s15370_s2 = scalar_lea.vmem %s15607_s10, %s9748_s13 }
  0x12   : > { %v2215_v1 = vpack.c.bf16 %v2183_v0, %v2183_v0  ;;  %v956_v6 = vld [vmem:[%s10568_s20] sm:$0xff]  ;;  %v965_v25 = vpack.c.bf16 %v957_v19, %v957_v19  ;;  %v966_v0 = vpack.c.bf16 %v958_v57, %v958_v57  ;;  %vm11058_vm15 = vmand %vm2066_vm14, %vm760_vm11 }
  0x13   : > { %v964_v7 = vpack.c.bf16 %v956_v6, %v956_v6 }
  0x14   : > { %v2248_v2 = vshrl.u32 %v2215_v1, 16  ;;  %v2251_v3 = vshll.u32 %v2215_v1, 16  ;;  %v981_v34 = vrot.slane %v965_v25, 3 }
  0x15   : > { %v980_v8 = vrot.slane %v964_v7, 3 }
  0x16   : > { %v10562_v4 = vrot.slane %v2248_v2, 7  ;;  %v1009_v43 = vsel %vm993_vm0, %v965_v25, %v981_v34  ;;  %v1012_v44 = vsel %vm997_vm1, %v965_v25, %v981_v34  ;;  %v1015_v51 = vsel %vm1001_vm2, %v965_v25, %v981_v34 }
  0x17   : > { %v994_v9 = vsel %vm993_vm0, %v964_v7, %v980_v8  ;;  %v998_v10 = vsel %vm997_vm1, %v964_v7, %v980_v8  ;;  %v1002_v12 = vsel %vm1001_vm2, %v964_v7, %v980_v8  ;;  %v991_v13 = vsel %vm988_vm3, %v964_v7, %v980_v8 }
  0x18   : > { %v2253_v5 = vor.u32 %v2251_v3, %v10562_v4  ;;  %v996_v11 = vrot.slane %v994_v9, 1  ;;  %v1000_v14 = vrot.slane %v998_v10, 2  ;;  %v1004_v15 = vrot.slane %v1002_v12, 3  ;;  %v2184_v12 = vld [vmem:[%s10558_s16 + $0x8] sm:$0xff] }
  0x19   : > { %v1097_v16 = vunpack.i.h.s16 %v991_v13  ;;  %v9227_v21 = vpack.i.b16 %v991_v13, %v991_v13  ;;  %v1007_v54 = vsel %vm988_vm3, %v965_v25, %v981_v34  ;;  %v1011_v55 = vrot.slane %v1009_v43, 1  ;;  %v959_v13 = vld [vmem:[%s10568_s20 + $0x18] sm:$0xff] }
  0x1a   : > { %2519 = vrot.lane.b32.xlu0 %v2253_v5, %s10475_s21  ;;  %v1099_v17 = vunpack.i.h.s16 %v996_v11  ;;  %v1101_v18 = vunpack.i.h.s16 %v1000_v14  ;;  %v1103_v20 = vunpack.i.h.s16 %v1004_v15  ;;  %v9228_v23 = vpack.i.b16 %v996_v11, %v996_v11  ;;  %v2186_v34 = vld [vmem:[%s10558_s16 + $0x18] sm:$0xff] }
  0x1b   : > { %v1161_v22 = vpack.i.b16 %v1097_v16, %v1097_v16  ;;  %v9229_v26 = vpack.i.b16 %v1000_v14, %v1000_v14  ;;  %v9230_v28 = vpack.i.b16 %v1004_v15, %v1004_v15  ;;  %v1224_v30 = vperm.slane %v9227_v21, 0 }
  0x1c   : > { %v1163_v24 = vpack.i.b16 %v1099_v17, %v1099_v17  ;;  %v1165_v27 = vpack.i.b16 %v1101_v18, %v1101_v18  ;;  %v1167_v29 = vpack.i.b16 %v1103_v20, %v1103_v20  ;;  %v1226_v32 = vperm.slane %v9228_v23, 0 }
  0x1d   : > { %v1225_v31 = vperm.slane %v1161_v22, 0  ;;  %v1228_v35 = vperm.slane %v9229_v26, 0  ;;  %v1230_v37 = vperm.slane %v9230_v28, 0  ;;  %v1289_v39 = vpack.i.b16 %v1224_v30, %v1224_v30 }
  0x1e   : > { %v1227_v33 = vperm.slane %v1163_v24, 0  ;;  %v1229_v36 = vperm.slane %v1165_v27, 0  ;;  %v1231_v38 = vperm.slane %v1167_v29, 0  ;;  %v1297_v41 = vpack.i.b16 %v1226_v32, %v1226_v32  ;;  %v2185_v27 = vld [vmem:[%s10558_s16 + $0x10] sm:$0xff] }
  0x1f   : > { %v1293_v40 = vpack.i.b16 %v1225_v31, %v1225_v31  ;;  %v1305_v45 = vpack.i.b16 %v1228_v35, %v1228_v35  ;;  %v1291_v47 = vperm.slane %v1289_v39, 0  ;;  %v1313_v50 = vpack.i.b16 %v1230_v37, %v1230_v37 }
  0x20   : > { %v10577_v42 = vpack.i.b16 %v1227_v33, %v1227_v33  ;;  %v10581_v46 = vpack.i.b16 %v1229_v36, %v1229_v36  ;;  %v1299_v49 = vperm.slane %v1297_v41, 0  ;;  %v10585_v53 = vpack.i.b16 %v1231_v38, %v1231_v38  ;;  %v2187_v33 = vld [vmem:[%s10558_s16 + $0x20] sm:$0xff] }
  0x21   : > { %v1295_v48 = vperm.slane %v1293_v40, 0  ;;  %v1307_v56 = vperm.slane %v1305_v45, 0  ;;  %1545 = vst [vmem:[#allocation1] ss:$4 sm:$0xff] %v1291_v47  ;;  %v1014_v58 = vrot.slane %v1012_v44, 2  ;;  %v1017_v60 = vrot.slane %v1015_v51, 3 }
  0x22   : > { %v1303_v52 = vperm.slane %v10577_v42, 0  ;;  %v1311_v59 = vperm.slane %v10581_v46, 0  ;;  %v10590_v61 = vperm.slane %v1313_v50, 0  ;;  %1551 = vst [vmem:[#allocation1 + $0x2] ss:$4 sm:$0xff] %v1299_v49  ;;  %v1105_v62 = vunpack.i.h.s16 %v1007_v54  ;;  %v2189_v51 = vld [vmem:[%s10558_s16 + $0x30] sm:$0xff] }
  0x23   : > { %1548 = vst [vmem:[#allocation1 + $0x1] ss:$4 sm:$0xff] %v1295_v48  ;;  %v1319_v63 = vperm.slane %v10585_v53, 0  ;;  %v1107_v1 = vunpack.i.h.s16 %v1011_v55  ;;  %v1109_v2 = vunpack.i.h.s16 %v1014_v58  ;;  %v1111_v3 = vunpack.i.h.s16 %v1017_v60 }
  0x24   : > { %1554 = vst [vmem:[#allocation1 + $0x3] ss:$4 sm:$0xff] %v1303_v52  ;;  %v9231_v5 = vpack.i.b16 %v1007_v54, %v1007_v54  ;;  %v1169_v6 = vpack.i.b16 %v1105_v62, %v1105_v62  ;;  %v9232_v7 = vpack.i.b16 %v1011_v55, %v1011_v55  ;;  %v982_v8 = vrot.slane %v966_v0, 3 }
  0x25   : > { %1557 = vst [vmem:[#allocation1 + $0x20] ss:$4 sm:$0xff] %v1307_v56  ;;  %v1171_v9 = vpack.i.b16 %v1107_v1, %v1107_v1  ;;  %v9233_v10 = vpack.i.b16 %v1014_v58, %v1014_v58  ;;  %v1173_v11 = vpack.i.b16 %v1109_v2, %v1109_v2  ;;  %v9234_v14 = vpack.i.b16 %v1017_v60, %v1017_v60  ;;  %v2188_v60 = vld [vmem:[%s10558_s16 + $0x28] sm:$0xff] }
  0x26   : > { %1560 = vst [vmem:[#allocation1 + $0x21] ss:$4 sm:$0xff] %v1311_v59  ;;  %v1175_v15 = vpack.i.b16 %v1111_v3, %v1111_v3  ;;  %v1232_v17 = vperm.slane %v9231_v5, 0  ;;  %v1233_v18 = vperm.slane %v1169_v6, 0  ;;  %v1234_v19 = vperm.slane %v9232_v7, 0 }
  0x27   : > { %1563 = vst [vmem:[#allocation1 + $0x22] ss:$4 sm:$0xff] %v10590_v61  ;;  %v1022_v20 = vsel %vm993_vm0, %v966_v0, %v982_v8  ;;  %v1235_v21 = vperm.slane %v1171_v9, 0  ;;  %v1236_v22 = vperm.slane %v9233_v10, 0  ;;  %v2216_v23 = vpack.c.bf16 %v2184_v12, %v2184_v12 }
  0x28   : > { %1566 = vst [vmem:[#allocation1 + $0x23] ss:$4 sm:$0xff] %v1319_v63  ;;  %v10603_v24 = vpack.c.bf16 %v959_v13, %v959_v13  ;;  %v10606_v25 = vsel %vm988_vm3, %v966_v0, %v982_v8  ;;  %v1237_v26 = vperm.slane %v1173_v11, 0  ;;  %v1025_v28 = vsel %vm997_vm1, %v966_v0, %v982_v8 }
  0x29   : > { %v1028_v29 = vsel %vm1001_vm2, %v966_v0, %v982_v8  ;;  %v1238_v30 = vperm.slane %v9234_v14, 0  ;;  %v1239_v31 = vperm.slane %v1175_v15, 0  ;;  %v10615_v35 = vrot.slane %v1022_v20, 1 }
  0x2a   : > { %v1321_v36 = vpack.i.b16 %v1232_v17, %v1232_v17  ;;  %v10617_v37 = vpack.i.b16 %v1233_v18, %v1233_v18  ;;  %v1329_v38 = vpack.i.b16 %v1234_v19, %v1234_v19  ;;  %v10621_v39 = vpack.i.b16 %v1235_v21, %v1235_v21  ;;  %v2190_v19 = vld [vmem:[%s10558_s16 + $0x38] sm:$0xff] }
  0x2b   : > { %v10600_v16 = vld [vmem:[#allocation1] sm:$0xff]  ;;  %v1337_v40 = vpack.i.b16 %v1236_v22, %v1236_v22  ;;  %v2256_v41 = vshrl.u32 %v2216_v23, 16  ;;  %v2259_v43 = vshll.u32 %v2216_v23, 16  ;;  %v10623_v44 = vpack.i.b16 %v1237_v26, %v1237_v26 }
  0x2c   : > { %1569 = vst [vmem:[#allocation1] ss:$4 sm:$0xff] %v1291_v47  ;;  %v2217_v45 = vpack.c.bf16 %v2185_v27, %v2185_v27  ;;  %v2219_v46 = vpack.c.bf16 %v2187_v33, %v2187_v33  ;;  %v2218_v47 = vpack.c.bf16 %v2186_v34, %v2186_v34  ;;  %v2254_v42 = vrot.slane %v10562_v4, 4 }
  0x2d   : > { %1570 = vst [vmem:[#allocation1 + $0x1] ss:$4 sm:$0xff] %v1295_v48  ;;  %v1345_v48 = vpack.i.b16 %v1238_v30, %v1238_v30  ;;  %v2258_v50 = vrot.slane %v2256_v41, 7  ;;  %v1327_v54 = vperm.slane %v10617_v37, 0  ;;  %v15701_v55 = vmov 0  ;;  %v2191_v30 = vld [vmem:[%s10558_s16 + $0x40] sm:$0xff] }
  0x2e   : > { %1571 = vst [vmem:[#allocation1 + $0x2] ss:$4 sm:$0xff] %v1299_v49  ;;  %v10625_v49 = vpack.i.b16 %v1239_v31, %v1239_v31  ;;  %v15702_v55 = vsel %vm10637_vm6, 4294967295, %v15701_v55  ;;  %v2282_v57 = vshrl.u32 %v2219_v46, 16  ;;  %v10641_v58 = vperm.slane %v1329_v38, 0 }
  0x2f   : > { %v10611_v32 = vld [vmem:[#allocation1 + $0x20] sm:$0xff]  ;;  %1572 = vst [vmem:[#allocation1 + $0x3] ss:$4 sm:$0xff] %v1303_v52  ;;  %v10630_v52 = vperm.slane %v1321_v36, 0  ;;  %v2261_v4 = vor.u32 %v2259_v43, %v2258_v50  ;;  %v1335_v62 = vperm.slane %v10621_v39, 0  ;;  %v2276_v1 = vshll.u32 %v2218_v47, 16 }
  0x30   : > { %1573 = vst [vmem:[#allocation1 + $0x20] ss:$4 sm:$0xff] %v1307_v56  ;;  %v2265_v56 = vshrl.u32 %v2217_v45, 16  ;;  %v10645_v53 = vpack.c.bf16 %v2189_v51, %v2189_v51  ;;  %v10652_v3 = vrot.slane %v2282_v57, 7  ;;  %v2285_v5 = vshll.u32 %v2219_v46, 16 }
  0x31   : > { %1574 = vst [vmem:[#allocation1 + $0x21] ss:$4 sm:$0xff] %v1311_v59  ;;  %v2263_v59 = vrot.slane %v2258_v50, 4  ;;  %v2262_v2 = vsel %vm10637_vm6, %v2254_v42, %v2261_v4  ;;  %v10656_v7 = vperm.slane %v1337_v40, 0  ;;  %v2268_v8 = vshll.u32 %v2217_v45, 16 }
  0x32   : > { %1575 = vst [vmem:[#allocation1 + $0x22] ss:$4 sm:$0xff] %v10590_v61  ;;  %v2273_v61 = vshrl.u32 %v2218_v47, 16  ;;  %v2267_v0 = vrot.slane %v2265_v56, 7  ;;  %2521 = vrot.lane.b32.xlu1 %v2262_v2, %s10475_s21  ;;  %v10660_v9 = vpack.c.bf16 %v2188_v60, %v2188_v60  ;;  %v10663_v11 = vrot.slane %v10603_v24, 3 }
  0x33   : > { %1576 = vst [vmem:[#allocation1 + $0x23] ss:$4 sm:$0xff] %v1319_v63  ;;  %2523 = vrot.lane.b32.xlu0 %v2263_v59, %s10475_s21  ;;  %v1343_v12 = vperm.slane %v10623_v44, 0  ;;  %v10669_v14 = vrot.slane %v1025_v28, 2  ;;  %v10671_v15 = vrot.slane %v1028_v29, 3  ;;  %v1113_v17 = vunpack.i.h.s16 %v10606_v25 }
  0x34   : > { %15703 = vst [vmem:[#allocation4_spill] sm:$0xff] %v15702_v55  ;;  %v10654_v6 = vrot.slane %v2273_v61, 7  ;;  %v2271_v10 = vrot.slane %v2267_v0, 4  ;;  %v10674_v18 = vperm.slane %v1345_v48, 0  ;;  %v1351_v20 = vperm.slane %v10625_v49, 0  ;;  %v2195_v49 = vld [vmem:[%s10558_s16 + $0x60] sm:$0xff] }
  0x35   : > { %v2287_v22 = vor.u32 %v2285_v5, %v10652_v3  ;;  %v2299_v26 = vshrl.u32 %v10645_v53, 16  ;;  %v1115_v27 = vunpack.i.h.s16 %v10615_v35  ;;  %v2270_v28 = vor.u32 %v2268_v8, %v2267_v0 }
  0x36   : > { %v10647_v63 = vld [vmem:[#allocation1] sm:$0xff]  ;;  %v2278_v13 = vor.u32 %v2276_v1, %v10654_v6  ;;  %v2290_v29 = vshrl.u32 %v10660_v9, 16  ;;  %v10694_v31 = vpack.c.bf16 %v2190_v19, %v2190_v19  ;;  %v1035_v33 = vsel %vm993_vm0, %v10603_v24, %v10663_v11 }
  0x37   : > { %1580 = vst [vmem:[#allocation1] ss:$4 sm:$0xff] %v10630_v52  ;;  %v1117_v34 = vunpack.i.h.s16 %v10669_v14  ;;  %v1119_v36 = vunpack.i.h.s16 %v10671_v15  ;;  %v9235_v38 = vpack.i.b16 %v10606_v25, %v10606_v25  ;;  %v1177_v40 = vpack.i.b16 %v1113_v17, %v1113_v17 }
  0x38   : > { %1582 = vst [vmem:[#allocation1 + $0x1] ss:$4 sm:$0xff] %v1327_v54  ;;  %v2279_v23 = vsel %vm10637_vm6, %v2271_v10, %v2278_v13  ;;  %v10707_v41 = vrot.slane %v2299_v26, 7  ;;  %v2302_v43 = vshll.u32 %v10645_v53, 16  ;;  %v10710_v45 = vpack.c.bf16 %v2191_v30, %v2191_v30  ;;  %v2192_v13 = vld [vmem:[%s10558_s16 + $0x48] sm:$0xff] }
  0x39   : > { %1584 = vst [vmem:[#allocation1 + $0x2] ss:$4 sm:$0xff] %v10641_v58  ;;  %2527 = vrot.lane.b32.xlu2 %v2279_v23, %s10475_s21  ;;  %v9236_v46 = vpack.i.b16 %v10615_v35, %v10615_v35  ;;  %v1179_v47 = vpack.i.b16 %v1115_v27, %v1115_v27  ;;  %v2292_v25 = vrot.slane %v2290_v29, 7  ;;  %v2280_v48 = vrot.slane %v10654_v6, 4 }
  0x3a   : > { %v10679_v21 = vld [vmem:[#allocation1 + $0x20] sm:$0xff]  ;;  %1586 = vst [vmem:[#allocation1 + $0x3] ss:$4 sm:$0xff] %v1335_v62  ;;  %2525 = vrot.lane.b32.xlu1 %v2270_v28, %s10475_s21  ;;  %v10719_v42 = vsel %vm988_vm3, %v10603_v24, %v10663_v11  ;;  %v10721_v50 = vrot.slane %v1035_v33, 1  ;;  %v2307_v51 = vshrl.u32 %v10694_v31, 16  ;;  %v2293_v56 = vshll.u32 %v10660_v9, 16 }
  0x3b   : > { %1588 = vst [vmem:[#allocation1 + $0x20] ss:$4 sm:$0xff] %v10656_v7  ;;  %2531 = vrot.lane.b32.xlu0 %v2287_v22, %s10475_s21  ;;  %v9237_v35 = vpack.i.b16 %v10669_v14, %v10669_v14  ;;  %v1181_v57 = vpack.i.b16 %v1117_v34, %v1117_v34  ;;  %v9238_v4 = vpack.i.b16 %v10671_v15, %v10671_v15  ;;  %v1240_v59 = vperm.slane %v9235_v38, 0  ;;  %v2193_v9 = vld [vmem:[%s10558_s16 + $0x50] sm:$0xff]  ;;  %v2194_v33 = vld [vmem:[%s10558_s16 + $0x58] sm:$0xff] }
  0x3c   : > { %1590 = vst [vmem:[#allocation1 + $0x21] ss:$4 sm:$0xff] %v1343_v12  ;;  %v1038_v61 = vsel %vm997_vm1, %v10603_v24, %v10663_v11  ;;  %v1241_v0 = vperm.slane %v1177_v40, 0  ;;  %v2304_v1 = vor.u32 %v2302_v43, %v10707_v41  ;;  %v2316_v53 = vshrl.u32 %v10710_v45, 16 }
  0x3d   : > { %1592 = vst [vmem:[#allocation1 + $0x22] ss:$4 sm:$0xff] %v10674_v18  ;;  %v1183_v2 = vpack.i.b16 %v1119_v36, %v1119_v36  ;;  %v1242_v5 = vperm.slane %v9236_v46, 0  ;;  %v1243_v6 = vperm.slane %v1179_v47, 0  ;;  %v2297_v8 = vrot.slane %v2292_v25, 4 }
  0x3e   : > { %1594 = vst [vmem:[#allocation1 + $0x23] ss:$4 sm:$0xff] %v1351_v20  ;;  %v10742_v10 = vrot.slane %v2307_v51, 7  ;;  %v2288_v14 = vrot.slane %v10652_v3, 4  ;;  %v2295_v15 = vor.u32 %v2293_v56, %v2292_v25  ;;  %v1244_v17 = vperm.slane %v9237_v35, 0 }
  0x3f   : > { %v1245_v19 = vperm.slane %v1181_v57, 0  ;;  %v1246_v22 = vperm.slane %v9238_v4, 0  ;;  %v1353_v23 = vpack.i.b16 %v1240_v59, %v1240_v59  ;;  %v2319_v3 = vshll.u32 %v10710_v45, 16 }
  0x40   : > { %v10758_v26 = vpack.c.bf16 %v2193_v9, %v2193_v9  ;;  %v1041_v27 = vsel %vm1001_vm2, %v10603_v24, %v10663_v11  ;;  %v1247_v28 = vperm.slane %v1183_v2, 0  ;;  %v1361_v39 = vpack.i.b16 %v1242_v5, %v1242_v5  ;;  %v696_v5 = vld [vmem:[#allocation2] sm:$0x1] }
  0x41   : > { %v10729_v60 = vld [vmem:[#allocation1] sm:$0xff]  ;;  %2529 = vrot.lane.b32.xlu2 %v2280_v48, %s10475_s21  ;;  %v2305_v29 = vrot.slane %v10707_v41, 4  ;;  %v2296_v24 = vsel %vm10637_vm6, %v2288_v14, %v2295_v15  ;;  %v10775_v11 = vrot.slane %v1038_v61, 2  ;;  %v10777_v44 = vperm.slane %v1353_v23, 0 }
  0x42   : > { %1597 = vst [vmem:[#allocation1] ss:$4 sm:$0xff] %v10630_v52  ;;  %v2310_v52 = vshll.u32 %v10694_v31, 16  ;;  %2535 = vrot.lane.b32.xlu1 %v2297_v8, %s10475_s21  ;;  %v10779_v31 = vpack.i.b16 %v1245_v19, %v1245_v19  ;;  %v1377_v34 = vpack.i.b16 %v1246_v22, %v1246_v22  ;;  %v2333_v38 = vshrl.u32 %v10758_v26, 16 }
  0x43   : > { %1598 = vst [vmem:[#allocation1 + $0x1] ss:$4 sm:$0xff] %v1327_v54  ;;  %v10751_v54 = vpack.i.b16 %v1241_v0, %v1241_v0  ;;  %2537 = vrot.lane.b32.xlu0 %v2304_v1, %s10475_s21  ;;  %v10787_v40 = vrot.slane %v1041_v27, 3  ;;  %v10789_v41 = vperm.slane %v1361_v39, 0  ;;  %v10791_v43 = vpack.i.b16 %v1247_v28, %v1247_v28  ;;  %v2197_v27 = vld [vmem:[%s10558_s16 + $0x70] sm:$0xff] }
  0x44   : > { %1599 = vst [vmem:[#allocation1 + $0x2] ss:$4 sm:$0xff] %v10641_v58  ;;  %v10755_v58 = vrot.slane %v2316_v53, 7  ;;  %v2312_v30 = vor.u32 %v2310_v52, %v10742_v10  ;;  %v10801_v25 = vpack.c.bf16 %v2194_v33, %v2194_v33  ;;  %v1121_v48 = vunpack.i.h.s16 %v10719_v42 }
  0x45   : > { %v10747_v37 = vld [vmem:[#allocation1 + $0x20] sm:$0xff]  ;;  %1600 = vst [vmem:[#allocation1 + $0x3] ss:$4 sm:$0xff] %v1335_v62  ;;  %v10766_v62 = vpack.c.bf16 %v2192_v13, %v2192_v13  ;;  %v1123_v51 = vunpack.i.h.s16 %v10721_v50  ;;  %v1375_v35 = vperm.slane %v10779_v31, 0  ;;  %v10809_v57 = vperm.slane %v1377_v34, 0 }
  0x46   : > { %1601 = vst [vmem:[#allocation1 + $0x20] ss:$4 sm:$0xff] %v10656_v7  ;;  %v10768_v7 = vpack.i.b16 %v1243_v6, %v1243_v6  ;;  %v2321_v36 = vor.u32 %v2319_v3, %v10755_v58  ;;  %v2313_v47 = vsel %vm10637_vm6, %v2305_v29, %v2312_v30  ;;  %v10814_v4 = vrot.slane %v2333_v38, 7 }
  0x47   : > { %1602 = vst [vmem:[#allocation1 + $0x21] ss:$4 sm:$0xff] %v1343_v12  ;;  %v1369_v12 = vpack.i.b16 %v1244_v17, %v1244_v17  ;;  %v2324_v45 = vshrl.u32 %v10766_v62, 16  ;;  %v2336_v59 = vshll.u32 %v10758_v26, 16  ;;  %v10817_v61 = vpack.c.bf16 %v2195_v49, %v2195_v49 }
  0x48   : > { %1603 = vst [vmem:[#allocation1 + $0x22] ss:$4 sm:$0xff] %v10674_v18  ;;  %v1359_v18 = vperm.slane %v10751_v54, 0  ;;  %v1125_v0 = vunpack.i.h.s16 %v10775_v11  ;;  %v15704_v1 = vmov 0  ;;  %v2314_v2 = vrot.slane %v10742_v10, 4 }
  0x49   : > { %1604 = vst [vmem:[#allocation1 + $0x23] ss:$4 sm:$0xff] %v1351_v20  ;;  %2533 = vrot.lane.b32.xlu2 %v2296_v24, %s10475_s21  ;;  %v1367_v20 = vperm.slane %v10768_v7, 0  ;;  %v10805_v56 = vperm.slane %v1369_v12, 0  ;;  %v15705_v1 = vsel %vm10823_vm8, 4294967295, %v15704_v1  ;;  %v2326_v53 = vrot.slane %v2324_v45, 7 }
  0x4a   : > { %15706 = vst [vmem:[#allocation5_spill] sm:$0xff] %v15705_v1  ;;  %2539 = vrot.lane.b32.xlu1 %v2313_v47, %s10475_s21  ;;  %v1383_v6 = vperm.slane %v10791_v43, 0  ;;  %v2341_v9 = vshrl.u32 %v10801_v25, 16  ;;  %v2327_v52 = vshll.u32 %v10766_v62, 16  ;;  %v1127_v13 = vunpack.i.h.s16 %v10787_v40  ;;  %v2196_v62 = vld [vmem:[%s10558_s16 + $0x68] sm:$0xff] }
  0x4b   : > { %2543 = vrot.lane.b32.xlu0 %v2321_v36, %s10475_s21  ;;  %v9239_v14 = vpack.i.b16 %v10719_v42, %v10719_v42  ;;  %v1185_v15 = vpack.i.b16 %v1121_v48, %v1121_v48  ;;  %v9240_v10 = vpack.i.b16 %v10721_v50, %v10721_v50  ;;  %v10842_v17 = vpack.i.b16 %v1123_v51, %v1123_v51 }
  0x4c   : > { %v10797_v46 = vld [vmem:[#allocation1] sm:$0xff]  ;;  %v2338_v19 = vor.u32 %v2336_v59, %v10814_v4  ;;  %v2350_v22 = vshrl.u32 %v10817_v61, 16  ;;  %v697_v23 = vsel %vm10823_vm8, 0, %v696_v5  ;;  %v9241_v42 = vpack.i.b16 %v10775_v11, %v10775_v11 }
  0x4d   : > { %1608 = vst [vmem:[#allocation1] ss:$4 sm:$0xff] %v10777_v44  ;;  %v1189_v3 = vpack.i.b16 %v1125_v0, %v1125_v0  ;;  %v9242_v50 = vpack.i.b16 %v10787_v40, %v10787_v40  ;;  %v2331_v26 = vrot.slane %v2326_v53, 4  ;;  %v10859_v28 = vrot.slane %v2341_v9, 7  ;;  %v2198_v0 = vld [vmem:[%s10558_s16 + $0x78] sm:$0xff] }
  0x4e   : > { %1610 = vst [vmem:[#allocation1 + $0x1] ss:$4 sm:$0xff] %v1359_v18  ;;  %v2344_v39 = vshll.u32 %v10801_v25, 16  ;;  %v2322_v29 = vrot.slane %v10755_v58, 4  ;;  %v2329_v30 = vor.u32 %v2327_v52, %v2326_v53  ;;  %v10864_v24 = vpack.i.b16 %v1127_v13, %v1127_v13  ;;  %v3350_v25 = vld [vmem:[%s15603_s6] sm:$0xf] }
  0x4f   : > { %1612 = vst [vmem:[#allocation1 + $0x2] ss:$4 sm:$0xff] %v10789_v41  ;;  %v1248_v11 = vperm.slane %v9239_v14, 0  ;;  %v1249_v12 = vperm.slane %v1185_v15, 0  ;;  %v1250_v33 = vperm.slane %v9240_v10, 0  ;;  %v1251_v34 = vperm.slane %v10842_v17, 0 }
  0x50   : > { %v10830_v8 = vld [vmem:[#allocation1 + $0x20] sm:$0xff]  ;;  %1614 = vst [vmem:[#allocation1 + $0x3] ss:$4 sm:$0xff] %v1367_v20  ;;  %v10868_v36 = vrot.slane %v2350_v22, 7  ;;  %v2353_v38 = vshll.u32 %v10817_v61, 16  ;;  %v2229_v40 = vpack.c.bf16 %v2197_v27, %v2197_v27  ;;  %v1252_v45 = vperm.slane %v9241_v42, 0 }
  0x51   : > { %1616 = vst [vmem:[#allocation1 + $0x20] ss:$4 sm:$0xff] %v10805_v56  ;;  %2541 = vrot.lane.b32.xlu2 %v2314_v2, %s10475_s21  ;;  %v1253_v49 = vperm.slane %v1189_v3, 0  ;;  %v10874_v47 = vpack.c.bf16 %v2196_v62, %v2196_v62  ;;  %v2339_v48 = vrot.slane %v10814_v4, 4  ;;  %v2346_v51 = vor.u32 %v2344_v39, %v10859_v28 }
  0x52   : > { %1618 = vst [vmem:[#allocation1 + $0x21] ss:$4 sm:$0xff] %v1375_v35  ;;  %2547 = vrot.lane.b32.xlu1 %v2331_v26, %s10475_s21  ;;  %v2330_v59 = vsel %vm10637_vm6, %v2322_v29, %v2329_v30  ;;  %v10885_v61 = vsel %vm15609_vm9, %v3350_v25, 0  ;;  %v2355_v4 = vor.u32 %v2353_v38, %v10868_v36  ;;  %v2367_v53 = vshrl.u32 %v2229_v40, 16 }
  0x53   : > { %1620 = vst [vmem:[#allocation1 + $0x22] ss:$4 sm:$0xff] %v10809_v57  ;;  %2549 = vrot.lane.b32.xlu0 %v2338_v19, %s10475_s21  ;;  %3830 = vmatpush.bf16.msra.mxu1 %v10885_v61  ;;  %v1254_v2 = vperm.slane %v9242_v50, 0  ;;  %v2358_v54 = vshrl.u32 %v10874_v47, 16  ;;  %v1255_v9 = vperm.slane %v10864_v24, 0  ;;  %v10901_v52 = vpack.i.b16 %v1249_v12, %v1249_v12 }
  0x54   : > { %1622 = vst [vmem:[#allocation1 + $0x23] ss:$4 sm:$0xff] %v1383_v6  ;;  %v2230_v13 = vpack.c.bf16 %v2198_v0, %v2198_v0  ;;  %v15707_v7 = vmov 0  ;;  %v1393_v14 = vpack.i.b16 %v1250_v33, %v1250_v33  ;;  %v10912_v15 = vpack.i.b16 %v1251_v34, %v1251_v34 }
  0x55   : > { %698 = vst [vmem:[#allocation2] sm:$0x1] %v697_v23  ;;  %v15708_v7 = vsel %vm10908_vm12, 4294967295, %v15707_v7  ;;  %v1401_v10 = vpack.i.b16 %v1252_v45, %v1252_v45  ;;  %v10914_v17 = vpack.i.b16 %v1253_v49, %v1253_v49  ;;  %v2369_v19 = vrot.slane %v2367_v53, 7 }
  0x56   : > { %15709 = vst [vmem:[#allocation6_spill] sm:$0xff] %v15708_v7  ;;  %v2370_v22 = vshll.u32 %v2229_v40, 16  ;;  %v2360_v42 = vrot.slane %v2358_v54, 7  ;;  %v2348_v3 = vrot.slane %v10859_v28, 4  ;;  %v2361_v50 = vshll.u32 %v10874_v47, 16  ;;  %v2200_v40 = vld [vmem:[%s10558_s16 + $0x88] sm:$0xff] }
  0x57   : > { %v10871_v58 = vld [vmem:[#allocation1] sm:$0xff]  ;;  %v10930_v26 = vperm.slane %v1393_v14, 0  ;;  %v1409_v27 = vpack.i.b16 %v1254_v2, %v1254_v2  ;;  %v1399_v43 = vperm.slane %v10912_v15, 0  ;;  %v10937_v29 = vperm.slane %v1401_v10, 0 }
  0x58   : > { %1625 = vst [vmem:[#allocation1] ss:$4 sm:$0xff] %v10777_v44  ;;  %v1385_v44 = vpack.i.b16 %v1248_v11, %v1248_v11  ;;  %v2372_v28 = vor.u32 %v2370_v22, %v2369_v19  ;;  %v1407_v30 = vperm.slane %v10914_v17, 0  ;;  %v2365_v24 = vrot.slane %v2360_v42, 4  ;;  %v2201_v11 = vld [vmem:[%s10558_s16 + $0x90] sm:$0xff] }
  0x59   : > { %1626 = vst [vmem:[#allocation1 + $0x1] ss:$4 sm:$0xff] %v1359_v18  ;;  %2545 = vrot.lane.b32.xlu2 %v2330_v59, %s10475_s21  ;;  %v2199_v18 = vld [vmem:[%s10558_s16 + $0x80] sm:$0xff]  ;;  %v2378_v33 = vshll.u32 %v2230_v13, 16  ;;  %v2356_v34 = vrot.slane %v10868_v36, 4  ;;  %v2363_v38 = vor.u32 %v2361_v50, %v2360_v42  ;;  %v1411_v45 = vperm.slane %v1409_v27, 0 }
  0x5a   : > { %1627 = vst [vmem:[#allocation1 + $0x2] ss:$4 sm:$0xff] %v10789_v41  ;;  %v2347_v41 = vsel %vm10637_vm6, %v2339_v48, %v2346_v51  ;;  %v2231_v23 = vpack.c.bf16 %v2199_v18, %v2199_v18  ;;  %v2233_v51 = vpack.c.bf16 %v2201_v11, %v2201_v11  ;;  %v2232_v36 = vpack.c.bf16 %v2200_v40, %v2200_v40  ;;  %v762_v50 = vld [vmem:[#allocation2 + $0x8] sm:$0xf]  ;;  %v945_v11 = vld [vmem:[#allocation3 + $0xe0] sm:$0xf] }
  0x5b   : > { %v10893_v5 = vld [vmem:[#allocation1 + $0x20] sm:$0xff]  ;;  %1628 = vst [vmem:[#allocation1 + $0x3] ss:$4 sm:$0xff] %v1367_v20  ;;  %2555 = vrot.lane.b32.xlu0 %v2355_v4, %s10475_s21  ;;  %2551 = vrot.lane.b32.xlu1 %v2347_v41, %s10475_s21  ;;  %v2373_v59 = vrot.slane %v2369_v19, 4  ;;  %v2202_v4 = vld [vmem:[%s10558_s16 + $0x98] sm:$0xff]  ;;  %v15610_v18 = vmov 0  }
  0x5c   : > { %1629 = vst [vmem:[#allocation1 + $0x20] ss:$4 sm:$0xff] %v10805_v56  ;;  %v3020_v20 = vld [vmem:[#allocation2] sm:$0xf]  ;;  %v10918_v56 = vperm.slane %v1385_v44, 0  ;;  %v2384_v62 = vshrl.u32 %v2231_v23, 16  ;;  %v2364_v44 = vsel %vm10637_vm6, %v2356_v34, %v2363_v38 }
  0x5d   : > { %1630 = vst [vmem:[#allocation1 + $0x21] ss:$4 sm:$0xff] %v1375_v35  ;;  %v3021_v31 = vsel %vm10908_vm12, 0, %v3020_v20  ;;  %v1391_v35 = vperm.slane %v10901_v52, 0  ;;  %v2387_v48 = vshll.u32 %v2231_v23, 16  ;;  %v2401_v2 = vshrl.u32 %v2233_v51, 16 }
  0x5e   : > { %1631 = vst [vmem:[#allocation1 + $0x22] ss:$4 sm:$0xff] %v10809_v57  ;;  %v2375_v57 = vshrl.u32 %v2230_v13, 16  ;;  %v10954_v25 = vrot.slane %v2384_v62, 7  ;;  %v2392_v54 = vshrl.u32 %v2232_v36, 16  ;;  %v2203_v41 = vld [vmem:[%s10558_s16 + $0xa0] sm:$0xff] }
  0x5f   : > { %1632 = vst [vmem:[#allocation1 + $0x23] ss:$4 sm:$0xff] %v1383_v6  ;;  %v10933_v6 = vpack.i.b16 %v1255_v9, %v1255_v9  ;;  %v2234_v9 = vpack.c.bf16 %v2202_v4, %v2202_v4  ;;  %v3353_v20 = vld [vmem:[%s15603_s6 + $0xc] sm:$0xf]  ;;  %v10984_v14 = vrot.slane %v2401_v2, 7  ;;  %v2404_v10 = vshll.u32 %v2233_v51, 16 }
  0x60   : > { %3022 = vst [vmem:[#allocation2] sm:$0xf] %v3021_v31  ;;  %v10943_v12 = vrot.slane %v2375_v57, 7  ;;  %v2389_v53 = vor.u32 %v2387_v48, %v10954_v25  ;;  %v3578_v19 = vsel %vm15609_vm9, %v3353_v20, 0  ;;  %v2235_v22 = vpack.c.bf16 %v2203_v41, %v2203_v41  ;;  %v699_v31 = vld [vmem:[#allocation2 + $0xc] sm:$0x1] }
  0x61   : > { %2553 = vrot.lane.b32.xlu2 %v2348_v3, %s10475_s21  ;;  %v1415_v49 = vperm.slane %v10933_v6, 0  ;;  %3023 = vst.msk [vmem:[#allocation2 + $0x4] sm:$0xf] %vm15608_vm10, %v15610_v18  ;;  %v2394_v23 = vrot.slane %v2392_v54, 7  ;;  %v2409_v3 = vshrl.u32 %v2234_v9, 16  ;;  %3587 = vmatpush.bf16.msra.mxu0 %v3578_v19  ;;  %v2412_v15 = vshll.u32 %v2234_v9, 16 }
  0x62   : > { %v10935_v39 = vld [vmem:[#allocation1] sm:$0xff]  ;;  %v2380_v0 = vor.u32 %v2378_v33, %v10943_v12  ;;  %3030 = vst.msk [vmem:[#allocation2 + $0x10] sm:$0xf] %vm15608_vm10, %v15610_v18  ;;  %v2382_v42 = vrot.slane %v10943_v12, 4  ;;  %10267 = vmatpush.bf16.msra.mxu3 %v3578_v19  ;;  %v2418_v62 = vshrl.u32 %v2235_v22, 16  ;;  %v763_v17 = vsel %vm10908_vm12, 0, %v762_v50 }
  0x63   : > { %1636 = vst [vmem:[#allocation1] ss:$4 sm:$0xff] %v10918_v56  ;;  %2561 = vrot.lane.b32.xlu0 %v2372_v28, %s10475_s21  ;;  %2559 = vrot.lane.b32.xlu1 %v2365_v24, %s10475_s21  ;;  %v822_v28 = vld [vmem:[#allocation2 + $0xf8] sm:$0xf]  ;;  %v11000_v24 = vrot.slane %v2409_v3, 7  ;;  %v2421_v34 = vshll.u32 %v2235_v22, 16 }
  0x64   : > { %1638 = vst [vmem:[#allocation1 + $0x1] ss:$4 sm:$0xff] %v1391_v35  ;;  %v2381_v52 = vsel %vm10637_vm6, %v2373_v59, %v2380_v0  ;;  %v765_v12 = vld [vmem:[#allocation2 + $0x14] sm:$0xf]  ;;  %v11015_v33 = vrot.slane %v2418_v62, 7  ;;  %v946_v6 = vsel %vm10908_vm12, 0, %v945_v11 }
  0x65   : > { %1640 = vst [vmem:[#allocation1 + $0x2] ss:$4 sm:$0xff] %v10930_v26  ;;  %v702_v38 = vld [vmem:[#allocation2 + $0x18] sm:$0x1]  ;;  %v2407_v40 = vrot.slane %v10984_v14, 4  ;;  %v1792_v0 = vshrl.u32 %v10647_v63, 16 }
  0x66   : > { %v10949_v47 = vld [vmem:[#allocation1 + $0x20] sm:$0xff]  ;;  %1642 = vst [vmem:[#allocation1 + $0x3] ss:$4 sm:$0xff] %v1399_v43  ;;  %10268 = vmatpush.bf16.msrb.mxu3 %v10885_v61  ;;  %v700_v61 = vsel %vm10823_vm8, 0, %v699_v31  ;;  %v3356_v48 = vld [vmem:[%s15603_s6 + $0x18] sm:$0xf] }
  0x67   : > { %1644 = vst [vmem:[#allocation1 + $0x20] ss:$4 sm:$0xff] %v10937_v29  ;;  %v703_v51 = vsel %vm10823_vm8, 0, %v702_v38  ;;  %v3968_v59 = vsel %vm15609_vm9, %v3356_v48, 0  ;;  %v1802_v4 = vshll.u32 %v10679_v21, 16  ;;  %v11040_v54 = vrot.slane %v1792_v0, 7  ;;  %vm11101_vm9 = vmand %vm2073_vm7, %vm694_vm4 }
  0x68   : > { %1646 = vst [vmem:[#allocation1 + $0x21] ss:$4 sm:$0xff] %v1407_v30  ;;  %v9753_v27 = vld [vmem:[#allocation2] sm:$0xff]  ;;  %3977 = vmatpush.bf16.msrb.mxu0 %v3968_v59  ;;  %v1780_v9 = vshll.u32 %v10600_v16, 16  ;;  %10269 = vmatpush.bf16.msra.mxu2 %v3968_v59  ;;  %v2416_v19 = vrot.slane %v11000_v24, 4  ;;  %v1784_v62 = vshrl.u32 %v10611_v32, 16 }
  0x69   : > { %1648 = vst [vmem:[#allocation1 + $0x22] ss:$4 sm:$0xff] %v1411_v45  ;;  %2557 = vrot.lane.b32.xlu2 %v2364_v44, %s10475_s21  ;;  %9298 = vmatmul.msk.bf16.vlgmr.msra.gmra.mxu1 %vm3494_vm13, %v9753_v27  ;;  %v1799_v44 = vshrl.u32 %v10679_v21, 16  ;;  %v1798_v21 = vrot.slane %v11040_v54, 4  ;;  %v768_v22 = vld [vmem:[#allocation2 + $0x20] sm:$0xf] }
  0x6a   : > { %1650 = vst [vmem:[#allocation1 + $0x23] ss:$4 sm:$0xff] %v1415_v49  ;;  %v769_v11 = vsel %vm10908_vm12, 0, %v768_v22  ;;  %v1795_v59 = vshll.u32 %v10647_v63, 16 }
  0x6b   : > { %3278 = vst.msk [vmem:[#allocation2 + $0xdc] sm:$0xf] %vm15608_vm10, %v15610_v18  ;;  %2567 = vrot.lane.b32.xlu0 %v2389_v53, %s10475_s21  ;;  %2563 = vrot.lane.b32.xlu1 %v2381_v52, %s10475_s21  ;;  %v1777_v53 = vshrl.u32 %v10600_v16, 16  ;;  %v11043_v52 = vrot.slane %v1799_v44, 7 }
  0x6c   : > { %3285 = vst.msk [vmem:[#allocation2 + $0xe8] sm:$0xf] %vm15608_vm10, %v15610_v18  ;;  %vm11093_vm10 = vmand %vm2663_vm5, %vm760_vm11  ;;  %vm2670_vm11 = vcmask 57376  }
  0x6d   : > { %v10975_v13 = vld [vmem:[#allocation1] sm:$0xff]  ;;  %701 = vst [vmem:[#allocation2 + $0xc] sm:$0x1] %v700_v61  ;;  %v1779_v41 = vrot.slane %v1777_v53, 7  ;;  %v1804_v16 = vor.u32 %v1802_v4, %v11043_v52  ;;  %vm11163_vm7 = vmand %vm2670_vm11, %vm694_vm4  ;;  %vm4133_vm4 = vsmask.f32 7424 }
  0x6e   : > { %1653 = vst [vmem:[#allocation1] ss:$4 sm:$0xff] %v10918_v56  ;;  %v2395_v56 = vshll.u32 %v2232_v36, 16  ;;  %v2423_v36 = vor.u32 %v2421_v34, %v11015_v33  ;;  %vm5147_vm11 = vcmask 1046528  }
  0x6f   : > { %1654 = vst [vmem:[#allocation1 + $0x1] ss:$4 sm:$0xff] %v1391_v35  ;;  %v2406_v35 = vor.u32 %v2404_v10, %v10984_v14  ;;  %v1782_v3 = vor.u32 %v1780_v9, %v1779_v41 }
  0x70   : > { %1655 = vst [vmem:[#allocation1 + $0x2] ss:$4 sm:$0xff] %v10930_v26  ;;  %v2399_v26 = vrot.slane %v2394_v23, 4 }
  0x71   : > { %v10990_v57 = vld [vmem:[#allocation1 + $0x20] sm:$0xff]  ;;  %1656 = vst [vmem:[#allocation1 + $0x3] ss:$4 sm:$0xff] %v1399_v43  ;;  %2565 = vrot.lane.b32.xlu2 %v2382_v42, %s10475_s21  ;;  %v2390_v43 = vrot.slane %v10954_v25, 4  ;;  %v766_v25 = vsel %vm10908_vm12, 0, %v765_v12  ;;  %v1783_v12 = vrot.slane %v1779_v41, 4 }
  0x72   : > { %1657 = vst [vmem:[#allocation1 + $0x20] ss:$4 sm:$0xff] %v10937_v29  ;;  %v2397_v29 = vor.u32 %v2395_v56, %v2394_v23  ;;  %v1806_v41 = vrot.slane %v11043_v52, 4 }
  0x73   : > { %1658 = vst [vmem:[#allocation1 + $0x21] ss:$4 sm:$0xff] %v1407_v30  ;;  %v823_v30 = vsel %vm10908_vm12, 0, %v822_v28  ;;  %2573 = vrot.lane.b32.xlu0 %v2406_v35, %s10475_s21  ;;  %2571 = vrot.lane.b32.xlu1 %v2399_v26, %s10475_s21  ;;  %v1805_v28 = vsel %vm10637_vm6, %v1798_v21, %v1804_v16  ;;  %v705_v26 = vld [vmem:[#allocation2 + $0x24] sm:$0x1] }
  0x74   : > { %1659 = vst [vmem:[#allocation1 + $0x22] ss:$4 sm:$0xff] %v1411_v45  ;;  %v2414_v45 = vor.u32 %v2412_v15, %v11000_v24  ;;  %v3027_v20 = vld [vmem:[#allocation2 + $0xc] sm:$0xf] }
  0x75   : > { %1660 = vst [vmem:[#allocation1 + $0x23] ss:$4 sm:$0xff] %v1415_v49  ;;  %v2398_v49 = vsel %vm10637_vm6, %v2390_v43, %v2397_v29  ;;  %v3028_v10 = vsel %vm10908_vm12, 0, %v3027_v20  ;;  %v1786_v43 = vrot.slane %v1784_v62, 7  ;;  %v1787_v29 = vshll.u32 %v10611_v32, 16 }
  0x76   : > { %764 = vst [vmem:[#allocation2 + $0x8] sm:$0xf] %v763_v17  ;;  %v2415_v2 = vsel %vm10637_vm6, %v2407_v40, %v2414_v45  ;;  %v2204_v17 = vld [vmem:[%s10558_s16 + $0xa8] sm:$0xff]  ;;  %v706_v32 = vsel %vm10823_vm8, 0, %v705_v26  ;;  %v1817_v26 = vshll.u32 %v10747_v37, 16 }
  0x77   : > { %824 = vst [vmem:[#allocation2 + $0xf8] sm:$0xf] %v823_v30  ;;  %v2205_v30 = vld [vmem:[%s10558_s16 + $0xb0] sm:$0xff]  ;;  %v1789_v34 = vor.u32 %v1787_v29, %v1786_v43  ;;  %v2236_v38 = vpack.c.bf16 %v2204_v17, %v2204_v17  ;;  %v2206_v17 = vld [vmem:[%s10558_s16 + $0xb8] sm:$0xff] }
  0x78   : > { %947 = vst [vmem:[#allocation3 + $0xe0] sm:$0xf] %v946_v6  ;;  %v771_v6 = vld [vmem:[#allocation2 + $0x2c] sm:$0xf]  ;;  %v2237_v45 = vpack.c.bf16 %v2205_v30, %v2205_v30 }
  0x79   : > { %2569 = vrot.lane.b32.xlu2 %v2398_v49, %s10475_s21  ;;  %767 = vst [vmem:[#allocation2 + $0x14] sm:$0xf] %v766_v25  ;;  %v772_v49 = vsel %vm10908_vm12, 0, %v771_v6  ;;  %v1790_v48 = vsel %vm10637_vm6, %v1783_v12, %v1789_v34  ;;  %v2238_v34 = vpack.c.bf16 %v2206_v17, %v2206_v17  ;;  %v1837_v17 = vshrl.u32 %v10871_v58, 16 }
  0x7a   : > { %704 = vst [vmem:[#allocation2 + $0x18] sm:$0x1] %v703_v51  ;;  %v2426_v51 = vshrl.u32 %v2236_v38, 16  ;;  %v2438_v44 = vshll.u32 %v2237_v45, 16 }
  0x7b   : > { %2579 = vrot.lane.b32.xlu0 %v2423_v36, %s10475_s21  ;;  %2575 = vrot.lane.b32.xlu1 %v2415_v2, %s10475_s21  ;;  %3029 = vst [vmem:[#allocation2 + $0xc] sm:$0xf] %v3028_v10  ;;  %v2435_v36 = vshrl.u32 %v2237_v45, 16  ;;  %v1791_v2 = vrot.slane %v1786_v43, 4  ;;  %v1797_v10 = vor.u32 %v1795_v59, %v11040_v54 }
  0x7c   : > { %2081 = vst.msk [vmem:[#allocation2 + $0x28] sm:$0xf] %vm2066_vm14, %v1805_v28  ;;  %v2428_v0 = vrot.slane %v2426_v51, 7 }
  0x7d   : > { %v3024_v14 = vld [vmem:[#allocation2 + $0x8] sm:$0x1]  ;;  %770 = vst [vmem:[#allocation2 + $0x20] sm:$0xf] %v769_v11  ;;  %v11097_v9 = vrot.slane %v2435_v36, 7  ;;  %v2446_v36 = vshll.u32 %v2238_v34, 16 }
  0x7e   : > { %v3025_v23 = vsel %vm10823_vm8, 0, %v3024_v14  ;;  %v831_v42 = vld [vmem:[#allocation2 + $0xf8] sm:$0x1]  ;;  %773 = vst [vmem:[#allocation2 + $0x2c] sm:$0xf] %v772_v49  ;;  %v2433_v20 = vrot.slane %v2428_v0, 4 }
  0x7f   : > { %3026 = vst [vmem:[#allocation2 + $0x8] sm:$0x1] %v3025_v23  ;;  %v832_v31 = vsel %vm10823_vm8, 0, %v831_v42  ;;  %v953_v56 = vld [vmem:[#allocation3 + $0xe0] sm:$0x1]  ;;  %v2440_v14 = vor.u32 %v2438_v44, %v11097_v9  ;;  %v960_v42 = vld [vmem:[%s10568_s20 + $0x20] sm:$0xff] }
  0x80   : > { %833 = vst [vmem:[#allocation2 + $0xf8] sm:$0x1] %v832_v31  ;;  %v954_v35 = vsel %vm10823_vm8, 0, %v953_v56  ;;  %v3031_v27 = vld [vmem:[#allocation2 + $0x14] sm:$0x1]  ;;  %v2429_v31 = vshll.u32 %v2236_v38, 16  ;;  %v11121_v28 = vpack.c.bf16 %v960_v42, %v960_v42 }
  0x81   : > { %955 = vst [vmem:[#allocation3 + $0xe0] sm:$0x1] %v954_v35  ;;  %v3032_v24 = vsel %vm10823_vm8, 0, %v3031_v27  ;;  %2577 = vrot.lane.b32.xlu2 %v2416_v19, %s10475_s21  ;;  %v2068_v15 = vld [vmem:[#allocation2 + $0x18] sm:$0xf]  ;;  %v2424_v56 = vrot.slane %v11015_v33, 4 }
  0x82   : > { %3033 = vst [vmem:[#allocation2 + $0x14] sm:$0x1] %v3032_v24  ;;  %v2069_v61 = vsel %vm11058_vm15, %v1782_v3, %v2068_v15  ;;  %v11078_v40 = vld [vmem:[#allocation2 + $0xc] sm:$0xff]   ;;  %v1807_v35 = vshrl.u32 %v10729_v60, 16  ;;  %v1814_v27 = vshrl.u32 %v10747_v37, 16  ;;  %v2431_v62 = vor.u32 %v2429_v31, %v2428_v0 }
  0x83   : > { %2070 = vst [vmem:[#allocation2 + $0x18] sm:$0xf] %v2069_v61  ;;  %9267 = vmatmul.msk.bf16.vlgmr.msra.gmra.mxu0 %vm3494_vm13, %v11078_v40  ;;  %2583 = vrot.lane.b32.xlu1 %v2433_v20, %s10475_s21  ;;  %v708_v24 = vld [vmem:[#allocation2 + $0x30] sm:$0x1]  ;;  %v774_v15 = vld [vmem:[#allocation2 + $0x38] sm:$0xf] }
  0x84   : > { %2072 = vst.msk [vmem:[#allocation2 + $0x1c] sm:$0xf] %vm2066_vm14, %v1790_v48  ;;  %v2075_v16 = vld [vmem:[#allocation2 + $0x20] sm:$0x1]  ;;  %2585 = vrot.lane.b32.xlu0 %v2440_v14, %s10475_s21  ;;  %v1809_v43 = vrot.slane %v1807_v35, 7  ;;  %v1816_v29 = vrot.slane %v1814_v27, 7  ;;  %v2432_v37 = vsel %vm10637_vm6, %v2424_v56, %v2431_v62 }
  0x85   : > { %707 = vst [vmem:[#allocation2 + $0x24] sm:$0x1] %v706_v32  ;;  %v2082_v52 = vld [vmem:[#allocation2 + $0x2c] sm:$0x1]  ;;  %v2076_v22 = vsel %vm11101_vm9, %v1791_v2, %v2075_v16  ;;  %v709_v11 = vsel %vm10823_vm8, 0, %v708_v24  ;;  %v775_v33 = vsel %vm10908_vm12, 0, %v774_v15 }
  0x86   : > { %v9969_v25 = vld [vmem:[#allocation2 + $0x8] sm:$0xff]   ;;  %v2083_v23 = vsel %vm11101_vm9, %v1806_v41, %v2082_v52  ;;  %2077 = vst [vmem:[#allocation2 + $0x20] sm:$0x1] %v2076_v22  ;;  %v1810_v38 = vshll.u32 %v10729_v60, 16  ;;  %v1813_v6 = vrot.slane %v1809_v43, 4  ;;  %v1819_v45 = vor.u32 %v1817_v26, %v1816_v29 }
  0x87   : > { %9299 = vmatmul.msk.bf16.gmra.mxu1 %vm3494_vm13, %v9969_v25  ;;  %2084 = vst [vmem:[#allocation2 + $0x2c] sm:$0x1] %v2083_v23  ;;  %v2443_v49 = vshrl.u32 %v2238_v34, 16  ;;  %v11139_v32 = vrot.slane %v11121_v28, 3  ;;  %v1821_v48 = vrot.slane %v1816_v29, 4  ;;  %v2441_v44 = vrot.slane %v11097_v9, 4 }
  0x88   : > { %710 = vst [vmem:[#allocation2 + $0x30] sm:$0x1] %v709_v11  ;;  %v1820_v25 = vsel %vm10637_vm6, %v1813_v6, %v1819_v45  ;;  %v1812_v0 = vor.u32 %v1810_v38, %v1809_v43  ;;  %v1829_v2 = vshrl.u32 %v10830_v8, 16  ;;  %v711_v41 = vld [vmem:[#allocation2 + $0x3c] sm:$0x1]  ;;  %v1825_v52 = vshll.u32 %v10797_v46, 16 }
  0x89   : > { %v11129_v30 = vld [vmem:[#allocation2 + $0x10] sm:$0xff]   ;;  %2581 = vrot.lane.b32.xlu2 %v2432_v37, %s10475_s21  ;;  %776 = vst [vmem:[#allocation2 + $0x38] sm:$0xf] %v775_v33  ;;  %v11148_v51 = vrot.slane %v2443_v49, 7  ;;  %v1051_v59 = vsel %vm997_vm1, %v11121_v28, %v11139_v32  ;;  %v712_v14 = vsel %vm10823_vm8, 0, %v711_v41  ;;  %v4134_v22 = vshrl.u32 %v11078_v40, 16 }
  0x8a   : > { %v2665_v21 = vld [vmem:[#allocation2 + $0x18] sm:$0xf]  ;;  %2088 = vst.msk [vmem:[#allocation2 + $0x34] sm:$0xf] %vm2066_vm14, %v1820_v25  ;;  %v1831_v16 = vrot.slane %v1829_v2, 7  ;;  %v4136_v23 = vshll.u32 %v11078_v40, 16  ;;  %v1054_v26 = vsel %vm1001_vm2, %v11121_v28, %v11139_v32 }
  0x8b   : > { %v2448_v20 = vor.u32 %v2446_v36, %v11148_v51  ;;  %713 = vst [vmem:[#allocation2 + $0x3c] sm:$0x1] %v712_v14  ;;  %v11175_v35 = vrot.slane %v1051_v59, 2  ;;  %v1832_v29 = vshll.u32 %v10830_v8, 16  ;;  %v1844_v37 = vshrl.u32 %v10893_v5, 16 }
  0x8c   : > { %v2520_v53 = vpop.permute.xlu0 %2519  ;;  %v2078_v54 = vld [vmem:[#allocation2 + $0x24] sm:$0xf]  ;;  %v4138_v62 = vrot.slane %v4136_v23, 1  ;;  %v1847_v34 = vshll.u32 %v10893_v5, 16  ;;  %v714_v38 = vld [vmem:[#allocation2 + $0x48] sm:$0x1]  ;;  %v11201_v8 = vsel %vm988_vm3, %v11121_v28, %v11139_v32 }
  0x8d   : > { %v2666_v19 = vsel %vm11093_vm10, %v2520_v53, %v2665_v21  ;;  %v2079_v3 = vsel %vm11058_vm15, %v1797_v10, %v2078_v54  ;;  %v777_v53 = vld [vmem:[#allocation2 + $0x44] sm:$0xf]  ;;  %v1822_v10 = vshrl.u32 %v10797_v46, 16  ;;  %v1834_v6 = vor.u32 %v1832_v29, %v1831_v16  ;;  %v2672_v2 = vld [vmem:[#allocation2 + $0x20] sm:$0x1] }
  0x8e   : > { %2667 = vst [vmem:[#allocation2 + $0x18] sm:$0xf] %v2666_v19  ;;  %v2679_v60 = vld [vmem:[#allocation2 + $0x2c] sm:$0x1]  ;;  %v778_v21 = vsel %vm10908_vm12, 0, %v777_v53  ;;  %v4139_v11 = vor.u32 %v4138_v62, %v4134_v22  ;;  %v1840_v45 = vshll.u32 %v10871_v58, 16  ;;  %v1048_v58 = vsel %vm993_vm0, %v11121_v28, %v11139_v32 }
  0x8f   : > { %2080 = vst [vmem:[#allocation2 + $0x24] sm:$0xf] %v2079_v3  ;;  %v2085_v54 = vld [vmem:[#allocation2 + $0x30] sm:$0xf]  ;;  %v2449_v3 = vsel %vm10637_vm6, %v2441_v44, %v2448_v20  ;;  %v1824_v31 = vrot.slane %v1822_v10, 7  ;;  %v715_v49 = vsel %vm10823_vm8, 0, %v714_v38  ;;  %v1129_v32 = vunpack.i.h.s16 %v11201_v8 }
  0x90   : > { %779 = vst [vmem:[#allocation2 + $0x44] sm:$0xf] %v778_v21  ;;  %v2086_v46 = vsel %vm11058_vm15, %v1812_v0, %v2085_v54  ;;  %v2089_v27 = vld [vmem:[#allocation2 + $0x38] sm:$0x1]  ;;  %2587 = vrot.lane.b32.xlu1 %v2449_v3, %s10475_s21  ;;  %v11203_v5 = vrot.slane %v1844_v37, 7  ;;  %v11208_v36 = vrot.slane %v1054_v26, 3  ;;  %v9243_v26 = vpack.i.b16 %v11201_v8, %v11201_v8 }
  0x91   : > { %2087 = vst [vmem:[#allocation2 + $0x30] sm:$0xf] %v2086_v46  ;;  %v2090_v24 = vsel %vm11101_vm9, %v1821_v48, %v2089_v27  ;;  %v1827_v43 = vor.u32 %v1825_v52, %v1824_v31  ;;  %v1828_v33 = vrot.slane %v1824_v31, 4  ;;  %v2207_v53 = vld [vmem:[%s10558_s16 + $0xc0] sm:$0xff]  ;;  %v1859_v29 = vshrl.u32 %v10949_v47, 16 }
  0x92   : > { %2091 = vst [vmem:[#allocation2 + $0x38] sm:$0x1] %v2090_v24  ;;  %v2092_v44 = vld [vmem:[#allocation2 + $0x3c] sm:$0xf]  ;;  %v1849_v28 = vor.u32 %v1847_v34, %v11203_v5  ;;  %v780_v14 = vld [vmem:[#allocation2 + $0x50] sm:$0xf]  ;;  %v2239_v10 = vpack.c.bf16 %v2207_v53, %v2207_v53  ;;  %v11241_v24 = vpack.i.b16 %v1129_v32, %v1129_v32 }
  0x93   : > { %v2528_v61 = vpop.permute.xlu2 %2527  ;;  %716 = vst [vmem:[#allocation2 + $0x48] sm:$0x1] %v715_v49  ;;  %v2093_v41 = vsel %vm11058_vm15, %v1827_v43, %v2092_v44  ;;  %v1835_v20 = vsel %vm10637_vm6, %v1828_v33, %v1834_v6  ;;  %v781_v46 = vsel %vm10908_vm12, 0, %v780_v14  ;;  %v783_v34 = vld [vmem:[#allocation2 + $0x5c] sm:$0xf]  ;;  %v1861_v8 = vrot.slane %v1859_v29, 7 }
  0x94   : > { %2678 = vst.msk [vmem:[#allocation2 + $0x28] sm:$0xf] %vm2663_vm5, %v2528_v61  ;;  %v1836_v61 = vrot.slane %v1831_v16, 4  ;;  %v1133_v16 = vunpack.i.h.s16 %v11175_v35  ;;  %v2455_v27 = vshll.u32 %v2239_v10, 16  ;;  %v717_v38 = vld [vmem:[#allocation2 + $0x54] sm:$0x1] }
  0x95   : > { %v11132_v12 = vld [vmem:[#allocation2 + $0x14] sm:$0xff]   ;;  %2094 = vst [vmem:[#allocation2 + $0x3c] sm:$0xf] %v2093_v41 }
  0x96   : > { %9268 = vmatmul.msk.bf16.gmra.mxu0 %vm3494_vm13, %v11132_v12  ;;  %v4140_v56 = vshll.u32 %v11132_v12, 16  ;;  %v5149_v23 = vrot.slane %v11132_v12, 1  ;;  %2095 = vst.msk [vmem:[#allocation2 + $0x40] sm:$0xf] %vm2066_vm14, %v1835_v20  ;;  %v11248_v33 = vpack.i.b16 %v1133_v16, %v1133_v16  ;;  %v2675_v44 = vld [vmem:[#allocation2 + $0x24] sm:$0xf] }
  0x97   : > { %9300 = vmatmul.msk.bf16.gmra.mxu1 %vm3494_vm13, %v11129_v30  ;;  %v2096_v48 = vld [vmem:[#allocation2 + $0x44] sm:$0x1]  ;;  %782 = vst [vmem:[#allocation2 + $0x50] sm:$0xf] %v781_v46  ;;  %v1855_v16 = vshll.u32 %v10935_v39, 16  ;;  %v1867_v46 = vshrl.u32 %v10975_v13, 16 }
  0x98   : > { %v11185_v15 = vrot.slane %v4140_v56, 1  ;;  %v2097_v0 = vsel %vm11101_vm9, %v1836_v61, %v2096_v48  ;;  %v2452_v56 = vshrl.u32 %v2239_v10, 16  ;;  %v2682_v6 = vld [vmem:[#allocation2 + $0x30] sm:$0xf]  ;;  %v1261_v20 = vperm.slane %v11248_v33, 0 }
  0x99   : > { %2098 = vst [vmem:[#allocation2 + $0x44] sm:$0x1] %v2097_v0  ;;  %v11264_v0 = vperm.slane %v9243_v26, 0  ;;  %v4555_v26 = vshrl.u32 %v11129_v30, 16  ;;  %v2686_v29 = vld [vmem:[#allocation2 + $0x38] sm:$0x1] }
  0x9a   : > { %v11196_v25 = vsel %vm4133_vm4, %v4139_v11, %v11185_v15  ;;  %v2099_v61 = vld [vmem:[#allocation2 + $0x48] sm:$0xf]  ;;  %v11243_v43 = vrot.slane %v2452_v56, 7  ;;  %v9245_v11 = vpack.i.b16 %v11175_v35, %v11175_v35  ;;  %v784_v35 = vsel %vm10908_vm12, 0, %v783_v34 }
  0x9b   : > { %v2530_v9 = vpop.permute.xlu2 %2529  ;;  %785 = vst [vmem:[#allocation2 + $0x5c] sm:$0xf] %v784_v35  ;;  %v1866_v56 = vrot.slane %v1861_v8, 4  ;;  %v1870_v33 = vshll.u32 %v10975_v13, 16  ;;  %v961_v13 = vld [vmem:[%s10568_s20 + $0x28] sm:$0xff] }
  0x9c   : > { %v2680_v42 = vsel %vm11163_vm7, %v2530_v9, %v2679_v60  ;;  %v1839_v60 = vrot.slane %v1837_v17, 7  ;;  %v5148_v9 = vrot.slane %v11078_v40, 1  ;;  %v1135_v40 = vunpack.i.h.s16 %v11208_v36 }
  0x9d   : > { %2681 = vst [vmem:[#allocation2 + $0x2c] sm:$0x1] %v2680_v42  ;;  %v11223_v42 = vrot.slane %v1048_v58, 1  ;;  %v9246_v17 = vpack.i.b16 %v11208_v36, %v11208_v36  ;;  %v2457_v49 = vor.u32 %v2455_v27, %v11243_v43  ;;  %v1852_v58 = vshrl.u32 %v10935_v39, 16 }
  0x9e   : > { %v1843_v21 = vrot.slane %v1839_v60, 4  ;;  %v1842_v22 = vor.u32 %v1840_v45, %v1839_v60  ;;  %v11237_v62 = vsel %vm5147_vm11, %v5148_v9, %v5149_v23  ;;  %v718_v60 = vsel %vm10823_vm8, 0, %v717_v38  ;;  %v2208_v38 = vld [vmem:[%s10558_s16 + $0xc8] sm:$0xff] }
  0x9f   : > { %v1131_v36 = vunpack.i.h.s16 %v11223_v42  ;;  %2591 = vrot.lane.b32.xlu0 %v2457_v49, %s10475_s21  ;;  %v11270_v41 = vperm.slane %v9245_v11, 0  ;;  %719 = vst [vmem:[#allocation2 + $0x54] sm:$0x1] %v718_v60  ;;  %v1854_v9 = vrot.slane %v1852_v58, 7  ;;  %v2689_v11 = vld [vmem:[#allocation2 + $0x3c] sm:$0xf]  ;;  %v11308_v49 = vpack.c.bf16 %v2208_v38, %v2208_v38 }
  0xa0   : > { %v1850_v31 = vsel %vm10637_vm6, %v1843_v21, %v1849_v28  ;;  %v2100_v37 = vsel %vm11058_vm15, %v1842_v22, %v2099_v61  ;;  %v2693_v48 = vld [vmem:[#allocation2 + $0x44] sm:$0x1]  ;;  %v11273_v21 = vperm.slane %v9246_v17, 0  ;;  %v4551_v22 = vshll.u32 %v11129_v30, 16  ;;  %v11314_v60 = vld [vmem:[#allocation1 + $0x20] sm:$0xff] }
  0xa1   : > { %2102 = vst.msk [vmem:[#allocation2 + $0x4c] sm:$0xf] %vm2066_vm14, %v1850_v31  ;;  %v1851_v31 = vrot.slane %v11203_v5, 4  ;;  %v1874_v61 = vshrl.u32 %v10990_v57, 16  ;;  %v1877_v5 = vshll.u32 %v10990_v57, 16  ;;  %v1857_v34 = vor.u32 %v1855_v16, %v1854_v9 }
  0xa2   : > { %2101 = vst [vmem:[#allocation2 + $0x48] sm:$0xf] %v2100_v37  ;;  %v2103_v37 = vld [vmem:[#allocation2 + $0x50] sm:$0x1]  ;;  %v11316_v58 = vrot.slane %v4551_v22, 1 }
  0xa3   : > { %v2534_v59 = vpop.permute.xlu2 %2533  ;;  %v2104_v30 = vsel %vm11101_vm9, %v1851_v31, %v2103_v37 }
  0xa4   : > { %2685 = vst.msk [vmem:[#allocation2 + $0x34] sm:$0xf] %vm2663_vm5, %v2534_v59  ;;  %v2522_v54 = vpop.permute.xlu1 %2521  ;;  %v11262_v59 = vpack.i.b16 %v1135_v40, %v1135_v40  ;;  %v1858_v40 = vrot.slane %v1854_v9, 4  ;;  %v720_v9 = vld [vmem:[#allocation2 + $0x60] sm:$0x1] }
  0xa5   : > { %v2524_v52 = vpop.permute.xlu0 %2523  ;;  %2669 = vst.msk [vmem:[#allocation2 + $0x1c] sm:$0xf] %vm2663_vm5, %v2522_v54 }
  0xa6   : > { %v2673_v3 = vsel %vm11163_vm7, %v2524_v52, %v2672_v2  ;;  %v1257_v2 = vperm.slane %v11241_v24, 0  ;;  %v1862_v52 = vshll.u32 %v10949_v47, 16  ;;  %v2450_v47 = vrot.slane %v11148_v51, 4  ;;  %2105 = vst [vmem:[#allocation2 + $0x50] sm:$0x1] %v2104_v30 }
  0xa7   : > { %2674 = vst [vmem:[#allocation2 + $0x20] sm:$0x1] %v2673_v3  ;;  %v1263_v27 = vperm.slane %v11262_v59, 0  ;;  %v11298_v51 = vrot.slane %v1867_v46, 7  ;;  %v1417_v46 = vpack.i.b16 %v11264_v0, %v11264_v0  ;;  %v11349_v0 = vpack.i.b16 %v1261_v20, %v1261_v20 }
  0xa8   : > { %v1864_v39 = vor.u32 %v1862_v52, %v1861_v8  ;;  %2589 = vrot.lane.b32.xlu2 %v2450_v47, %s10475_s21  ;;  %15718 = vst [vmem:[#allocation7_spill] sm:$0xff] %v11316_v58  ;;  %v789_v47 = vld [vmem:[#allocation2 + $0x74] sm:$0xf] }
  0xa9   : > { %v1873_v8 = vrot.slane %v11298_v51, 4 }
  0xaa   : > { %v1865_v57 = vsel %vm10637_vm6, %v1858_v40, %v1864_v39 }
  0xab   : > { %v2542_v45 = vpop.permute.xlu2 %2541  ;;  %2109 = vst.msk [vmem:[#allocation2 + $0x58] sm:$0xf] %vm2066_vm14, %v1865_v57  ;;  %v2696_v57 = vld [vmem:[#allocation2 + $0x48] sm:$0xf] }
  0xac   : > { %v2694_v53 = vsel %vm11163_vm7, %v2542_v45, %v2693_v48  ;;  %v2526_v32 = vpop.permute.xlu1 %2525  ;;  %v11275_v14 = vld [vmem:[#allocation2 + $0x18] sm:$0xff]   ;;  %v11306_v45 = vrot.slane %v1874_v61, 7  ;;  %v2209_v48 = vld [vmem:[%s10558_s16 + $0xd0] sm:$0xff]  ;;  %v721_v61 = vsel %vm10823_vm8, 0, %v720_v9  ;;  %v1439_v9 = vperm.slane %v11349_v0, 0 }
  0xad   : > { %v2532_v28 = vpop.permute.xlu0 %2531  ;;  %2695 = vst [vmem:[#allocation2 + $0x44] sm:$0x1] %v2694_v53  ;;  %v2676_v54 = vsel %vm11093_vm10, %v2526_v32, %v2675_v44  ;;  %9301 = vmatmul.msk.bf16.gmra.mxu1 %vm3494_vm13, %v11275_v14  ;;  %v9244_v44 = vpack.i.b16 %v11223_v42, %v11223_v42  ;;  %v11320_v53 = vpack.i.b16 %v1131_v36, %v1131_v36  ;;  %v2106_v32 = vld [vmem:[#allocation2 + $0x54] sm:$0xf]  ;;  %v4558_v52 = vshll.u32 %v11275_v14, 16 }
  0xae   : > { %v2683_v10 = vsel %vm11093_vm10, %v2532_v28, %v2682_v6  ;;  %v11286_v3 = vld [vmem:[#allocation2 + $0x1c] sm:$0xff]   ;;  %2677 = vst [vmem:[#allocation2 + $0x24] sm:$0xf] %v2676_v54  ;;  %v2241_v16 = vpack.c.bf16 %v2209_v48, %v2209_v48  ;;  %v2107_v22 = vsel %vm11058_vm15, %v1857_v34, %v2106_v32  ;;  %v786_v42 = vld [vmem:[#allocation2 + $0x68] sm:$0xf]  ;;  %v2460_v36 = vshrl.u32 %v11308_v49, 16 }
  0xaf   : > { %2684 = vst [vmem:[#allocation2 + $0x30] sm:$0xf] %v2683_v10  ;;  %9269 = vmatmul.msk.bf16.gmra.mxu0 %vm3494_vm13, %v11286_v3  ;;  %v2110_v6 = vld [vmem:[#allocation2 + $0x5c] sm:$0x1]  ;;  %v1879_v10 = vor.u32 %v1877_v5, %v11306_v45  ;;  %v1889_v34 = vshrl.u32 %v11314_v60, 16  ;;  %v11354_v30 = vrot.slane %v4558_v52, 1 }
  0xb0   : > { %v2111_v35 = vsel %vm11101_vm9, %v1866_v56, %v2110_v6  ;;  %v2469_v14 = vshrl.u32 %v2241_v16, 16  ;;  %v2472_v39 = vshll.u32 %v2241_v16, 16  ;;  %v2462_v5 = vrot.slane %v2460_v36, 7  ;;  %2108 = vst [vmem:[#allocation2 + $0x54] sm:$0xf] %v2107_v22 }
  0xb1   : > { %2112 = vst [vmem:[#allocation2 + $0x5c] sm:$0x1] %v2111_v35  ;;  %v1880_v40 = vsel %vm10637_vm6, %v1873_v8, %v1879_v10  ;;  %v11359_v6 = vpack.i.b16 %v1257_v2, %v1257_v2  ;;  %v1441_v35 = vpack.i.b16 %v11273_v21, %v11273_v21  ;;  %v11368_v8 = vpack.i.b16 %v1263_v27, %v1263_v27 }
  0xb2   : > { %v11343_v37 = vrot.slane %v2469_v14, 7  ;;  %2116 = vst.msk [vmem:[#allocation2 + $0x64] sm:$0xf] %vm2066_vm14, %v1880_v40  ;;  %v11376_v2 = vperm.slane %v9244_v44, 0  ;;  %v11383_v21 = vrot.slane %v1889_v34, 7  ;;  %v1259_v27 = vperm.slane %v11320_v53, 0 }
  0xb3   : > { %v2546_v17 = vpop.permute.xlu2 %2545  ;;  %722 = vst [vmem:[#allocation2 + $0x60] sm:$0x1] %v721_v61  ;;  %v11386_v10 = vperm.slane %v1417_v46, 0  ;;  %v1872_v53 = vor.u32 %v1870_v33, %v11298_v51  ;;  %v2458_v22 = vrot.slane %v11243_v43, 4  ;;  %v11399_v36 = vperm.slane %v1441_v35, 0  ;;  %v11403_v14 = vld [vmem:[#allocation1] sm:$0xff] }
  0xb4   : > { %2699 = vst.msk [vmem:[#allocation2 + $0x4c] sm:$0xf] %vm2663_vm5, %v2546_v17  ;;  %v2536_v54 = vpop.permute.xlu1 %2535  ;;  %v787_v17 = vsel %vm10908_vm12, 0, %v786_v42  ;;  %v2474_v20 = vor.u32 %v2472_v39, %v11343_v37  ;;  %v2463_v42 = vshll.u32 %v11308_v49, 16  ;;  %v1881_v40 = vrot.slane %v11306_v45, 4 }
  0xb5   : > { %v2538_v28 = vpop.permute.xlu0 %2537  ;;  %v2687_v56 = vsel %vm11163_vm7, %v2536_v54, %v2686_v29  ;;  %v1433_v29 = vpack.i.b16 %v11270_v41, %v11270_v41  ;;  %v790_v41 = vsel %vm10908_vm12, 0, %v789_v47  ;;  %788 = vst [vmem:[#allocation2 + $0x68] sm:$0xf] %v787_v17  ;;  %v9972_v44 = vld [vmem:[#allocation2 + $0x20] sm:$0xff]   ;;  %v1423_v54 = vperm.slane %v11359_v6, 0 }
  0xb6   : > { %v2690_v31 = vsel %vm11093_vm10, %v2538_v28, %v2689_v11  ;;  %2688 = vst [vmem:[#allocation2 + $0x38] sm:$0x1] %v2687_v56  ;;  %v4557_v11 = vor.u32 %v4555_v26, %v11316_v58  ;;  %v2467_v26 = vrot.slane %v2462_v5, 4  ;;  %2597 = vrot.lane.b32.xlu0 %v2474_v20, %s10475_s21  ;;  %v1447_v56 = vperm.slane %v11368_v8, 0  ;;  %v11410_v51 = vld [vmem:[#allocation2 + $0x2c] sm:$0xff]  }
  0xb7   : > { %2691 = vst [vmem:[#allocation2 + $0x3c] sm:$0xf] %v2690_v31  ;;  %v11378_v28 = vperm.slane %v1433_v29, 0  ;;  %v11394_v31 = vld [vmem:[#allocation2 + $0x24] sm:$0xff]   ;;  %v1896_v39 = vrot.slane %v11383_v21, 4  ;;  %v1882_v43 = vshrl.u32 %v11403_v14, 16  ;;  %v2465_v49 = vor.u32 %v2463_v42, %v2462_v5 }
  0xb8   : > { %v2707_v48 = vld [vmem:[#allocation2 + $0x5c] sm:$0x1]  ;;  %2595 = vrot.lane.b32.xlu1 %v2467_v26, %s10475_s21  ;;  %v11373_v24 = vsel %vm4133_vm4, %v4557_v11, %v11354_v30  ;;  %791 = vst [vmem:[#allocation2 + $0x74] sm:$0xf] %v790_v41  ;;  %v4147_v47 = vshll.u32 %v11286_v3, 16  ;;  %v11413_v46 = vpack.c.bf16 %v961_v13, %v961_v13  ;;  %v4144_v5 = vshrl.u32 %v11132_v12, 16 }
  0xb9   : > { %15719 = vst [vmem:[#allocation8_spill] sm:$0xff] %v11373_v24  ;;  %v2703_v61 = vld [vmem:[#allocation2 + $0x54] sm:$0xf]  ;;  %v2466_v34 = vsel %vm10637_vm6, %v2458_v22, %v2465_v49  ;;  %v1425_v26 = vpack.i.b16 %v11376_v2, %v11376_v2  ;;  %v11426_v41 = vpack.i.b16 %v1259_v27, %v1259_v27  ;;  %v723_v13 = vld [vmem:[#allocation2 + $0x6c] sm:$0x1] }
  0xba   : > { %1672 = vst [vmem:[#allocation1 + $0x20] ss:$4 sm:$0xff] %v11378_v28  ;;  %v2113_v11 = vld [vmem:[#allocation2 + $0x60] sm:$0xf]  ;;  %2593 = vrot.lane.b32.xlu2 %v2466_v34, %s10475_s21  ;;  %v4146_v2 = vor.u32 %v4144_v5, %v11185_v15  ;;  %v724_v49 = vsel %vm10823_vm8, 0, %v723_v13 }
  0xbb   : > { %v2554_v38 = vpop.permute.xlu2 %2553  ;;  %1674 = vst [vmem:[#allocation1 + $0x21] ss:$4 sm:$0xff] %v1439_v9  ;;  %v2114_v29 = vsel %vm11058_vm15, %v1872_v53, %v2113_v11  ;;  %v4161_v53 = vshll.u32 %v11410_v51, 16  ;;  %v1431_v34 = vperm.slane %v11426_v41, 0 }
  0xbc   : > { %v2708_v59 = vsel %vm11163_vm7, %v2554_v38, %v2707_v48  ;;  %v2540_v16 = vpop.permute.xlu1 %2539  ;;  %v2117_v17 = vld [vmem:[#allocation2 + $0x68] sm:$0x1]  ;;  %v4151_v38 = vshrl.u32 %v11286_v3, 16  ;;  %2115 = vst [vmem:[#allocation2 + $0x60] sm:$0xf] %v2114_v29 }
  0xbd   : > { %v2544_v32 = vpop.permute.xlu0 %2543  ;;  %2709 = vst [vmem:[#allocation2 + $0x5c] sm:$0x1] %v2708_v59  ;;  %9302 = vmatmul.msk.bf16.gmra.mxu1 %vm3494_vm13, %v9972_v44  ;;  %v2118_v33 = vsel %vm11101_vm9, %v1881_v40, %v2117_v17  ;;  %v4149_v59 = vrot.slane %v4147_v47, 1  ;;  %v4154_v44 = vshll.u32 %v11394_v31, 16  ;;  %v11443_v42 = vld [vmem:[#allocation2 + $0x34] sm:$0xff]   ;;  %v1892_v47 = vshll.u32 %v11314_v60, 16 }
  0xbe   : > { %v2697_v52 = vsel %vm11093_vm10, %v2544_v32, %v2696_v57  ;;  %2692 = vst.msk [vmem:[#allocation2 + $0x40] sm:$0xf] %vm2663_vm5, %v2540_v16  ;;  %v2700_v57 = vld [vmem:[#allocation2 + $0x50] sm:$0x1]  ;;  %v11433_v32 = vrot.slane %v1882_v43, 7  ;;  %v11449_v43 = vperm.slane %v1425_v26, 0 }
  0xbf   : > { %2698 = vst [vmem:[#allocation2 + $0x48] sm:$0xf] %v2697_v52  ;;  %9270 = vmatmul.msk.bf16.gmra.mxu0 %vm3494_vm13, %v11394_v31  ;;  %v2124_v20 = vld [vmem:[#allocation2 + $0x74] sm:$0x1]  ;;  %v4158_v52 = vshrl.u32 %v11394_v31, 16  ;;  %v11446_v15 = vsel %vm4133_vm4, %v4146_v2, %v4149_v59  ;;  %v4153_v40 = vor.u32 %v4151_v38, %v4149_v59  ;;  %v4163_v11 = vrot.slane %v4161_v53, 1 }
  0xc0   : > { %2119 = vst [vmem:[#allocation2 + $0x68] sm:$0x1] %v2118_v33  ;;  %v2125_v48 = vsel %vm11101_vm9, %v1896_v39, %v2124_v20  ;;  %v5151_v39 = vrot.slane %v11286_v3, 1  ;;  %v5153_v3 = vrot.slane %v11394_v31, 1  ;;  %v5155_v17 = vrot.slane %v11410_v51, 1 }
  0xc1   : > { %2126 = vst [vmem:[#allocation2 + $0x74] sm:$0x1] %v2125_v48  ;;  %v1885_v60 = vshll.u32 %v11403_v14, 16  ;;  %v1888_v5 = vrot.slane %v11433_v32, 4  ;;  %v4165_v31 = vshrl.u32 %v11410_v51, 16  ;;  %v4168_v33 = vshll.u32 %v11443_v42, 16 }
  0xc2   : > { %1676 = vst [vmem:[#allocation1 + $0x22] ss:$4 sm:$0xff] %v11399_v36  ;;  %v11459_v29 = vsel %vm5147_vm11, %v5149_v23, %v5151_v39  ;;  %v1894_v20 = vor.u32 %v1892_v47, %v11383_v21  ;;  %v11476_v48 = vsel %vm5147_vm11, %v5151_v39, %v5153_v3  ;;  %v726_v47 = vld [vmem:[#allocation2 + $0x78] sm:$0x1] }
  0xc3   : > { %v2558_v45 = vpop.permute.xlu2 %2557  ;;  %1678 = vst [vmem:[#allocation1 + $0x23] ss:$4 sm:$0xff] %v1447_v56  ;;  %v2710_v26 = vld [vmem:[#allocation2 + $0x60] sm:$0xf] }
  0xc4   : > { %2713 = vst.msk [vmem:[#allocation2 + $0x64] sm:$0xf] %vm2663_vm5, %v2558_v45  ;;  %v2548_v27 = vpop.permute.xlu1 %2547  ;;  %v2210_v45 = vld [vmem:[%s10558_s16 + $0xd8] sm:$0xff] }
  0xc5   : > { %v2550_v35 = vpop.permute.xlu0 %2549  ;;  %v2701_v22 = vsel %vm11163_vm7, %v2548_v27, %v2700_v57  ;;  %v2242_v38 = vpack.c.bf16 %v2210_v45, %v2210_v45  ;;  %725 = vst [vmem:[#allocation2 + $0x6c] sm:$0x1] %v724_v49  ;;  %v4167_v27 = vor.u32 %v4165_v31, %v4163_v11  ;;  %v1887_v49 = vor.u32 %v1885_v60, %v11433_v32 }
  0xc6   : > { %v2704_v16 = vsel %vm11093_vm10, %v2550_v35, %v2703_v61  ;;  %2702 = vst [vmem:[#allocation2 + $0x50] sm:$0x1] %v2701_v22  ;;  %v4156_v61 = vrot.slane %v4154_v44, 1  ;;  %v11486_v44 = vsel %vm5147_vm11, %v5153_v3, %v5155_v17  ;;  %v5157_v45 = vrot.slane %v11443_v42, 1 }
  0xc7   : > { %2705 = vst [vmem:[#allocation2 + $0x54] sm:$0xf] %v2704_v16  ;;  %v2477_v35 = vshrl.u32 %v2242_v38, 16  ;;  %v2480_v14 = vshll.u32 %v2242_v38, 16  ;;  %v11483_v16 = vrot.slane %v4168_v33, 1  ;;  %v985_v60 = vrot.slane %v11413_v46, 3 }
  0xc8   : > { %v11469_v12 = vsel %vm4133_vm4, %v4153_v40, %v4156_v61  ;;  %v4160_v23 = vor.u32 %v4158_v52, %v4156_v61  ;;  %1664 = vst [vmem:[#allocation1] ss:$4 sm:$0xff] %v11386_v10  ;;  %v2721_v2 = vld [vmem:[#allocation2 + $0x74] sm:$0x1]  ;;  %v9973_v52 = vld [vmem:[#allocation2 + $0x28] sm:$0xff]   ;;  %v2475_v40 = vrot.slane %v11343_v37, 4 }
  0xc9   : > { %1666 = vst [vmem:[#allocation1 + $0x1] ss:$4 sm:$0xff] %v1423_v54  ;;  %v11494_v39 = vrot.slane %v2477_v35, 7  ;;  %v11501_v61 = vsel %vm4133_vm4, %v4167_v27, %v11483_v16  ;;  %v816_v37 = vld [vmem:[#allocation2 + $0xe0] sm:$0xf]  ;;  %v1061_v33 = vsel %vm993_vm0, %v11413_v46, %v985_v60 }
  0xca   : > { %v11481_v59 = vsel %vm4133_vm4, %v4160_v23, %v4163_v11  ;;  %1668 = vst [vmem:[#allocation1 + $0x2] ss:$4 sm:$0xff] %v11449_v43  ;;  %v1895_v11 = vsel %vm10637_vm6, %v1888_v5, %v1894_v20  ;;  %v792_v38 = vld [vmem:[#allocation2 + $0x80] sm:$0xf]  ;;  %v11509_v32 = vld [vmem:[#allocation1 + $0x20] sm:$0xff]  ;;  %v727_v5 = vsel %vm10823_vm8, 0, %v726_v47 }
  0xcb   : > { %v2566_v57 = vpop.permute.xlu2 %2565  ;;  %v2482_v3 = vor.u32 %v2480_v14, %v11494_v39  ;;  %1670 = vst [vmem:[#allocation1 + $0x3] ss:$4 sm:$0xff] %v1431_v34  ;;  %v1904_v23 = vshrl.u32 %v11509_v32, 16  ;;  %v2714_v20 = vld [vmem:[#allocation2 + $0x68] sm:$0x1]  ;;  %v793_v35 = vsel %vm10908_vm12, 0, %v792_v38  ;;  %v1059_v14 = vsel %vm988_vm3, %v11413_v46, %v985_v60 }
  0xcc   : > { %v2722_v22 = vsel %vm11163_vm7, %v2566_v57, %v2721_v2  ;;  %v2120_v57 = vld [vmem:[#allocation2 + $0x6c] sm:$0xf]  ;;  %2123 = vst.msk [vmem:[#allocation2 + $0x70] sm:$0xf] %vm2066_vm14, %v1895_v11 }
  0xcd   : > { %v2556_v13 = vpop.permute.xlu0 %2555  ;;  %v2552_v21 = vpop.permute.xlu1 %2551  ;;  %9303 = vmatmul.msk.bf16.gmra.mxu1 %vm3494_vm13, %v9973_v52  ;;  %2723 = vst [vmem:[#allocation2 + $0x74] sm:$0x1] %v2722_v22  ;;  %v2121_v31 = vsel %vm11058_vm15, %v1887_v49, %v2120_v57  ;;  %v1906_v27 = vrot.slane %v1904_v23, 7 }
  0xce   : > { %v2711_v53 = vsel %vm11093_vm10, %v2556_v13, %v2710_v26  ;;  %2706 = vst.msk [vmem:[#allocation2 + $0x58] sm:$0xf] %vm2663_vm5, %v2552_v21  ;;  %v11515_v26 = vsel %vm5147_vm11, %v5155_v17, %v5157_v45  ;;  %v817_v17 = vsel %vm10908_vm12, 0, %v816_v37  ;;  %v1063_v13 = vrot.slane %v1061_v33, 1 }
  0xcf   : > { %2712 = vst [vmem:[#allocation2 + $0x60] sm:$0xf] %v2711_v53  ;;  %9271 = vmatmul.msk.bf16.gmra.mxu0 %vm3494_vm13, %v11410_v51  ;;  %v2483_v51 = vsel %vm10637_vm6, %v2475_v40, %v2482_v3  ;;  %v1137_v21 = vunpack.i.h.s16 %v1059_v14  ;;  %v9247_v53 = vpack.i.b16 %v1059_v14, %v1059_v14  ;;  %v1911_v37 = vrot.slane %v1906_v27, 4 }
  0xd0   : > { %2599 = vrot.lane.b32.xlu1 %v2483_v51, %s10475_s21  ;;  %2122 = vst [vmem:[#allocation2 + $0x6c] sm:$0xf] %v2121_v31  ;;  %v1139_v49 = vunpack.i.h.s16 %v1063_v13  ;;  %v1907_v3 = vshll.u32 %v11509_v32, 16  ;;  %v9248_v51 = vpack.i.b16 %v1063_v13, %v1063_v13  ;;  %v1064_v31 = vsel %vm997_vm1, %v11413_v46, %v985_v60 }
  0xd1   : > { %728 = vst [vmem:[#allocation2 + $0x78] sm:$0x1] %v727_v5  ;;  %v1201_v22 = vpack.i.b16 %v1137_v21, %v1137_v21  ;;  %v2211_v5 = vld [vmem:[%s10558_s16 + $0xe0] sm:$0xff]  ;;  %v1264_v23 = vperm.slane %v9247_v53, 0  ;;  %v1066_v21 = vrot.slane %v1064_v31, 2 }
  0xd2   : > { %818 = vst [vmem:[#allocation2 + $0xe0] sm:$0xf] %v817_v17  ;;  %v1679_v40 = vld [vmem:[#allocation1] sm:$0xff]  ;;  %v9974_v17 = vld [vmem:[#allocation2 + $0x30] sm:$0xff]   ;;  %v1203_v6 = vpack.i.b16 %v1139_v49, %v1139_v49  ;;  %v729_v53 = vld [vmem:[#allocation2 + $0x84] sm:$0x1] }
  0xd3   : > { %794 = vst [vmem:[#allocation2 + $0x80] sm:$0xf] %v793_v35  ;;  %v1897_v47 = vshrl.u32 %v1679_v40, 16  ;;  %v1900_v11 = vshll.u32 %v1679_v40, 16  ;;  %v1265_v32 = vperm.slane %v1201_v22, 0  ;;  %v1909_v22 = vor.u32 %v1907_v3, %v1906_v27 }
  0xd4   : > { %1685 = vst [vmem:[#allocation1 + $0x20] ss:$4 sm:$0xff] %v11378_v28  ;;  %v1266_v41 = vperm.slane %v9248_v51, 0  ;;  %v795_v27 = vld [vmem:[#allocation2 + $0x8c] sm:$0xf] }
  0xd5   : > { %v2560_v2 = vpop.permute.xlu1 %2559  ;;  %1681 = vst [vmem:[#allocation1] ss:$4 sm:$0xff] %v11386_v10  ;;  %v2562_v38 = vpop.permute.xlu0 %2561  ;;  %v1899_v33 = vrot.slane %v1897_v47, 7  ;;  %v2243_v10 = vpack.c.bf16 %v2211_v5, %v2211_v5  ;;  %v11567_v3 = vpack.i.b16 %v1265_v32, %v1265_v32  ;;  %v9249_v5 = vpack.i.b16 %v1066_v21, %v1066_v21 }
  0xd6   : > { %v2715_v52 = vsel %vm11163_vm7, %v2560_v2, %v2714_v20  ;;  %1682 = vst [vmem:[#allocation1 + $0x1] ss:$4 sm:$0xff] %v1423_v54  ;;  %v1457_v31 = vpack.i.b16 %v1266_v41, %v1266_v41  ;;  %v796_v32 = vsel %vm10908_vm12, 0, %v795_v27 }
  0xd7   : > { %2716 = vst [vmem:[#allocation2 + $0x68] sm:$0x1] %v2715_v52  ;;  %v2717_v57 = vld [vmem:[#allocation2 + $0x6c] sm:$0xf]  ;;  %v1902_v14 = vor.u32 %v1900_v11, %v1899_v33  ;;  %v1067_v52 = vsel %vm1001_vm2, %v11413_v46, %v985_v60  ;;  %v2486_v40 = vshrl.u32 %v2243_v10, 16  ;;  %v1903_v49 = vrot.slane %v1899_v33, 4 }
  0xd8   : > { %v2718_v28 = vsel %vm11093_vm10, %v2562_v38, %v2717_v57  ;;  %1683 = vst [vmem:[#allocation1 + $0x2] ss:$4 sm:$0xff] %v11449_v43  ;;  %v2127_v20 = vld [vmem:[#allocation2 + $0x78] sm:$0xf]  ;;  %v2489_v47 = vshll.u32 %v2243_v10, 16  ;;  %v2484_v11 = vrot.slane %v11494_v39, 4  ;;  %v1141_v57 = vunpack.i.h.s16 %v1066_v21 }
  0xd9   : > { %2719 = vst [vmem:[#allocation2 + $0x6c] sm:$0xf] %v2718_v28  ;;  %v3279_v35 = vld [vmem:[#allocation2 + $0xe0] sm:$0x1]  ;;  %v11564_v46 = vrot.slane %v2486_v40, 7  ;;  %v1267_v60 = vperm.slane %v1203_v6, 0 }
  0xda   : > { %1684 = vst [vmem:[#allocation1 + $0x3] ss:$4 sm:$0xff] %v1431_v34  ;;  %v3280_v13 = vsel %vm10823_vm8, 0, %v3279_v35  ;;  %v2131_v2 = vld [vmem:[#allocation2 + $0x80] sm:$0x1]  ;;  %v2128_v34 = vsel %vm11058_vm15, %v1902_v14, %v2127_v20  ;;  %v1069_v38 = vrot.slane %v1067_v52, 3  ;;  %2601 = vrot.lane.b32.xlu2 %v2484_v11, %s10475_s21  ;;  %v1205_v33 = vpack.i.b16 %v1141_v57, %v1141_v57 }
  0xdb   : > { %v2132_v43 = vsel %vm11101_vm9, %v1911_v37, %v2131_v2  ;;  %3281 = vst [vmem:[#allocation2 + $0xe0] sm:$0x1] %v3280_v13  ;;  %v1449_v37 = vpack.i.b16 %v1264_v23, %v1264_v23  ;;  %v730_v39 = vsel %vm10823_vm8, 0, %v729_v53  ;;  %v2491_v51 = vor.u32 %v2489_v47, %v11564_v46  ;;  %v11582_v20 = vld [vmem:[#allocation2 + $0x3c] sm:$0xff]  }
  0xdc   : > { %2129 = vst [vmem:[#allocation2 + $0x78] sm:$0xf] %v2128_v34  ;;  %v1143_v28 = vunpack.i.h.s16 %v1069_v38  ;;  %v1910_v23 = vsel %vm10637_vm6, %v1903_v49, %v1909_v22  ;;  %v1268_v10 = vperm.slane %v9249_v5, 0  ;;  %v9250_v6 = vpack.i.b16 %v1069_v38, %v1069_v38 }
  0xdd   : > { %v2564_v54 = vpop.permute.xlu1 %2563  ;;  %9304 = vmatmul.msk.bf16.gmra.mxu1 %vm3494_vm13, %v9974_v17  ;;  %2133 = vst [vmem:[#allocation2 + $0x80] sm:$0x1] %v2132_v43  ;;  %v732_v17 = vld [vmem:[#allocation2 + $0x90] sm:$0x1]  ;;  %2603 = vrot.lane.b32.xlu0 %v2491_v51, %s10475_s21  ;;  %v11584_v35 = vperm.slane %v1449_v37, 0  ;;  %v1455_v8 = vperm.slane %v11567_v3, 0  ;;  %v2568_v40 = vpop.permute.xlu0 %2567 }
  0xde   : > { %2720 = vst.msk [vmem:[#allocation2 + $0x70] sm:$0xf] %vm2663_vm5, %v2564_v54  ;;  %v733_v52 = vsel %vm10823_vm8, 0, %v732_v17  ;;  %v11595_v43 = vperm.slane %v1457_v31, 0  ;;  %v1465_v53 = vpack.i.b16 %v1268_v10, %v1268_v10  ;;  %v4172_v22 = vshrl.u32 %v11443_v42, 16  ;;  %v2213_v51 = vld [vmem:[%s10558_s16 + $0xf0] sm:$0xff] }
  0xdf   : > { %9272 = vmatmul.msk.bf16.gmra.mxu0 %vm3494_vm13, %v11443_v42  ;;  %1686 = vst [vmem:[#allocation1 + $0x21] ss:$4 sm:$0xff] %v1439_v9  ;;  %v2570_v9 = vpop.permute.xlu2 %2569  ;;  %v1269_v49 = vperm.slane %v1205_v33, 0  ;;  %v4175_v37 = vshll.u32 %v11582_v20, 16  ;;  %v2245_v10 = vpack.c.bf16 %v2213_v51, %v2213_v51  ;;  %v9976_v3 = vld [vmem:[#allocation2 + $0x40] sm:$0xff]  }
  0xe0   : > { %1687 = vst [vmem:[#allocation1 + $0x22] ss:$4 sm:$0xff] %v11399_v36  ;;  %v11586_v36 = vpack.i.b16 %v1267_v60, %v1267_v60  ;;  %v11604_v60 = vperm.slane %v9250_v6, 0  ;;  %v11614_v31 = vperm.slane %v1465_v53, 0 }
  0xe1   : > { %1688 = vst [vmem:[#allocation1 + $0x23] ss:$4 sm:$0xff] %v1447_v56  ;;  %v1689_v0 = vld [vmem:[#allocation1] sm:$0xff]  ;;  %v11589_v56 = vpack.i.b16 %v1143_v28, %v1143_v28  ;;  %v11616_v28 = vld [vmem:[#allocation2 + $0x44] sm:$0xff]  }
  0xe2   : > { %731 = vst [vmem:[#allocation2 + $0x84] sm:$0x1] %v730_v39  ;;  %v1912_v14 = vshrl.u32 %v1689_v0, 16  ;;  %v1915_v13 = vshll.u32 %v1689_v0, 16  ;;  %v10321_v2 = vld [vmem:[#allocation2 + $0xdc] sm:$0xff]   ;;  %v1463_v57 = vperm.slane %v11586_v36, 0  ;;  %v11619_v0 = vpack.i.b16 %v1269_v49, %v1269_v49 }
  0xe3   : > { %2130 = vst.msk [vmem:[#allocation2 + $0x7c] sm:$0xf] %vm2066_vm14, %v1910_v23  ;;  %v2724_v41 = vld [vmem:[#allocation2 + $0x78] sm:$0xf]  ;;  %9293 = vmatmul.msk.bf16.vlgmr.msra.gmra.mxu3 %vm3494_vm13, %v10321_v2  ;;  %v1271_v5 = vperm.slane %v11589_v56, 0  ;;  %v4174_v23 = vor.u32 %v4172_v22, %v11483_v16 }
  0xe4   : > { %v11598_v34 = vrot.slane %v1912_v14, 7  ;;  %2727 = vst.msk [vmem:[#allocation2 + $0x7c] sm:$0xf] %vm2663_vm5, %v2570_v9  ;;  %v2725_v47 = vsel %vm11093_vm10, %v2568_v40, %v2724_v41  ;;  %v2728_v11 = vld [vmem:[#allocation2 + $0x80] sm:$0x1]  ;;  %v2212_v39 = vld [vmem:[%s10558_s16 + $0xe8] sm:$0xff]  ;;  %v1473_v14 = vpack.i.b16 %v11604_v60, %v11604_v60 }
  0xe5   : > { %v9982_v54 = vld [vmem:[#allocation2 + $0x70] sm:$0xff]   ;;  %v2572_v21 = vpop.permute.xlu1 %2571  ;;  %797 = vst [vmem:[#allocation2 + $0x8c] sm:$0xf] %v796_v32  ;;  %v2244_v33 = vpack.c.bf16 %v2212_v39, %v2212_v39  ;;  %v4177_v9 = vrot.slane %v4175_v37, 1  ;;  %v9975_v56 = vld [vmem:[#allocation2 + $0x38] sm:$0xff]   ;;  %v4179_v40 = vshrl.u32 %v11582_v20, 16 }
  0xe6   : > { %9340 = vmatmul.msk.bf16.vlgmr.msra.gmra.mxu2 %vm3494_vm13, %v9982_v54  ;;  %2726 = vst [vmem:[#allocation2 + $0x78] sm:$0xf] %v2725_v47  ;;  %v2729_v38 = vsel %vm11163_vm7, %v2572_v21, %v2728_v11  ;;  %v1917_v27 = vor.u32 %v1915_v13, %v11598_v34  ;;  %v1918_v16 = vrot.slane %v11598_v34, 4  ;;  %v2503_v21 = vshrl.u32 %v2245_v10, 16 }
  0xe7   : > { %2730 = vst [vmem:[#allocation2 + $0x80] sm:$0x1] %v2729_v38  ;;  %v2494_v2 = vshrl.u32 %v2244_v33, 16  ;;  %v11633_v22 = vsel %vm4133_vm4, %v4174_v23, %v4177_v9  ;;  %v4182_v41 = vshll.u32 %v11616_v28, 16  ;;  %v2506_v11 = vshll.u32 %v2245_v10, 16 }
  0xe8   : > { %v1690_v17 = vld [vmem:[#allocation1 + $0x20] sm:$0xff]  ;;  %734 = vst [vmem:[#allocation2 + $0x90] sm:$0x1] %v733_v52  ;;  %v11630_v52 = vpop.f32.mrf.mxu1  ;;  %v11637_v47 = vrot.slane %v2503_v21, 7  ;;  %v1471_v60 = vperm.slane %v11619_v0, 0  ;;  %v2497_v39 = vshll.u32 %v2244_v33, 16 }
  0xe9   : > { %v2134_v32 = vld [vmem:[#allocation2 + $0x84] sm:$0xf]  ;;  %v1919_v6 = vshrl.u32 %v1690_v17, 16  ;;  %v1922_v54 = vshll.u32 %v1690_v17, 16  ;;  %1692 = vst [vmem:[#allocation1] ss:$4 sm:$0xff] %v11584_v35  ;;  %v4181_v17 = vor.u32 %v4179_v40, %v4177_v9 }
  0xea   : > { %v2135_v13 = vsel %vm11058_vm15, %v1917_v27, %v2134_v32  ;;  %1694 = vst [vmem:[#allocation1 + $0x1] ss:$4 sm:$0xff] %v1455_v8  ;;  %v2496_v34 = vrot.slane %v2494_v2, 7  ;;  %v2492_v27 = vrot.slane %v11564_v46, 4  ;;  %v2508_v23 = vor.u32 %v2506_v11, %v11637_v47 }
  0xeb   : > { %2136 = vst [vmem:[#allocation2 + $0x84] sm:$0xf] %v2135_v13  ;;  %v1921_v53 = vrot.slane %v1919_v6, 7  ;;  %v11647_v10 = vrot.slane %v4182_v41, 1  ;;  %v5159_v33 = vrot.slane %v11582_v20, 1  ;;  %v2574_v13 = vpop.permute.xlu0 %2573  ;;  %v11666_v2 = vpack.i.b16 %v1271_v5, %v1271_v5 }
  0xec   : > { %v2138_v49 = vld [vmem:[#allocation2 + $0x8c] sm:$0x1]  ;;  %1696 = vst [vmem:[#allocation1 + $0x2] ss:$4 sm:$0xff] %v11595_v43  ;;  %v2501_v51 = vrot.slane %v2496_v34, 4  ;;  %v2499_v46 = vor.u32 %v2497_v39, %v2496_v34  ;;  %2609 = vrot.lane.b32.xlu0 %v2508_v23, %s10475_s21  ;;  %v5161_v40 = vrot.slane %v11616_v28, 1 }
  0xed   : > { %9305 = vmatmul.msk.bf16.gmra.mxu1 %vm3494_vm13, %v9975_v56  ;;  %v1926_v37 = vrot.slane %v1921_v53, 4  ;;  %v1924_v38 = vor.u32 %v1922_v54, %v1921_v53  ;;  %1698 = vst [vmem:[#allocation1 + $0x3] ss:$4 sm:$0xff] %v1463_v57  ;;  %v2576_v6 = vpop.permute.xlu1 %2575  ;;  %v11655_v56 = vld [vmem:[#allocation2 + $0x78] sm:$0xff]   ;;  %v11661_v9 = vsel %vm4133_vm4, %v4181_v17, %v11647_v10  ;;  %v11673_v21 = vsel %vm5147_vm11, %v5157_v45, %v5159_v33  ;;  %v2578_v45 = vpop.permute.xlu2 %2577  ;;  %v11695_v39 = vld [vmem:[#allocation2 + $0x4c] sm:$0xff]  }
  0xee   : > { %1700 = vst [vmem:[#allocation1 + $0x20] ss:$4 sm:$0xff] %v11614_v31  ;;  %2607 = vrot.lane.b32.xlu1 %v2501_v51, %s10475_s21  ;;  %v11685_v42 = vsel %vm5147_vm11, %v5159_v33, %v5161_v40 }
  0xef   : > { %9273 = vmatmul.msk.bf16.gmra.mxu0 %vm3494_vm13, %v11582_v20  ;;  %v2139_v32 = vsel %vm11101_vm9, %v1926_v37, %v2138_v49  ;;  %v1925_v54 = vsel %vm10637_vm6, %v1918_v16, %v1924_v38  ;;  %v11664_v16 = vperm.slane %v1473_v14, 0  ;;  %v2500_v20 = vsel %vm10637_vm6, %v2492_v27, %v2499_v46  ;;  %1702 = vst [vmem:[#allocation1 + $0x21] ss:$4 sm:$0xff] %v1471_v60  ;;  %v798_v37 = vld [vmem:[#allocation2 + $0x98] sm:$0xf]  ;;  %v2214_v27 = vld [vmem:[%s10558_s16 + $0xf8] sm:$0xff] }
  0xf0   : > { %2140 = vst [vmem:[#allocation2 + $0x8c] sm:$0x1] %v2139_v32  ;;  %2605 = vrot.lane.b32.xlu2 %v2500_v20, %s10475_s21  ;;  %v11687_v5 = vpop.f32.mrf.mxu1  ;;  %v1479_v49 = vperm.slane %v11666_v2, 0  ;;  %v2246_v17 = vpack.c.bf16 %v2214_v27, %v2214_v27  ;;  %v735_v32 = vld [vmem:[#allocation2 + $0x9c] sm:$0x1]  ;;  %v962_v46 = vld [vmem:[%s10568_s20 + $0x30] sm:$0xff] }
  0xf1   : > { %2137 = vst.msk [vmem:[#allocation2 + $0x88] sm:$0xf] %vm2066_vm14, %v1925_v54  ;;  %v4186_v20 = vshrl.u32 %v11616_v28, 16 }
  0xf2   : > { %v2731_v53 = vld [vmem:[#allocation2 + $0x84] sm:$0xf]  ;;  %2734 = vst.msk [vmem:[#allocation2 + $0x88] sm:$0xf] %vm2663_vm5, %v2576_v6  ;;  %v799_v6 = vsel %vm10908_vm12, 0, %v798_v37  ;;  %v2511_v54 = vshrl.u32 %v2246_v17, 16 }
  0xf3   : > { %v2732_v14 = vsel %vm11093_vm10, %v2574_v13, %v2731_v53  ;;  %15720 = vst [vmem:[#allocation9_spill] sm:$0xff] %v11687_v5  ;;  %v11713_v13 = vpack.c.bf16 %v962_v46, %v962_v46  ;;  %v4189_v53 = vshll.u32 %v11695_v39, 16  ;;  %v15613_v37 = vrot.slane %v11695_v39, 1 }
  0xf4   : > { %2733 = vst [vmem:[#allocation2 + $0x84] sm:$0xf] %v2732_v14  ;;  %v1707_v41 = vld [vmem:[#allocation1] sm:$0xff]  ;;  %v11721_v14 = vrot.slane %v2511_v54, 7 }
  0xf5   : > { %1704 = vst [vmem:[#allocation1 + $0x22] ss:$4 sm:$0xff] %v11664_v16  ;;  %v1927_v34 = vshrl.u32 %v1707_v41, 16  ;;  %v1930_v11 = vshll.u32 %v1707_v41, 16  ;;  %v11726_v41 = vrot.slane %v11713_v13, 3 }
  0xf6   : > { %9341 = vmatmul.msk.bf16.gmra.mxu2 %vm3494_vm13, %v11655_v56  ;;  %1709 = vst [vmem:[#allocation1] ss:$4 sm:$0xff] %v11584_v35  ;;  %v2141_v35 = vld [vmem:[#allocation2 + $0x90] sm:$0xf] }
  0xf7   : > { %v2735_v38 = vld [vmem:[#allocation2 + $0x8c] sm:$0x1]  ;;  %1710 = vst [vmem:[#allocation1 + $0x1] ss:$4 sm:$0xff] %v1455_v8  ;;  %v11699_v23 = vrot.slane %v1927_v34, 7  ;;  %v4188_v34 = vor.u32 %v4186_v20, %v11647_v10  ;;  %v11743_v10 = vsel %vm5147_vm11, %v5161_v40, %v15613_v37  ;;  %v1072_v54 = vsel %vm988_vm3, %v11713_v13, %v11726_v41  ;;  %v2580_v40 = vpop.permute.xlu0 %2579 }
  0xf8   : > { %v2736_v51 = vsel %vm11163_vm7, %v2578_v45, %v2735_v38  ;;  %1711 = vst [vmem:[#allocation1 + $0x2] ss:$4 sm:$0xff] %v11595_v43  ;;  %v736_v43 = vsel %vm10823_vm8, 0, %v735_v32  ;;  %v2514_v45 = vshll.u32 %v2246_v17, 16  ;;  %v1145_v20 = vunpack.i.h.s16 %v1072_v54 }
  0xf9   : > { %2737 = vst [vmem:[#allocation2 + $0x8c] sm:$0x1] %v2736_v51  ;;  %v1932_v8 = vor.u32 %v1930_v11, %v11699_v23  ;;  %v11729_v11 = vrot.slane %v4189_v53, 1  ;;  %v1074_v51 = vsel %vm993_vm0, %v11713_v13, %v11726_v41 }
  0xfa   : > { %1712 = vst [vmem:[#allocation1 + $0x3] ss:$4 sm:$0xff] %v1463_v57  ;;  %v2509_v57 = vrot.slane %v11637_v47, 4  ;;  %v2516_v38 = vor.u32 %v2514_v45, %v11721_v14 }
  0xfb   : > { %v9984_v33 = vld [vmem:[#allocation2 + $0x80] sm:$0xff]   ;;  %1706 = vst [vmem:[#allocation1 + $0x23] ss:$4 sm:$0xff] %v1479_v49  ;;  %v2142_v36 = vsel %vm11058_vm15, %v1932_v8, %v2141_v35 }
  0xfc   : > { %9314 = vmatmul.msk.bf16.vlgmr.msrb.gmra.mxu3 %vm3494_vm13, %v9984_v33  ;;  %800 = vst [vmem:[#allocation2 + $0x98] sm:$0xf] %v799_v6  ;;  %v2517_v32 = vsel %vm10637_vm6, %v2509_v57, %v2516_v38  ;;  %v801_v35 = vld [vmem:[#allocation2 + $0xa4] sm:$0xf]  ;;  %v1076_v6 = vrot.slane %v1074_v51, 1 }
  0xfd   : > { %9306 = vmatmul.msk.bf16.gmra.mxu1 %vm3494_vm13, %v9976_v3  ;;  %2143 = vst [vmem:[#allocation2 + $0x90] sm:$0xf] %v2142_v36  ;;  %2611 = vrot.lane.b32.xlu1 %v2517_v32, %s10475_s21  ;;  %v802_v8 = vsel %vm10908_vm12, 0, %v801_v35  ;;  %v1933_v35 = vrot.slane %v11699_v23, 4 }
  0xfe   : > { %737 = vst [vmem:[#allocation2 + $0x9c] sm:$0x1] %v736_v43  ;;  %v1147_v53 = vunpack.i.h.s16 %v1076_v6  ;;  %v9252_v51 = vpack.i.b16 %v1076_v6, %v1076_v6 }
  0xff   : > { %9274 = vmatmul.msk.bf16.gmra.mxu0 %vm3494_vm13, %v11616_v28  ;;  %v11738_v28 = vsel %vm4133_vm4, %v4188_v34, %v11729_v11  ;;  %803 = vst [vmem:[#allocation2 + $0xa4] sm:$0xf] %v802_v8 }
 0x100   : > { %v3589_v27 = vpop.f32.mrf.mxu0 }
 0x101   : > { %v11746_v17 = vadd.f32 %v11630_v52, %v3589_v27  ;;  %v1717_v3 = vld [vmem:[#allocation1] sm:$0xff]  ;;  %v1209_v27 = vpack.i.b16 %v1145_v20, %v1145_v20  ;;  %v2582_v20 = vpop.permute.xlu2 %2581 }
 0x102   : > { %v1708_v46 = vld [vmem:[#allocation1 + $0x20] sm:$0xff]  ;;  %v1942_v43 = vshrl.u32 %v1717_v3, 16  ;;  %v1945_v52 = vshll.u32 %v1717_v3, 16 }
 0x103   : > { %15721 = vst [vmem:[#allocation10_spill] sm:$0xff] %v11746_v17  ;;  %v1934_v36 = vshrl.u32 %v1708_v46, 16  ;;  %v1937_v57 = vshll.u32 %v1708_v46, 16  ;;  %v2145_v34 = vld [vmem:[#allocation2 + $0x98] sm:$0x1]  ;;  %v1273_v8 = vperm.slane %v1209_v27, 0 }
 0x104   : > { %v3837_v47 = vpop.f32.mrf.mxu1  ;;  %1713 = vst [vmem:[#allocation1 + $0x20] ss:$4 sm:$0xff] %v11614_v31  ;;  %v2738_v45 = vld [vmem:[#allocation2 + $0x90] sm:$0xf]  ;;  %v11760_v38 = vrot.slane %v1942_v43, 7  ;;  %v1211_v31 = vpack.i.b16 %v1147_v53, %v1147_v53  ;;  %v1274_v46 = vperm.slane %v9252_v51, 0 }
 0x105   : > { %1714 = vst [vmem:[#allocation1 + $0x21] ss:$4 sm:$0xff] %v1471_v60  ;;  %v9251_v47 = vpack.i.b16 %v1072_v54, %v1072_v54  ;;  %v2739_v32 = vsel %vm11093_vm10, %v2580_v40, %v2738_v45  ;;  %v2148_v3 = vld [vmem:[#allocation2 + $0x9c] sm:$0xf]  ;;  %v9977_v27 = vld [vmem:[#allocation2 + $0x48] sm:$0xff]  }
 0x106   : > { %9342 = vmatmul.msk.bf16.gmra.mxu2 %vm3494_vm13, %v9984_v33  ;;  %v1936_v33 = vrot.slane %v1934_v36, 7  ;;  %1715 = vst [vmem:[#allocation1 + $0x22] ss:$4 sm:$0xff] %v11664_v16  ;;  %v1947_v0 = vor.u32 %v1945_v52, %v11760_v38  ;;  %v1275_v23 = vperm.slane %v1211_v31, 0  ;;  %v1077_v16 = vsel %vm997_vm1, %v11713_v13, %v11726_v41  ;;  %v819_v17 = vld [vmem:[#allocation2 + $0xec] sm:$0xf] }
 0x107   : > { %2740 = vst [vmem:[#allocation2 + $0x90] sm:$0xf] %v2739_v32  ;;  %v1272_v60 = vperm.slane %v9251_v47, 0  ;;  %v11778_v36 = vpack.i.b16 %v1273_v8, %v1273_v8  ;;  %v1489_v45 = vpack.i.b16 %v1274_v46, %v1274_v46 }
 0x108   : > { %v1939_v43 = vor.u32 %v1937_v57, %v1936_v33  ;;  %v1941_v54 = vrot.slane %v1936_v33, 4  ;;  %1716 = vst [vmem:[#allocation1 + $0x23] ss:$4 sm:$0xff] %v1479_v49  ;;  %v11771_v40 = vpop.f32.mrf.mxu0  ;;  %v2149_v52 = vsel %vm11058_vm15, %v1947_v0, %v2148_v3  ;;  %v9985_v57 = vld [vmem:[#allocation2 + $0x88] sm:$0xff]   ;;  %v11784_v47 = vpack.i.b16 %v1275_v23, %v1275_v23 }
 0x109   : > { %15723 = vst [vmem:[#allocation12_spill] sm:$0xff] %v11771_v40  ;;  %v1481_v53 = vpack.i.b16 %v1272_v60, %v1272_v60  ;;  %v15612_v32 = vperm.slane %v11778_v36, 0  ;;  %v1079_v33 = vrot.slane %v1077_v16, 2  ;;  %v1080_v3 = vsel %vm1001_vm2, %v11713_v13, %v11726_v41  ;;  %v2586_v41 = vpop.permute.xlu0 %2585 }
 0x10a   : > { %v1940_v2 = vsel %vm10637_vm6, %v1933_v35, %v1939_v43  ;;  %v2146_v49 = vsel %vm11101_vm9, %v1941_v54, %v2145_v34  ;;  %2150 = vst [vmem:[#allocation2 + $0x9c] sm:$0xf] %v2149_v52  ;;  %v11795_v34 = vld [vmem:[#allocation2 + $0x54] sm:$0xff]   ;;  %v11797_v35 = vperm.slane %v1489_v45, 0  ;;  %v1082_v31 = vrot.slane %v1080_v3, 3  ;;  %v2584_v43 = vpop.permute.xlu1 %2583 }
 0x10b   : > { %2144 = vst.msk [vmem:[#allocation2 + $0x94] sm:$0xf] %vm2066_vm14, %v1940_v2  ;;  %v11787_v51 = vperm.slane %v1481_v53, 0  ;;  %v2518_v0 = vrot.slane %v11721_v14, 4  ;;  %v15614_v60 = vperm.slane %v11784_v47, 0  ;;  %v1149_v8 = vunpack.i.h.s16 %v1079_v33 }
 0x10c   : > { %v11769_v6 = vpop.f32.mrf.mxu1  ;;  %2741 = vst.msk [vmem:[#allocation2 + $0x94] sm:$0xf] %vm2663_vm5, %v2582_v20  ;;  %9315 = vmatmul.msk.bf16.gmra.mxu3 %vm3494_vm13, %v9985_v57  ;;  %v9253_v46 = vpack.i.b16 %v1079_v33, %v1079_v33  ;;  %v1151_v13 = vunpack.i.h.s16 %v1082_v31  ;;  %v1948_v23 = vrot.slane %v11760_v38, 4  ;;  %v9254_v16 = vpack.i.b16 %v1082_v31, %v1082_v31  ;;  %v738_v33 = vld [vmem:[#allocation2 + $0xa8] sm:$0x1] }
 0x10d   : > { %15722 = vst [vmem:[#allocation11_spill] sm:$0xff] %v11769_v6  ;;  %9307 = vmatmul.msk.bf16.gmra.mxu1 %vm3494_vm13, %v9977_v27  ;;  %2613 = vrot.lane.b32.xlu2 %v2518_v0, %s10475_s21  ;;  %v1213_v14 = vpack.i.b16 %v1149_v8, %v1149_v8  ;;  %v4193_v45 = vshrl.u32 %v11695_v39, 16  ;;  %v4196_v27 = vshll.u32 %v11795_v34, 16 }
 0x10e   : > { %2147 = vst [vmem:[#allocation2 + $0x98] sm:$0x1] %v2146_v49  ;;  %v1276_v20 = vperm.slane %v9253_v46, 0  ;;  %v1215_v3 = vpack.i.b16 %v1151_v13, %v1151_v13  ;;  %v739_v46 = vsel %vm10823_vm8, 0, %v738_v33  ;;  %v1278_v18 = vperm.slane %v9254_v16, 0 }
 0x10f   : > { %9275 = vmatmul.msk.bf16.gmra.mxu0 %vm3494_vm13, %v11695_v39  ;;  %1720 = vst [vmem:[#allocation1] ss:$4 sm:$0xff] %v11787_v51  ;;  %v1718_v54 = vld [vmem:[#allocation1 + $0x20] sm:$0xff]  ;;  %v4195_v13 = vor.u32 %v4193_v45, %v11729_v11  ;;  %v5165_v11 = vrot.slane %v11795_v34, 1 }
 0x110   : > { %1722 = vst [vmem:[#allocation1 + $0x1] ss:$4 sm:$0xff] %v15612_v32  ;;  %v1949_v53 = vshrl.u32 %v1718_v54, 16  ;;  %v1952_v2 = vshll.u32 %v1718_v54, 16  ;;  %v1497_v0 = vpack.i.b16 %v1276_v20, %v1276_v20  ;;  %v1277_v54 = vperm.slane %v1213_v14, 0 }
 0x111   : > { %1724 = vst [vmem:[#allocation1 + $0x2] ss:$4 sm:$0xff] %v11797_v35  ;;  %v2745_v38 = vld [vmem:[#allocation2 + $0x9c] sm:$0xf]  ;;  %v1279_v20 = vperm.slane %v1215_v3, 0  ;;  %v9978_v3 = vld [vmem:[#allocation2 + $0x50] sm:$0xff]  }
 0x112   : > { %1726 = vst [vmem:[#allocation1 + $0x3] ss:$4 sm:$0xff] %v15614_v60  ;;  %v2746_v31 = vsel %vm11093_vm10, %v2586_v41, %v2745_v38  ;;  %v1951_v8 = vrot.slane %v1949_v53, 7  ;;  %v11820_v32 = vperm.slane %v1497_v0, 0  ;;  %v2588_v16 = vpop.permute.xlu1 %2587  ;;  %v11831_v53 = vpack.i.b16 %v1277_v54, %v1277_v54 }
 0x113   : > { %v3594_v49 = vpop.f32.mrf.mxu0  ;;  %2747 = vst [vmem:[#allocation2 + $0x9c] sm:$0xf] %v2746_v31  ;;  %v1505_v38 = vpack.i.b16 %v1278_v18, %v1278_v18  ;;  %v9986_v18 = vld [vmem:[#allocation2 + $0x90] sm:$0xff]   ;;  %v11848_v31 = vpack.i.b16 %v1279_v20, %v1279_v20  ;;  %v15725_v54 = vperm.slane %v11778_v36, 0 }
 0x114   : > { %v11809_v52 = vpop.f32.mrf.mxu1  ;;  %v2152_v49 = vld [vmem:[#allocation2 + $0xa4] sm:$0x1]  ;;  %v1956_v24 = vrot.slane %v1951_v8, 4  ;;  %v1954_v60 = vor.u32 %v1952_v2, %v1951_v8  ;;  %740 = vst [vmem:[#allocation2 + $0xa8] sm:$0x1] %v739_v46  ;;  %v4198_v2 = vrot.slane %v4196_v27, 1 }
 0x115   : > { %v2742_v37 = vld [vmem:[#allocation2 + $0x98] sm:$0x1]  ;;  %1728 = vst [vmem:[#allocation1 + $0x20] ss:$4 sm:$0xff] %v11820_v32  ;;  %v1503_v0 = vperm.slane %v11831_v53, 0 }
 0x116   : > { %9343 = vmatmul.msk.bf16.gmra.mxu2 %vm3494_vm13, %v9985_v57  ;;  %v2743_v41 = vsel %vm11163_vm7, %v2584_v43, %v2742_v37  ;;  %v2153_v14 = vsel %vm11101_vm9, %v1956_v24, %v2152_v49  ;;  %v1955_v57 = vsel %vm10637_vm6, %v1948_v23, %v1954_v60  ;;  %v11835_v43 = vld [vmem:[#allocation2 + $0x5c] sm:$0xff]   ;;  %v11838_v33 = vsel %vm4133_vm4, %v4195_v13, %v4198_v2 }
 0x117   : > { %2744 = vst [vmem:[#allocation2 + $0x98] sm:$0x1] %v2743_v41  ;;  %v15724_v23 = vrot.slane %v11695_v39, 1  ;;  %v1507_v49 = vperm.slane %v1505_v38, 0  ;;  %v2590_v39 = vpop.permute.xlu2 %2589  ;;  %v4200_v13 = vshrl.u32 %v11795_v34, 16  ;;  %v5167_v41 = vrot.slane %v11835_v43, 1 }
 0x118   : > { %2154 = vst [vmem:[#allocation2 + $0xa4] sm:$0x1] %v2153_v14  ;;  %v15726_v14 = vperm.slane %v11784_v47, 0 }
 0x119   : > { %2151 = vst.msk [vmem:[#allocation2 + $0xa0] sm:$0xf] %vm2066_vm14, %v1955_v57  ;;  %v1735_v37 = vld [vmem:[#allocation1] sm:$0xff]  ;;  %v11844_v27 = vsel %vm5147_vm11, %v15724_v23, %v5165_v11  ;;  %v11869_v53 = vsel %vm5147_vm11, %v5165_v11, %v5167_v41 }
 0x11a   : > { %2748 = vst.msk [vmem:[#allocation2 + $0xa0] sm:$0xf] %vm2663_vm5, %v2588_v16  ;;  %v1957_v24 = vshrl.u32 %v1735_v37, 16  ;;  %v1960_v60 = vshll.u32 %v1735_v37, 16  ;;  %v1511_v16 = vperm.slane %v11848_v31, 0 }
 0x11b   : > { %1737 = vst [vmem:[#allocation1] ss:$4 sm:$0xff] %v11787_v51  ;;  %v2155_v8 = vld [vmem:[#allocation2 + $0xa8] sm:$0xf]  ;;  %v4203_v51 = vshll.u32 %v11835_v43, 16 }
 0x11c   : > { %v3843_v45 = vpop.f32.mrf.mxu1  ;;  %v11850_v46 = vrot.slane %v1957_v24, 7  ;;  %1738 = vst [vmem:[#allocation1 + $0x1] ss:$4 sm:$0xff] %v15725_v54  ;;  %9316 = vmatmul.msk.bf16.gmra.mxu3 %vm3494_vm13, %v9986_v18  ;;  %v741_v37 = vld [vmem:[#allocation2 + $0xb4] sm:$0x1] }
 0x11d   : > { %9308 = vmatmul.msk.bf16.gmra.mxu1 %vm3494_vm13, %v9978_v3  ;;  %1739 = vst [vmem:[#allocation1 + $0x2] ss:$4 sm:$0xff] %v11797_v35  ;;  %v4202_v35 = vor.u32 %v4200_v13, %v4198_v2  ;;  %v4205_v57 = vrot.slane %v4203_v51, 1  ;;  %v11878_v45 = vpop.f32.mrf.mxu0  ;;  %v804_v2 = vld [vmem:[#allocation2 + $0xb0] sm:$0xf]  ;;  %v742_v24 = vsel %vm10823_vm8, 0, %v741_v37  ;;  %v2592_v3 = vpop.permute.xlu0 %2591 }
 0x11e   : > { %v1962_v20 = vor.u32 %v1960_v60, %v11850_v46  ;;  %1740 = vst [vmem:[#allocation1 + $0x3] ss:$4 sm:$0xff] %v15726_v14  ;;  %v805_v11 = vsel %vm10908_vm12, 0, %v804_v2  ;;  %v11892_v14 = vld [vmem:[#allocation2 + $0x64] sm:$0xff]  }
 0x11f   : > { %v2749_v36 = vld [vmem:[#allocation2 + $0xa4] sm:$0x1]  ;;  %9276 = vmatmul.msk.bf16.gmra.mxu0 %vm3494_vm13, %v11795_v34  ;;  %1730 = vst [vmem:[#allocation1 + $0x21] ss:$4 sm:$0xff] %v1503_v0  ;;  %v11876_v34 = vsel %vm4133_vm4, %v4202_v35, %v4205_v57 }
 0x120   : > { %v2750_v38 = vsel %vm11163_vm7, %v2590_v39, %v2749_v36  ;;  %v2156_v47 = vsel %vm11058_vm15, %v1962_v20, %v2155_v8  ;;  %1732 = vst [vmem:[#allocation1 + $0x22] ss:$4 sm:$0xff] %v1507_v49  ;;  %v11894_v36 = vld [vmem:[#allocation2 + $0x58] sm:$0xff]  }
 0x121   : > { %2751 = vst [vmem:[#allocation2 + $0xa4] sm:$0x1] %v2750_v38 }
 0x122   : > { %15727 = vst [vmem:[#allocation13_spill] sm:$0xff] %v11878_v45 }
 0x123   : > { %2157 = vst [vmem:[#allocation2 + $0xa8] sm:$0xf] %v2156_v47  ;;  %v1963_v47 = vrot.slane %v11850_v46, 4 }
 0x124   : > { %1734 = vst [vmem:[#allocation1 + $0x23] ss:$4 sm:$0xff] %v1511_v16 }
 0x125   : > { %806 = vst [vmem:[#allocation2 + $0xb0] sm:$0xf] %v805_v11  ;;  %v1745_v60 = vld [vmem:[#allocation1] sm:$0xff]  ;;  %v963_v11 = vld [vmem:[%s10568_s20 + $0x38] sm:$0xff] }
 0x126   : > { %9344 = vmatmul.msk.bf16.gmra.mxu2 %vm3494_vm13, %v9986_v18  ;;  %743 = vst [vmem:[#allocation2 + $0xb4] sm:$0x1] %v742_v24  ;;  %v1972_v23 = vshrl.u32 %v1745_v60, 16  ;;  %v1975_v8 = vshll.u32 %v1745_v60, 16  ;;  %v9987_v18 = vld [vmem:[#allocation2 + $0x98] sm:$0xff]  }
 0x128   : > { %v11885_v31 = vrot.slane %v1972_v23, 7  ;;  %v9988_v5 = vld [vmem:[#allocation2 + $0xa0] sm:$0xff]  }
 0x12a   : > { %v2752_v54 = vld [vmem:[#allocation2 + $0xa8] sm:$0xf]  ;;  %v11887_v39 = vpop.f32.mrf.mxu1  ;;  %v1977_v20 = vor.u32 %v1975_v8, %v11885_v31  ;;  %v4210_v8 = vshll.u32 %v11892_v14, 16 }
 0x12b   : > { %v2753_v13 = vsel %vm11093_vm10, %v2592_v3, %v2752_v54  ;;  %v1736_v51 = vld [vmem:[#allocation1 + $0x20] sm:$0xff]  ;;  %v971_v3 = vpack.c.bf16 %v963_v11, %v963_v11 }
 0x12c   : > { %2754 = vst [vmem:[#allocation2 + $0xa8] sm:$0xf] %v2753_v13  ;;  %v1964_v35 = vshrl.u32 %v1736_v51, 16  ;;  %v1967_v38 = vshll.u32 %v1736_v51, 16  ;;  %v3598_v2 = vpop.f32.mrf.mxu0  ;;  %9317 = vmatmul.msk.bf16.gmra.mxu3 %vm3494_vm13, %v9987_v18  ;;  %v2159_v46 = vld [vmem:[#allocation2 + $0xb0] sm:$0x1]  ;;  %v2594_v51 = vpop.permute.xlu2 %2593 }
 0x12d   : > { %1741 = vst [vmem:[#allocation1 + $0x20] ss:$4 sm:$0xff] %v11820_v32  ;;  %v2162_v37 = vld [vmem:[#allocation2 + $0xb4] sm:$0xf]  ;;  %9309 = vmatmul.msk.bf16.gmra.mxu1 %vm3494_vm13, %v11894_v36  ;;  %v11902_v60 = vadd.f32 %v11809_v52, %v3598_v2  ;;  %v4207_v32 = vshrl.u32 %v11835_v43, 16  ;;  %v987_v52 = vrot.slane %v971_v3, 3 }
 0x12e   : > { %v1966_v24 = vrot.slane %v1964_v35, 7  ;;  %1742 = vst [vmem:[#allocation1 + $0x21] ss:$4 sm:$0xff] %v1503_v0  ;;  %v2163_v23 = vsel %vm11058_vm15, %v1977_v20, %v2162_v37  ;;  %v15615_v0 = vrot.slane %v11892_v14, 1  ;;  %v11912_v35 = vrot.slane %v4210_v8, 1 }
 0x12f   : > { %15728 = vst [vmem:[#allocation14_spill] sm:$0xff] %v11902_v60  ;;  %9277 = vmatmul.msk.bf16.gmra.mxu0 %vm3494_vm13, %v11835_v43  ;;  %v4209_v20 = vor.u32 %v4207_v32, %v4205_v57  ;;  %v807_v57 = vld [vmem:[#allocation2 + $0xbc] sm:$0xf]  ;;  %v1085_v43 = vsel %vm988_vm3, %v971_v3, %v987_v52  ;;  %v2598_v32 = vpop.permute.xlu0 %2597 }
 0x130   : > { %1743 = vst [vmem:[#allocation1 + $0x22] ss:$4 sm:$0xff] %v1507_v49  ;;  %v1969_v54 = vor.u32 %v1967_v38, %v1966_v24  ;;  %v1971_v13 = vrot.slane %v1966_v24, 4  ;;  %v1087_v38 = vsel %vm993_vm0, %v971_v3, %v987_v52  ;;  %v808_v24 = vsel %vm10908_vm12, 0, %v807_v57 }
 0x131   : > { %1744 = vst [vmem:[#allocation1 + $0x23] ss:$4 sm:$0xff] %v1511_v16  ;;  %v11924_v16 = vsel %vm5147_vm11, %v5167_v41, %v15615_v0  ;;  %v1089_v11 = vrot.slane %v1087_v38, 1  ;;  %v1153_v41 = vunpack.i.h.s16 %v1085_v43  ;;  %vm15737_vm0 = vcmask 1043456  }
 0x132   : > { %2164 = vst [vmem:[#allocation2 + $0xb4] sm:$0xf] %v2163_v23  ;;  %v1970_v49 = vsel %vm10637_vm6, %v1963_v47, %v1969_v54  ;;  %v2160_v2 = vsel %vm11101_vm9, %v1971_v13, %v2159_v46  ;;  %v11926_v37 = vpop.f32.mrf.mxu1  ;;  %v11931_v47 = vsel %vm4133_vm4, %v4209_v20, %v11912_v35  ;;  %v9255_v54 = vpack.i.b16 %v1085_v43, %v1085_v43  ;;  %vm15810_vm3 = vmmov %vm15737_vm0 }
 0x133   : > { %2158 = vst.msk [vmem:[#allocation2 + $0xac] sm:$0xf] %vm2066_vm14, %v1970_v49  ;;  %v1155_v46 = vunpack.i.h.s16 %v1089_v11  ;;  %v1217_v13 = vpack.i.b16 %v1153_v41, %v1153_v41  ;;  %v9256_v20 = vpack.i.b16 %v1089_v11, %v1089_v11 }
 0x134   : > { %2755 = vst.msk [vmem:[#allocation2 + $0xac] sm:$0xf] %vm2663_vm5, %v2594_v51  ;;  %v3600_v23 = vpop.f32.mrf.mxu0  ;;  %v1280_v0 = vperm.slane %v9255_v54, 0 }
 0x135   : > { %2161 = vst [vmem:[#allocation2 + $0xb0] sm:$0x1] %v2160_v2  ;;  %v1219_v49 = vpack.i.b16 %v1155_v46, %v1155_v46  ;;  %v1281_v58 = vperm.slane %v1217_v13, 0  ;;  %v1282_v23 = vperm.slane %v9256_v20, 0  ;;  %v2596_v2 = vpop.permute.xlu1 %2595  ;;  %v11946_v20 = vld [vmem:[#allocation2 + $0x60] sm:$0xff]  }
 0x136   : > { %9345 = vmatmul.msk.bf16.gmra.mxu2 %vm3494_vm13, %v9987_v18  ;;  %809 = vst [vmem:[#allocation2 + $0xbc] sm:$0xf] %v808_v24  ;;  %v1090_v18 = vsel %vm997_vm1, %v971_v3, %v987_v52  ;;  %v1093_v24 = vsel %vm1001_vm2, %v971_v3, %v987_v52  ;;  %v1513_v41 = vpack.i.b16 %v1280_v0, %v1280_v0  ;;  %vm15749_vm1 = vmmov %vm15737_vm0 }
 0x137   : > { %v1283_v6 = vperm.slane %v1219_v49, 0  ;;  %v11942_v11 = vpack.i.b16 %v1281_v58, %v1281_v58  ;;  %v1521_v46 = vpack.i.b16 %v1282_v23, %v1282_v23  ;;  %v1092_v45 = vrot.slane %v1090_v18, 2  ;;  %vm15779_vm2 = vmmov %vm15737_vm0 }
 0x138   : > { %v1746_v8 = vld [vmem:[#allocation1 + $0x20] sm:$0xff]  ;;  %v1095_v13 = vrot.slane %v1093_v24, 3  ;;  %v11950_v3 = vperm.slane %v1513_v41, 0  ;;  %v1978_v23 = vrot.slane %v11885_v31, 4  ;;  %v4214_v31 = vshrl.u32 %v11892_v14, 16 }
 0x139   : > { %v2759_v38 = vld [vmem:[#allocation2 + $0xb4] sm:$0xf]  ;;  %v1979_v51 = vshrl.u32 %v1746_v8, 16  ;;  %v11944_v54 = vpack.i.b16 %v1283_v6, %v1283_v6  ;;  %v1519_v58 = vperm.slane %v11942_v11, 0  ;;  %v11953_v52 = vperm.slane %v1521_v46, 0  ;;  %v11968_v46 = vld [vmem:[#allocation2 + $0x6c] sm:$0xff]  }
 0x13a   : > { %v2760_v57 = vsel %vm11093_vm10, %v2598_v32, %v2759_v38  ;;  %v3850_v43 = vpop.f32.mrf.mxu1  ;;  %v1159_v18 = vunpack.i.h.s16 %v1095_v13  ;;  %v9257_v24 = vpack.i.b16 %v1092_v45, %v1092_v45  ;;  %1748 = vst [vmem:[#allocation1] ss:$4 sm:$0xff] %v11950_v3 }
 0x13b   : > { %2761 = vst [vmem:[#allocation2 + $0xb4] sm:$0xf] %v2760_v57  ;;  %v1981_v60 = vrot.slane %v1979_v51, 7  ;;  %v1157_v57 = vunpack.i.h.s16 %v1092_v45  ;;  %v9258_v43 = vpack.i.b16 %v1095_v13, %v1095_v13  ;;  %v744_v13 = vld [vmem:[#allocation2 + $0xc0] sm:$0x1] }
 0x13c   : > { %v2756_v40 = vld [vmem:[#allocation2 + $0xb0] sm:$0x1]  ;;  %v3602_v38 = vpop.f32.mrf.mxu0  ;;  %9318 = vmatmul.msk.bf16.gmra.mxu3 %vm3494_vm13, %v9988_v5  ;;  %1750 = vst [vmem:[#allocation1 + $0x1] ss:$4 sm:$0xff] %v1519_v58 }
 0x13d   : > { %v1986_v32 = vrot.slane %v1981_v60, 4  ;;  %v2757_v49 = vsel %vm11163_vm7, %v2596_v2, %v2756_v40  ;;  %v2166_v51 = vld [vmem:[#allocation2 + $0xbc] sm:$0x1]  ;;  %9310 = vmatmul.msk.bf16.gmra.mxu1 %vm3494_vm13, %v11946_v20  ;;  %v11958_v6 = vadd.f32 %v11887_v39, %v3602_v38  ;;  %v15617_v40 = vperm.slane %v11944_v54, 0  ;;  %1752 = vst [vmem:[#allocation1 + $0x2] ss:$4 sm:$0xff] %v11953_v52 }
 0x13e   : > { %2758 = vst [vmem:[#allocation2 + $0xb0] sm:$0x1] %v2757_v49  ;;  %v1982_v2 = vshll.u32 %v1746_v8, 16  ;;  %v1221_v39 = vpack.i.b16 %v1157_v57, %v1157_v57  ;;  %v1284_v49 = vperm.slane %v9257_v24, 0  ;;  %v1286_v8 = vperm.slane %v9258_v43, 0  ;;  %v2602_v57 = vpop.permute.xlu2 %2601 }
 0x13f   : > { %15729 = vst [vmem:[#allocation15_spill] sm:$0xff] %v11958_v6  ;;  %v2167_v0 = vsel %vm11101_vm9, %v1986_v32, %v2166_v51  ;;  %9278 = vmatmul.msk.bf16.gmra.mxu0 %vm3494_vm13, %v11892_v14  ;;  %v1223_v32 = vpack.i.b16 %v1159_v18, %v1159_v18  ;;  %v745_v18 = vsel %vm10823_vm8, 0, %v744_v13 }
 0x140   : > { %2168 = vst [vmem:[#allocation2 + $0xbc] sm:$0x1] %v2167_v0  ;;  %v1984_v41 = vor.u32 %v1982_v2, %v1981_v60  ;;  %v1285_v45 = vperm.slane %v1221_v39, 0  ;;  %v1529_v0 = vpack.i.b16 %v1284_v49, %v1284_v49  ;;  %v1537_v39 = vpack.i.b16 %v1286_v8, %v1286_v8 }
 0x141   : > { %1754 = vst [vmem:[#allocation1 + $0x3] ss:$4 sm:$0xff] %v15617_v40  ;;  %v1287_v60 = vperm.slane %v1223_v32, 0  ;;  %v4217_v40 = vshll.u32 %v11968_v46, 16  ;;  %v5171_v32 = vrot.slane %v11968_v46, 1 }
 0x142   : > { %v11974_v38 = vpop.f32.mrf.mxu1  ;;  %v1985_v51 = vsel %vm10637_vm6, %v1978_v23, %v1984_v41  ;;  %v2600_v2 = vpop.permute.xlu1 %2599  ;;  %v11983_v24 = vpack.i.b16 %v1285_v45, %v1285_v45  ;;  %v1531_v23 = vperm.slane %v1529_v0, 0  ;;  %v4216_v41 = vor.u32 %v4214_v31, %v11912_v35  ;;  %746 = vst [vmem:[#allocation2 + $0xc0] sm:$0x1] %v745_v18  ;;  %v12004_v18 = vld [vmem:[#allocation2 + $0x74] sm:$0xff]  }
 0x143   : > { %2165 = vst.msk [vmem:[#allocation2 + $0xb8] sm:$0xf] %vm2066_vm14, %v1985_v51  ;;  %v1539_v8 = vperm.slane %v1537_v39, 0  ;;  %v1541_v0 = vpack.i.b16 %v1287_v60, %v1287_v60  ;;  %v4219_v35 = vrot.slane %v4217_v40, 1  ;;  %v15731_v31 = vrot.slane %v11892_v14, 1  ;;  %v9989_v14 = vld [vmem:[#allocation2 + $0xa8] sm:$0xff]  }
 0x144   : > { %v3604_v43 = vpop.f32.mrf.mxu0  ;;  %2762 = vst.msk [vmem:[#allocation2 + $0xb8] sm:$0xf] %vm2663_vm5, %v2600_v2  ;;  %v1535_v45 = vperm.slane %v11983_v24, 0  ;;  %v12011_v39 = vld [vmem:[#allocation2 + $0x68] sm:$0xff]   ;;  %v15618_v11 = vrot.slane %v12004_v18, 1  ;;  %v15735_v50 = vrot.slane %v12004_v18, 1 }
 0x145   : > { %v11991_v49 = vadd.f32 %v11926_v37, %v3604_v43  ;;  %1756 = vst [vmem:[#allocation1 + $0x20] ss:$4 sm:$0xff] %v1531_v23  ;;  %v11999_v2 = vsel %vm5147_vm11, %v15731_v31, %v5171_v32  ;;  %v1543_v40 = vperm.slane %v1541_v0, 0  ;;  %v4224_v0 = vshll.u32 %v12004_v18, 16 }
 0x146   : > { %9346 = vmatmul.msk.bf16.gmra.mxu2 %vm3494_vm13, %v9988_v5  ;;  %1758 = vst [vmem:[#allocation1 + $0x21] ss:$4 sm:$0xff] %v1535_v45  ;;  %v12002_v5 = vsel %vm4133_vm4, %v4216_v41, %v4219_v35 }
 0x147   : > { %15730 = vst [vmem:[#allocation16_spill] sm:$0xff] %v11991_v49  ;;  %v2763_v51 = vld [vmem:[#allocation2 + $0xbc] sm:$0x1]  ;;  %v4226_v31 = vrot.slane %v4224_v0, 1 }
 0x148   : > { %v2764_v13 = vsel %vm11163_vm7, %v2602_v57, %v2763_v51  ;;  %v1763_v37 = vld [vmem:[#allocation1] sm:$0xff]  ;;  %1760 = vst [vmem:[#allocation1 + $0x22] ss:$4 sm:$0xff] %v1539_v8 }
 0x149   : > { %2765 = vst [vmem:[#allocation2 + $0xbc] sm:$0x1] %v2764_v13  ;;  %v1987_v57 = vshrl.u32 %v1763_v37, 16  ;;  %v1990_v60 = vshll.u32 %v1763_v37, 16  ;;  %v2169_v41 = vld [vmem:[#allocation2 + $0xc0] sm:$0xf] }
 0x14a   : > { %v12006_v24 = vpop.f32.mrf.mxu1  ;;  %1765 = vst [vmem:[#allocation1] ss:$4 sm:$0xff] %v11950_v3  ;;  %v15732_v13 = vperm.slane %v11944_v54, 0  ;;  %v4221_v3 = vshrl.u32 %v11968_v46, 16  ;;  %v12027_v54 = vsel %vm5147_vm11, %v5171_v32, %v15618_v11 }
 0x14b   : > { %1766 = vst [vmem:[#allocation1 + $0x1] ss:$4 sm:$0xff] %v1519_v58  ;;  %v1989_v51 = vrot.slane %v1987_v57, 7 }
 0x14c   : > { %v3607_v43 = vpop.f32.mrf.mxu0  ;;  %1767 = vst [vmem:[#allocation1 + $0x2] ss:$4 sm:$0xff] %v11953_v52  ;;  %9319 = vmatmul.msk.bf16.gmra.mxu3 %vm3494_vm13, %v9989_v14  ;;  %v4223_v52 = vor.u32 %v4221_v3, %v4219_v35 }
 0x14d   : > { %9311 = vmatmul.msk.bf16.gmra.mxu1 %vm3494_vm13, %v12011_v39  ;;  %1768 = vst [vmem:[#allocation1 + $0x3] ss:$4 sm:$0xff] %v15732_v13  ;;  %v1992_v58 = vor.u32 %v1990_v60, %v1989_v51  ;;  %v810_v60 = vld [vmem:[#allocation2 + $0xc8] sm:$0xf]  ;;  %v747_v13 = vld [vmem:[#allocation2 + $0xcc] sm:$0x1] }
 0x14e   : > { %1762 = vst [vmem:[#allocation1 + $0x23] ss:$4 sm:$0xff] %v1543_v40  ;;  %v12032_v57 = vsel %vm4133_vm4, %v4223_v52, %v4226_v31  ;;  %v748_v35 = vsel %vm10823_vm8, 0, %v747_v13  ;;  %v1993_v11 = vrot.slane %v1989_v51, 4 }
 0x14f   : > { %9279 = vmatmul.msk.bf16.gmra.mxu0 %vm3494_vm13, %v11968_v46  ;;  %v2170_v37 = vsel %vm11058_vm15, %v1992_v58, %v2169_v41  ;;  %v811_v46 = vsel %vm10908_vm12, 0, %v810_v60  ;;  %749 = vst [vmem:[#allocation2 + $0xcc] sm:$0x1] %v748_v35  ;;  %v2604_v58 = vpop.permute.xlu0 %2603 }
 0x150   : > { %2171 = vst [vmem:[#allocation2 + $0xc0] sm:$0xf] %v2170_v37 }
 0x151   : > { %812 = vst [vmem:[#allocation2 + $0xc8] sm:$0xf] %v811_v46  ;;  %v12046_v46 = vld [vmem:[#allocation2 + $0x7c] sm:$0xff]  }
 0x152   : > { %v3856_v43 = vpop.f32.mrf.mxu1  ;;  %v4235_v4 = vshrl.u32 %v12046_v46, 16 }
 0x154   : > { %v3608_v3 = vpop.f32.mrf.mxu0  ;;  %v1773_v0 = vld [vmem:[#allocation1] sm:$0xff] }
 0x155   : > { %v12040_v32 = vadd.f32 %v11974_v38, %v3608_v3  ;;  %v1764_v41 = vld [vmem:[#allocation1 + $0x20] sm:$0xff]  ;;  %v2002_v43 = vshrl.u32 %v1773_v0, 16  ;;  %v2005_v38 = vshll.u32 %v1773_v0, 16  ;;  %v12053_v0 = vld [vmem:[#allocation2 + $0x70] sm:$0xff]  }
 0x156   : > { %9347 = vmatmul.msk.bf16.gmra.mxu2 %vm3494_vm13, %v9989_v14  ;;  %v1994_v52 = vshrl.u32 %v1764_v41, 16  ;;  %v1997_v37 = vshll.u32 %v1764_v41, 16  ;;  %1769 = vst [vmem:[#allocation1 + $0x20] ss:$4 sm:$0xff] %v1531_v23  ;;  %v9990_v23 = vld [vmem:[#allocation2 + $0xb0] sm:$0xff]  }
 0x157   : > { %15733 = vst [vmem:[#allocation17_spill] sm:$0xff] %v12040_v32  ;;  %v2766_v60 = vld [vmem:[#allocation2 + $0xc0] sm:$0xf]  ;;  %v12042_v13 = vrot.slane %v2002_v43, 7  ;;  %v2606_v32 = vpop.permute.xlu2 %2605  ;;  %v4231_v43 = vshll.u32 %v12046_v46, 16 }
 0x158   : > { %1770 = vst [vmem:[#allocation1 + $0x21] ss:$4 sm:$0xff] %v1535_v45  ;;  %v1996_v49 = vrot.slane %v1994_v52, 7  ;;  %v2767_v14 = vsel %vm11093_vm10, %v2604_v58, %v2766_v60  ;;  %v2173_v51 = vld [vmem:[#allocation2 + $0xc8] sm:$0x1]  ;;  %v5175_v60 = vrot.slane %v12046_v46, 1 }
 0x159   : > { %1771 = vst [vmem:[#allocation1 + $0x22] ss:$4 sm:$0xff] %v1539_v8  ;;  %v2007_v45 = vor.u32 %v2005_v38, %v12042_v13 }
 0x15a   : > { %1772 = vst [vmem:[#allocation1 + $0x23] ss:$4 sm:$0xff] %v1543_v40  ;;  %v3858_v35 = vpop.f32.mrf.mxu1  ;;  %v1999_v3 = vor.u32 %v1997_v37, %v1996_v49  ;;  %v2001_v41 = vrot.slane %v1996_v49, 4  ;;  %v2176_v40 = vld [vmem:[#allocation2 + $0xcc] sm:$0xf]  ;;  %v12073_v38 = vsel %vm5147_vm11, %v15735_v50, %v5175_v60 }
 0x15b   : > { %2768 = vst [vmem:[#allocation2 + $0xc0] sm:$0xf] %v2767_v14  ;;  %v2177_v37 = vsel %vm11058_vm15, %v2007_v45, %v2176_v40  ;;  %v813_v45 = vld [vmem:[#allocation2 + $0xd4] sm:$0xf]  ;;  %vm15943_vm15 = vmmov %vm15737_vm0 }
 0x15c   : > { %v2000_v8 = vsel %vm10637_vm6, %v1993_v11, %v1999_v3  ;;  %v3611_v52 = vpop.f32.mrf.mxu0  ;;  %v2174_v58 = vsel %vm11101_vm9, %v2001_v41, %v2173_v51  ;;  %v4228_v11 = vshrl.u32 %v12004_v18, 16  ;;  %9320 = vmatmul.msk.bf16.gmra.mxu3 %vm3494_vm13, %v9990_v23  ;;  %2178 = vst [vmem:[#allocation2 + $0xcc] sm:$0xf] %v2177_v37  ;;  %v3357_v3 = vld [vmem:[%s15603_s6 + $0x1c] sm:$0xf] }
 0x15d   : > { %9312 = vmatmul.msk.bf16.gmra.mxu1 %vm3494_vm13, %v12053_v0  ;;  %2172 = vst.msk [vmem:[#allocation2 + $0xc4] sm:$0xf] %vm2066_vm14, %v2000_v8  ;;  %v12059_v49 = vadd.f32 %v12006_v24, %v3611_v52  ;;  %v4233_v24 = vrot.slane %v4231_v43, 1  ;;  %v4983_v51 = vsel %vm15737_vm0, %v3357_v3, 0 }
 0x15e   : > { %2769 = vst.msk [vmem:[#allocation2 + $0xc4] sm:$0xf] %vm2663_vm5, %v2606_v32  ;;  %v4230_v14 = vor.u32 %v4228_v11, %v4226_v31  ;;  %4992 = vmatpush.bf16.msrb.mxu1 %v4983_v51  ;;  %v814_v31 = vsel %vm10908_vm12, 0, %v813_v45  ;;  %v2610_v52 = vpop.permute.xlu0 %2609  ;;  %v10302_v51 = vld [vmem:[#allocation2 + $0x84] sm:$0xff]  }
 0x15f   : > { %15734 = vst [vmem:[#allocation18_spill] sm:$0xff] %v12059_v49  ;;  %9280 = vmatmul.msk.bf16.gmra.mxu0 %vm3494_vm13, %v12004_v18 }
 0x160   : > { %2175 = vst [vmem:[#allocation2 + $0xc8] sm:$0x1] %v2174_v58  ;;  %v12079_v32 = vsel %vm4133_vm4, %v4230_v14, %v4233_v24  ;;  %v2608_v18 = vpop.permute.xlu1 %2607 }
 0x161   : > { %15736 = vst [vmem:[#allocation19_spill] sm:$0xff] %v12073_v38  ;;  %v1774_v58 = vld [vmem:[#allocation1 + $0x20] sm:$0xff] }
 0x162   : > { %v3860_v41 = vpop.f32.mrf.mxu1  ;;  %815 = vst [vmem:[#allocation2 + $0xd4] sm:$0xf] %v814_v31  ;;  %v2009_v37 = vshrl.u32 %v1774_v58, 16 }
 0x163   : > { %v2773_v43 = vld [vmem:[#allocation2 + $0xcc] sm:$0xf] }
 0x164   : > { %v3613_v8 = vpop.f32.mrf.mxu0  ;;  %v2774_v50 = vsel %vm11093_vm10, %v2610_v52, %v2773_v43  ;;  %v2011_v3 = vrot.slane %v2009_v37, 7  ;;  %v4238_v52 = vshll.u32 %v10302_v51, 16  ;;  %v5177_v37 = vrot.slane %v10302_v51, 1  ;;  %vm15870_vm10 = vmmov %vm15737_vm0 }
 0x165   : > { %2775 = vst [vmem:[#allocation2 + $0xcc] sm:$0xf] %v2774_v50  ;;  %v12093_v8 = vld [vmem:[#allocation2 + $0xb8] sm:$0xff]  }
 0x166   : > { %9348 = vmatmul.msk.bf16.gmra.mxu2 %vm3494_vm13, %v9990_v23  ;;  %v12091_v45 = vpop.f32.mrf.mxu3  ;;  %v2016_v31 = vrot.slane %v2011_v3, 4  ;;  %v4240_v43 = vrot.slane %v4238_v52, 1  ;;  %v12107_v63 = vsel %vm5147_vm11, %v5175_v60, %v5177_v37 }
 0x167   : > { %v2770_v40 = vld [vmem:[#allocation2 + $0xc8] sm:$0x1]  ;;  %15740 = vst [vmem:[#allocation22_spill] sm:$0xff] %v12107_v63 }
 0x168   : > { %v2771_v11 = vsel %vm11163_vm7, %v2608_v18, %v2770_v40 }
 0x169   : > { %v12087_v14 = vpop.f32.mrf.mxu2  ;;  %2772 = vst [vmem:[#allocation2 + $0xc8] sm:$0x1] %v2771_v11  ;;  %v2180_v49 = vld [vmem:[#allocation2 + $0xd4] sm:$0x1]  ;;  %v4237_v11 = vor.u32 %v4235_v4, %v4233_v24 }
 0x16a   : > { %15738 = vst [vmem:[#allocation20_spill] sm:$0xff] %v12087_v14  ;;  %v3863_v23 = vpop.f32.mrf.mxu1  ;;  %v2181_v18 = vsel %vm11101_vm9, %v2016_v31, %v2180_v49  ;;  %v12113_v14 = vld [vmem:[#allocation2 + $0x20] sm:$0xff]   ;;  %vm15867_vm9 = vmmov %vm15737_vm0 }
 0x16b   : > { %2182 = vst [vmem:[#allocation2 + $0xd4] sm:$0x1] %v2181_v18  ;;  %v12111_v50 = vsel %vm4133_vm4, %v4237_v11, %v4240_v43  ;;  %v4569_v55 = vshrl.u32 %v12113_v14, 16 }
 0x16c   : > { %v3615_v6 = vpop.f32.mrf.mxu0  ;;  %9321 = vmatmul.msk.bf16.gmra.mxu3 %vm3494_vm13, %v12093_v8 }
 0x16d   : > { %9313 = vmatmul.msk.bf16.gmra.mxu1 %vm3494_vm13, %v11655_v56  ;;  %v12099_v40 = vadd.f32 %v3858_v35, %v3615_v6  ;;  %v2012_v56 = vshll.u32 %v1774_v58, 16  ;;  %v2614_v6 = vpop.permute.xlu2 %2613  ;;  %v2008_v35 = vrot.slane %v12042_v13, 4 }
 0x16e   : > { %v3704_v23 = vpop.f32.mrf.mxu3 }
 0x16f   : > { %15739 = vst [vmem:[#allocation21_spill] sm:$0xff] %v12099_v40  ;;  %9281 = vmatmul.msk.bf16.gmra.mxu0 %vm3494_vm13, %v12046_v46  ;;  %v2014_v18 = vor.u32 %v2012_v56, %v2011_v3  ;;  %v4565_v46 = vshll.u32 %v12113_v14, 16  ;;  %v2612_v52 = vpop.permute.xlu1 %2611  ;;  %v12126_v3 = vld [vmem:[#allocation2 + $0x18] sm:$0xff]  }
 0x170   : > { %v4562_v11 = vshrl.u32 %v12126_v3, 16  ;;  %v12164_v40 = vld [vmem:[#allocation2 + $0xc8] sm:$0xff]  }
 0x171   : > { %v4029_v49 = vpop.f32.mrf.mxu2  ;;  %v2015_v60 = vsel %vm10637_vm6, %v2008_v35, %v2014_v18  ;;  %v4567_v56 = vrot.slane %v4565_v46, 1  ;;  %v10304_v35 = vld [vmem:[#allocation2 + $0x8c] sm:$0xff]   ;;  %v12132_v18 = vld [vmem:[#allocation2 + $0xc0] sm:$0xff]   ;;  %15750 = vst [vmem:[#allocation31_spill] sm:$0xff] %v12164_v40 }
 0x172   : > { %v3864_v31 = vpop.f32.mrf.mxu1  ;;  %v2777_v4 = vld [vmem:[#allocation2 + $0xd4] sm:$0x1]  ;;  %2179 = vst.msk [vmem:[#allocation2 + $0xd0] sm:$0xf] %vm2066_vm14, %v2015_v60  ;;  %v5179_v60 = vrot.slane %v10304_v35, 1  ;;  %vm15942_vm14 = vmmov %vm15737_vm0 }
 0x173   : > { %v2778_v13 = vsel %vm11163_vm7, %v2614_v6, %v2777_v4  ;;  %2776 = vst.msk [vmem:[#allocation2 + $0xd0] sm:$0xf] %vm2663_vm5, %v2612_v52  ;;  %v4245_v4 = vshll.u32 %v10304_v35, 16  ;;  %vm16096_vm5 = vmmov %vm15737_vm0  ;;  %vm16098_vm7 = vcmask 60416  }
 0x174   : > { %v3617_v24 = vpop.f32.mrf.mxu0  ;;  %2779 = vst [vmem:[#allocation2 + $0xd4] sm:$0x1] %v2778_v13  ;;  %vm16101_vm0 = vmmov %vm16098_vm7 }
 0x175   : > { %v12120_v58 = vadd.f32 %v3860_v41, %v3617_v24  ;;  %v4564_v41 = vor.u32 %v4562_v11, %v11354_v30  ;;  %15743 = vst [vmem:[#allocation25_spill] sm:$0xff] %v12132_v18  ;;  %v4242_v24 = vshrl.u32 %v10302_v51, 16  ;;  %v4247_v13 = vrot.slane %v4245_v4, 1 }
 0x176   : > { %9349 = vmatmul.msk.bf16.gmra.mxu2 %vm3494_vm13, %v12093_v8  ;;  %v12143_v30 = vsel %vm5147_vm11, %v5177_v37, %v5179_v60 }
 0x177   : > { %15741 = vst [vmem:[#allocation23_spill] sm:$0xff] %v12120_v58  ;;  %v12135_v19 = vsel %vm4133_vm4, %v4564_v41, %v4567_v56  ;;  %v4244_v46 = vor.u32 %v4242_v24, %v4240_v43  ;;  %v4571_v43 = vor.u32 %v4569_v55, %v4567_v56  ;;  %v4249_v56 = vshrl.u32 %v10304_v35, 16 }
 0x178   : > { %15744 = vst [vmem:[#allocation26_spill] sm:$0xff] %v12135_v19 }
 0x179   : > { %v12129_v49 = vpop.f32.mrf.mxu2  ;;  %15745 = vst [vmem:[#allocation27_spill] sm:$0xff] %v12143_v30  ;;  %v12148_v41 = vsel %vm4133_vm4, %v4244_v46, %v4247_v13  ;;  %v3354_v46 = vld [vmem:[%s15603_s6 + $0x10] sm:$0xf]  ;;  %v750_v30 = vld [vmem:[#allocation2 + $0xd8] sm:$0x1] }
 0x17a   : > { %15742 = vst [vmem:[#allocation24_spill] sm:$0xff] %v12129_v49  ;;  %v3867_v23 = vpop.f32.mrf.mxu1  ;;  %v12151_v49 = vld [vmem:[#allocation2 + $0x28] sm:$0xff]   ;;  %v751_v55 = vsel %vm10823_vm8, 0, %v750_v30 }
 0x17b   : > { %v4572_v58 = vshll.u32 %v12151_v49, 16  ;;  %752 = vst [vmem:[#allocation2 + $0xd8] sm:$0x1] %v751_v55  ;;  %v4576_v55 = vshrl.u32 %v12151_v49, 16  ;;  %v12198_v63 = vld [vmem:[#allocation2 + $0xd0] sm:$0xff]  }
 0x17c   : > { %v3620_v6 = vpop.f32.mrf.mxu0  ;;  %9322 = vmatmul.msk.bf16.gmra.mxu3 %vm3494_vm13, %v12132_v18 }
 0x17d   : > { %9410 = vmatmul.msk.bf16.vlgmr.msrb.gmra.mxu1 %vm3494_vm13, %v12135_v19  ;;  %v4574_v24 = vrot.slane %v4572_v58, 1 }
 0x17f   : > { %9282 = vmatmul.msk.bf16.gmra.mxu0 %vm3494_vm13, %v10302_v51  ;;  %v3902_v11 = vpop.f32.mrf.mxu3 }
 0x180   : > { %v10306_v11 = vld [vmem:[#allocation2 + $0x94] sm:$0xff]  }
 0x181   : > { %v12145_v52 = vpop.f32.mrf.mxu2 }
 0x182   : > { %15746 = vst [vmem:[#allocation28_spill] sm:$0xff] %v12145_v52  ;;  %v3869_v6 = vpop.f32.mrf.mxu1  ;;  %v4409_v52 = vsel %vm15749_vm1, %v3354_v46, 0  ;;  %v5181_v46 = vrot.slane %v10306_v11, 1  ;;  %vm16102_vm1 = vmmov %vm16101_vm0 }
 0x183   : > { %4418 = vmatpush.bf16.msra.mxu3 %v4409_v52  ;;  %v4251_v52 = vor.u32 %v4249_v56, %v4247_v13  ;;  %v3275_v13 = vld [vmem:[#allocation2 + $0xd8] sm:$0xf] }
 0x184   : > { %v3621_v19 = vpop.f32.mrf.mxu0 }
 0x185   : > { %v12156_v51 = vadd.f32 %v3864_v31, %v3621_v19  ;;  %v12167_v31 = vsel %vm4133_vm4, %v4571_v43, %v4574_v24 }
 0x186   : > { %9350 = vmatmul.msk.bf16.gmra.mxu2 %vm3494_vm13, %v12132_v18  ;;  %15751 = vst [vmem:[#allocation32_spill] sm:$0xff] %v12167_v31 }
 0x187   : > { %15747 = vst [vmem:[#allocation29_spill] sm:$0xff] %v12156_v51  ;;  %v12158_v4 = vpop.f32.mrf.mxu3 }
 0x188   : > { %15748 = vst [vmem:[#allocation30_spill] sm:$0xff] %v12158_v4  ;;  %v12179_v4 = vsel %vm5147_vm11, %v5179_v60, %v5181_v46  ;;  %v3276_v60 = vsel %vm10908_vm12, 0, %v3275_v13  ;;  %v753_v13 = vld [vmem:[#allocation2 + $0xe4] sm:$0x1] }
 0x189   : > { %v4036_v37 = vpop.f32.mrf.mxu2  ;;  %15753 = vst [vmem:[#allocation34_spill] sm:$0xff] %v12179_v4 }
 0x18a   : > { %v3871_v6 = vpop.f32.mrf.mxu1  ;;  %v4252_v37 = vshll.u32 %v10306_v11, 16  ;;  %3277 = vst [vmem:[#allocation2 + $0xd8] sm:$0xf] %v3276_v60  ;;  %v4256_v60 = vshrl.u32 %v10306_v11, 16 }
 0x18c   : > { %v3624_v19 = vpop.f32.mrf.mxu0  ;;  %9323 = vmatmul.msk.bf16.gmra.mxu3 %vm3494_vm13, %v12164_v40  ;;  %v4254_v43 = vrot.slane %v4252_v37, 1  ;;  %v4578_v37 = vor.u32 %v4576_v55, %v4574_v24 }
 0x18d   : > { %9411 = vmatmul.msk.bf16.gmra.mxu1 %vm3494_vm13, %v12167_v31  ;;  %v12173_v58 = vadd.f32 %v3867_v23, %v3624_v19 }
 0x18e   : > { %v12186_v23 = vsel %vm4133_vm4, %v4251_v52, %v4254_v43  ;;  %v4258_v24 = vor.u32 %v4256_v60, %v4254_v43 }
 0x18f   : > { %15752 = vst [vmem:[#allocation33_spill] sm:$0xff] %v12173_v58  ;;  %9283 = vmatmul.msk.bf16.gmra.mxu0 %vm3494_vm13, %v10304_v35  ;;  %v12183_v51 = vpop.f32.mrf.mxu3  ;;  %v12189_v58 = vld [vmem:[#allocation2 + $0x30] sm:$0xff]  }
 0x190   : > { %15755 = vst [vmem:[#allocation36_spill] sm:$0xff] %v12183_v51  ;;  %v4579_v31 = vshll.u32 %v12189_v58, 16 }
 0x191   : > { %v12181_v30 = vpop.f32.mrf.mxu2  ;;  %15756 = vst [vmem:[#allocation37_spill] sm:$0xff] %v12186_v23  ;;  %v12252_v7 = vld [vmem:[#allocation2 + $0xd8] sm:$0xff]  }
 0x192   : > { %15754 = vst [vmem:[#allocation35_spill] sm:$0xff] %v12181_v30  ;;  %v3873_v19 = vpop.f32.mrf.mxu1  ;;  %v4581_v52 = vrot.slane %v4579_v31, 1  ;;  %v10308_v30 = vld [vmem:[#allocation2 + $0x9c] sm:$0xff]  }
 0x193   : > { %v4259_v18 = vshll.u32 %v10308_v30, 16 }
 0x194   : > { %v3626_v35 = vpop.f32.mrf.mxu0  ;;  %v12201_v38 = vsel %vm4133_vm4, %v4578_v37, %v4581_v52 }
 0x195   : > { %15758 = vst [vmem:[#allocation39_spill] sm:$0xff] %v12201_v38 }
 0x196   : > { %9351 = vmatmul.msk.bf16.gmra.mxu2 %vm3494_vm13, %v12164_v40 }
 0x197   : > { %v3908_v51 = vpop.f32.mrf.mxu3 }
 0x198   : > { %v754_v51 = vsel %vm10823_vm8, 0, %v753_v13 }
 0x199   : > { %v12196_v56 = vpop.f32.mrf.mxu2  ;;  %755 = vst [vmem:[#allocation2 + $0xe4] sm:$0x1] %v754_v51 }
 0x19a   : > { %15757 = vst [vmem:[#allocation38_spill] sm:$0xff] %v12196_v56  ;;  %v3876_v4 = vpop.f32.mrf.mxu1  ;;  %v5183_v56 = vrot.slane %v10308_v30, 1 }
 0x19b   : > { %v4261_v4 = vrot.slane %v4259_v18, 1 }
 0x19c   : > { %v3628_v35 = vpop.f32.mrf.mxu0  ;;  %9324 = vmatmul.msk.bf16.gmra.mxu3 %vm3494_vm13, %v12198_v63  ;;  %v12213_v31 = vsel %vm5147_vm11, %v5181_v46, %v5183_v56 }
 0x19d   : > { %9412 = vmatmul.msk.bf16.gmra.mxu1 %vm3494_vm13, %v12201_v38  ;;  %v12205_v40 = vadd.f32 %v3871_v6, %v3628_v35  ;;  %15760 = vst [vmem:[#allocation41_spill] sm:$0xff] %v12213_v31  ;;  %v12218_v37 = vsel %vm4133_vm4, %v4258_v24, %v4261_v4  ;;  %v12221_v38 = vld [vmem:[#allocation2 + $0x38] sm:$0xff]  }
 0x19e   : > { %15762 = vst [vmem:[#allocation43_spill] sm:$0xff] %v12218_v37  ;;  %v4586_v13 = vshll.u32 %v12221_v38, 16 }
 0x19f   : > { %15759 = vst [vmem:[#allocation40_spill] sm:$0xff] %v12205_v40  ;;  %9284 = vmatmul.msk.bf16.gmra.mxu0 %vm3494_vm13, %v10306_v11  ;;  %v12215_v55 = vpop.f32.mrf.mxu3  ;;  %v4583_v40 = vshrl.u32 %v12189_v58, 16 }
 0x1a0   : > { %15761 = vst [vmem:[#allocation42_spill] sm:$0xff] %v12215_v55  ;;  %v3282_v46 = vld [vmem:[#allocation2 + $0xe4] sm:$0xf]  ;;  %v4588_v24 = vrot.slane %v4586_v13, 1 }
 0x1a1   : > { %v4042_v6 = vpop.f32.mrf.mxu2  ;;  %v3283_v43 = vsel %vm10908_vm12, 0, %v3282_v46  ;;  %v4585_v51 = vor.u32 %v4583_v40, %v4581_v52  ;;  %v10310_v55 = vld [vmem:[#allocation2 + $0xa4] sm:$0xff]  }
 0x1a2   : > { %v3877_v35 = vpop.f32.mrf.mxu1  ;;  %3284 = vst [vmem:[#allocation2 + $0xe4] sm:$0xf] %v3283_v43  ;;  %v4266_v46 = vshll.u32 %v10310_v55, 16  ;;  %v5185_v40 = vrot.slane %v10310_v55, 1 }
 0x1a3   : > { %v12235_v37 = vsel %vm4133_vm4, %v4585_v51, %v4588_v24 }
 0x1a4   : > { %v3630_v11 = vpop.f32.mrf.mxu0  ;;  %15766 = vst [vmem:[#allocation47_spill] sm:$0xff] %v12235_v37  ;;  %v4268_v13 = vrot.slane %v4266_v46, 1 }
 0x1a5   : > { %v12226_v18 = vadd.f32 %v3873_v19, %v3630_v11  ;;  %v820_v19 = vsel %vm10908_vm12, 0, %v819_v17  ;;  %v4263_v11 = vshrl.u32 %v10308_v30, 16 }
 0x1a6   : > { %9352 = vmatmul.msk.bf16.gmra.mxu2 %vm3494_vm13, %v12198_v63  ;;  %821 = vst [vmem:[#allocation2 + $0xec] sm:$0xf] %v820_v19 }
 0x1a7   : > { %15763 = vst [vmem:[#allocation44_spill] sm:$0xff] %v12226_v18  ;;  %v12232_v6 = vpop.f32.mrf.mxu3  ;;  %v4265_v52 = vor.u32 %v4263_v11, %v4261_v4 }
 0x1a8   : > { %15765 = vst [vmem:[#allocation46_spill] sm:$0xff] %v12232_v6 }
 0x1a9   : > { %v12230_v60 = vpop.f32.mrf.mxu2  ;;  %v12250_v6 = vsel %vm4133_vm4, %v4265_v52, %v4268_v13 }
 0x1aa   : > { %15764 = vst [vmem:[#allocation45_spill] sm:$0xff] %v12230_v60  ;;  %v3880_v31 = vpop.f32.mrf.mxu1  ;;  %v4590_v60 = vshrl.u32 %v12221_v38, 16 }
 0x1ac   : > { %v3633_v23 = vpop.f32.mrf.mxu0  ;;  %9356 = vmatmul.msk.bf16.vlgmr.msra.gmra.mxu3 %vm3494_vm13, %v11196_v25  ;;  %v12255_v25 = vld [vmem:[#allocation2 + $0x40] sm:$0xff]   ;;  %v4592_v52 = vor.u32 %v4590_v60, %v4588_v24 }
 0x1ad   : > { %9413 = vmatmul.msk.bf16.gmra.mxu1 %vm3494_vm13, %v12235_v37  ;;  %v12245_v23 = vsel %vm5147_vm11, %v5183_v56, %v5185_v40  ;;  %v3286_v19 = vld [vmem:[#allocation2 + $0xec] sm:$0x1] }
 0x1ae   : > { %15767 = vst [vmem:[#allocation48_spill] sm:$0xff] %v12245_v23  ;;  %v3287_v11 = vsel %vm10823_vm8, 0, %v3286_v19 }
 0x1af   : > { %9285 = vmatmul.msk.bf16.gmra.mxu0 %vm3494_vm13, %v10308_v30  ;;  %v3915_v51 = vpop.f32.mrf.mxu3  ;;  %v4593_v30 = vshll.u32 %v12255_v25, 16  ;;  %3288 = vst [vmem:[#allocation2 + $0xec] sm:$0x1] %v3287_v11 }
 0x1b1   : > { %v12247_v43 = vpop.f32.mrf.mxu2  ;;  %v4595_v51 = vrot.slane %v4593_v30, 1 }
 0x1b2   : > { %15768 = vst [vmem:[#allocation49_spill] sm:$0xff] %v12247_v43  ;;  %v3882_v17 = vpop.f32.mrf.mxu1  ;;  %v10312_v43 = vld [vmem:[#allocation2 + $0xac] sm:$0xff]  }
 0x1b3   : > { %v12267_v37 = vsel %vm4133_vm4, %v4592_v52, %v4595_v51  ;;  %v4273_v1 = vshll.u32 %v10312_v43, 16  ;;  %v5187_v19 = vrot.slane %v10312_v43, 1  ;;  %v12286_v52 = vld [vmem:[#allocation2 + $0xe0] sm:$0xff]  }
 0x1b4   : > { %v3634_v4 = vpop.f32.mrf.mxu0  ;;  %15771 = vst [vmem:[#allocation52_spill] sm:$0xff] %v12267_v37 }
 0x1b5   : > { %v12260_v56 = vadd.f32 %v3877_v35, %v3634_v4  ;;  %v4270_v4 = vshrl.u32 %v10310_v55, 16  ;;  %v4275_v24 = vrot.slane %v4273_v1, 1  ;;  %v12277_v30 = vsel %vm5147_vm11, %v5185_v40, %v5187_v19  ;;  %15777 = vst [vmem:[#allocation58_spill] sm:$0xff] %v12286_v52 }
 0x1b6   : > { %9353 = vmatmul.msk.bf16.gmra.mxu2 %vm3494_vm13, %v12252_v7  ;;  %15773 = vst [vmem:[#allocation54_spill] sm:$0xff] %v12277_v30 }
 0x1b7   : > { %15769 = vst [vmem:[#allocation50_spill] sm:$0xff] %v12260_v56  ;;  %v12264_v17 = vpop.f32.mrf.mxu3  ;;  %v4272_v60 = vor.u32 %v4270_v4, %v4268_v13 }
 0x1b8   : > { %15770 = vst [vmem:[#allocation51_spill] sm:$0xff] %v12264_v17  ;;  %v4597_v17 = vshrl.u32 %v12255_v25, 16 }
 0x1b9   : > { %v4049_v46 = vpop.f32.mrf.mxu2 }
 0x1ba   : > { %v3884_v18 = vpop.f32.mrf.mxu1  ;;  %v4599_v13 = vor.u32 %v4597_v17, %v4595_v51  ;;  %v4277_v51 = vshrl.u32 %v10312_v43, 16 }
 0x1bc   : > { %v3637_v23 = vpop.f32.mrf.mxu0  ;;  %9357 = vmatmul.msk.bf16.gmra.mxu3 %vm3494_vm13, %v11446_v15  ;;  %v12289_v15 = vld [vmem:[#allocation2 + $0x48] sm:$0xff]  }
 0x1bd   : > { %9414 = vmatmul.msk.bf16.gmra.mxu1 %vm3494_vm13, %v12267_v37  ;;  %v12271_v35 = vadd.f32 %v3880_v31, %v3637_v23  ;;  %v12284_v31 = vsel %vm4133_vm4, %v4272_v60, %v4275_v24  ;;  %v3355_v60 = vld [vmem:[%s15603_s6 + $0x14] sm:$0xf] }
 0x1be   : > { %15776 = vst [vmem:[#allocation57_spill] sm:$0xff] %v12284_v31  ;;  %v5285_v56 = vsel %vm15779_vm2, %v3355_v60, 0  ;;  %vm16103_vm2 = vmmov %vm16101_vm0 }
 0x1bf   : > { %15772 = vst [vmem:[#allocation53_spill] sm:$0xff] %v12271_v35  ;;  %9286 = vmatmul.msk.bf16.gmra.mxu0 %vm3494_vm13, %v10310_v55  ;;  %v12281_v46 = vpop.f32.mrf.mxu3  ;;  %v4600_v55 = vshll.u32 %v12289_v15, 16  ;;  %5294 = vmatpush.bf16.msrb.mxu2 %v5285_v56 }
 0x1c0   : > { %15775 = vst [vmem:[#allocation56_spill] sm:$0xff] %v12281_v46 }
 0x1c1   : > { %v12279_v11 = vpop.f32.mrf.mxu2  ;;  %v4602_v4 = vrot.slane %v4600_v55, 1 }
 0x1c2   : > { %15774 = vst [vmem:[#allocation55_spill] sm:$0xff] %v12279_v11  ;;  %v3886_v23 = vpop.f32.mrf.mxu1  ;;  %v10314_v11 = vld [vmem:[#allocation2 + $0xb4] sm:$0xff]  }
 0x1c3   : > { %v12301_v37 = vsel %vm4133_vm4, %v4599_v13, %v4602_v4  ;;  %v4280_v17 = vshll.u32 %v10314_v11, 16 }
 0x1c4   : > { %v3639_v1 = vpop.f32.mrf.mxu0  ;;  %15780 = vst [vmem:[#allocation60_spill] sm:$0xff] %v12301_v37 }
 0x1c5   : > { %v4282_v55 = vrot.slane %v4280_v17, 1 }
 0x1c6   : > { %9354 = vmatmul.msk.bf16.gmra.mxu2 %vm3494_vm13, %v12286_v52  ;;  %v9754_v52 = vld [vmem:[#allocation2 + $0xe8] sm:$0xff] }
 0x1c7   : > { %v3921_v46 = vpop.f32.mrf.mxu3 }
 0x1c8   : > { %v5189_v46 = vrot.slane %v10314_v11, 1 }
 0x1c9   : > { %v12294_v40 = vpop.f32.mrf.mxu2 }
 0x1ca   : > { %15778 = vst [vmem:[#allocation59_spill] sm:$0xff] %v12294_v40  ;;  %v3889_v35 = vpop.f32.mrf.mxu1  ;;  %v12311_v56 = vsel %vm5147_vm11, %v5187_v19, %v5189_v46 }
 0x1cb   : > { %v4279_v35 = vor.u32 %v4277_v51, %v4275_v24  ;;  %15782 = vst [vmem:[#allocation62_spill] sm:$0xff] %v12311_v56 }
 0x1cc   : > { %v3641_v1 = vpop.f32.mrf.mxu0  ;;  %9358 = vmatmul.msk.bf16.gmra.mxu3 %vm3494_vm13, %v11469_v12 }
 0x1cd   : > { %9415 = vmatmul.msk.bf16.gmra.mxu1 %vm3494_vm13, %v12301_v37  ;;  %v12305_v40 = vadd.f32 %v3884_v18, %v3641_v1  ;;  %v12316_v18 = vsel %vm4133_vm4, %v4279_v35, %v4282_v55  ;;  %v12319_v37 = vld [vmem:[#allocation2 + $0x50] sm:$0xff]  }
 0x1ce   : > { %15784 = vst [vmem:[#allocation64_spill] sm:$0xff] %v12316_v18  ;;  %v4607_v12 = vshll.u32 %v12319_v37, 16  ;;  %v4284_v18 = vshrl.u32 %v10314_v11, 16 }
 0x1cf   : > { %15781 = vst [vmem:[#allocation61_spill] sm:$0xff] %v12305_v40  ;;  %9287 = vmatmul.msk.bf16.gmra.mxu0 %vm3494_vm13, %v10312_v43  ;;  %v12313_v60 = vpop.f32.mrf.mxu3  ;;  %v4604_v40 = vshrl.u32 %v12289_v15, 16 }
 0x1d0   : > { %15783 = vst [vmem:[#allocation63_spill] sm:$0xff] %v12313_v60  ;;  %v4609_v17 = vrot.slane %v4607_v12, 1  ;;  %v10316_v60 = vld [vmem:[#allocation2 + $0xbc] sm:$0xff]  }
 0x1d1   : > { %v4055_v13 = vpop.f32.mrf.mxu2  ;;  %v4606_v51 = vor.u32 %v4604_v40, %v4602_v4  ;;  %v4287_v31 = vshll.u32 %v10316_v60, 16 }
 0x1d2   : > { %v3890_v1 = vpop.f32.mrf.mxu1 }
 0x1d3   : > { %v12330_v56 = vsel %vm4133_vm4, %v4606_v51, %v4609_v17  ;;  %v4289_v40 = vrot.slane %v4287_v31, 1 }
 0x1d4   : > { %v3643_v43 = vpop.f32.mrf.mxu0 }
 0x1d5   : > { %v12323_v24 = vadd.f32 %v3886_v23, %v3643_v43  ;;  %v4286_v23 = vor.u32 %v4284_v18, %v4282_v55 }
 0x1d6   : > { %9355 = vmatmul.msk.bf16.gmra.mxu2 %vm3494_vm13, %v9754_v52  ;;  %v5191_v52 = vrot.slane %v10316_v60, 1 }
 0x1d7   : > { %15785 = vst [vmem:[#allocation65_spill] sm:$0xff] %v12323_v24  ;;  %v12327_v13 = vpop.f32.mrf.mxu3 }
 0x1d8   : > { %15787 = vst [vmem:[#allocation67_spill] sm:$0xff] %v12327_v13  ;;  %v12338_v4 = vsel %vm5147_vm11, %v5189_v46, %v5191_v52  ;;  %v4611_v13 = vshrl.u32 %v12319_v37, 16 }
 0x1d9   : > { %v12325_v19 = vpop.f32.mrf.mxu2 }
 0x1da   : > { %15786 = vst [vmem:[#allocation66_spill] sm:$0xff] %v12325_v19  ;;  %v3893_v35 = vpop.f32.mrf.mxu1  ;;  %v4614_v19 = vshll.u32 %v11894_v36, 16  ;;  %v4613_v31 = vor.u32 %v4611_v13, %v4609_v17 }
 0x1dc   : > { %v3646_v30 = vpop.f32.mrf.mxu0  ;;  %9359 = vmatmul.msk.bf16.gmra.mxu3 %vm3494_vm13, %v11481_v59  ;;  %v4616_v46 = vrot.slane %v4614_v19, 1 }
 0x1dd   : > { %9416 = vmatmul.msk.bf16.gmra.mxu1 %vm3494_vm13, %v12330_v56  ;;  %v12343_v30 = vsel %vm4133_vm4, %v4286_v23, %v4289_v40 }
 0x1de   : > { %v12354_v23 = vsel %vm4133_vm4, %v4613_v31, %v4616_v46 }
 0x1df   : > { %9288 = vmatmul.msk.bf16.gmra.mxu0 %vm3494_vm13, %v10314_v11  ;;  %v3928_v43 = vpop.f32.mrf.mxu3  ;;  %15791 = vst [vmem:[#allocation71_spill] sm:$0xff] %v12354_v23 }
 0x1e0   : > { %v10318_v43 = vld [vmem:[#allocation2 + $0xc4] sm:$0xff]  }
 0x1e1   : > { %v12340_v12 = vpop.f32.mrf.mxu2 }
 0x1e2   : > { %15788 = vst [vmem:[#allocation68_spill] sm:$0xff] %v12340_v12  ;;  %v3895_v51 = vpop.f32.mrf.mxu1  ;;  %v4291_v12 = vshrl.u32 %v10316_v60, 16 }
 0x1e4   : > { %v3647_v24 = vpop.f32.mrf.mxu0 }
 0x1e5   : > { %v12349_v59 = vadd.f32 %v3890_v1, %v3647_v24  ;;  %v5193_v1 = vrot.slane %v10318_v43, 1  ;;  %v4293_v24 = vor.u32 %v4291_v12, %v4289_v40 }
 0x1e6   : > { %9437 = vmatmul.msk.bf16.vlgmr.msrb.gmra.mxu2 %vm3494_vm13, %v11237_v62  ;;  %v4294_v62 = vshll.u32 %v10318_v43, 16 }
 0x1e7   : > { %15789 = vst [vmem:[#allocation69_spill] sm:$0xff] %v12349_v59  ;;  %v12351_v55 = vpop.f32.mrf.mxu3  ;;  %v12364_v17 = vsel %vm5147_vm11, %v5191_v52, %v5193_v1 }
 0x1e8   : > { %15790 = vst [vmem:[#allocation70_spill] sm:$0xff] %v12351_v55  ;;  %v4296_v19 = vrot.slane %v4294_v62, 1 }
 0x1e9   : > { %v4062_v11 = vpop.f32.mrf.mxu2 }
 0x1ea   : > { %v3897_v18 = vpop.f32.mrf.mxu1 }
 0x1ec   : > { %v3650_v51 = vpop.f32.mrf.mxu0  ;;  %9360 = vmatmul.msk.bf16.gmra.mxu3 %vm3494_vm13, %v11501_v61  ;;  %v4621_v61 = vshll.u32 %v11946_v20, 16 }
 0x1ed   : > { %9417 = vmatmul.msk.bf16.gmra.mxu1 %vm3494_vm13, %v12354_v23  ;;  %v12358_v36 = vadd.f32 %v3893_v35, %v3650_v51  ;;  %v12371_v35 = vsel %vm4133_vm4, %v4293_v24, %v4296_v19  ;;  %v12373_v51 = vld [vmem:[#allocation2 + $0x58] sm:$0xff]   ;;  %v10319_v24 = vld [vmem:[#allocation2 + $0xcc] sm:$0xff]  }
 0x1ee   : > { %v4618_v55 = vshrl.u32 %v12373_v51, 16  ;;  %v4623_v12 = vrot.slane %v4621_v61, 1  ;;  %v4301_v23 = vshll.u32 %v10319_v24, 16 }
 0x1ef   : > { %15792 = vst [vmem:[#allocation72_spill] sm:$0xff] %v12358_v36  ;;  %9289 = vmatmul.msk.bf16.gmra.mxu0 %vm3494_vm13, %v10316_v60  ;;  %v12368_v11 = vpop.f32.mrf.mxu3 }
 0x1f0   : > { %15794 = vst [vmem:[#allocation74_spill] sm:$0xff] %v12368_v11  ;;  %v4620_v40 = vor.u32 %v4618_v55, %v4616_v46  ;;  %v4303_v55 = vrot.slane %v4301_v23, 1 }
 0x1f1   : > { %v12366_v13 = vpop.f32.mrf.mxu2 }
 0x1f2   : > { %15793 = vst [vmem:[#allocation73_spill] sm:$0xff] %v12366_v13  ;;  %v3899_v31 = vpop.f32.mrf.mxu1  ;;  %v12384_v13 = vsel %vm4133_vm4, %v4620_v40, %v4623_v12 }
 0x1f3   : > { %15796 = vst [vmem:[#allocation76_spill] sm:$0xff] %v12384_v13 }
 0x1f4   : > { %v3652_v60 = vpop.f32.mrf.mxu0 }
 0x1f5   : > { %v4298_v60 = vshrl.u32 %v10318_v43, 16 }
 0x1f6   : > { %9438 = vmatmul.msk.bf16.gmra.mxu2 %vm3494_vm13, %v11459_v29  ;;  %v5195_v29 = vrot.slane %v10319_v24, 1 }
 0x1f7   : > { %v3934_v62 = vpop.f32.mrf.mxu3  ;;  %v4300_v46 = vor.u32 %v4298_v60, %v4296_v19  ;;  %v9863_v60 = vunpack.c.l.b16 %v12252_v7 }
 0x1f8   : > { %v12394_v61 = vsel %vm5147_vm11, %v5193_v1, %v5195_v29 }
 0x1f9   : > { %v12379_v52 = vpop.f32.mrf.mxu2 }
 0x1fa   : > { %15795 = vst [vmem:[#allocation75_spill] sm:$0xff] %v12379_v52  ;;  %v12381_v11 = vpop.f32.mrf.mxu1  ;;  %v12399_v52 = vsel %vm4133_vm4, %v4300_v46, %v4303_v55 }
 0x1fc   : > { %v3654_v36 = vpop.f32.mrf.mxu0  ;;  %9361 = vmatmul.msk.bf16.gmra.mxu3 %vm3494_vm13, %v11633_v22 }
 0x1fd   : > { %9418 = vmatmul.msk.bf16.gmra.mxu1 %vm3494_vm13, %v12384_v13  ;;  %v12388_v59 = vadd.f32 %v3897_v18, %v3654_v36  ;;  %v4625_v36 = vshrl.u32 %v11946_v20, 16 }
 0x1ff   : > { %15797 = vst [vmem:[#allocation77_spill] sm:$0xff] %v12388_v59  ;;  %9290 = vmatmul.msk.bf16.gmra.mxu0 %vm3494_vm13, %v10318_v43  ;;  %v12396_v62 = vpop.f32.mrf.mxu3  ;;  %v4628_v59 = vshll.u32 %v12011_v39, 16  ;;  %v4627_v1 = vor.u32 %v4625_v36, %v4623_v12 }
 0x200   : > { %15798 = vst [vmem:[#allocation78_spill] sm:$0xff] %v12396_v62 }
 0x201   : > { %v4068_v40 = vpop.f32.mrf.mxu2  ;;  %v4630_v19 = vrot.slane %v4628_v59, 1 }
 0x202   : > { %v12401_v18 = vpop.f32.mrf.mxu1  ;;  %v9860_v40 = vunpack.c.h.b16 %v12198_v63 }
 0x203   : > { %15799 = vst [vmem:[#allocation79_spill] sm:$0xff] %v12401_v18  ;;  %v12418_v13 = vsel %vm4133_vm4, %v4627_v1, %v4630_v19 }
 0x204   : > { %v3656_v22 = vpop.f32.mrf.mxu0  ;;  %v12415_v20 = vpack.c.b16 %v9863_v60, %v9860_v40 }
 0x205   : > { %v12407_v43 = vadd.f32 %v3899_v31, %v3656_v22 }
 0x206   : > { %9439 = vmatmul.msk.bf16.gmra.mxu2 %vm3494_vm13, %v11476_v48  ;;  %v4305_v48 = vshrl.u32 %v10319_v24, 16  ;;  %v4308_v31 = vshll.u32 %v12415_v20, 16  ;;  %v15638_v59 = vrot.slane %v12415_v20, 1 }
 0x207   : > { %15800 = vst [vmem:[#allocation80_spill] sm:$0xff] %v12407_v43  ;;  %v12412_v46 = vpop.f32.mrf.mxu3 }
 0x208   : > { %15802 = vst [vmem:[#allocation82_spill] sm:$0xff] %v12412_v46  ;;  %v4307_v12 = vor.u32 %v4305_v48, %v4303_v55  ;;  %v4719_v48 = vshll.u32 %v12198_v63, 16  ;;  %v12452_v46 = vpack.c.b16 %v9863_v60, %v9863_v60 }
 0x209   : > { %v12409_v23 = vpop.f32.mrf.mxu2 }
 0x20a   : > { %15801 = vst [vmem:[#allocation81_spill] sm:$0xff] %v12409_v23  ;;  %v4999_v62 = vpop.f32.mrf.mxu1 }
 0x20b   : > { %v12427_v62 = vrot.slane %v4308_v31, 1  ;;  %15805 = vst [vmem:[#allocation85_spill] sm:$0xff] %v12452_v46 }
 0x20c   : > { %v3659_v18 = vpop.f32.mrf.mxu0  ;;  %9362 = vmatmul.msk.bf16.gmra.mxu3 %vm3494_vm13, %v11661_v9  ;;  %v4632_v9 = vshrl.u32 %v12011_v39, 16 }
 0x20d   : > { %9419 = vmatmul.msk.bf16.gmra.mxu1 %vm3494_vm13, %v12418_v13  ;;  %v12432_v18 = vsel %vm5147_vm11, %v5195_v29, %v15638_v59  ;;  %v12438_v1 = vsel %vm4133_vm4, %v4307_v12, %v12427_v62  ;;  %v4723_v29 = vshrl.u32 %v12198_v63, 16  ;;  %v12450_v12 = vrot.slane %v4719_v48, 1 }
 0x20f   : > { %9291 = vmatmul.msk.bf16.gmra.mxu0 %vm3494_vm13, %v10319_v24  ;;  %v3941_v22 = vpop.f32.mrf.mxu3  ;;  %v4635_v24 = vshll.u32 %v12053_v0, 16  ;;  %v12459_v23 = vor.u32 %v4723_v29, %v12450_v12 }
 0x210   : > { %v4634_v22 = vor.u32 %v4632_v9, %v4630_v19 }
 0x211   : > { %v12434_v36 = vpop.f32.mrf.mxu2  ;;  %v4637_v59 = vrot.slane %v4635_v24, 1 }
 0x212   : > { %15803 = vst [vmem:[#allocation83_spill] sm:$0xff] %v12434_v36  ;;  %v12440_v40 = vpop.f32.mrf.mxu1 }
 0x214   : > { %v12444_v55 = vpop.f32.mrf.mxu0 }
 0x215   : > { %15804 = vst [vmem:[#allocation84_spill] sm:$0xff] %v12444_v55  ;;  %v4727_v55 = vshll.u32 %v12452_v46, 16 }
 0x216   : > { %9440 = vmatmul.msk.bf16.gmra.mxu2 %vm3494_vm13, %v11486_v44  ;;  %v12463_v44 = vsel %vm4133_vm4, %v4634_v22, %v4637_v59 }
 0x217   : > { %v12454_v36 = vpop.f32.mrf.mxu3  ;;  %v4729_v19 = vrot.slane %v4727_v55, 1  ;;  %v3351_v55 = vld [vmem:[%s15603_s6 + $0x4] sm:$0xf] }
 0x218   : > { %15806 = vst [vmem:[#allocation86_spill] sm:$0xff] %v12454_v36  ;;  %v4813_v29 = vsel %vm15810_vm3, %v3351_v55, 0  ;;  %vm16106_vm3 = vmmov %vm16101_vm0 }
 0x219   : > { %v4075_v31 = vpop.f32.mrf.mxu2  ;;  %v12473_v60 = vsel %vm4133_vm4, %v12459_v23, %v4729_v19  ;;  %4822 = vmatpush.bf16.msra.mxu0 %v4813_v29  ;;  %v10407_v29 = vld [vmem:[#allocation2 + $0x80] sm:$0xff]  }
 0x21a   : > { %v12456_v39 = vpop.f32.mrf.mxu1  ;;  %15808 = vst [vmem:[#allocation88_spill] sm:$0xff] %v12473_v60  ;;  %v10406_v31 = vld [vmem:[#allocation2 + $0x78] sm:$0xff]  }
 0x21b   : > { %v4642_v22 = vshll.u32 %v10406_v31, 16 }
 0x21c   : > { %v12465_v63 = vpop.f32.mrf.mxu0  ;;  %9363 = vmatmul.msk.bf16.gmra.mxu3 %vm3494_vm13, %v11738_v28  ;;  %v4639_v28 = vshrl.u32 %v12053_v0, 16 }
 0x21d   : > { %15807 = vst [vmem:[#allocation87_spill] sm:$0xff] %v12465_v63  ;;  %9420 = vmatmul.msk.bf16.gmra.mxu1 %vm3494_vm13, %v12463_v44 }
 0x21e   : > { %v4641_v36 = vor.u32 %v4639_v28, %v4637_v59 }
 0x21f   : > { %9292 = vmatmul.msk.bf16.gmra.mxu0 %vm3494_vm13, %v12415_v20  ;;  %v12479_v24 = vpop.f32.mrf.mxu3 }
 0x221   : > { %v12477_v9 = vpop.f32.mrf.mxu2 }
 0x222   : > { %15809 = vst [vmem:[#allocation89_spill] sm:$0xff] %v12477_v9  ;;  %v5005_v48 = vpop.f32.mrf.mxu1  ;;  %v4644_v9 = vrot.slane %v4642_v22, 1 }
 0x224   : > { %v3665_v19 = vpop.f32.mrf.mxu0  ;;  %v12493_v48 = vsel %vm4133_vm4, %v4641_v36, %v4644_v9  ;;  %v4649_v36 = vshll.u32 %v10407_v29, 16 }
 0x226   : > { %9441 = vmatmul.msk.bf16.gmra.mxu2 %vm3494_vm13, %v11515_v26 }
 0x227   : > { %v3947_v60 = vpop.f32.mrf.mxu3 }
 0x228   : > { %v4646_v60 = vshrl.u32 %v10406_v31, 16 }
 0x229   : > { %v12488_v46 = vpop.f32.mrf.mxu2 }
 0x22a   : > { %15811 = vst [vmem:[#allocation90_spill] sm:$0xff] %v12488_v46  ;;  %v12490_v63 = vpop.f32.mrf.mxu1  ;;  %v4648_v19 = vor.u32 %v4646_v60, %v4644_v9  ;;  %v4653_v60 = vshrl.u32 %v10407_v29, 16 }
 0x22c   : > { %v12495_v55 = vpop.f32.mrf.mxu0  ;;  %9364 = vmatmul.msk.bf16.gmra.mxu3 %vm3494_vm13, %v11838_v33  ;;  %v4651_v33 = vrot.slane %v4649_v36, 1  ;;  %v10408_v36 = vld [vmem:[#allocation2 + $0x88] sm:$0xff]  }
 0x22d   : > { %15812 = vst [vmem:[#allocation91_spill] sm:$0xff] %v12495_v55  ;;  %9421 = vmatmul.msk.bf16.gmra.mxu1 %vm3494_vm13, %v12493_v48 }
 0x22f   : > { %9329 = vmatmul.msk.bf16.vlgmr.msrb.gmra.mxu0 %vm3494_vm13, %v12126_v3  ;;  %v12503_v0 = vpop.f32.mrf.mxu3 }
 0x231   : > { %v4081_v26 = vpop.f32.mrf.mxu2 }
 0x232   : > { %v12505_v59 = vpop.f32.mrf.mxu1  ;;  %v12516_v26 = vsel %vm4133_vm4, %v4648_v19, %v4651_v33 }
 0x234   : > { %v12507_v28 = vpop.f32.mrf.mxu0 }
 0x235   : > { %15813 = vst [vmem:[#allocation92_spill] sm:$0xff] %v12507_v28 }
 0x236   : > { %9442 = vmatmul.msk.bf16.gmra.mxu2 %vm3494_vm13, %v11673_v21 }
 0x237   : > { %v12513_v46 = vpop.f32.mrf.mxu3 }
 0x239   : > { %v12511_v22 = vpop.f32.mrf.mxu2 }
 0x23a   : > { %15814 = vst [vmem:[#allocation93_spill] sm:$0xff] %v12511_v22  ;;  %v5012_v3 = vpop.f32.mrf.mxu1  ;;  %v4655_v22 = vor.u32 %v4653_v60, %v4651_v33  ;;  %v4660_v60 = vshrl.u32 %v10408_v36, 16 }
 0x23b   : > { %v4656_v3 = vshll.u32 %v10408_v36, 16 }
 0x23c   : > { %v3672_v55 = vpop.f32.mrf.mxu0  ;;  %9365 = vmatmul.msk.bf16.gmra.mxu3 %vm3494_vm13, %v11876_v34 }
 0x23d   : > { %9422 = vmatmul.msk.bf16.gmra.mxu1 %vm3494_vm13, %v12516_v26  ;;  %v4658_v28 = vrot.slane %v4656_v3, 1  ;;  %v10409_v3 = vld [vmem:[#allocation2 + $0x90] sm:$0xff]  }
 0x23f   : > { %9330 = vmatmul.msk.bf16.gmra.mxu0 %vm3494_vm13, %v12113_v14  ;;  %v4425_v9 = vpop.f32.mrf.mxu3  ;;  %v12537_v14 = vsel %vm4133_vm4, %v4655_v22, %v4658_v28  ;;  %v4663_v22 = vshll.u32 %v10409_v3, 16 }
 0x240   : > { %15817 = vst [vmem:[#allocation96_spill] sm:$0xff] %v12537_v14 }
 0x241   : > { %v12524_v21 = vpop.f32.mrf.mxu2 }
 0x242   : > { %15815 = vst [vmem:[#allocation94_spill] sm:$0xff] %v12524_v21  ;;  %v12526_v31 = vpop.f32.mrf.mxu1  ;;  %v3946_v21 = vadd.f32 %v12479_v24, %v12091_v45 }
 0x244   : > { %v12528_v19 = vpop.f32.mrf.mxu0 }
 0x245   : > { %15816 = vst [vmem:[#allocation95_spill] sm:$0xff] %v12528_v19  ;;  %v4665_v19 = vrot.slane %v4663_v22, 1 }
 0x246   : > { %9443 = vmatmul.msk.bf16.gmra.mxu2 %vm3494_vm13, %v11685_v42 }
 0x247   : > { %v12532_v34 = vpop.f32.mrf.mxu3 }
 0x249   : > { %v4088_v55 = vpop.f32.mrf.mxu2 }
 0x24a   : > { %v12534_v43 = vpop.f32.mrf.mxu1 }
 0x24c   : > { %v12539_v9 = vpop.f32.mrf.mxu0  ;;  %9366 = vmatmul.msk.bf16.gmra.mxu3 %vm3494_vm13, %v11931_v47  ;;  %v4662_v47 = vor.u32 %v4660_v60, %v4658_v28  ;;  %v4667_v28 = vshrl.u32 %v10409_v3, 16 }
 0x24d   : > { %15818 = vst [vmem:[#allocation97_spill] sm:$0xff] %v12539_v9  ;;  %9423 = vmatmul.msk.bf16.gmra.mxu1 %vm3494_vm13, %v12537_v14 }
 0x24e   : > { %v4669_v22 = vor.u32 %v4667_v28, %v4665_v19 }
 0x24f   : > { %9331 = vmatmul.msk.bf16.gmra.mxu0 %vm3494_vm13, %v12151_v49  ;;  %v12549_v29 = vpop.f32.mrf.mxu3 }
 0x251   : > { %v12547_v42 = vpop.f32.mrf.mxu2 }
 0x252   : > { %15819 = vst [vmem:[#allocation98_spill] sm:$0xff] %v12547_v42  ;;  %v5018_v33 = vpop.f32.mrf.mxu1 }
 0x253   : > { %v12560_v33 = vsel %vm4133_vm4, %v4662_v47, %v4665_v19 }
 0x254   : > { %v3678_v55 = vpop.f32.mrf.mxu0  ;;  %15821 = vst [vmem:[#allocation100_spill] sm:$0xff] %v12560_v33 }
 0x256   : > { %9444 = vmatmul.msk.bf16.gmra.mxu2 %vm3494_vm13, %v11743_v10 }
 0x257   : > { %v4431_v14 = vpop.f32.mrf.mxu3 }
 0x259   : > { %v4092_v9 = vpop.f32.mrf.mxu2 }
 0x25a   : > { %v12555_v49 = vadd.f32 %v4092_v9, %v3946_v21  ;;  %v12557_v42 = vpop.f32.mrf.mxu1  ;;  %v10410_v21 = vld [vmem:[#allocation2 + $0x98] sm:$0xff]  }
 0x25b   : > { %v4670_v14 = vshll.u32 %v10410_v21, 16  ;;  %v4674_v28 = vshrl.u32 %v10410_v21, 16 }
 0x25c   : > { %15820 = vst [vmem:[#allocation99_spill] sm:$0xff] %v12555_v49  ;;  %v12562_v36 = vpop.f32.mrf.mxu0  ;;  %9367 = vmatmul.msk.bf16.gmra.mxu3 %vm3494_vm13, %v12002_v5 }
 0x25d   : > { %15822 = vst [vmem:[#allocation101_spill] sm:$0xff] %v12562_v36  ;;  %9424 = vmatmul.msk.bf16.gmra.mxu1 %vm3494_vm13, %v12560_v33  ;;  %v4672_v5 = vrot.slane %v4670_v14, 1  ;;  %v10411_v14 = vld [vmem:[#allocation2 + $0xa0] sm:$0xff]  }
 0x25f   : > { %9332 = vmatmul.msk.bf16.gmra.mxu0 %vm3494_vm13, %v12189_v58  ;;  %v12570_v45 = vpop.f32.mrf.mxu3  ;;  %v12583_v47 = vsel %vm4133_vm4, %v4669_v22, %v4672_v5  ;;  %v4676_v49 = vor.u32 %v4674_v28, %v4672_v5  ;;  %v4681_v28 = vshrl.u32 %v10411_v14, 16 }
 0x260   : > { %15825 = vst [vmem:[#allocation104_spill] sm:$0xff] %v12583_v47 }
 0x261   : > { %v4094_v10 = vpop.f32.mrf.mxu2 }
 0x262   : > { %v12572_v24 = vpop.f32.mrf.mxu1 }
 0x264   : > { %v12574_v9 = vpop.f32.mrf.mxu0 }
 0x265   : > { %15823 = vst [vmem:[#allocation102_spill] sm:$0xff] %v12574_v9 }
 0x266   : > { %9445 = vmatmul.msk.bf16.gmra.mxu2 %vm3494_vm13, %v11844_v27 }
 0x267   : > { %v12580_v55 = vpop.f32.mrf.mxu3 }
 0x269   : > { %v12578_v60 = vpop.f32.mrf.mxu2 }
 0x26a   : > { %15824 = vst [vmem:[#allocation103_spill] sm:$0xff] %v12578_v60  ;;  %v5025_v58 = vpop.f32.mrf.mxu1 }
 0x26b   : > { %v4677_v58 = vshll.u32 %v10411_v14, 16 }
 0x26c   : > { %v3685_v10 = vpop.f32.mrf.mxu0  ;;  %9368 = vmatmul.msk.bf16.gmra.mxu3 %vm3494_vm13, %v12032_v57 }
 0x26d   : > { %9425 = vmatmul.msk.bf16.gmra.mxu1 %vm3494_vm13, %v12583_v47  ;;  %v4679_v60 = vrot.slane %v4677_v58, 1  ;;  %v10412_v58 = vld [vmem:[#allocation2 + $0xa8] sm:$0xff]  }
 0x26f   : > { %9333 = vmatmul.msk.bf16.gmra.mxu0 %vm3494_vm13, %v12221_v38  ;;  %v4438_v19 = vpop.f32.mrf.mxu3  ;;  %v12604_v38 = vsel %vm4133_vm4, %v4676_v49, %v4679_v60  ;;  %v4684_v49 = vshll.u32 %v10412_v58, 16 }
 0x270   : > { %15828 = vst [vmem:[#allocation107_spill] sm:$0xff] %v12604_v38 }
 0x271   : > { %v12591_v27 = vpop.f32.mrf.mxu2 }
 0x272   : > { %15826 = vst [vmem:[#allocation105_spill] sm:$0xff] %v12591_v27  ;;  %v12593_v3 = vpop.f32.mrf.mxu1 }
 0x274   : > { %v12595_v22 = vpop.f32.mrf.mxu0 }
 0x275   : > { %15827 = vst [vmem:[#allocation106_spill] sm:$0xff] %v12595_v22  ;;  %v4686_v22 = vrot.slane %v4684_v49, 1 }
 0x276   : > { %9446 = vmatmul.msk.bf16.gmra.mxu2 %vm3494_vm13, %v11869_v53 }
 0x277   : > { %v12599_v57 = vpop.f32.mrf.mxu3 }
 0x279   : > { %v5301_v10 = vpop.f32.mrf.mxu2 }
 0x27a   : > { %v12601_v9 = vpop.f32.mrf.mxu1 }
 0x27c   : > { %v12606_v19 = vpop.f32.mrf.mxu0  ;;  %9369 = vmatmul.msk.bf16.gmra.mxu3 %vm3494_vm13, %v12079_v32 }
 0x27d   : > { %15829 = vst [vmem:[#allocation108_spill] sm:$0xff] %v12606_v19  ;;  %9426 = vmatmul.msk.bf16.gmra.mxu1 %vm3494_vm13, %v12604_v38  ;;  %v4683_v19 = vor.u32 %v4681_v28, %v4679_v60  ;;  %v10413_v28 = vld [vmem:[#allocation2 + $0xb0] sm:$0xff]  }
 0x27f   : > { %9334 = vmatmul.msk.bf16.gmra.mxu0 %vm3494_vm13, %v12255_v25  ;;  %v12616_v21 = vpop.f32.mrf.mxu3  ;;  %v12625_v25 = vsel %vm4133_vm4, %v4683_v19, %v4686_v22  ;;  %v4691_v19 = vshll.u32 %v10413_v28, 16 }
 0x280   : > { %15833 = vst [vmem:[#allocation112_spill] sm:$0xff] %v12625_v25 }
 0x281   : > { %v12614_v53 = vpop.f32.mrf.mxu2 }
 0x282   : > { %15830 = vst [vmem:[#allocation109_spill] sm:$0xff] %v12614_v53  ;;  %v5031_v5 = vpop.f32.mrf.mxu1 }
 0x283   : > { %v4688_v5 = vshrl.u32 %v10412_v58, 16 }
 0x284   : > { %v3691_v10 = vpop.f32.mrf.mxu0 }
 0x286   : > { %9447 = vmatmul.msk.bf16.gmra.mxu2 %vm3494_vm13, %v11924_v16 }
 0x287   : > { %v4444_v32 = vpop.f32.mrf.mxu3 }
 0x288   : > { %v4690_v32 = vor.u32 %v4688_v5, %v4686_v22  ;;  %v4695_v5 = vshrl.u32 %v10413_v28, 16  ;;  %v15844_v28 = vld [vmem:[#allocation10_spill] sm:$0xff] }
 0x289   : > { %v12620_v27 = vpop.f32.mrf.mxu2 }
 0x28a   : > { %15831 = vst [vmem:[#allocation110_spill] sm:$0xff] %v12620_v27  ;;  %v12622_v36 = vpop.f32.mrf.mxu1 }
 0x28b   : > { %15832 = vst [vmem:[#allocation111_spill] sm:$0xff] %v12622_v36 }
 0x28c   : > { %v12627_v53 = vpop.f32.mrf.mxu0  ;;  %9370 = vmatmul.msk.bf16.gmra.mxu3 %vm3494_vm13, %v12111_v50  ;;  %v4693_v50 = vrot.slane %v4691_v19, 1  ;;  %v4698_v19 = vshll.u32 %v12093_v8, 16 }
 0x28d   : > { %15834 = vst [vmem:[#allocation113_spill] sm:$0xff] %v12627_v53  ;;  %9427 = vmatmul.msk.bf16.gmra.mxu1 %vm3494_vm13, %v12625_v25 }
 0x28f   : > { %9335 = vmatmul.msk.bf16.gmra.mxu0 %vm3494_vm13, %v12289_v15  ;;  %v12635_v60 = vpop.f32.mrf.mxu3 }
 0x291   : > { %v5307_v16 = vpop.f32.mrf.mxu2 }
 0x292   : > { %v12637_v14 = vpop.f32.mrf.mxu1  ;;  %v12648_v16 = vsel %vm4133_vm4, %v4690_v32, %v4693_v50 }
 0x293   : > { %15835 = vst [vmem:[#allocation114_spill] sm:$0xff] %v12637_v14 }
 0x294   : > { %v12639_v49 = vpop.f32.mrf.mxu0  ;;  %15838 = vst [vmem:[#allocation117_spill] sm:$0xff] %v12648_v16 }
 0x295   : > { %15836 = vst [vmem:[#allocation115_spill] sm:$0xff] %v12639_v49 }
 0x296   : > { %9448 = vmatmul.msk.bf16.gmra.mxu2 %vm3494_vm13, %v11999_v2 }
 0x297   : > { %v12645_v27 = vpop.f32.mrf.mxu3 }
 0x299   : > { %v12643_v10 = vpop.f32.mrf.mxu2 }
 0x29a   : > { %15837 = vst [vmem:[#allocation116_spill] sm:$0xff] %v12643_v10  ;;  %v5038_v15 = vpop.f32.mrf.mxu1  ;;  %v4700_v10 = vrot.slane %v4698_v19, 1  ;;  %v15847_v19 = vld [vmem:[#allocation12_spill] sm:$0xff] }
 0x29b   : > { %v4697_v15 = vor.u32 %v4695_v5, %v4693_v50 }
 0x29c   : > { %v3698_v53 = vpop.f32.mrf.mxu0  ;;  %9371 = vmatmul.msk.bf16.gmra.mxu3 %vm3494_vm13, %v12148_v41 }
 0x29d   : > { %9428 = vmatmul.msk.bf16.gmra.mxu1 %vm3494_vm13, %v12648_v16  ;;  %v4702_v16 = vshrl.u32 %v12093_v8, 16  ;;  %v15854_v8 = vld [vmem:[#allocation43_spill] sm:$0xff] }
 0x29f   : > { %9336 = vmatmul.msk.bf16.gmra.mxu0 %vm3494_vm13, %v12319_v37  ;;  %v4451_v22 = vpop.f32.mrf.mxu3  ;;  %v12670_v37 = vsel %vm4133_vm4, %v4697_v15, %v4700_v10 }
 0x2a0   : > { %15843 = vst [vmem:[#allocation122_spill] sm:$0xff] %v12670_v37 }
 0x2a1   : > { %v12656_v2 = vpop.f32.mrf.mxu2 }
 0x2a2   : > { %15839 = vst [vmem:[#allocation118_spill] sm:$0xff] %v12656_v2  ;;  %v12658_v58 = vpop.f32.mrf.mxu1 }
 0x2a3   : > { %15840 = vst [vmem:[#allocation119_spill] sm:$0xff] %v12658_v58 }
 0x2a4   : > { %v12661_v32 = vpop.f32.mrf.mxu0 }
 0x2a5   : > { %15841 = vst [vmem:[#allocation120_spill] sm:$0xff] %v12661_v32  ;;  %v15845_v32 = vld [vmem:[#allocation37_spill] sm:$0xff] }
 0x2a6   : > { %9449 = vmatmul.msk.bf16.gmra.mxu2 %vm3494_vm13, %v12027_v54 }
 0x2a7   : > { %v12665_v41 = vpop.f32.mrf.mxu3 }
 0x2a9   : > { %v5314_v53 = vpop.f32.mrf.mxu2 }
 0x2aa   : > { %v12667_v49 = vpop.f32.mrf.mxu1  ;;  %v15848_v53 = vld [vmem:[#allocation9_spill] sm:$0xff] }
 0x2ab   : > { %15842 = vst [vmem:[#allocation121_spill] sm:$0xff] %v12667_v49  ;;  %v3835_v15 = vadd.f32 %v15848_v53, %v15847_v19  ;;  %v12704_v53 = vld [vmem:[#allocation2 + $0x60] sm:$0xff]  }
 0x2ac   : > { %v3979_v22 = vpop.f32.mrf.mxu0  ;;  %9372 = vmatmul.msk.bf16.gmra.mxu3 %vm3494_vm13, %v15845_v32 }
 0x2ad   : > { %9429 = vmatmul.msk.bf16.gmra.mxu1 %vm3494_vm13, %v12670_v37  ;;  %v12675_v2 = vadd.f32 %v3979_v22, %v15844_v28  ;;  %v15849_v37 = vld [vmem:[#allocation25_spill] sm:$0xff]  ;;  %v15850_v28 = vld [vmem:[#allocation19_spill] sm:$0xff] }
 0x2ae   : > { %v4705_v25 = vshll.u32 %v15849_v37, 16  ;;  %15855 = vst [vmem:[#allocation25_spill] sm:$0xff] %v12704_v53 }
 0x2af   : > { %9337 = vmatmul.msk.bf16.gmra.mxu0 %vm3494_vm13, %v12373_v51  ;;  %v12683_v50 = vpop.f32.mrf.mxu3  ;;  %v4704_v51 = vor.u32 %v4702_v16, %v4700_v10 }
 0x2b1   : > { %v12681_v54 = vpop.f32.mrf.mxu2 }
 0x2b2   : > { %15846 = vst [vmem:[#allocation10_spill] sm:$0xff] %v12681_v54  ;;  %v5044_v5 = vpop.f32.mrf.mxu1  ;;  %v4707_v54 = vrot.slane %v4705_v25, 1 }
 0x2b4   : > { %v3981_v22 = vpop.f32.mrf.mxu0  ;;  %v12698_v5 = vsel %vm4133_vm4, %v4704_v51, %v4707_v54  ;;  %v15860_v51 = vld [vmem:[#allocation31_spill] sm:$0xff] }
 0x2b5   : > { %v12691_v32 = vadd.f32 %v3981_v22, %v3835_v15  ;;  %15853 = vst [vmem:[#allocation9_spill] sm:$0xff] %v12698_v5  ;;  %v15859_v15 = vld [vmem:[#allocation11_spill] sm:$0xff] }
 0x2b6   : > { %9450 = vmatmul.msk.bf16.gmra.mxu2 %vm3494_vm13, %v15850_v28  ;;  %v4709_v28 = vshrl.u32 %v15849_v37, 16  ;;  %v15865_v37 = vld [vmem:[#allocation14_spill] sm:$0xff] }
 0x2b7   : > { %v4457_v58 = vpop.f32.mrf.mxu3 }
 0x2b8   : > { %v15858_v58 = vld [vmem:[#allocation13_spill] sm:$0xff] }
 0x2b9   : > { %v12693_v49 = vpop.f32.mrf.mxu2  ;;  %v3839_v22 = vadd.f32 %v15859_v15, %v15858_v58 }
 0x2ba   : > { %15851 = vst [vmem:[#allocation37_spill] sm:$0xff] %v12693_v49  ;;  %v12695_v38 = vpop.f32.mrf.mxu1 }
 0x2bb   : > { %15852 = vst [vmem:[#allocation12_spill] sm:$0xff] %v12695_v38 }
 0x2bc   : > { %v3984_v19 = vpop.f32.mrf.mxu0  ;;  %9373 = vmatmul.msk.bf16.gmra.mxu3 %vm3494_vm13, %v15854_v8 }
 0x2bd   : > { %9430 = vmatmul.msk.bf16.gmra.mxu1 %vm3494_vm13, %v12698_v5  ;;  %v4712_v19 = vshll.u32 %v15860_v51, 16  ;;  %v15861_v5 = vld [vmem:[#allocation22_spill] sm:$0xff] }
 0x2bf   : > { %9338 = vmatmul.msk.bf16.gmra.mxu0 %vm3494_vm13, %v12704_v53  ;;  %v12708_v25 = vpop.f32.mrf.mxu3  ;;  %v4714_v53 = vrot.slane %v4712_v19, 1 }
 0x2c0   : > { %15856 = vst [vmem:[#allocation19_spill] sm:$0xff] %v12708_v25 }
 0x2c1   : > { %v5320_v10 = vpop.f32.mrf.mxu2 }
 0x2c2   : > { %v12710_v16 = vpop.f32.mrf.mxu1  ;;  %v4711_v10 = vor.u32 %v4709_v28, %v4707_v54  ;;  %v12737_v54 = vld [vmem:[#allocation2 + $0x68] sm:$0xff]   ;;  %v12744_v28 = vld [vmem:[#allocation2] sm:$0xff] }
 0x2c3   : > { %15857 = vst [vmem:[#allocation43_spill] sm:$0xff] %v12710_v16  ;;  %v4540_v19 = vshll.u32 %v12744_v28, 16 }
 0x2c4   : > { %v3985_v49 = vpop.f32.mrf.mxu0  ;;  %v12725_v47 = vsel %vm4133_vm4, %v4711_v10, %v4714_v53  ;;  %15866 = vst [vmem:[#allocation22_spill] sm:$0xff] %v12737_v54 }
 0x2c5   : > { %v12718_v8 = vadd.f32 %v3985_v49, %v3839_v22  ;;  %15864 = vst [vmem:[#allocation31_spill] sm:$0xff] %v12725_v47  ;;  %v3352_v49 = vld [vmem:[%s15603_s6 + $0x8] sm:$0xf] }
 0x2c6   : > { %9451 = vmatmul.msk.bf16.gmra.mxu2 %vm3494_vm13, %v15861_v5  ;;  %v5550_v5 = vsel %vm15867_vm9, %v3352_v49, 0  ;;  %vm16110_vm9 = vmmov %vm16096_vm5 }
 0x2c7   : > { %v12722_v14 = vpop.f32.mrf.mxu3  ;;  %5559 = vmatpush.bf16.msrb.mxu3 %v5550_v5  ;;  %v4716_v5 = vshrl.u32 %v15860_v51, 16 }
 0x2c8   : > { %15863 = vst [vmem:[#allocation11_spill] sm:$0xff] %v12722_v14 }
 0x2c9   : > { %v12720_v38 = vpop.f32.mrf.mxu2  ;;  %v4718_v36 = vor.u32 %v4716_v5, %v4714_v53  ;;  %v4944_v5 = vshll.u32 %v12252_v7, 16  ;;  %v15885_v7 = vld [vmem:[#allocation64_spill] sm:$0xff] }
 0x2ca   : > { %15862 = vst [vmem:[#allocation13_spill] sm:$0xff] %v12720_v38  ;;  %v5051_v16 = vpop.f32.mrf.mxu1  ;;  %v4542_v38 = vrot.slane %v4540_v19, 1 }
 0x2cc   : > { %v3988_v58 = vpop.f32.mrf.mxu0  ;;  %9374 = vmatmul.msk.bf16.gmra.mxu3 %vm3494_vm13, %v12250_v6  ;;  %v3358_v6 = vld [vmem:[%s15603_s6 + $0x20] sm:$0xf] }
 0x2cd   : > { %9431 = vmatmul.msk.bf16.gmra.mxu1 %vm3494_vm13, %v12725_v47  ;;  %v12730_v15 = vadd.f32 %v3988_v58, %v15865_v37  ;;  %v5699_v58 = vsel %vm15870_vm10, %v3358_v6, 0  ;;  %v12753_v37 = vld [vmem:[#allocation2 + $0x8] sm:$0xff]   ;;  %v15871_v47 = vld [vmem:[#allocation27_spill] sm:$0xff]  ;;  %vm16112_vm10 = vmmov %vm16096_vm5 }
 0x2ce   : > { %5708 = vmatpush.bf16.msrb.mxu0 %v5699_v58  ;;  %v4544_v49 = vshll.u32 %v12753_v37, 16  ;;  %v12766_v58 = vsel %vm4133_vm4, %v4718_v36, %v12450_v12  ;;  %v4548_v19 = vshrl.u32 %v12753_v37, 16 }
 0x2cf   : > { %9339 = vmatmul.msk.bf16.gmra.mxu0 %vm3494_vm13, %v12737_v54  ;;  %v4464_v22 = vpop.f32.mrf.mxu3  ;;  %15874 = vst [vmem:[#allocation125_spill] sm:$0xff] %v12766_v58 }
 0x2d0   : > { %v4546_v54 = vrot.slane %v4544_v49, 1 }
 0x2d1   : > { %v12742_v16 = vpop.f32.mrf.mxu2 }
 0x2d2   : > { %15868 = vst [vmem:[#allocation14_spill] sm:$0xff] %v12742_v16  ;;  %v12750_v10 = vpop.f32.mrf.mxu1  ;;  %v4538_v16 = vshrl.u32 %v12744_v28, 16  ;;  %v4550_v36 = vor.u32 %v4548_v19, %v4546_v54 }
 0x2d3   : > { %15869 = vst [vmem:[#allocation123_spill] sm:$0xff] %v12750_v10 }
 0x2d4   : > { %v3990_v22 = vpop.f32.mrf.mxu0  ;;  %v4543_v10 = vor.u32 %v4542_v38, %v4538_v16  ;;  %v15876_v38 = vld [vmem:[#allocation57_spill] sm:$0xff] }
 0x2d6   : > { %9452 = vmatmul.msk.bf16.gmra.mxu2 %vm3494_vm13, %v15871_v47  ;;  %v4547_v22 = vsel %vm4133_vm4, %v4543_v10, %v4546_v54  ;;  %v15875_v47 = vld [vmem:[#allocation15_spill] sm:$0xff] }
 0x2d7   : > { %v12760_v25 = vpop.f32.mrf.mxu3  ;;  %v15879_v10 = vld [vmem:[#allocation7_spill] sm:$0xff] }
 0x2d8   : > { %15872 = vst [vmem:[#allocation27_spill] sm:$0xff] %v12760_v25  ;;  %v4554_v49 = vsel %vm4133_vm4, %v4550_v36, %v15879_v10  ;;  %v15889_v10 = vld [vmem:[#allocation17_spill] sm:$0xff] }
 0x2d9   : > { %v5327_v14 = vpop.f32.mrf.mxu2 }
 0x2da   : > { %v12762_v6 = vpop.f32.mrf.mxu1 }
 0x2db   : > { %15873 = vst [vmem:[#allocation124_spill] sm:$0xff] %v12762_v6  ;;  %v15880_v6 = vld [vmem:[#allocation34_spill] sm:$0xff] }
 0x2dc   : > { %v3992_v51 = vpop.f32.mrf.mxu0  ;;  %9375 = vmatmul.msk.bf16.gmra.mxu3 %vm3494_vm13, %v15876_v38 }
 0x2dd   : > { %9432 = vmatmul.msk.bf16.gmra.mxu1 %vm3494_vm13, %v12766_v58  ;;  %v12773_v14 = vadd.f32 %v3992_v51, %v15875_v47  ;;  %v15881_v51 = vld [vmem:[#allocation16_spill] sm:$0xff] }
 0x2df   : > { %9383 = vmatmul.msk.bf16.vlgmr.msra.gmra.mxu0 %vm3494_vm13, %v4547_v22  ;;  %v12780_v12 = vpop.f32.mrf.mxu3  ;;  %v12792_v22 = vrot.slane %v4944_v5, 1 }
 0x2e0   : > { %15878 = vst [vmem:[#allocation57_spill] sm:$0xff] %v12780_v12 }
 0x2e1   : > { %v12778_v53 = vpop.f32.mrf.mxu2  ;;  %15883 = vst [vmem:[#allocation34_spill] sm:$0xff] %v12792_v22  ;;  %v4947_v54 = vsel %vm4133_vm4, %v12459_v23, %v12792_v22  ;;  %v15899_v22 = vld [vmem:[#allocation21_spill] sm:$0xff] }
 0x2e2   : > { %15877 = vst [vmem:[#allocation15_spill] sm:$0xff] %v12778_v53  ;;  %v5057_v16 = vpop.f32.mrf.mxu1 }
 0x2e3   : > { %v15888_v16 = vld [vmem:[#allocation41_spill] sm:$0xff] }
 0x2e4   : > { %v3994_v58 = vpop.f32.mrf.mxu0 }
 0x2e5   : > { %v12788_v47 = vadd.f32 %v3994_v58, %v15881_v51 }
 0x2e6   : > { %9453 = vmatmul.msk.bf16.gmra.mxu2 %vm3494_vm13, %v15880_v6 }
 0x2e7   : > { %v4470_v53 = vpop.f32.mrf.mxu3 }
 0x2e9   : > { %v12790_v38 = vpop.f32.mrf.mxu2 }
 0x2ea   : > { %15882 = vst [vmem:[#allocation7_spill] sm:$0xff] %v12790_v38  ;;  %v12794_v12 = vpop.f32.mrf.mxu1 }
 0x2eb   : > { %15884 = vst [vmem:[#allocation16_spill] sm:$0xff] %v12794_v12 }
 0x2ec   : > { %v3997_v19 = vpop.f32.mrf.mxu0  ;;  %9376 = vmatmul.msk.bf16.gmra.mxu3 %vm3494_vm13, %v15885_v7  ;;  %v15892_v7 = vld [vmem:[#allocation18_spill] sm:$0xff] }
 0x2ed   : > { %9433 = vmatmul.msk.bf16.gmra.mxu1 %vm3494_vm13, %v4947_v54 }
 0x2ef   : > { %9384 = vmatmul.msk.bf16.gmra.mxu0 %vm3494_vm13, %v4554_v49  ;;  %v12803_v58 = vpop.f32.mrf.mxu3 }
 0x2f0   : > { %15886 = vst [vmem:[#allocation64_spill] sm:$0xff] %v12803_v58 }
 0x2f1   : > { %v5333_v6 = vpop.f32.mrf.mxu2 }
 0x2f2   : > { %v12805_v36 = vpop.f32.mrf.mxu1  ;;  %v15893_v6 = vld [vmem:[#allocation8_spill] sm:$0xff] }
 0x2f3   : > { %15887 = vst [vmem:[#allocation126_spill] sm:$0xff] %v12805_v36 }
 0x2f4   : > { %v3998_v53 = vpop.f32.mrf.mxu0 }
 0x2f5   : > { %v12810_v5 = vadd.f32 %v3998_v53, %v15889_v10 }
 0x2f6   : > { %9454 = vmatmul.msk.bf16.gmra.mxu2 %vm3494_vm13, %v15888_v16 }
 0x2f7   : > { %v12814_v51 = vpop.f32.mrf.mxu3 }
 0x2f8   : > { %15891 = vst [vmem:[#allocation17_spill] sm:$0xff] %v12814_v51  ;;  %v15921_v51 = vld [vmem:[#allocation40_spill] sm:$0xff] }
 0x2f9   : > { %v12812_v23 = vpop.f32.mrf.mxu2 }
 0x2fa   : > { %15890 = vst [vmem:[#allocation41_spill] sm:$0xff] %v12812_v23  ;;  %v5064_v54 = vpop.f32.mrf.mxu1  ;;  %v15896_v23 = vld [vmem:[#allocation48_spill] sm:$0xff] }
 0x2fc   : > { %v4001_v19 = vpop.f32.mrf.mxu0  ;;  %9377 = vmatmul.msk.bf16.gmra.mxu3 %vm3494_vm13, %v12343_v30 }
 0x2fd   : > { %v12817_v49 = vadd.f32 %v4001_v19, %v15892_v7 }
 0x2ff   : > { %9385 = vmatmul.msk.bf16.gmra.mxu0 %vm3494_vm13, %v15893_v6  ;;  %v4477_v16 = vpop.f32.mrf.mxu3  ;;  %v15900_v6 = vld [vmem:[#allocation26_spill] sm:$0xff] }
 0x301   : > { %v12823_v38 = vpop.f32.mrf.mxu2 }
 0x302   : > { %15894 = vst [vmem:[#allocation18_spill] sm:$0xff] %v12823_v38  ;;  %v12825_v53 = vpop.f32.mrf.mxu1  ;;  %v15903_v38 = vld [vmem:[#allocation54_spill] sm:$0xff] }
 0x303   : > { %15895 = vst [vmem:[#allocation8_spill] sm:$0xff] %v12825_v53 }
 0x304   : > { %v4003_v10 = vpop.f32.mrf.mxu0 }
 0x306   : > { %9455 = vmatmul.msk.bf16.gmra.mxu2 %vm3494_vm13, %v15896_v23 }
 0x307   : > { %v12829_v36 = vpop.f32.mrf.mxu3 }
 0x308   : > { %15897 = vst [vmem:[#allocation48_spill] sm:$0xff] %v12829_v36  ;;  %v15914_v36 = vld [vmem:[#allocation33_spill] sm:$0xff] }
 0x309   : > { %v5340_v54 = vpop.f32.mrf.mxu2 }
 0x30a   : > { %v12831_v19 = vpop.f32.mrf.mxu1 }
 0x30b   : > { %15898 = vst [vmem:[#allocation127_spill] sm:$0xff] %v12831_v19  ;;  %v15904_v19 = vld [vmem:[#allocation23_spill] sm:$0xff] }
 0x30c   : > { %v4005_v7 = vpop.f32.mrf.mxu0  ;;  %9378 = vmatmul.msk.bf16.gmra.mxu3 %vm3494_vm13, %v12371_v35 }
 0x30d   : > { %v12834_v30 = vadd.f32 %v4005_v7, %v15899_v22 }
 0x30f   : > { %9386 = vmatmul.msk.bf16.gmra.mxu0 %vm3494_vm13, %v15900_v6  ;;  %v12842_v10 = vpop.f32.mrf.mxu3  ;;  %v15907_v6 = vld [vmem:[#allocation32_spill] sm:$0xff] }
 0x310   : > { %15902 = vst [vmem:[#allocation26_spill] sm:$0xff] %v12842_v10 }
 0x311   : > { %v12840_v16 = vpop.f32.mrf.mxu2 }
 0x312   : > { %15901 = vst [vmem:[#allocation21_spill] sm:$0xff] %v12840_v16  ;;  %v5070_v23 = vpop.f32.mrf.mxu1 }
 0x314   : > { %v4007_v54 = vpop.f32.mrf.mxu0 }
 0x315   : > { %v12847_v53 = vadd.f32 %v4007_v54, %v15904_v19  ;;  %v15910_v19 = vld [vmem:[#allocation62_spill] sm:$0xff]  ;;  %v15911_v54 = vld [vmem:[#allocation29_spill] sm:$0xff] }
 0x316   : > { %9456 = vmatmul.msk.bf16.gmra.mxu2 %vm3494_vm13, %v15903_v38 }
 0x317   : > { %v4483_v7 = vpop.f32.mrf.mxu3 }
 0x319   : > { %v12849_v22 = vpop.f32.mrf.mxu2 }
 0x31a   : > { %15905 = vst [vmem:[#allocation54_spill] sm:$0xff] %v12849_v22  ;;  %v12851_v12 = vpop.f32.mrf.mxu1 }
 0x31b   : > { %15906 = vst [vmem:[#allocation23_spill] sm:$0xff] %v12851_v12 }
 0x31c   : > { %v4010_v35 = vpop.f32.mrf.mxu0  ;;  %9379 = vmatmul.msk.bf16.gmra.mxu3 %vm3494_vm13, %v12399_v52 }
 0x31f   : > { %9387 = vmatmul.msk.bf16.gmra.mxu0 %vm3494_vm13, %v15907_v6  ;;  %v12857_v16 = vpop.f32.mrf.mxu3 }
 0x320   : > { %15908 = vst [vmem:[#allocation32_spill] sm:$0xff] %v12857_v16 }
 0x321   : > { %v5346_v23 = vpop.f32.mrf.mxu2 }
 0x322   : > { %v12859_v10 = vpop.f32.mrf.mxu1  ;;  %v15915_v23 = vld [vmem:[#allocation39_spill] sm:$0xff] }
 0x323   : > { %15909 = vst [vmem:[#allocation128_spill] sm:$0xff] %v12859_v10 }
 0x324   : > { %v4011_v38 = vpop.f32.mrf.mxu0 }
 0x325   : > { %v12864_v7 = vadd.f32 %v4011_v38, %v15911_v54 }
 0x326   : > { %9457 = vmatmul.msk.bf16.gmra.mxu2 %vm3494_vm13, %v15910_v19 }
 0x327   : > { %v12868_v35 = vpop.f32.mrf.mxu3 }
 0x328   : > { %15913 = vst [vmem:[#allocation29_spill] sm:$0xff] %v12868_v35  ;;  %v12882_v35 = vld [vmem:[#allocation2 + $0xdc] sm:$0xff]  }
 0x329   : > { %v12866_v22 = vpop.f32.mrf.mxu2 }
 0x32a   : > { %15912 = vst [vmem:[#allocation62_spill] sm:$0xff] %v12866_v22  ;;  %v5077_v52 = vpop.f32.mrf.mxu1  ;;  %v4312_v22 = vshrl.u32 %v12415_v20, 16 }
 0x32b   : > { %v4315_v52 = vshll.u32 %v12882_v35, 16 }
 0x32c   : > { %v4014_v12 = vpop.f32.mrf.mxu0  ;;  %9380 = vmatmul.msk.bf16.gmra.mxu3 %vm3494_vm13, %v12438_v1 }
 0x32d   : > { %v12871_v6 = vadd.f32 %v4014_v12, %v15914_v36  ;;  %v4314_v36 = vor.u32 %v4312_v22, %v12427_v62 }
 0x32f   : > { %9388 = vmatmul.msk.bf16.gmra.mxu0 %vm3494_vm13, %v15915_v23  ;;  %v4490_v19 = vpop.f32.mrf.mxu3  ;;  %v4317_v23 = vrot.slane %v4315_v52, 1  ;;  %v4319_v52 = vshrl.u32 %v12882_v35, 16 }
 0x330   : > { %v15920_v19 = vld [vmem:[#allocation58_spill] sm:$0xff] }
 0x331   : > { %v12877_v10 = vpop.f32.mrf.mxu2  ;;  %v4318_v16 = vsel %vm4133_vm4, %v4314_v36, %v4317_v23 }
 0x332   : > { %15916 = vst [vmem:[#allocation33_spill] sm:$0xff] %v12877_v10  ;;  %v12879_v38 = vpop.f32.mrf.mxu1 }
 0x333   : > { %15917 = vst [vmem:[#allocation39_spill] sm:$0xff] %v12879_v38  ;;  %v9868_v38 = vunpack.c.h.b16 %v15920_v19 }
 0x334   : > { %v4016_v54 = vpop.f32.mrf.mxu0 }
 0x335   : > { %v12898_v25 = vpack.c.b16 %v9868_v38, %v9868_v38  ;;  %v5414_v38 = vrot.slane %v12753_v37, 1 }
 0x336   : > { %9458 = vmatmul.msk.bf16.gmra.mxu2 %vm3494_vm13, %v12338_v4  ;;  %v15924_v4 = vld [vmem:[#allocation47_spill] sm:$0xff] }
 0x337   : > { %v12887_v1 = vpop.f32.mrf.mxu3  ;;  %15923 = vst [vmem:[#allocation40_spill] sm:$0xff] %v12898_v25  ;;  %v4323_v19 = vshll.u32 %v12898_v25, 16 }
 0x338   : > { %15918 = vst [vmem:[#allocation129_spill] sm:$0xff] %v12887_v1 }
 0x339   : > { %v5353_v12 = vpop.f32.mrf.mxu2 }
 0x33a   : > { %v12890_v10 = vpop.f32.mrf.mxu1 }
 0x33b   : > { %15919 = vst [vmem:[#allocation130_spill] sm:$0xff] %v12890_v10  ;;  %v4321_v10 = vor.u32 %v4319_v52, %v4317_v23 }
 0x33c   : > { %v4018_v54 = vpop.f32.mrf.mxu0  ;;  %9381 = vmatmul.msk.bf16.gmra.mxu3 %vm3494_vm13, %v4318_v16 }
 0x33d   : > { %v12895_v58 = vadd.f32 %v4018_v54, %v15921_v51  ;;  %v15927_v51 = vld [vmem:[#allocation44_spill] sm:$0xff]  ;;  %v10419_v54 = vld [vmem:[#allocation2 + $0x10] sm:$0xff]  }
 0x33f   : > { %15922 = vst [vmem:[#allocation58_spill] sm:$0xff] %v12895_v58  ;;  %9389 = vmatmul.msk.bf16.gmra.mxu0 %vm3494_vm13, %v15924_v4  ;;  %v12904_v62 = vpop.f32.mrf.mxu3  ;;  %v5416_v4 = vrot.slane %v10419_v54, 1 }
 0x340   : > { %15926 = vst [vmem:[#allocation131_spill] sm:$0xff] %v12904_v62 }
 0x341   : > { %v12902_v12 = vpop.f32.mrf.mxu2  ;;  %v5417_v62 = vsel %vm5147_vm11, %v5414_v38, %v5416_v4 }
 0x342   : > { %15925 = vst [vmem:[#allocation47_spill] sm:$0xff] %v12902_v12  ;;  %v5083_v22 = vpop.f32.mrf.mxu1  ;;  %v4325_v12 = vrot.slane %v4323_v19, 1  ;;  %v15930_v19 = vld [vmem:[#allocation50_spill] sm:$0xff] }
 0x344   : > { %v4020_v36 = vpop.f32.mrf.mxu0  ;;  %v4326_v25 = vsel %vm4133_vm4, %v4321_v10, %v4325_v12  ;;  %v5413_v10 = vrot.slane %v12744_v28, 1 }
 0x345   : > { %v12911_v16 = vadd.f32 %v4020_v36, %v15927_v51 }
 0x346   : > { %9459 = vmatmul.msk.bf16.gmra.mxu2 %vm3494_vm13, %v12364_v17  ;;  %v15929_v17 = vld [vmem:[#allocation52_spill] sm:$0xff]  ;;  %v5415_v54 = vsel %vm5147_vm11, %v5413_v10, %v5414_v38 }
 0x347   : > { %v4496_v22 = vpop.f32.mrf.mxu3 }
 0x349   : > { %v12914_v1 = vpop.f32.mrf.mxu2 }
 0x34a   : > { %15928 = vst [vmem:[#allocation44_spill] sm:$0xff] %v12914_v1  ;;  %v12917_v58 = vpop.f32.mrf.mxu1 }
 0x34c   : > { %v4023_v33 = vpop.f32.mrf.mxu0  ;;  %9382 = vmatmul.msk.bf16.gmra.mxu3 %vm3494_vm13, %v4326_v25 }
 0x34f   : > { %9390 = vmatmul.msk.bf16.gmra.mxu0 %vm3494_vm13, %v15929_v17  ;;  %v12923_v36 = vpop.f32.mrf.mxu3  ;;  %v15932_v17 = vld [vmem:[#allocation60_spill] sm:$0xff] }
 0x351   : > { %v5359_v37 = vpop.f32.mrf.mxu2 }
 0x352   : > { %v12925_v23 = vpop.f32.mrf.mxu1 }
 0x354   : > { %v4024_v52 = vpop.f32.mrf.mxu0 }
 0x355   : > { %v12930_v51 = vadd.f32 %v4024_v52, %v15930_v19 }
 0x356   : > { %9460 = vmatmul.msk.bf16.gmra.mxu2 %vm3494_vm13, %v12394_v61 }
 0x357   : > { %v12935_v25 = vpop.f32.mrf.mxu3 }
 0x359   : > { %v12933_v33 = vpop.f32.mrf.mxu2 }
 0x35a   : > { %15931 = vst [vmem:[#allocation52_spill] sm:$0xff] %v12933_v33  ;;  %v5090_v12 = vpop.f32.mrf.mxu1 }
 0x35c   : > { %v4824_v22 = vpop.f32.mrf.mxu0  ;;  %9464 = vmatmul.msk.bf16.vlgmr.msrb.gmra.mxu3 %vm3494_vm13, %v5415_v54 }
 0x35d   : > { %v4825_v28 = vadd.f32 %v4824_v22, %v12503_v0  ;;  %v15654_v0 = vrot.slane %v12882_v35, 1 }
 0x35f   : > { %9391 = vmatmul.msk.bf16.gmra.mxu0 %vm3494_vm13, %v15932_v17  ;;  %v4503_v61 = vpop.f32.mrf.mxu3  ;;  %v5111_v38 = vadd.f32 %v12381_v11, %v4825_v28  ;;  %v15935_v11 = vld [vmem:[#allocation79_spill] sm:$0xff] }
 0x361   : > { %v12941_v37 = vpop.f32.mrf.mxu2  ;;  %v12955_v61 = vadd.f32 %v5111_v38, %v12675_v2 }
 0x362   : > { %15933 = vst [vmem:[#allocation50_spill] sm:$0xff] %v12941_v37  ;;  %v12943_v52 = vpop.f32.mrf.mxu1 }
 0x364   : > { %v4826_v19 = vpop.f32.mrf.mxu0 }
 0x365   : > { %v4827_v17 = vadd.f32 %v4826_v19, %v12513_v46  ;;  %v15936_v46 = vrot.slane %v12415_v20, 1  ;;  %v15938_v20 = vld [vmem:[#allocation71_spill] sm:$0xff] }
 0x366   : > { %9461 = vmatmul.msk.bf16.gmra.mxu2 %vm3494_vm13, %v12432_v18 }
 0x367   : > { %v12948_v33 = vpop.f32.mrf.mxu3  ;;  %v5112_v28 = vadd.f32 %v15935_v11, %v4827_v17  ;;  %v5200_v2 = vsel %vm5147_vm11, %v15936_v46, %v15654_v0 }
 0x369   : > { %v5366_v12 = vpop.f32.mrf.mxu2 }
 0x36a   : > { %v12951_v10 = vpop.f32.mrf.mxu1 }
 0x36c   : > { %v4829_v54 = vpop.f32.mrf.mxu0  ;;  %9465 = vmatmul.msk.bf16.gmra.mxu3 %vm3494_vm13, %v5417_v62 }
 0x36d   : > { %v10420_v54 = vld [vmem:[#allocation2 + $0x18] sm:$0xff]  }
 0x36f   : > { %9392 = vmatmul.msk.bf16.gmra.mxu0 %vm3494_vm13, %v12330_v56  ;;  %v12963_v22 = vpop.f32.mrf.mxu3  ;;  %v12973_v56 = vadd.f32 %v5112_v28, %v12691_v32 }
 0x371   : > { %v12960_v18 = vpop.f32.mrf.mxu2 }
 0x372   : > { %15934 = vst [vmem:[#allocation60_spill] sm:$0xff] %v12960_v18  ;;  %v5096_v12 = vpop.f32.mrf.mxu1  ;;  %v5418_v18 = vrot.slane %v10420_v54, 1 }
 0x374   : > { %v4830_v19 = vpop.f32.mrf.mxu0  ;;  %v5419_v17 = vsel %vm5147_vm11, %v5416_v4, %v5418_v18 }
 0x375   : > { %v4831_v11 = vadd.f32 %v4830_v19, %v12532_v34  ;;  %v10421_v34 = vld [vmem:[#allocation2 + $0x20] sm:$0xff]  }
 0x376   : > { %9462 = vmatmul.msk.bf16.gmra.mxu2 %vm3494_vm13, %v5200_v2  ;;  %v5420_v19 = vrot.slane %v10421_v34, 1 }
 0x377   : > { %v4509_v38 = vpop.f32.mrf.mxu3  ;;  %v5113_v32 = vadd.f32 %v12440_v40, %v4831_v11 }
 0x379   : > { %v12975_v62 = vpop.f32.mrf.mxu2  ;;  %v12987_v38 = vadd.f32 %v5113_v32, %v12718_v8 }
 0x37a   : > { %15937 = vst [vmem:[#allocation79_spill] sm:$0xff] %v12975_v62  ;;  %v15979_v62 = vld [vmem:[#allocation20_spill] sm:$0xff] }
 0x37c   : > { %v4833_v37 = vpop.f32.mrf.mxu0  ;;  %9466 = vmatmul.msk.bf16.gmra.mxu3 %vm3494_vm13, %v5419_v17 }
 0x37d   : > { %v4834_v2 = vadd.f32 %v4833_v37, %v12549_v29  ;;  %v15940_v29 = vld [vmem:[#allocation76_spill] sm:$0xff] }
 0x37f   : > { %9393 = vmatmul.msk.bf16.gmra.mxu0 %vm3494_vm13, %v15938_v20  ;;  %v12982_v46 = vpop.f32.mrf.mxu3  ;;  %v5114_v17 = vadd.f32 %v12456_v39, %v4834_v2  ;;  %v6598_v39 = vld [vmem:[%s15605_s8] sm:$0xf]  ;;  %v10422_v2 = vld [vmem:[#allocation2 + $0x28] sm:$0xff]  }
 0x380   : > { %v7018_v11 = vsel %vm15942_vm14, %v6598_v39, 0  ;;  %v5422_v34 = vrot.slane %v10422_v2, 1  ;;  %vm16121_vm14 = vmmov %vm16101_vm0 }
 0x381   : > { %v5372_v12 = vpop.f32.mrf.mxu2  ;;  %v12998_v40 = vadd.f32 %v5114_v17, %v12730_v15  ;;  %7027 = vmatpush.bf16.msra.mxu2 %v7018_v11 }
 0x382   : > { %v12995_v12 = vsel %vm5147_vm11, %v5418_v18, %v5420_v19  ;;  %v13019_v39 = vsel %vm5147_vm11, %v5420_v19, %v5422_v34 }
 0x384   : > { %v4835_v28 = vpop.f32.mrf.mxu0 }
 0x387   : > { %v12991_v4 = vpop.f32.mrf.mxu3 }
 0x389   : > { %v12989_v54 = vpop.f32.mrf.mxu2 }
 0x38a   : > { %15939 = vst [vmem:[#allocation71_spill] sm:$0xff] %v12989_v54  ;;  %v15978_v54 = vld [vmem:[#allocation53_spill] sm:$0xff] }
 0x38b   : > { %v4111_v1 = vadd.f32 %v15979_v62, %v15978_v54  ;;  %v15984_v54 = vld [vmem:[#allocation12_spill] sm:$0xff] }
 0x38c   : > { %v4837_v20 = vpop.f32.mrf.mxu0  ;;  %9467 = vmatmul.msk.bf16.gmra.mxu3 %vm3494_vm13, %v12995_v12 }
 0x38d   : > { %v4838_v15 = vadd.f32 %v4837_v20, %v12570_v45 }
 0x38f   : > { %9394 = vmatmul.msk.bf16.gmra.mxu0 %vm3494_vm13, %v15940_v29  ;;  %v4516_v37 = vpop.f32.mrf.mxu3  ;;  %v5115_v17 = vadd.f32 %v12490_v63, %v4838_v15  ;;  %v6601_v29 = vld [vmem:[%s15605_s8 + $0xc] sm:$0xf] }
 0x390   : > { %v6800_v37 = vsel %vm15943_vm15, %v6601_v29, 0  ;;  %vm16134_vm15 = vmmov %vm16101_vm0 }
 0x391   : > { %v13004_v8 = vpop.f32.mrf.mxu2  ;;  %6809 = vmatpush.bf16.msra.mxu1 %v6800_v37  ;;  %v13023_v20 = vadd.f32 %v5115_v17, %v12773_v14 }
 0x392   : > { %15941 = vst [vmem:[#allocation76_spill] sm:$0xff] %v13004_v8 }
 0x394   : > { %v4839_v18 = vpop.f32.mrf.mxu0 }
 0x395   : > { %v4840_v45 = vadd.f32 %v4839_v18, %v12580_v55  ;;  %v10423_v18 = vld [vmem:[#allocation2 + $0x30] sm:$0xff]  }
 0x397   : > { %v13011_v28 = vpop.f32.mrf.mxu3 }
 0x399   : > { %v5379_v32 = vpop.f32.mrf.mxu2 }
 0x39a   : > { %v5424_v32 = vrot.slane %v10423_v18, 1 }
 0x39c   : > { %v4842_v0 = vpop.f32.mrf.mxu0  ;;  %9468 = vmatmul.msk.bf16.gmra.mxu3 %vm3494_vm13, %v13019_v39  ;;  %v13040_v17 = vsel %vm5147_vm11, %v5422_v34, %v5424_v32 }
 0x39d   : > { %v5116_v0 = vadd.f32 %v12505_v59, %v4840_v45 }
 0x39f   : > { %9395 = vmatmul.msk.bf16.gmra.mxu0 %vm3494_vm13, %v12418_v13  ;;  %v13031_v11 = vpop.f32.mrf.mxu3  ;;  %v13035_v19 = vadd.f32 %v5116_v0, %v12788_v47 }
 0x3a1   : > { %v13029_v63 = vpop.f32.mrf.mxu2  ;;  %15945 = vst [vmem:[#allocation133_spill] sm:$0xff] %v13035_v19 }
 0x3a2   : > { %15944 = vst [vmem:[#allocation132_spill] sm:$0xff] %v13029_v63  ;;  %v15976_v63 = vld [vmem:[#allocation22_spill] sm:$0xff] }
 0x3a4   : > { %v4843_v15 = vpop.f32.mrf.mxu0 }
 0x3a5   : > { %v4844_v13 = vadd.f32 %v4843_v15, %v12599_v57  ;;  %v10424_v15 = vld [vmem:[#allocation2 + $0x38] sm:$0xff]  }
 0x3a7   : > { %v4522_v14 = vpop.f32.mrf.mxu3  ;;  %v5117_v29 = vadd.f32 %v12526_v31, %v4844_v13 }
 0x3a8   : > { %v5426_v14 = vrot.slane %v10424_v15, 1 }
 0x3a9   : > { %v13037_v55 = vpop.f32.mrf.mxu2  ;;  %v13052_v0 = vadd.f32 %v5117_v29, %v12810_v5 }
 0x3aa   : > { %15946 = vst [vmem:[#allocation134_spill] sm:$0xff] %v13037_v55 }
 0x3ab   : > { %15947 = vst [vmem:[#allocation135_spill] sm:$0xff] %v13052_v0  ;;  %v16016_v0 = vld [vmem:[#allocation34_spill] sm:$0xff] }
 0x3ac   : > { %v4846_v2 = vpop.f32.mrf.mxu0  ;;  %9469 = vmatmul.msk.bf16.gmra.mxu3 %vm3494_vm13, %v13040_v17 }
 0x3ad   : > { %v4847_v45 = vadd.f32 %v4846_v2, %v12616_v21 }
 0x3af   : > { %9396 = vmatmul.msk.bf16.gmra.mxu0 %vm3494_vm13, %v12463_v44  ;;  %v13047_v47 = vpop.f32.mrf.mxu3  ;;  %v5118_v18 = vadd.f32 %v12534_v43, %v4847_v45 }
 0x3b1   : > { %v5385_v59 = vpop.f32.mrf.mxu2  ;;  %v13063_v31 = vadd.f32 %v5118_v18, %v12817_v49 }
 0x3b2   : > { %v13060_v59 = vsel %vm5147_vm11, %v5424_v32, %v5426_v14  ;;  %v10425_v32 = vld [vmem:[#allocation2 + $0x40] sm:$0xff]  }
 0x3b3   : > { %15949 = vst [vmem:[#allocation137_spill] sm:$0xff] %v13063_v31  ;;  %v16006_v31 = vld [vmem:[#allocation72_spill] sm:$0xff] }
 0x3b4   : > { %v4848_v37 = vpop.f32.mrf.mxu0 }
 0x3b5   : > { %v5428_v37 = vrot.slane %v10425_v32, 1 }
 0x3b7   : > { %v13056_v57 = vpop.f32.mrf.mxu3  ;;  %v13076_v15 = vsel %vm5147_vm11, %v5426_v14, %v5428_v37 }
 0x3b9   : > { %v13054_v34 = vpop.f32.mrf.mxu2 }
 0x3ba   : > { %15948 = vst [vmem:[#allocation136_spill] sm:$0xff] %v13054_v34 }
 0x3bc   : > { %v4850_v44 = vpop.f32.mrf.mxu0  ;;  %9470 = vmatmul.msk.bf16.gmra.mxu3 %vm3494_vm13, %v13060_v59 }
 0x3bd   : > { %v4851_v13 = vadd.f32 %v4850_v44, %v12635_v60 }
 0x3bf   : > { %9397 = vmatmul.msk.bf16.gmra.mxu0 %vm3494_vm13, %v12493_v48  ;;  %v4529_v5 = vpop.f32.mrf.mxu3  ;;  %v5119_v49 = vadd.f32 %v12557_v42, %v4851_v13 }
 0x3c1   : > { %v13069_v21 = vpop.f32.mrf.mxu2  ;;  %v13080_v48 = vadd.f32 %v5119_v49, %v12834_v30  ;;  %v15955_v49 = vld [vmem:[#allocation96_spill] sm:$0xff] }
 0x3c2   : > { %15950 = vst [vmem:[#allocation138_spill] sm:$0xff] %v13069_v21  ;;  %v15963_v21 = vld [vmem:[#allocation11_spill] sm:$0xff] }
 0x3c3   : > { %15951 = vst [vmem:[#allocation139_spill] sm:$0xff] %v13080_v48 }
 0x3c4   : > { %v4852_v2 = vpop.f32.mrf.mxu0 }
 0x3c5   : > { %v4853_v18 = vadd.f32 %v4852_v2, %v12645_v27  ;;  %v10426_v2 = vld [vmem:[#allocation2 + $0x48] sm:$0xff]  }
 0x3c6   : > { %v5430_v13 = vrot.slane %v10426_v2, 1 }
 0x3c7   : > { %v13072_v29 = vpop.f32.mrf.mxu3  ;;  %v5120_v42 = vadd.f32 %v12572_v24, %v4853_v18 }
 0x3c8   : > { %v13097_v32 = vsel %vm5147_vm11, %v5428_v37, %v5430_v13 }
 0x3c9   : > { %v5392_v43 = vpop.f32.mrf.mxu2  ;;  %v13092_v14 = vadd.f32 %v5120_v42, %v12847_v53 }
 0x3cb   : > { %15953 = vst [vmem:[#allocation141_spill] sm:$0xff] %v13092_v14  ;;  %v16005_v14 = vld [vmem:[#allocation124_spill] sm:$0xff] }
 0x3cc   : > { %v4855_v45 = vpop.f32.mrf.mxu0  ;;  %9471 = vmatmul.msk.bf16.gmra.mxu3 %vm3494_vm13, %v13076_v15 }
 0x3cf   : > { %9398 = vmatmul.msk.bf16.gmra.mxu0 %vm3494_vm13, %v12516_v26  ;;  %v13088_v44 = vpop.f32.mrf.mxu3 }
 0x3d1   : > { %v13086_v60 = vpop.f32.mrf.mxu2 }
 0x3d2   : > { %15952 = vst [vmem:[#allocation140_spill] sm:$0xff] %v13086_v60 }
 0x3d4   : > { %v4856_v5 = vpop.f32.mrf.mxu0 }
 0x3d5   : > { %v4857_v26 = vadd.f32 %v4856_v5, %v12665_v41  ;;  %v10427_v5 = vld [vmem:[#allocation2 + $0x50] sm:$0xff]  }
 0x3d6   : > { %v5432_v2 = vrot.slane %v10427_v5, 1 }
 0x3d7   : > { %v4535_v30 = vpop.f32.mrf.mxu3  ;;  %v5121_v45 = vadd.f32 %v12593_v3, %v4857_v26 }
 0x3d9   : > { %v13094_v27 = vpop.f32.mrf.mxu2  ;;  %v13109_v30 = vadd.f32 %v5121_v45, %v12864_v7  ;;  %v15961_v45 = vld [vmem:[#allocation19_spill] sm:$0xff] }
 0x3da   : > { %15954 = vst [vmem:[#allocation142_spill] sm:$0xff] %v13094_v27 }
 0x3db   : > { %15956 = vst [vmem:[#allocation96_spill] sm:$0xff] %v13109_v30 }
 0x3dc   : > { %v4859_v43 = vpop.f32.mrf.mxu0  ;;  %9472 = vmatmul.msk.bf16.gmra.mxu3 %vm3494_vm13, %v13097_v32 }
 0x3dd   : > { %v4860_v42 = vadd.f32 %v4859_v43, %v12683_v50  ;;  %v15959_v50 = vld [vmem:[#allocation100_spill] sm:$0xff] }
 0x3df   : > { %9399 = vmatmul.msk.bf16.gmra.mxu0 %vm3494_vm13, %v15955_v49  ;;  %v13104_v53 = vpop.f32.mrf.mxu3  ;;  %v5122_v27 = vadd.f32 %v12601_v9, %v4860_v42 }
 0x3e1   : > { %v5398_v24 = vpop.f32.mrf.mxu2  ;;  %v13120_v3 = vadd.f32 %v5122_v27, %v12871_v6 }
 0x3e2   : > { %v13117_v24 = vsel %vm5147_vm11, %v5430_v13, %v5432_v2  ;;  %v10428_v13 = vld [vmem:[#allocation2 + $0x58] sm:$0xff]  }
 0x3e3   : > { %15958 = vst [vmem:[#allocation144_spill] sm:$0xff] %v13120_v3  ;;  %v5434_v5 = vrot.slane %v10428_v13, 1  ;;  %v15969_v13 = vld [vmem:[#allocation25_spill] sm:$0xff] }
 0x3e4   : > { %v4861_v18 = vpop.f32.mrf.mxu0 }
 0x3e5   : > { %v13133_v60 = vsel %vm5147_vm11, %v5432_v2, %v5434_v5 }
 0x3e7   : > { %v13113_v41 = vpop.f32.mrf.mxu3 }
 0x3e9   : > { %v13111_v37 = vpop.f32.mrf.mxu2 }
 0x3ea   : > { %15957 = vst [vmem:[#allocation143_spill] sm:$0xff] %v13111_v37  ;;  %v15962_v37 = vld [vmem:[#allocation111_spill] sm:$0xff] }
 0x3ec   : > { %v4863_v49 = vpop.f32.mrf.mxu0  ;;  %9473 = vmatmul.msk.bf16.gmra.mxu3 %vm3494_vm13, %v13117_v24 }
 0x3ed   : > { %v4864_v18 = vadd.f32 %v4863_v49, %v15961_v45  ;;  %v15966_v49 = vld [vmem:[#allocation104_spill] sm:$0xff]  ;;  %v15967_v45 = vld [vmem:[#allocation114_spill] sm:$0xff] }
 0x3ef   : > { %9400 = vmatmul.msk.bf16.gmra.mxu0 %vm3494_vm13, %v15959_v50  ;;  %v5566_v43 = vpop.f32.mrf.mxu3  ;;  %v5123_v6 = vadd.f32 %v15962_v37, %v4864_v18  ;;  %v15964_v50 = vld [vmem:[#allocation58_spill] sm:$0xff] }
 0x3f1   : > { %v13126_v7 = vpop.f32.mrf.mxu2  ;;  %v13137_v55 = vadd.f32 %v5123_v6, %v15964_v50 }
 0x3f2   : > { %15960 = vst [vmem:[#allocation100_spill] sm:$0xff] %v13126_v7 }
 0x3f3   : > { %15965 = vst [vmem:[#allocation19_spill] sm:$0xff] %v13137_v55 }
 0x3f4   : > { %v4865_v26 = vpop.f32.mrf.mxu0 }
 0x3f5   : > { %v4866_v34 = vadd.f32 %v4865_v26, %v15963_v21  ;;  %v5436_v21 = vrot.slane %v15969_v13, 1 }
 0x3f7   : > { %v13129_v42 = vpop.f32.mrf.mxu3  ;;  %v13151_v6 = vsel %vm5147_vm11, %v5434_v5, %v5436_v21 }
 0x3f9   : > { %v5405_v9 = vpop.f32.mrf.mxu2 }
 0x3fa   : > { %v5124_v9 = vadd.f32 %v15967_v45, %v4866_v34  ;;  %v15972_v45 = vld [vmem:[#allocation119_spill] sm:$0xff] }
 0x3fc   : > { %v4868_v27 = vpop.f32.mrf.mxu0  ;;  %9474 = vmatmul.msk.bf16.gmra.mxu3 %vm3494_vm13, %v13133_v60  ;;  %v13147_v18 = vadd.f32 %v5124_v9, %v12911_v16 }
 0x3fd   : > { %v15970_v27 = vld [vmem:[#allocation27_spill] sm:$0xff] }
 0x3fe   : > { %15968 = vst [vmem:[#allocation111_spill] sm:$0xff] %v13147_v18 }
 0x3ff   : > { %9401 = vmatmul.msk.bf16.gmra.mxu0 %vm3494_vm13, %v15966_v49  ;;  %v13143_v43 = vpop.f32.mrf.mxu3  ;;  %v15971_v49 = vld [vmem:[#allocation107_spill] sm:$0xff] }
 0x404   : > { %v4869_v37 = vpop.f32.mrf.mxu0 }
 0x405   : > { %v4870_v50 = vadd.f32 %v4869_v37, %v15970_v27  ;;  %v5438_v37 = vrot.slane %v15976_v63, 1  ;;  %v15977_v27 = vld [vmem:[#allocation121_spill] sm:$0xff]  ;;  %v15982_v63 = vld [vmem:[#allocation64_spill] sm:$0xff] }
 0x407   : > { %v5572_v2 = vpop.f32.mrf.mxu3  ;;  %v5125_v16 = vadd.f32 %v15972_v45, %v4870_v50  ;;  %v13172_v18 = vsel %vm5147_vm11, %v5436_v21, %v5438_v37  ;;  %v15985_v21 = vld [vmem:[#allocation61_spill] sm:$0xff] }
 0x408   : > { %v15973_v2 = vld [vmem:[#allocation57_spill] sm:$0xff] }
 0x409   : > { %v13163_v13 = vadd.f32 %v5125_v16, %v12930_v51  ;;  %v15981_v51 = vld [vmem:[#allocation112_spill] sm:$0xff] }
 0x40b   : > { %15974 = vst [vmem:[#allocation11_spill] sm:$0xff] %v13163_v13  ;;  %v15987_v13 = vld [vmem:[#allocation17_spill] sm:$0xff] }
 0x40c   : > { %v4872_v26 = vpop.f32.mrf.mxu0  ;;  %9475 = vmatmul.msk.bf16.gmra.mxu3 %vm3494_vm13, %v13151_v6 }
 0x40d   : > { %v4873_v7 = vadd.f32 %v4872_v26, %v15973_v2 }
 0x40f   : > { %9402 = vmatmul.msk.bf16.gmra.mxu0 %vm3494_vm13, %v15971_v49  ;;  %v13158_v34 = vpop.f32.mrf.mxu3  ;;  %v5126_v8 = vadd.f32 %v15977_v27, %v4873_v7  ;;  %v15986_v27 = vld [vmem:[#allocation24_spill] sm:$0xff] }
 0x411   : > { %v13174_v50 = vadd.f32 %v5126_v8, %v4111_v1  ;;  %v4112_v1 = vadd.f32 %v15986_v27, %v15985_v21 }
 0x413   : > { %15980 = vst [vmem:[#allocation104_spill] sm:$0xff] %v13174_v50 }
 0x414   : > { %v4874_v9 = vpop.f32.mrf.mxu0 }
 0x415   : > { %v10429_v9 = vld [vmem:[#allocation2 + $0x70] sm:$0xff]  }
 0x416   : > { %v5440_v62 = vrot.slane %v10429_v9, 1  ;;  %v15992_v9 = vld [vmem:[#allocation65_spill] sm:$0xff] }
 0x417   : > { %v13165_v5 = vpop.f32.mrf.mxu3 }
 0x418   : > { %15975 = vst [vmem:[#allocation58_spill] sm:$0xff] %v13165_v5  ;;  %v13187_v50 = vsel %vm5147_vm11, %v5438_v37, %v5440_v62  ;;  %v16040_v5 = vld [vmem:[#allocation59_spill] sm:$0xff] }
 0x41c   : > { %v4876_v49 = vpop.f32.mrf.mxu0  ;;  %9476 = vmatmul.msk.bf16.gmra.mxu3 %vm3494_vm13, %v13172_v18 }
 0x41d   : > { %v4877_v16 = vadd.f32 %v4876_v49, %v15982_v63  ;;  %v15989_v49 = vld [vmem:[#allocation117_spill] sm:$0xff]  ;;  %v15991_v63 = vld [vmem:[#allocation43_spill] sm:$0xff] }
 0x41f   : > { %9403 = vmatmul.msk.bf16.gmra.mxu0 %vm3494_vm13, %v15981_v51  ;;  %v5579_v26 = vpop.f32.mrf.mxu3  ;;  %v5127_v2 = vadd.f32 %v15984_v54, %v4877_v16  ;;  %v15993_v54 = vld [vmem:[#allocation28_spill] sm:$0xff] }
 0x420   : > { %v4113_v21 = vadd.f32 %v15993_v54, %v15992_v9  ;;  %v16000_v9 = vld [vmem:[#allocation69_spill] sm:$0xff]  ;;  %v16001_v54 = vld [vmem:[#allocation35_spill] sm:$0xff] }
 0x421   : > { %v13190_v51 = vadd.f32 %v5127_v2, %v4112_v1 }
 0x423   : > { %15988 = vst [vmem:[#allocation25_spill] sm:$0xff] %v13190_v51  ;;  %v15996_v51 = vld [vmem:[#allocation48_spill] sm:$0xff] }
 0x424   : > { %v4878_v45 = vpop.f32.mrf.mxu0 }
 0x425   : > { %v4879_v55 = vadd.f32 %v4878_v45, %v15987_v13  ;;  %v10430_v13 = vld [vmem:[#allocation2 + $0x78] sm:$0xff]  }
 0x426   : > { %v5442_v45 = vrot.slane %v10430_v13, 1  ;;  %v16002_v13 = vld [vmem:[#allocation26_spill] sm:$0xff] }
 0x427   : > { %v13181_v7 = vpop.f32.mrf.mxu3  ;;  %v5128_v16 = vadd.f32 %v15991_v63, %v4879_v55  ;;  %v15999_v63 = vld [vmem:[#allocation123_spill] sm:$0xff] }
 0x428   : > { %15983 = vst [vmem:[#allocation114_spill] sm:$0xff] %v13181_v7  ;;  %v13204_v1 = vsel %vm5147_vm11, %v5440_v62, %v5442_v45 }
 0x429   : > { %v13201_v37 = vadd.f32 %v5128_v16, %v4113_v21  ;;  %15995 = vst [vmem:[#allocation119_spill] sm:$0xff] %v13204_v1  ;;  %v4114_v21 = vadd.f32 %v16001_v54, %v16000_v9  ;;  %v16011_v54 = vld [vmem:[#allocation32_spill] sm:$0xff] }
 0x42b   : > { %15994 = vst [vmem:[#allocation107_spill] sm:$0xff] %v13201_v37 }
 0x42c   : > { %v4881_v8 = vpop.f32.mrf.mxu0  ;;  %9477 = vmatmul.msk.bf16.gmra.mxu3 %vm3494_vm13, %v13187_v50 }
 0x42f   : > { %9404 = vmatmul.msk.bf16.gmra.mxu0 %vm3494_vm13, %v15989_v49  ;;  %v13196_v26 = vpop.f32.mrf.mxu3  ;;  %v15997_v49 = vld [vmem:[#allocation122_spill] sm:$0xff] }
 0x430   : > { %15990 = vst [vmem:[#allocation27_spill] sm:$0xff] %v13196_v26 }
 0x434   : > { %v4882_v27 = vpop.f32.mrf.mxu0 }
 0x435   : > { %v4883_v3 = vadd.f32 %v4882_v27, %v15996_v51  ;;  %v10431_v51 = vld [vmem:[#allocation2 + $0x80] sm:$0xff]  }
 0x436   : > { %v5444_v27 = vrot.slane %v10431_v51, 1 }
 0x437   : > { %v5585_v8 = vpop.f32.mrf.mxu3  ;;  %v5129_v16 = vadd.f32 %v15999_v63, %v4883_v3 }
 0x438   : > { %v13225_v3 = vsel %vm5147_vm11, %v5442_v45, %v5444_v27  ;;  %v10433_v45 = vld [vmem:[#allocation2 + $0xd8] sm:$0xff]  }
 0x439   : > { %v13217_v62 = vadd.f32 %v5129_v16, %v4114_v21  ;;  %16008 = vst [vmem:[#allocation53_spill] sm:$0xff] %v13225_v3  ;;  %v4948_v51 = vshrl.u32 %v10433_v45, 16 }
 0x43b   : > { %16003 = vst [vmem:[#allocation22_spill] sm:$0xff] %v13217_v62 }
 0x43c   : > { %v4885_v2 = vpop.f32.mrf.mxu0  ;;  %9478 = vmatmul.msk.bf16.gmra.mxu3 %vm3494_vm13, %v13204_v1 }
 0x43d   : > { %v4886_v37 = vadd.f32 %v4885_v2, %v16002_v13  ;;  %v16010_v2 = vld [vmem:[#allocation9_spill] sm:$0xff] }
 0x43f   : > { %9405 = vmatmul.msk.bf16.gmra.mxu0 %vm3494_vm13, %v15997_v49  ;;  %v13211_v55 = vpop.f32.mrf.mxu3  ;;  %v5130_v48 = vadd.f32 %v16005_v14, %v4886_v37  ;;  %v16007_v49 = vld [vmem:[#allocation38_spill] sm:$0xff]  ;;  %v10432_v37 = vld [vmem:[#allocation2 + $0x88] sm:$0xff]  }
 0x440   : > { %15998 = vst [vmem:[#allocation57_spill] sm:$0xff] %v13211_v55  ;;  %v4115_v26 = vadd.f32 %v16007_v49, %v16006_v31  ;;  %v5446_v31 = vrot.slane %v10432_v37, 1  ;;  %v16014_v49 = vld [vmem:[#allocation77_spill] sm:$0xff]  ;;  %v16020_v37 = vld [vmem:[#allocation31_spill] sm:$0xff] }
 0x442   : > { %v13227_v63 = vadd.f32 %v5130_v48, %v4115_v26  ;;  %v10434_v48 = vld [vmem:[#allocation2 + $0xe0] sm:$0xff]   ;;  %v13241_v7 = vsel %vm5147_vm11, %v5444_v27, %v5446_v31 }
 0x443   : > { %v4951_v26 = vshll.u32 %v10434_v48, 16  ;;  %16017 = vst [vmem:[#allocation64_spill] sm:$0xff] %v13241_v7  ;;  %v16023_v27 = vld [vmem:[#allocation80_spill] sm:$0xff] }
 0x444   : > { %v4887_v8 = vpop.f32.mrf.mxu0  ;;  %16009 = vst [vmem:[#allocation20_spill] sm:$0xff] %v13227_v63  ;;  %v16015_v63 = vld [vmem:[#allocation45_spill] sm:$0xff] }
 0x445   : > { %v16013_v8 = vld [vmem:[#allocation16_spill] sm:$0xff]  ;;  %v4116_v62 = vadd.f32 %v16015_v63, %v16014_v49  ;;  %v4955_v49 = vshrl.u32 %v10434_v48, 16 }
 0x447   : > { %v13219_v30 = vpop.f32.mrf.mxu3 }
 0x448   : > { %16004 = vst [vmem:[#allocation121_spill] sm:$0xff] %v13219_v30 }
 0x44c   : > { %v4889_v55 = vpop.f32.mrf.mxu0  ;;  %9479 = vmatmul.msk.bf16.gmra.mxu3 %vm3494_vm13, %v13225_v3 }
 0x44d   : > { %v4890_v21 = vadd.f32 %v4889_v55, %v16011_v54  ;;  %v16018_v55 = vld [vmem:[#allocation29_spill] sm:$0xff] }
 0x44f   : > { %9406 = vmatmul.msk.bf16.gmra.mxu0 %vm3494_vm13, %v16010_v2  ;;  %v5592_v16 = vpop.f32.mrf.mxu3  ;;  %v5131_v13 = vadd.f32 %v16013_v8, %v4890_v21  ;;  %v4950_v2 = vor.u32 %v4948_v51, %v16016_v0  ;;  %v16022_v0 = vld [vmem:[#allocation126_spill] sm:$0xff]  ;;  %v16024_v8 = vld [vmem:[#allocation49_spill] sm:$0xff] }
 0x450   : > { %v4953_v16 = vrot.slane %v4951_v26, 1  ;;  %v4117_v45 = vadd.f32 %v16024_v8, %v16023_v27  ;;  %v10435_v51 = vld [vmem:[#allocation2 + $0x90] sm:$0xff]  }
 0x451   : > { %v5448_v26 = vrot.slane %v10435_v51, 1  ;;  %v16029_v27 = vld [vmem:[#allocation30_spill] sm:$0xff] }
 0x452   : > { %v4954_v21 = vsel %vm4133_vm4, %v4950_v2, %v4953_v16  ;;  %v10436_v2 = vld [vmem:[#allocation2 + $0xe8] sm:$0xff] }
 0x453   : > { %9434 = vmatmul.msk.bf16.gmra.mxu1 %vm3494_vm13, %v4954_v21  ;;  %v13260_v21 = vsel %vm5147_vm11, %v5446_v31, %v5448_v26 }
 0x454   : > { %v4891_v9 = vpop.f32.mrf.mxu0  ;;  %16026 = vst [vmem:[#allocation17_spill] sm:$0xff] %v13260_v21 }
 0x455   : > { %v4892_v54 = vadd.f32 %v4891_v9, %v16018_v55  ;;  %v4958_v55 = vshll.u32 %v10436_v2, 16 }
 0x457   : > { %v13234_v14 = vpop.f32.mrf.mxu3  ;;  %v5132_v63 = vadd.f32 %v16022_v0, %v4892_v54 }
 0x458   : > { %16012 = vst [vmem:[#allocation112_spill] sm:$0xff] %v13234_v14  ;;  %v13244_v14 = vadd.f32 %v5131_v13, %v4116_v62 }
 0x459   : > { %v13257_v62 = vadd.f32 %v5132_v63, %v4117_v45  ;;  %v16028_v63 = vld [vmem:[#allocation84_spill] sm:$0xff]  ;;  %v16030_v45 = vld [vmem:[#allocation125_spill] sm:$0xff] }
 0x45a   : > { %16019 = vst [vmem:[#allocation12_spill] sm:$0xff] %v13244_v14  ;;  %v3904_v8 = vadd.f32 %v16029_v27, %v16028_v63  ;;  %v16037_v27 = vld [vmem:[#allocation87_spill] sm:$0xff] }
 0x45b   : > { %16025 = vst [vmem:[#allocation24_spill] sm:$0xff] %v13257_v62 }
 0x45c   : > { %v4894_v30 = vpop.f32.mrf.mxu0  ;;  %9480 = vmatmul.msk.bf16.gmra.mxu3 %vm3494_vm13, %v13241_v7  ;;  %v4960_v7 = vrot.slane %v4958_v55, 1 }
 0x45f   : > { %9407 = vmatmul.msk.bf16.gmra.mxu0 %vm3494_vm13, %v16020_v37  ;;  %v13252_v30 = vpop.f32.mrf.mxu3  ;;  %v4957_v37 = vor.u32 %v4955_v49, %v4953_v16  ;;  %v16032_v16 = vld [vmem:[#allocation8_spill] sm:$0xff] }
 0x460   : > { %16021 = vst [vmem:[#allocation61_spill] sm:$0xff] %v13252_v30  ;;  %v16027_v30 = vld [vmem:[#allocation129_spill] sm:$0xff] }
 0x461   : > { %v4961_v0 = vsel %vm4133_vm4, %v4957_v37, %v4960_v7  ;;  %v16035_v37 = vld [vmem:[#allocation131_spill] sm:$0xff] }
 0x463   : > { %9435 = vmatmul.msk.bf16.gmra.mxu1 %vm3494_vm13, %v4961_v0 }
 0x464   : > { %v4895_v9 = vpop.f32.mrf.mxu0 }
 0x465   : > { %v4896_v54 = vadd.f32 %v4895_v9, %v16027_v30  ;;  %v16034_v9 = vld [vmem:[#allocation55_spill] sm:$0xff] }
 0x466   : > { %v4118_v49 = vadd.f32 %v16034_v9, %v3904_v8  ;;  %v16043_v9 = vld [vmem:[#allocation88_spill] sm:$0xff] }
 0x467   : > { %v5598_v13 = vpop.f32.mrf.mxu3  ;;  %v5133_v31 = vadd.f32 %v16032_v16, %v4896_v54  ;;  %v16039_v54 = vld [vmem:[#allocation127_spill] sm:$0xff] }
 0x468   : > { %v756_v13 = vld [vmem:[#allocation2 + $0xf0] sm:$0x1] }
 0x469   : > { %v757_v30 = vsel %vm10823_vm8, 0, %v756_v13  ;;  %v13278_v63 = vadd.f32 %v5133_v31, %v4118_v49 }
 0x46a   : > { %758 = vst [vmem:[#allocation2 + $0xf0] sm:$0x1] %v757_v30 }
 0x46b   : > { %16036 = vst [vmem:[#allocation43_spill] sm:$0xff] %v13278_v63 }
 0x46c   : > { %v4898_v14 = vpop.f32.mrf.mxu0  ;;  %9481 = vmatmul.msk.bf16.gmra.mxu3 %vm3494_vm13, %v13260_v21 }
 0x46d   : > { %v4899_v62 = vadd.f32 %v4898_v14, %v16035_v37  ;;  %v16045_v37 = vld [vmem:[#allocation91_spill] sm:$0xff] }
 0x46f   : > { %9408 = vmatmul.msk.bf16.gmra.mxu0 %vm3494_vm13, %v16030_v45  ;;  %v13271_v48 = vpop.f32.mrf.mxu3  ;;  %v16038_v45 = vld [vmem:[#allocation36_spill] sm:$0xff]  ;;  %v5134_v16 = vadd.f32 %v16039_v54, %v4899_v62 }
 0x470   : > { %16031 = vst [vmem:[#allocation117_spill] sm:$0xff] %v13271_v48  ;;  %v3907_v21 = vadd.f32 %v16038_v45, %v16037_v27  ;;  %v10437_v48 = vld [vmem:[#allocation2 + $0x98] sm:$0xff]  }
 0x471   : > { %v5450_v3 = vrot.slane %v10437_v48, 1  ;;  %v826_v19 = vld [vmem:[#allocation2 + $0xf0] sm:$0xf] }
 0x472   : > { %v4119_v13 = vadd.f32 %v16040_v5, %v3907_v21  ;;  %v827_v8 = vsel %vm10908_vm12, 0, %v826_v19  ;;  %v4962_v5 = vshrl.u32 %v10436_v2, 16 }
 0x473   : > { %828 = vst [vmem:[#allocation2 + $0xf0] sm:$0xf] %v827_v8  ;;  %v13289_v14 = vsel %vm5147_vm11, %v5448_v26, %v5450_v3  ;;  %v16046_v26 = vld [vmem:[#allocation42_spill] sm:$0xff] }
 0x474   : > { %v4900_v55 = vpop.f32.mrf.mxu0  ;;  %v13291_v31 = vadd.f32 %v5134_v16, %v4119_v13  ;;  %v3911_v27 = vadd.f32 %v16046_v26, %v16045_v37  ;;  %v4964_v45 = vor.u32 %v4962_v5, %v4960_v7  ;;  %v10438_v13 = vld [vmem:[#allocation2 + $0xa0] sm:$0xff]  }
 0x475   : > { %v5452_v8 = vrot.slane %v10438_v13, 1  ;;  %v16050_v5 = vld [vmem:[#allocation92_spill] sm:$0xff] }
 0x476   : > { %16042 = vst [vmem:[#allocation65_spill] sm:$0xff] %v13291_v31  ;;  %v16052_v26 = vld [vmem:[#allocation128_spill] sm:$0xff] }
 0x477   : > { %v13282_v0 = vpop.f32.mrf.mxu3 }
 0x47a   : > { %v3349_v48 = vld [vmem:[#allocation2 + $0xf0] sm:$0xf] }
 0x47b   : > { %v4942_v49 = vunpack.c.l.b16 %v3349_v48  ;;  %v16048_v48 = vld [vmem:[#allocation66_spill] sm:$0xff] }
 0x47c   : > { %v4902_v30 = vpop.f32.mrf.mxu0  ;;  %9482 = vmatmul.msk.bf16.gmra.mxu3 %vm3494_vm13, %v13289_v14  ;;  %v4120_v2 = vadd.f32 %v16048_v48, %v3911_v27  ;;  %v16053_v27 = vld [vmem:[#allocation68_spill] sm:$0xff] }
 0x47d   : > { %v4903_v19 = vadd.f32 %v4902_v30, %v12923_v36  ;;  %v13298_v55 = vpack.c.b16 %v4942_v49, %v4942_v49  ;;  %v13309_v30 = vsel %vm5147_vm11, %v5450_v3, %v5452_v8 }
 0x47f   : > { %9409 = vmatmul.msk.bf16.gmra.mxu0 %vm3494_vm13, %v16043_v9  ;;  %v5605_v62 = vpop.f32.mrf.mxu3  ;;  %16044 = vst [vmem:[#allocation28_spill] sm:$0xff] %v13298_v55  ;;  %v4966_v54 = vshll.u32 %v13298_v55, 16  ;;  %v16047_v9 = vld [vmem:[#allocation23_spill] sm:$0xff] }
 0x480   : > { %v5135_v62 = vadd.f32 %v16047_v9, %v4903_v19  ;;  %v16051_v19 = vld [vmem:[#allocation46_spill] sm:$0xff] }
 0x481   : > { %v4968_v31 = vrot.slane %v4966_v54, 1  ;;  %v3913_v37 = vadd.f32 %v16051_v19, %v16050_v5  ;;  %v16057_v5 = vld [vmem:[#allocation39_spill] sm:$0xff] }
 0x482   : > { %v13313_v49 = vadd.f32 %v5135_v62, %v4120_v2  ;;  %v16056_v2 = vld [vmem:[#allocation51_spill] sm:$0xff] }
 0x483   : > { %v4969_v63 = vsel %vm4133_vm4, %v4964_v45, %v4968_v31  ;;  %v4121_v45 = vadd.f32 %v16053_v27, %v3913_v37  ;;  %v16058_v37 = vld [vmem:[#allocation73_spill] sm:$0xff] }
 0x484   : > { %v4904_v21 = vpop.f32.mrf.mxu0  ;;  %9436 = vmatmul.msk.bf16.gmra.mxu1 %vm3494_vm13, %v4969_v63  ;;  %16049 = vst [vmem:[#allocation48_spill] sm:$0xff] %v13313_v49 }
 0x485   : > { %v4905_v7 = vadd.f32 %v4904_v21, %v12935_v25  ;;  %v10439_v21 = vld [vmem:[#allocation2 + $0xa8] sm:$0xff]  }
 0x486   : > { %v5454_v13 = vrot.slane %v10439_v21, 1  ;;  %v10440_v21 = vld [vmem:[#allocation2 + $0xb0] sm:$0xff]  }
 0x487   : > { %v13303_v16 = vpop.f32.mrf.mxu3  ;;  %v5136_v3 = vadd.f32 %v16052_v26, %v4905_v7 }
 0x488   : > { %v13328_v62 = vsel %vm5147_vm11, %v5452_v8, %v5454_v13 }
 0x489   : > { %v13325_v54 = vadd.f32 %v5136_v3, %v4121_v45  ;;  %v16060_v45 = vld [vmem:[#allocation56_spill] sm:$0xff] }
 0x48b   : > { %16054 = vst [vmem:[#allocation122_spill] sm:$0xff] %v13325_v54  ;;  %v16062_v54 = vld [vmem:[#allocation75_spill] sm:$0xff] }
 0x48c   : > { %v4907_v36 = vpop.f32.mrf.mxu0  ;;  %9483 = vmatmul.msk.bf16.gmra.mxu3 %vm3494_vm13, %v13309_v30 }
 0x48f   : > { %9491 = vmatmul.msk.bf16.vlgmr.msrb.gmra.mxu0 %vm3494_vm13, %v12995_v12  ;;  %v13321_v31 = vpop.f32.mrf.mxu3  ;;  %v16055_v12 = vld [vmem:[#allocation95_spill] sm:$0xff] }
 0x490   : > { %v3917_v36 = vadd.f32 %v16056_v2, %v16055_v12  ;;  %v5456_v12 = vrot.slane %v10440_v21, 1  ;;  %v16061_v2 = vld [vmem:[#allocation130_spill] sm:$0xff] }
 0x492   : > { %v4122_v26 = vadd.f32 %v16058_v37, %v3917_v36  ;;  %v16064_v37 = vld [vmem:[#allocation63_spill] sm:$0xff] }
 0x494   : > { %v4908_v63 = vpop.f32.mrf.mxu0 }
 0x495   : > { %v4909_v48 = vadd.f32 %v4908_v63, %v12948_v33  ;;  %v16059_v33 = vld [vmem:[#allocation97_spill] sm:$0xff] }
 0x496   : > { %v3920_v63 = vadd.f32 %v16060_v45, %v16059_v33 }
 0x497   : > { %v5611_v25 = vpop.f32.mrf.mxu3  ;;  %v5137_v19 = vadd.f32 %v16057_v5, %v4909_v48  ;;  %v13351_v48 = vsel %vm5147_vm11, %v5454_v13, %v5456_v12 }
 0x498   : > { %v4123_v49 = vadd.f32 %v16062_v54, %v3920_v63 }
 0x499   : > { %v13342_v27 = vadd.f32 %v5137_v19, %v4122_v26  ;;  %v16063_v19 = vld [vmem:[#allocation101_spill] sm:$0xff] }
 0x49a   : > { %v3924_v26 = vadd.f32 %v16064_v37, %v16063_v19 }
 0x49c   : > { %v4911_v9 = vpop.f32.mrf.mxu0  ;;  %9484 = vmatmul.msk.bf16.gmra.mxu3 %vm3494_vm13, %v13328_v62 }
 0x49d   : > { %v4912_v8 = vadd.f32 %v4911_v9, %v12963_v22 }
 0x49f   : > { %9492 = vmatmul.msk.bf16.gmra.mxu0 %vm3494_vm13, %v13019_v39  ;;  %v13337_v7 = vpop.f32.mrf.mxu3  ;;  %v5138_v39 = vadd.f32 %v16061_v2, %v4912_v8  ;;  %v16065_v8 = vld [vmem:[#allocation81_spill] sm:$0xff] }
 0x4a0   : > { %v4124_v33 = vadd.f32 %v16065_v8, %v3924_v26  ;;  %v16070_v8 = vld [vmem:[#allocation70_spill] sm:$0xff] }
 0x4a1   : > { %v13353_v36 = vadd.f32 %v5138_v39, %v4123_v49 }
 0x4a4   : > { %v4913_v3 = vpop.f32.mrf.mxu0 }
 0x4a5   : > { %v10441_v3 = vld [vmem:[#allocation2 + $0xb8] sm:$0xff]  }
 0x4a6   : > { %v5458_v13 = vrot.slane %v10441_v3, 1 }
 0x4a7   : > { %v13346_v25 = vpop.f32.mrf.mxu3 }
 0x4a8   : > { %v13367_v63 = vsel %vm5147_vm11, %v5456_v12, %v5458_v13 }
 0x4ac   : > { %v4915_v55 = vpop.f32.mrf.mxu0  ;;  %9485 = vmatmul.msk.bf16.gmra.mxu3 %vm3494_vm13, %v13351_v48 }
 0x4ad   : > { %v4916_v5 = vadd.f32 %v4915_v55, %v12982_v46  ;;  %v16066_v46 = vld [vmem:[#allocation102_spill] sm:$0xff]  ;;  %v16067_v55 = vld [vmem:[#allocation67_spill] sm:$0xff] }
 0x4ae   : > { %v3926_v2 = vadd.f32 %v16067_v55, %v16066_v46 }
 0x4af   : > { %9493 = vmatmul.msk.bf16.gmra.mxu0 %vm3494_vm13, %v13040_v17  ;;  %v5618_v22 = vpop.f32.mrf.mxu3  ;;  %v5139_v49 = vadd.f32 %v12917_v58, %v4916_v5 }
 0x4b0   : > { %v16068_v22 = vld [vmem:[#allocation83_spill] sm:$0xff] }
 0x4b1   : > { %v13370_v21 = vadd.f32 %v5139_v49, %v4124_v33  ;;  %v4125_v12 = vadd.f32 %v16068_v22, %v3926_v2 }
 0x4b4   : > { %v4917_v9 = vpop.f32.mrf.mxu0 }
 0x4b5   : > { %v4918_v17 = vadd.f32 %v4917_v9, %v12991_v4  ;;  %v10442_v9 = vld [vmem:[#allocation2 + $0xc0] sm:$0xff]  }
 0x4b6   : > { %v5460_v37 = vrot.slane %v10442_v9, 1  ;;  %v16075_v9 = vld [vmem:[#allocation40_spill] sm:$0xff] }
 0x4b7   : > { %v13362_v54 = vpop.f32.mrf.mxu3  ;;  %v5140_v39 = vadd.f32 %v12925_v23, %v4918_v17  ;;  %v16071_v17 = vld [vmem:[#allocation89_spill] sm:$0xff] }
 0x4b8   : > { %v13385_v3 = vsel %vm5147_vm11, %v5458_v13, %v5460_v37 }
 0x4b9   : > { %v13382_v19 = vadd.f32 %v5140_v39, %v4125_v12  ;;  %v16074_v39 = vld [vmem:[#allocation74_spill] sm:$0xff] }
 0x4bc   : > { %v4920_v45 = vpop.f32.mrf.mxu0  ;;  %9486 = vmatmul.msk.bf16.gmra.mxu3 %vm3494_vm13, %v13367_v63 }
 0x4bf   : > { %9494 = vmatmul.msk.bf16.gmra.mxu0 %vm3494_vm13, %v13060_v59  ;;  %v13378_v58 = vpop.f32.mrf.mxu3  ;;  %v16069_v59 = vld [vmem:[#allocation106_spill] sm:$0xff] }
 0x4c0   : > { %v3930_v23 = vadd.f32 %v16070_v8, %v16069_v59  ;;  %v5201_v59 = vrot.slane %v16075_v9, 1  ;;  %v16076_v8 = vld [vmem:[#allocation90_spill] sm:$0xff]  ;;  %v16083_v9 = vld [vmem:[#allocation115_spill] sm:$0xff] }
 0x4c2   : > { %v4126_v46 = vadd.f32 %v16071_v17, %v3930_v23  ;;  %v16078_v23 = vld [vmem:[#allocation78_spill] sm:$0xff] }
 0x4c4   : > { %v4921_v5 = vpop.f32.mrf.mxu0 }
 0x4c5   : > { %v4922_v49 = vadd.f32 %v4921_v5, %v13011_v28  ;;  %v16073_v28 = vld [vmem:[#allocation108_spill] sm:$0xff]  ;;  %v10443_v5 = vld [vmem:[#allocation2 + $0xc8] sm:$0xff]  }
 0x4c6   : > { %v3933_v22 = vadd.f32 %v16074_v39, %v16073_v28  ;;  %v16081_v28 = vld [vmem:[#allocation93_spill] sm:$0xff] }
 0x4c7   : > { %v5624_v4 = vpop.f32.mrf.mxu3  ;;  %v5141_v45 = vadd.f32 %v12943_v52, %v4922_v49  ;;  %v16077_v49 = vld [vmem:[#allocation113_spill] sm:$0xff] }
 0x4c8   : > { %v5462_v4 = vrot.slane %v10443_v5, 1  ;;  %v4127_v52 = vadd.f32 %v16076_v8, %v3933_v22  ;;  %v3937_v17 = vadd.f32 %v16078_v23, %v16077_v49 }
 0x4c9   : > { %v13399_v2 = vadd.f32 %v5141_v45, %v4126_v46 }
 0x4ca   : > { %v4128_v39 = vadd.f32 %v16081_v28, %v3937_v17  ;;  %v10444_v17 = vld [vmem:[#allocation2 + $0xd0] sm:$0xff]   ;;  %v16087_v28 = vld [vmem:[#allocation120_spill] sm:$0xff] }
 0x4cb   : > { %16072 = vst [vmem:[#allocation123_spill] sm:$0xff] %v13399_v2 }
 0x4cc   : > { %v4924_v26 = vpop.f32.mrf.mxu0  ;;  %9487 = vmatmul.msk.bf16.gmra.mxu3 %vm3494_vm13, %v13385_v3 }
 0x4cd   : > { %v4925_v13 = vadd.f32 %v4924_v26, %v13031_v11  ;;  %v16079_v11 = vrot.slane %v12882_v35, 1 }
 0x4cf   : > { %9495 = vmatmul.msk.bf16.gmra.mxu0 %vm3494_vm13, %v13076_v15  ;;  %v13394_v33 = vpop.f32.mrf.mxu3  ;;  %v5142_v15 = vadd.f32 %v12951_v10, %v4925_v13  ;;  %v5202_v26 = vsel %vm5147_vm11, %v16079_v11, %v5201_v59  ;;  %v16084_v59 = vld [vmem:[#allocation82_spill] sm:$0xff] }
 0x4d0   : > { %v5098_v46 = vpop.f32.mrf.mxu1  ;;  %9463 = vmatmul.msk.bf16.gmra.mxu2 %vm3494_vm13, %v5202_v26  ;;  %v13433_v26 = vrot.slane %v10444_v17, 1 }
 0x4d1   : > { %v13418_v13 = vadd.f32 %v5142_v15, %v4127_v52  ;;  %v16085_v15 = vld [vmem:[#allocation94_spill] sm:$0xff] }
 0x4d3   : > { %16080 = vst [vmem:[#allocation69_spill] sm:$0xff] %v13418_v13 }
 0x4d4   : > { %v4926_v55 = vpop.f32.mrf.mxu0 }
 0x4d5   : > { %v13415_v55 = vsel %vm5147_vm11, %v5460_v37, %v5462_v4  ;;  %v3939_v37 = vadd.f32 %v16084_v59, %v16083_v9 }
 0x4d7   : > { %v13403_v12 = vpop.f32.mrf.mxu3  ;;  %v4129_v52 = vadd.f32 %v16085_v15, %v3939_v37  ;;  %v16089_v37 = vld [vmem:[#allocation98_spill] sm:$0xff] }
 0x4d8   : > { %v5100_v49 = vpop.f32.mrf.mxu1 }
 0x4dc   : > { %v4928_v45 = vpop.f32.mrf.mxu0  ;;  %9488 = vmatmul.msk.bf16.gmra.mxu3 %vm3494_vm13, %v13415_v55 }
 0x4dd   : > { %v4929_v10 = vadd.f32 %v4928_v45, %v13047_v47 }
 0x4df   : > { %v5143_v22 = vadd.f32 %v5098_v46, %v4929_v10  ;;  %9496 = vmatmul.msk.bf16.gmra.mxu0 %vm3494_vm13, %v13097_v32  ;;  %v5631_v35 = vpop.f32.mrf.mxu3  ;;  %v13439_v10 = vsel %vm5147_vm11, %v5462_v4, %v13433_v26 }
 0x4e0   : > { %v5103_v46 = vpop.f32.mrf.mxu1 }
 0x4e1   : > { %v13425_v5 = vadd.f32 %v5143_v22, %v4128_v39  ;;  %v16088_v39 = vld [vmem:[#allocation86_spill] sm:$0xff] }
 0x4e2   : > { %v3943_v22 = vadd.f32 %v16088_v39, %v16087_v28 }
 0x4e3   : > { %16082 = vst [vmem:[#allocation35_spill] sm:$0xff] %v13425_v5  ;;  %v16132_v5 = vld [vmem:[#allocation57_spill] sm:$0xff] }
 0x4e4   : > { %v4930_v8 = vpop.f32.mrf.mxu0 }
 0x4e5   : > { %v4931_v47 = vadd.f32 %v4930_v8, %v13056_v57  ;;  %v4130_v8 = vadd.f32 %v16089_v37, %v3943_v22  ;;  %v891_v22 = vld [vmem:[#allocation3 + $0x8] sm:$0xf] }
 0x4e7   : > { %v5144_v23 = vadd.f32 %v5100_v49, %v4931_v47  ;;  %v13431_v11 = vpop.f32.mrf.mxu3  ;;  %v16090_v47 = vld [vmem:[#allocation85_spill] sm:$0xff] }
 0x4e8   : > { %v5104_v9 = vpop.f32.mrf.mxu1  ;;  %v5466_v15 = vrot.slane %v16090_v47, 1 }
 0x4e9   : > { %v13435_v45 = vadd.f32 %v5144_v23, %v4129_v52 }
 0x4eb   : > { %16086 = vst [vmem:[#allocation26_spill] sm:$0xff] %v13435_v45  ;;  %v16131_v45 = vld [vmem:[#allocation13_spill] sm:$0xff] }
 0x4ec   : > { %v4933_v32 = vpop.f32.mrf.mxu0  ;;  %9489 = vmatmul.msk.bf16.gmra.mxu3 %vm3494_vm13, %v13439_v10 }
 0x4ef   : > { %9497 = vmatmul.msk.bf16.gmra.mxu0 %vm3494_vm13, %v13117_v24  ;;  %v13445_v57 = vpop.f32.mrf.mxu3  ;;  %v5467_v24 = vsel %vm5147_vm11, %v13433_v26, %v5466_v15 }
 0x4f4   : > { %v4934_v35 = vpop.f32.mrf.mxu0 }
 0x4f5   : > { %v4935_v59 = vadd.f32 %v4934_v35, %v13072_v29  ;;  %v834_v29 = vld [vmem:[#allocation3] sm:$0x1] }
 0x4f6   : > { %v835_v32 = vsel %vm10823_vm8, 0, %v834_v29 }
 0x4f7   : > { %v5145_v49 = vadd.f32 %v5104_v9, %v4935_v59  ;;  %v5637_v4 = vpop.f32.mrf.mxu3  ;;  %836 = vst [vmem:[#allocation3] sm:$0x1] %v835_v32  ;;  %v892_v9 = vsel %vm10908_vm12, 0, %v891_v22  ;;  %v16092_v59 = vld [vmem:[#allocation103_spill] sm:$0xff]  ;;  %v16095_v32 = vld [vmem:[#allocation105_spill] sm:$0xff] }
 0x4f8   : > { %893 = vst [vmem:[#allocation3 + $0x8] sm:$0xf] %v892_v9 }
 0x4f9   : > { %v13452_v52 = vadd.f32 %v5145_v49, %v4130_v8  ;;  %v16093_v49 = vld [vmem:[#allocation99_spill] sm:$0xff] }
 0x4fb   : > { %16091 = vst [vmem:[#allocation124_spill] sm:$0xff] %v13452_v52 }
 0x4fc   : > { %v4937_v23 = vpop.f32.mrf.mxu0  ;;  %9490 = vmatmul.msk.bf16.gmra.mxu3 %vm3494_vm13, %v5467_v24  ;;  %v6604_v24 = vld [vmem:[%s15605_s8 + $0x18] sm:$0xf] }
 0x4fd   : > { %v4938_v28 = vadd.f32 %v4937_v23, %v13088_v44  ;;  %v13476_v44 = vld [vmem:[%s15604_s7] ss:$0 sm:$0xff]  ;;  %v7152_v22 = vsel %vm16096_vm5, %v6604_v24, 0  ;;  %vm16152_vm5 = vmmov %vm16101_vm0 }
 0x4fe   : > { %7161 = vmatpush.bf16.msra.mxu3 %v7152_v22 }
 0x4ff   : > { %9498 = vmatmul.msk.bf16.gmra.mxu0 %vm3494_vm13, %v13133_v60  ;;  %v13459_v17 = vpop.f32.mrf.mxu3  ;;  %v5562_v60 = vadd.f32 %v13104_v53, %v16092_v59 }
 0x501   : > { %v5107_v35 = vpop.f32.mrf.mxu1 }
 0x502   : > { %v5146_v37 = vadd.f32 %v5107_v35, %v4938_v28 }
 0x504   : > { %v4939_v46 = vpop.f32.mrf.mxu0  ;;  %v13471_v4 = vadd.f32 %v5146_v37, %v16093_v49 }
 0x505   : > { %v5564_v46 = vadd.f32 %v13113_v41, %v16095_v32 }
 0x506   : > { %16094 = vst [vmem:[#allocation72_spill] sm:$0xff] %v13471_v4 }
 0x507   : > { %v13464_v39 = vpop.f32.mrf.mxu3 }
 0x509   : > { %v5109_v29 = vpop.f32.mrf.mxu1 }
 0x50c   : > { %v5710_v8 = vpop.f32.mrf.mxu0 }
 0x50d   : > { %v5827_v47 = vadd.f32 %v5710_v8, %v5562_v60 }
 0x50f   : > { %v5899_v15 = vadd.f32 %v12955_v61, %v5827_v47  ;;  %9499 = vmatmul.msk.bf16.gmra.mxu0 %vm3494_vm13, %v13151_v6  ;;  %v5644_v23 = vpop.f32.mrf.mxu3  ;;  %v6407_v47 = vld [vmem:[#allocation3] sm:$0xf] }
 0x511   : > { %v5939_v53 = vadd.f32 %v13476_v44, %v5899_v15  ;;  %v837_v15 = vld [vmem:[#allocation3 + $0xc] sm:$0x1] }
 0x513   : > { %v5975_v28 = vmax.f32 %v5939_v53, 0.0  ;;  %v838_v53 = vsel %vm10823_vm8, 0, %v837_v15 }
 0x514   : > { %v5712_v35 = vpop.f32.mrf.mxu0  ;;  %839 = vst [vmem:[#allocation3 + $0xc] sm:$0x1] %v838_v53 }
 0x515   : > { %v6011_v61 = vpack.c.bf16 %v5975_v28, %v5975_v28  ;;  %v5828_v9 = vadd.f32 %v5712_v35, %v5564_v46 }
 0x517   : > { %v6048_v59 = vshrl.u32 %v6011_v61, 16  ;;  %v5900_v6 = vadd.f32 %v12973_v56, %v5828_v9  ;;  %v13489_v60 = vpop.f32.mrf.mxu3  ;;  %v6051_v8 = vshll.u32 %v6011_v61, 16  ;;  %v16097_v56 = vmov 0   ;;  %v894_v61 = vld [vmem:[#allocation3 + $0x14] sm:$0xf] }
 0x518   : > { %v6411_v9 = vld [vmem:[#allocation3 + $0x8] sm:$0x1] }
 0x519   : > { %v6050_v37 = vrot.slane %v6048_v59, 7  ;;  %v5940_v49 = vadd.f32 %v13476_v44, %v5900_v6  ;;  %v895_v59 = vsel %vm10908_vm12, 0, %v894_v61  ;;  %v16099_v6 = vld [vmem:[#allocation109_spill] sm:$0xff] }
 0x51a   : > { %896 = vst [vmem:[#allocation3 + $0x14] sm:$0xf] %v895_v59 }
 0x51b   : > { %v6053_v23 = vor.u32 %v6051_v8, %v6050_v37  ;;  %v5976_v41 = vmax.f32 %v5940_v49, 0.0  ;;  %v5568_v8 = vadd.f32 %v13129_v42, %v16099_v6  ;;  %v6054_v49 = vrot.slane %v6050_v37, 4 }
 0x51c   : > { %v5715_v24 = vpop.f32.mrf.mxu0 }
 0x51d   : > { %v6408_v29 = vsel %vm10908_vm12, %v6053_v23, %v6407_v47  ;;  %v6012_v32 = vpack.c.bf16 %v5976_v41, %v5976_v41 }
 0x51e   : > { %6409 = vst [vmem:[#allocation3] sm:$0xf] %v6408_v29 }
 0x51f   : > { %6536 = vst.msk [vmem:[#allocation3] sm:$0xf] %vm16098_vm7, %v16097_v56  ;;  %v6056_v46 = vshrl.u32 %v6012_v32, 16  ;;  %9500 = vmatmul.msk.bf16.gmra.mxu0 %vm3494_vm13, %v13172_v18  ;;  %v13500_v28 = vpop.f32.mrf.mxu3  ;;  %v6059_v35 = vshll.u32 %v6012_v32, 16  ;;  %v16104_v32 = vld [vmem:[#allocation110_spill] sm:$0xff]  ;;  %vm16165_vm7 = vmmov %vm16101_vm0 }
 0x521   : > { %v6058_v22 = vrot.slane %v6056_v46, 7  ;;  %v5571_v46 = vadd.f32 %v13143_v43, %v16104_v32  ;;  %v6414_v43 = vld [vmem:[#allocation3 + $0xc] sm:$0xf] }
 0x523   : > { %v6061_v47 = vor.u32 %v6059_v35, %v6058_v22  ;;  %v6063_v15 = vrot.slane %v6058_v22, 4 }
 0x524   : > { %v5716_v23 = vpop.f32.mrf.mxu0 }
 0x525   : > { %v6062_v18 = vsel %vm10637_vm6, %v6054_v49, %v6061_v47  ;;  %v6412_v53 = vsel %vm10823_vm8, %v6063_v15, %v6411_v9  ;;  %v5829_v24 = vadd.f32 %v5716_v23, %v5568_v8  ;;  %v840_v23 = vld [vmem:[#allocation3 + $0x18] sm:$0x1] }
 0x526   : > { %6410 = vst.msk [vmem:[#allocation3 + $0x4] sm:$0xf] %vm16101_vm0, %v6062_v18 }
 0x527   : > { %6413 = vst [vmem:[#allocation3 + $0x8] sm:$0x1] %v6412_v53  ;;  %v5901_v29 = vadd.f32 %v12987_v38, %v5829_v24  ;;  %v5650_v42 = vpop.f32.mrf.mxu3 }
 0x528   : > { %6537 = vst.msk [vmem:[#allocation3 + $0x4] sm:$0xf] %vm16102_vm1, %v16097_v56  ;;  %vm16184_vm1 = vmmov %vm16101_vm0 }
 0x529   : > { %6538 = vst.msk [vmem:[#allocation3 + $0x8] sm:$0xf] %vm16103_vm2, %v16097_v56  ;;  %v5941_v37 = vadd.f32 %v13476_v44, %v5901_v29  ;;  %vm16195_vm2 = vmmov %vm16101_vm0 }
 0x52b   : > { %v5977_v22 = vmax.f32 %v5941_v37, 0.0 }
 0x52c   : > { %v5719_v35 = vpop.f32.mrf.mxu0 }
 0x52d   : > { %v6013_v61 = vpack.c.bf16 %v5977_v22, %v5977_v22  ;;  %v5830_v9 = vadd.f32 %v5719_v35, %v5571_v46  ;;  %v897_v22 = vld [vmem:[#allocation3 + $0x20] sm:$0xf]  ;;  %v6418_v35 = vld [vmem:[#allocation3 + $0x14] sm:$0x1] }
 0x52f   : > { %v6065_v59 = vshrl.u32 %v6013_v61, 16  ;;  %v5902_v6 = vadd.f32 %v12998_v40, %v5830_v9  ;;  %9501 = vmatmul.msk.bf16.gmra.mxu0 %vm3494_vm13, %v13187_v50  ;;  %v13522_v38 = vld [vmem:[#allocation3] sm:$0xff]  ;;  %v13524_v8 = vpop.f32.mrf.mxu3  ;;  %v6068_v47 = vshll.u32 %v6013_v61, 16  ;;  %v841_v40 = vsel %vm10823_vm8, 0, %v840_v23 }
 0x530   : > { %9546 = vmatmul.msk.bf16.vlgmr.msra.gmra.mxu2 %vm3494_vm13, %v13522_v38  ;;  %842 = vst [vmem:[#allocation3 + $0x18] sm:$0x1] %v841_v40  ;;  %v898_v61 = vsel %vm10908_vm12, 0, %v897_v22  ;;  %v16105_v9 = vld [vmem:[#allocation116_spill] sm:$0xff] }
 0x531   : > { %v6067_v49 = vrot.slane %v6065_v59, 7  ;;  %v5942_v15 = vadd.f32 %v13476_v44, %v5902_v6  ;;  %v5575_v59 = vadd.f32 %v13158_v34, %v16105_v9  ;;  %899 = vst [vmem:[#allocation3 + $0x20] sm:$0xf] %v898_v61 }
 0x533   : > { %v6070_v18 = vor.u32 %v6068_v47, %v6067_v49  ;;  %v5978_v53 = vmax.f32 %v5942_v15, 0.0  ;;  %v6071_v6 = vrot.slane %v6067_v49, 4 }
 0x534   : > { %v5721_v24 = vpop.f32.mrf.mxu0 }
 0x535   : > { %v6415_v50 = vsel %vm10908_vm12, %v6070_v18, %v6414_v43  ;;  %v6014_v29 = vpack.c.bf16 %v5978_v53, %v5978_v53  ;;  %v16107_v24 = vld [vmem:[#allocation119_spill] sm:$0xff] }
 0x536   : > { %6416 = vst [vmem:[#allocation3 + $0xc] sm:$0xf] %v6415_v50 }
 0x537   : > { %v6073_v42 = vshrl.u32 %v6014_v29, 16  ;;  %v13533_v37 = vpop.f32.mrf.mxu3  ;;  %v6076_v46 = vshll.u32 %v6014_v29, 16  ;;  %v6599_v29 = vld [vmem:[%s15605_s8 + $0x4] sm:$0xf] }
 0x539   : > { %v6075_v32 = vrot.slane %v6073_v42, 7  ;;  %v16108_v42 = vld [vmem:[#allocation118_spill] sm:$0xff] }
 0x53b   : > { %v6078_v47 = vor.u32 %v6076_v46, %v6075_v32  ;;  %v6080_v15 = vrot.slane %v6075_v32, 4  ;;  %v16109_v32 = vld [vmem:[#allocation58_spill] sm:$0xff] }
 0x53c   : > { %v5723_v43 = vpop.f32.mrf.mxu0  ;;  %v5577_v46 = vadd.f32 %v16109_v32, %v16108_v42 }
 0x53d   : > { %v6079_v23 = vsel %vm10637_vm6, %v6071_v6, %v6078_v47  ;;  %v6419_v18 = vsel %vm10823_vm8, %v6080_v15, %v6418_v35  ;;  %v5831_v53 = vadd.f32 %v5723_v43, %v5575_v59  ;;  %v13547_v34 = vld [vmem:[#allocation3 + $0x8] sm:$0xff]  }
 0x53e   : > { %6417 = vst.msk [vmem:[#allocation3 + $0x10] sm:$0xf] %vm16106_vm3, %v6079_v23  ;;  %v16111_v47 = vld [vmem:[#allocation133_spill] sm:$0xff]  ;;  %v7667_v43 = vshll.u32 %v13547_v34, 16  ;;  %v8448_v32 = vrot.slane %v13547_v34, 1  ;;  %vm16209_vm3 = vmmov %vm16101_vm0 }
 0x53f   : > { %6420 = vst [vmem:[#allocation3 + $0x14] sm:$0x1] %v6419_v18  ;;  %v5903_v40 = vadd.f32 %v13023_v20, %v5831_v53  ;;  %9502 = vmatmul.msk.bf16.gmra.mxu0 %vm3494_vm13, %v16107_v24  ;;  %v5657_v49 = vpop.f32.mrf.mxu3  ;;  %v7906_v20 = vsel %vm16110_vm9, %v6599_v29, 0  ;;  %v7663_v24 = vshll.u32 %v13522_v38, 16  ;;  %v843_v29 = vld [vmem:[#allocation3 + $0x24] sm:$0x1]  ;;  %vm16223_vm9 = vmmov %vm16101_vm0 }
 0x540   : > { %9547 = vmatmul.msk.bf16.gmra.mxu2 %vm3494_vm13, %v13547_v34  ;;  %v6421_v49 = vld [vmem:[#allocation3 + $0x18] sm:$0xf] }
 0x541   : > { %v5943_v50 = vadd.f32 %v13476_v44, %v5903_v40  ;;  %7915 = vmatpush.bf16.msrb.mxu2 %v7906_v20  ;;  %v7669_v20 = vrot.slane %v7667_v43, 1  ;;  %v16113_v43 = vld [vmem:[#allocation53_spill] sm:$0xff] }
 0x543   : > { %v5979_v22 = vmax.f32 %v5943_v50, 0.0  ;;  %v6602_v50 = vld [vmem:[%s15605_s8 + $0x10] sm:$0xf] }
 0x544   : > { %v5725_v35 = vpop.f32.mrf.mxu0 }
 0x545   : > { %v6015_v61 = vpack.c.bf16 %v5979_v22, %v5979_v22  ;;  %v5832_v9 = vadd.f32 %v5725_v35, %v5577_v46  ;;  %v13558_v59 = vld [vmem:[#allocation3 + $0xc] sm:$0xff]   ;;  %v7661_v22 = vshrl.u32 %v13522_v38, 16 }
 0x546   : > { %9518 = vmatmul.msk.bf16.vlgmr.msra.gmra.mxu1 %vm3494_vm13, %v13558_v59 }
 0x547   : > { %v6082_v6 = vshrl.u32 %v6015_v61, 16  ;;  %v5904_v15 = vadd.f32 %v16111_v47, %v5832_v9  ;;  %v13564_v23 = vpop.f32.mrf.mxu3  ;;  %v6085_v53 = vshll.u32 %v6015_v61, 16  ;;  %v7545_v61 = vsel %vm16112_vm10, %v6602_v50, 0 }
 0x548   : > { %v844_v9 = vsel %vm10823_vm8, 0, %v843_v29  ;;  %7554 = vmatpush.bf16.msrb.mxu1 %v7545_v61 }
 0x549   : > { %v6084_v18 = vrot.slane %v6082_v6, 7  ;;  %v5944_v40 = vadd.f32 %v13476_v44, %v5904_v15  ;;  %v13578_v15 = vld [vmem:[#allocation3 + $0x10] sm:$0xff]   ;;  %845 = vst [vmem:[#allocation3 + $0x24] sm:$0x1] %v844_v9  ;;  %v6425_v9 = vld [vmem:[#allocation3 + $0x20] sm:$0x1] }
 0x54a   : > { %v7674_v29 = vshll.u32 %v13578_v15, 16 }
 0x54b   : > { %v6087_v42 = vor.u32 %v6085_v53, %v6084_v18  ;;  %v5980_v46 = vmax.f32 %v5944_v40, 0.0  ;;  %v7665_v53 = vrot.slane %v7663_v24, 1  ;;  %v8447_v40 = vrot.slane %v13522_v38, 1  ;;  %v900_v38 = vld [vmem:[#allocation3 + $0x2c] sm:$0xf] }
 0x54c   : > { %v5728_v35 = vpop.f32.mrf.mxu0  ;;  %v13600_v52 = vrot.slane %v7674_v29, 1  ;;  %v13618_v29 = vpop.f32.mrf.mxu2 }
 0x54d   : > { %v6422_v6 = vsel %vm10908_vm12, %v6087_v42, %v6421_v49  ;;  %v6016_v47 = vpack.c.bf16 %v5980_v46, %v5980_v46  ;;  %v7666_v50 = vor.u32 %v7665_v53, %v7661_v22  ;;  %v13584_v35 = vsel %vm5147_vm11, %v8447_v40, %v8448_v32  ;;  %v16117_v53 = vld [vmem:[#allocation10_spill] sm:$0xff]  ;;  %16123 = vst [vmem:[#allocation45_spill] sm:$0xff] %v13618_v29 }
 0x54e   : > { %6423 = vst [vmem:[#allocation3 + $0x18] sm:$0xf] %v6422_v6  ;;  %v7671_v22 = vshrl.u32 %v13547_v34, 16  ;;  %v901_v6 = vsel %vm10908_vm12, 0, %v900_v38  ;;  %v16118_v40 = vld [vmem:[#allocation114_spill] sm:$0xff]  ;;  %v6088_v49 = vrot.slane %v6084_v18, 4 }
 0x54f   : > { %v6090_v56 = vshrl.u32 %v6016_v47, 16  ;;  %9503 = vmatmul.msk.bf16.gmra.mxu0 %vm3494_vm13, %v16113_v43  ;;  %16114 = vst [vmem:[#allocation38_spill] sm:$0xff] %v13584_v35  ;;  %v13588_v42 = vpop.f32.mrf.mxu3  ;;  %v6093_v61 = vshll.u32 %v6016_v47, 16  ;;  %v13593_v24 = vsel %vm4133_vm4, %v7666_v50, %v7669_v20  ;;  %v5581_v43 = vadd.f32 %v16118_v40, %v16117_v53 }
 0x550   : > { %16115 = vst [vmem:[#allocation9_spill] sm:$0xff] %v13588_v42  ;;  %9548 = vmatmul.msk.bf16.gmra.mxu2 %vm3494_vm13, %v13578_v15  ;;  %v7673_v4 = vor.u32 %v7671_v22, %v7669_v20  ;;  %v16119_v50 = vrot.slane %v13578_v15, 1  ;;  %v16126_v22 = vld [vmem:[#allocation27_spill] sm:$0xff] }
 0x551   : > { %v6092_v46 = vrot.slane %v6090_v56, 7  ;;  %16116 = vst [vmem:[#allocation32_spill] sm:$0xff] %v13593_v24 }
 0x552   : > { %902 = vst [vmem:[#allocation3 + $0x2c] sm:$0xf] %v901_v6  ;;  %v13605_v24 = vsel %vm5147_vm11, %v8448_v32, %v16119_v50  ;;  %v13616_v20 = vsel %vm4133_vm4, %v7673_v4, %v13600_v52  ;;  %v16124_v32 = vld [vmem:[#allocation135_spill] sm:$0xff] }
 0x553   : > { %v6095_v35 = vor.u32 %v6093_v61, %v6092_v46  ;;  %v6097_v56 = vrot.slane %v6092_v46, 4  ;;  %16120 = vst [vmem:[#allocation16_spill] sm:$0xff] %v13605_v24  ;;  %v16125_v61 = vld [vmem:[#allocation37_spill] sm:$0xff] }
 0x554   : > { %v5729_v47 = vpop.f32.mrf.mxu0  ;;  %16122 = vst [vmem:[#allocation77_spill] sm:$0xff] %v13616_v20 }
 0x555   : > { %v6096_v34 = vsel %vm10637_vm6, %v6088_v49, %v6095_v35  ;;  %v6426_v38 = vsel %vm10823_vm8, %v6097_v56, %v6425_v9  ;;  %v5833_v53 = vadd.f32 %v5729_v47, %v5581_v43  ;;  %v13611_v18 = vld [vmem:[#allocation3 + $0x14] sm:$0xff]   ;;  %v5584_v9 = vadd.f32 %v16126_v22, %v16125_v61  ;;  %v6428_v22 = vld [vmem:[#allocation3 + $0x24] sm:$0xf] }
 0x556   : > { %6424 = vst.msk [vmem:[#allocation3 + $0x1c] sm:$0xf] %vm16121_vm14, %v6096_v34  ;;  %9519 = vmatmul.msk.bf16.gmra.mxu1 %vm3494_vm13, %v13611_v18  ;;  %v7302_v47 = vshll.u32 %v13558_v59, 16  ;;  %v16127_v34 = vld [vmem:[#allocation137_spill] sm:$0xff]  ;;  %v7310_v42 = vshrl.u32 %v13611_v18, 16  ;;  %vm16239_vm14 = vmmov %vm16101_vm0 }
 0x557   : > { %6427 = vst [vmem:[#allocation3 + $0x20] sm:$0x1] %v6426_v38  ;;  %v5905_v46 = vadd.f32 %v16124_v32, %v5833_v53  ;;  %v5663_v35 = vpop.f32.mrf.mxu3  ;;  %v16128_v53 = vld [vmem:[#allocation64_spill] sm:$0xff]  ;;  %v13634_v32 = vpop.f32.mrf.mxu2 }
 0x559   : > { %v5945_v49 = vadd.f32 %v13476_v44, %v5905_v46 }
 0x55b   : > { %v5981_v6 = vmax.f32 %v5945_v49, 0.0 }
 0x55c   : > { %v5732_v40 = vpop.f32.mrf.mxu0 }
 0x55d   : > { %v6017_v43 = vpack.c.bf16 %v5981_v6, %v5981_v6  ;;  %v5834_v56 = vadd.f32 %v5732_v40, %v5584_v9  ;;  %v13626_v4 = vld [vmem:[#allocation3 + $0x18] sm:$0xff]   ;;  %v846_v9 = vld [vmem:[#allocation3 + $0x30] sm:$0x1]  ;;  %v7304_v6 = vrot.slane %v7302_v47, 1 }
 0x55e   : > { %9574 = vmatmul.msk.bf16.vlgmr.msra.gmra.mxu3 %vm3494_vm13, %v13626_v4  ;;  %v13649_v47 = vld [vmem:[#allocation3 + $0x1c] sm:$0xff]  }
 0x55f   : > { %v6099_v50 = vshrl.u32 %v6017_v43, 16  ;;  %v5906_v38 = vadd.f32 %v16127_v34, %v5834_v56  ;;  %9504 = vmatmul.msk.bf16.gmra.mxu0 %vm3494_vm13, %v16128_v53  ;;  %v13636_v46 = vpop.f32.mrf.mxu3  ;;  %v6102_v49 = vshll.u32 %v6017_v43, 16  ;;  %v847_v56 = vsel %vm10823_vm8, 0, %v846_v9 }
 0x560   : > { %16129 = vst [vmem:[#allocation34_spill] sm:$0xff] %v13636_v46  ;;  %9549 = vmatmul.msk.bf16.gmra.mxu2 %vm3494_vm13, %v13626_v4  ;;  %v8210_v53 = vrot.slane %v13558_v59, 1  ;;  %v7300_v43 = vshrl.u32 %v13558_v59, 16  ;;  %v903_v46 = vld [vmem:[#allocation3 + $0x38] sm:$0xf] }
 0x561   : > { %v6101_v35 = vrot.slane %v6099_v50, 7  ;;  %v5946_v61 = vadd.f32 %v13476_v44, %v5906_v38  ;;  %848 = vst [vmem:[#allocation3 + $0x30] sm:$0x1] %v847_v56  ;;  %v8211_v50 = vrot.slane %v13611_v18, 1  ;;  %v7306_v38 = vshll.u32 %v13611_v18, 16 }
 0x563   : > { %v6104_v40 = vor.u32 %v6102_v49, %v6101_v35  ;;  %v5982_v24 = vmax.f32 %v5946_v61, 0.0  ;;  %v13652_v49 = vsel %vm5147_vm11, %v8210_v53, %v8211_v50  ;;  %v7305_v61 = vor.u32 %v7304_v6, %v7300_v43  ;;  %v849_v53 = vld [vmem:[#allocation3 + $0x3c] sm:$0x1]  ;;  %v6432_v43 = vld [vmem:[#allocation3 + $0x2c] sm:$0x1] }
 0x564   : > { %v5734_v34 = vpop.f32.mrf.mxu0  ;;  %v7308_v9 = vrot.slane %v7306_v38, 1  ;;  %v7678_v6 = vshrl.u32 %v13578_v15, 16  ;;  %v904_v38 = vsel %vm10908_vm12, 0, %v903_v46  ;;  %v7313_v46 = vshll.u32 %v13649_v47, 16 }
 0x565   : > { %v6429_v20 = vsel %vm10908_vm12, %v6104_v40, %v6428_v22  ;;  %v6018_v29 = vpack.c.bf16 %v5982_v24, %v5982_v24  ;;  %v5411_v34 = vpop.f32.mrf.mxu2  ;;  %v5588_v22 = vadd.f32 %v16132_v5, %v16131_v45  ;;  %905 = vst [vmem:[#allocation3 + $0x38] sm:$0xf] %v904_v38  ;;  %v15661_v45 = vrot.slane %v13649_v47, 1 }
 0x566   : > { %6430 = vst [vmem:[#allocation3 + $0x24] sm:$0xf] %v6429_v20  ;;  %9520 = vmatmul.msk.bf16.gmra.mxu1 %vm3494_vm13, %v13649_v47  ;;  %v13657_v59 = vsel %vm4133_vm4, %v7305_v61, %v7308_v9  ;;  %v850_v34 = vsel %vm10823_vm8, 0, %v849_v53  ;;  %v7681_v61 = vshll.u32 %v13626_v4, 16 }
 0x567   : > { %v6107_v56 = vshrl.u32 %v6018_v29, 16  ;;  %16130 = vst [vmem:[#allocation29_spill] sm:$0xff] %v13657_v59  ;;  %v13661_v24 = vpop.f32.mrf.mxu3  ;;  %v6110_v20 = vshll.u32 %v6018_v29, 16  ;;  %v6105_v59 = vrot.slane %v6101_v35, 4  ;;  %v13682_v38 = vsel %vm5147_vm11, %v8211_v50, %v15661_v45 }
 0x568   : > { %16133 = vst [vmem:[#allocation31_spill] sm:$0xff] %v13661_v24  ;;  %v7683_v24 = vrot.slane %v7681_v61, 1  ;;  %v8452_v50 = vrot.slane %v13626_v4, 1 }
 0x569   : > { %v6109_v40 = vrot.slane %v6107_v56, 7  ;;  %851 = vst [vmem:[#allocation3 + $0x3c] sm:$0x1] %v850_v34  ;;  %v7680_v56 = vor.u32 %v7678_v6, %v13600_v52  ;;  %v13693_v6 = vrot.slane %v7313_v46, 1 }
 0x56b   : > { %v6112_v13 = vor.u32 %v6110_v20, %v6109_v40  ;;  %v6114_v5 = vrot.slane %v6109_v40, 4  ;;  %v13688_v52 = vsel %vm4133_vm4, %v7680_v56, %v7683_v24 }
 0x56c   : > { %v5736_v29 = vpop.f32.mrf.mxu0  ;;  %16135 = vst [vmem:[#allocation126_spill] sm:$0xff] %v13688_v52 }
 0x56d   : > { %v6113_v53 = vsel %vm10637_vm6, %v6105_v59, %v6112_v13  ;;  %v6433_v35 = vsel %vm10823_vm8, %v6114_v5, %v6432_v43  ;;  %v5835_v20 = vadd.f32 %v5736_v29, %v5588_v22  ;;  %v13677_v40 = vld [vmem:[#allocation3 + $0x20] sm:$0xff]   ;;  %v16137_v59 = vld [vmem:[#allocation17_spill] sm:$0xff]  ;;  %v7312_v22 = vor.u32 %v7310_v42, %v7308_v9  ;;  %v16141_v42 = vld [vmem:[#allocation14_spill] sm:$0xff] }
 0x56e   : > { %6431 = vst.msk [vmem:[#allocation3 + $0x28] sm:$0xf] %vm16134_vm15, %v6113_v53  ;;  %9575 = vmatmul.msk.bf16.gmra.mxu3 %vm3494_vm13, %v13677_v40  ;;  %v16136_v13 = vld [vmem:[#allocation139_spill] sm:$0xff]  ;;  %v16139_v5 = vrot.slane %v13578_v15, 1  ;;  %v16142_v9 = vld [vmem:[#allocation121_spill] sm:$0xff]  ;;  %vm16248_vm15 = vmmov %vm16101_vm0 }
 0x56f   : > { %6434 = vst [vmem:[#allocation3 + $0x2c] sm:$0x1] %v6433_v35  ;;  %v5907_v18 = vadd.f32 %v16136_v13, %v5835_v20  ;;  %9505 = vmatmul.msk.bf16.gmra.mxu0 %vm3494_vm13, %v16137_v59  ;;  %v5670_v43 = vpop.f32.mrf.mxu3  ;;  %v13701_v61 = vsel %vm4133_vm4, %v7312_v22, %v13693_v6  ;;  %v5590_v56 = vadd.f32 %v16142_v9, %v16141_v42  ;;  %v906_v59 = vld [vmem:[#allocation3 + $0x44] sm:$0xf]  ;;  %v16143_v22 = vld [vmem:[#allocation141_spill] sm:$0xff] }
 0x570   : > { %9550 = vmatmul.msk.bf16.gmra.mxu2 %vm3494_vm13, %v13677_v40  ;;  %16138 = vst [vmem:[#allocation80_spill] sm:$0xff] %v13701_v61  ;;  %v13706_v29 = vsel %vm5147_vm11, %v16139_v5, %v8452_v50  ;;  %v907_v15 = vsel %vm10908_vm12, 0, %v906_v59  ;;  %v8454_v5 = vrot.slane %v13677_v40, 1 }
 0x571   : > { %v5947_v34 = vadd.f32 %v13476_v44, %v5907_v18  ;;  %16140 = vst [vmem:[#allocation49_spill] sm:$0xff] %v13706_v29  ;;  %v7688_v18 = vshll.u32 %v13677_v40, 16  ;;  %v7685_v29 = vshrl.u32 %v13626_v4, 16 }
 0x572   : > { %908 = vst [vmem:[#allocation3 + $0x44] sm:$0xf] %v907_v15  ;;  %v13724_v2 = vsel %vm5147_vm11, %v8452_v50, %v8454_v5 }
 0x573   : > { %v5983_v46 = vmax.f32 %v5947_v34, 0.0  ;;  %v7687_v52 = vor.u32 %v7685_v29, %v7683_v24  ;;  %16145 = vst [vmem:[#allocation84_spill] sm:$0xff] %v13724_v2  ;;  %v852_v24 = vld [vmem:[#allocation3 + $0x48] sm:$0x1] }
 0x574   : > { %v5738_v53 = vpop.f32.mrf.mxu0  ;;  %v853_v50 = vsel %vm10823_vm8, 0, %v852_v24  ;;  %v16148_v29 = vld [vmem:[#allocation112_spill] sm:$0xff] }
 0x575   : > { %v6019_v35 = vpack.c.bf16 %v5983_v46, %v5983_v46  ;;  %v5836_v20 = vadd.f32 %v5738_v53, %v5590_v56  ;;  %v13710_v13 = vld [vmem:[#allocation3 + $0x24] sm:$0xff]   ;;  %v6435_v46 = vld [vmem:[#allocation3 + $0x30] sm:$0xf]  ;;  %v7690_v53 = vrot.slane %v7688_v18, 1  ;;  %854 = vst [vmem:[#allocation3 + $0x48] sm:$0x1] %v853_v50 }
 0x576   : > { %9521 = vmatmul.msk.bf16.gmra.mxu1 %vm3494_vm13, %v13710_v13 }
 0x577   : > { %v6116_v43 = vshrl.u32 %v6019_v35, 16  ;;  %v5908_v45 = vadd.f32 %v16143_v22, %v5836_v20  ;;  %v13719_v34 = vpop.f32.mrf.mxu3  ;;  %v6119_v9 = vshll.u32 %v6019_v35, 16 }
 0x578   : > { %16144 = vst [vmem:[#allocation129_spill] sm:$0xff] %v13719_v34  ;;  %v13728_v34 = vld [vmem:[#allocation3 + $0x28] sm:$0xff]  }
 0x579   : > { %v6118_v42 = vrot.slane %v6116_v43, 7  ;;  %v5948_v56 = vadd.f32 %v13476_v44, %v5908_v45  ;;  %v13733_v45 = vsel %vm4133_vm4, %v7687_v52, %v7690_v53  ;;  %v7692_v52 = vshrl.u32 %v13677_v40, 16 }
 0x57a   : > { %16146 = vst [vmem:[#allocation30_spill] sm:$0xff] %v13733_v45  ;;  %v7317_v40 = vshrl.u32 %v13649_v47, 16 }
 0x57b   : > { %v6121_v20 = vor.u32 %v6119_v9, %v6118_v42  ;;  %v5984_v22 = vmax.f32 %v5948_v56, 0.0 }
 0x57c   : > { %v5741_v61 = vpop.f32.mrf.mxu0 }
 0x57d   : > { %v6436_v59 = vsel %vm10908_vm12, %v6121_v20, %v6435_v46  ;;  %v6020_v15 = vpack.c.bf16 %v5984_v22, %v5984_v22  ;;  %v16147_v61 = vld [vmem:[#allocation15_spill] sm:$0xff]  ;;  %v6439_v46 = vld [vmem:[#allocation3 + $0x38] sm:$0x1]  ;;  %v7695_v20 = vshll.u32 %v13728_v34, 16  ;;  %v15662_v22 = vrot.slane %v13728_v34, 1 }
 0x57e   : > { %6437 = vst [vmem:[#allocation3 + $0x30] sm:$0xf] %v6436_v59  ;;  %9576 = vmatmul.msk.bf16.gmra.mxu3 %vm3494_vm13, %v13728_v34  ;;  %v5594_v35 = vadd.f32 %v16148_v29, %v16147_v61  ;;  %v7694_v29 = vor.u32 %v7692_v52, %v7690_v53  ;;  %v16151_v53 = vrot.slane %v13649_v47, 1 }
 0x57f   : > { %v6124_v4 = vshrl.u32 %v6020_v15, 16  ;;  %9506 = vmatmul.msk.bf16.gmra.mxu0 %vm3494_vm13, %v13289_v14  ;;  %v5674_v18 = vpop.f32.mrf.mxu3  ;;  %v6127_v9 = vshll.u32 %v6020_v15, 16  ;;  %v6122_v14 = vrot.slane %v6118_v42, 4  ;;  %v7320_v15 = vshll.u32 %v13710_v13, 16 }
 0x580   : > { %9551 = vmatmul.msk.bf16.gmra.mxu2 %vm3494_vm13, %v13728_v34  ;;  %v13745_v56 = vadd.f32 %v5674_v18, %v13634_v32  ;;  %v13751_v50 = vrot.slane %v7695_v20, 1  ;;  %v13757_v32 = vsel %vm5147_vm11, %v8454_v5, %v15662_v22  ;;  %v7319_v20 = vor.u32 %v7317_v40, %v13693_v6  ;;  %v909_v40 = vld [vmem:[#allocation3 + $0x50] sm:$0xf] }
 0x581   : > { %v6126_v43 = vrot.slane %v6124_v4, 7  ;;  %v8215_v4 = vrot.slane %v13710_v13, 1  ;;  %16150 = vst [vmem:[#allocation8_spill] sm:$0xff] %v13757_v32 }
 0x582   : > { %16149 = vst [vmem:[#allocation125_spill] sm:$0xff] %v13745_v56  ;;  %v13773_v5 = vsel %vm4133_vm4, %v7694_v29, %v13751_v50 }
 0x583   : > { %v6129_v59 = vor.u32 %v6127_v9, %v6126_v43  ;;  %v6131_v24 = vrot.slane %v6126_v43, 4  ;;  %v13768_v52 = vsel %vm5147_vm11, %v16151_v53, %v8215_v4  ;;  %16153 = vst [vmem:[#allocation5_spill] sm:$0xff] %v13773_v5 }
 0x584   : > { %v5742_v61 = vpop.f32.mrf.mxu0 }
 0x585   : > { %v6130_v42 = vsel %vm10637_vm6, %v6122_v14, %v6129_v59  ;;  %v6440_v18 = vsel %vm10823_vm8, %v6131_v24, %v6439_v46  ;;  %v5837_v43 = vadd.f32 %v5742_v61, %v5594_v35  ;;  %v13763_v9 = vld [vmem:[#allocation3 + $0x2c] sm:$0xff]   ;;  %v7322_v14 = vrot.slane %v7320_v15, 1  ;;  %v16154_v59 = vld [vmem:[#allocation96_spill] sm:$0xff]  ;;  %v16156_v61 = vld [vmem:[#allocation7_spill] sm:$0xff] }
 0x586   : > { %6438 = vst.msk [vmem:[#allocation3 + $0x34] sm:$0xf] %vm16152_vm5, %v6130_v42  ;;  %9522 = vmatmul.msk.bf16.gmra.mxu1 %vm3494_vm13, %v13763_v9  ;;  %v16157_v42 = vld [vmem:[#allocation61_spill] sm:$0xff]  ;;  %vm16256_vm5 = vmmov %vm16101_vm0 }
 0x587   : > { %6441 = vst [vmem:[#allocation3 + $0x38] sm:$0x1] %v6440_v18  ;;  %v5909_v46 = vadd.f32 %v16154_v59, %v5837_v43  ;;  %v13780_v47 = vsel %vm4133_vm4, %v7319_v20, %v7322_v14  ;;  %v5676_v35 = vpop.f32.mrf.mxu3  ;;  %v5597_v53 = vadd.f32 %v16157_v42, %v16156_v61  ;;  %v16158_v43 = vld [vmem:[#allocation144_spill] sm:$0xff]  ;;  %v910_v59 = vsel %vm10908_vm12, 0, %v909_v40 }
 0x588   : > { %16155 = vst [vmem:[#allocation55_spill] sm:$0xff] %v13780_v47 }
 0x589   : > { %v5949_v24 = vadd.f32 %v13476_v44, %v5909_v46  ;;  %911 = vst [vmem:[#allocation3 + $0x50] sm:$0xf] %v910_v59 }
 0x58b   : > { %v5985_v29 = vmax.f32 %v5949_v24, 0.0  ;;  %v6442_v24 = vld [vmem:[#allocation3 + $0x3c] sm:$0xf] }
 0x58c   : > { %v5745_v22 = vpop.f32.mrf.mxu0 }
 0x58d   : > { %v6021_v32 = vpack.c.bf16 %v5985_v29, %v5985_v29  ;;  %v5838_v6 = vadd.f32 %v5745_v22, %v5597_v53  ;;  %v13785_v15 = vld [vmem:[#allocation3 + $0x30] sm:$0xff]   ;;  %v8217_v53 = vrot.slane %v13763_v9, 1 }
 0x58e   : > { %9577 = vmatmul.msk.bf16.gmra.mxu3 %vm3494_vm13, %v13785_v15  ;;  %v8458_v47 = vrot.slane %v13785_v15, 1 }
 0x58f   : > { %v6133_v18 = vshrl.u32 %v6021_v32, 16  ;;  %v5910_v20 = vadd.f32 %v16158_v43, %v5838_v6  ;;  %9507 = vmatmul.msk.bf16.gmra.mxu0 %vm3494_vm13, %v13309_v30  ;;  %v6136_v35 = vshll.u32 %v6021_v32, 16  ;;  %v7324_v6 = vshrl.u32 %v13710_v13, 16  ;;  %v13802_v32 = vld [vmem:[#allocation3 + $0x34] sm:$0xff]  }
 0x590   : > { %9552 = vmatmul.msk.bf16.gmra.mxu2 %vm3494_vm13, %v13785_v15  ;;  %v7327_v30 = vshll.u32 %v13763_v9, 16  ;;  %v13805_v43 = vsel %vm5147_vm11, %v8215_v4, %v8217_v53  ;;  %v16164_v56 = vrot.slane %v13802_v32, 1 }
 0x591   : > { %v6135_v46 = vrot.slane %v6133_v18, 7  ;;  %v5950_v22 = vadd.f32 %v13476_v44, %v5910_v20  ;;  %v7326_v20 = vor.u32 %v7324_v6, %v7322_v14  ;;  %v6446_v14 = vld [vmem:[#allocation3 + $0x44] sm:$0x1]  ;;  %v7699_v6 = vshrl.u32 %v13728_v34, 16 }
 0x592   : > { %v7329_v59 = vrot.slane %v7327_v30, 1  ;;  %v7702_v30 = vshll.u32 %v13785_v15, 16 }
 0x593   : > { %v6138_v61 = vor.u32 %v6136_v35, %v6135_v46  ;;  %v5986_v42 = vmax.f32 %v5950_v22, 0.0  ;;  %v855_v22 = vld [vmem:[#allocation3 + $0x54] sm:$0x1] }
 0x594   : > { %v5747_v29 = vpop.f32.mrf.mxu0  ;;  %v856_v13 = vsel %vm10823_vm8, 0, %v855_v22 }
 0x595   : > { %v6443_v40 = vsel %vm10908_vm12, %v6138_v61, %v6442_v24  ;;  %v6022_v18 = vpack.c.bf16 %v5986_v42, %v5986_v42  ;;  %v13812_v29 = vsel %vm4133_vm4, %v7326_v20, %v7329_v59  ;;  %v16160_v24 = vld [vmem:[#allocation41_spill] sm:$0xff]  ;;  %857 = vst [vmem:[#allocation3 + $0x54] sm:$0x1] %v856_v13  ;;  %v7334_v20 = vshll.u32 %v13802_v32, 16 }
 0x596   : > { %6444 = vst [vmem:[#allocation3 + $0x3c] sm:$0xf] %v6443_v40  ;;  %9523 = vmatmul.msk.bf16.gmra.mxu1 %vm3494_vm13, %v13802_v32  ;;  %v16161_v61 = vld [vmem:[#allocation117_spill] sm:$0xff]  ;;  %v6139_v40 = vrot.slane %v6135_v46, 4  ;;  %v16162_v46 = vrot.slane %v13728_v34, 1 }
 0x597   : > { %v6141_v35 = vshrl.u32 %v6022_v18, 16  ;;  %16159 = vst [vmem:[#allocation131_spill] sm:$0xff] %v13812_v29  ;;  %v5601_v42 = vadd.f32 %v16161_v61, %v16160_v24  ;;  %v6144_v4 = vshll.u32 %v6022_v18, 16  ;;  %v7701_v24 = vor.u32 %v7699_v6, %v13751_v50 }
 0x598   : > { %v7331_v18 = vshrl.u32 %v13763_v9, 16  ;;  %v13826_v13 = vsel %vm5147_vm11, %v16162_v46, %v8458_v47  ;;  %v13837_v50 = vsel %vm5147_vm11, %v8217_v53, %v16164_v56 }
 0x599   : > { %v6143_v2 = vrot.slane %v6141_v35, 7  ;;  %v7704_v35 = vrot.slane %v7702_v30, 1  ;;  %16163 = vst [vmem:[#allocation87_spill] sm:$0xff] %v13826_v13 }
 0x59a   : > { %v7333_v9 = vor.u32 %v7331_v18, %v7329_v59  ;;  %v16169_v18 = vld [vmem:[#allocation111_spill] sm:$0xff] }
 0x59b   : > { %v6146_v5 = vor.u32 %v6144_v4, %v6143_v2  ;;  %v6148_v45 = vrot.slane %v6143_v2, 4  ;;  %v13843_v34 = vsel %vm4133_vm4, %v7701_v24, %v7704_v35  ;;  %v912_v24 = vld [vmem:[#allocation3 + $0x5c] sm:$0xf] }
 0x59c   : > { %v5749_v29 = vpop.f32.mrf.mxu0 }
 0x59d   : > { %v6147_v61 = vsel %vm10637_vm6, %v6139_v40, %v6146_v5  ;;  %v6447_v2 = vsel %vm10823_vm8, %v6148_v45, %v6446_v14  ;;  %v5839_v4 = vadd.f32 %v5749_v29, %v5601_v42  ;;  %v13832_v22 = vld [vmem:[#allocation3 + $0x38] sm:$0xff]   ;;  %v13845_v5 = vrot.slane %v7334_v20, 1 }
 0x59e   : > { %6445 = vst.msk [vmem:[#allocation3 + $0x40] sm:$0xf] %vm16165_vm7, %v6147_v61  ;;  %9578 = vmatmul.msk.bf16.gmra.mxu3 %vm3494_vm13, %v13832_v22  ;;  %v16166_v45 = vld [vmem:[#allocation19_spill] sm:$0xff]  ;;  %v16168_v42 = vld [vmem:[#allocation18_spill] sm:$0xff]  ;;  %v913_v61 = vsel %vm10908_vm12, 0, %v912_v24  ;;  %vm16264_vm7 = vmmov %vm16101_vm0 }
 0x59f   : > { %6448 = vst [vmem:[#allocation3 + $0x44] sm:$0x1] %v6447_v2  ;;  %v5911_v29 = vadd.f32 %v16166_v45, %v5839_v4  ;;  %9508 = vmatmul.msk.bf16.gmra.mxu0 %vm3494_vm13, %v13328_v62  ;;  %v13852_v56 = vsel %vm4133_vm4, %v7333_v9, %v13845_v5  ;;  %v5603_v59 = vadd.f32 %v13282_v0, %v16168_v42  ;;  %v6449_v9 = vld [vmem:[#allocation3 + $0x48] sm:$0xf]  ;;  %v7706_v45 = vshrl.u32 %v13785_v15, 16 }
 0x5a0   : > { %16167 = vst [vmem:[#allocation36_spill] sm:$0xff] %v13852_v56  ;;  %9553 = vmatmul.msk.bf16.gmra.mxu2 %vm3494_vm13, %v13832_v22 }
 0x5a1   : > { %v5951_v53 = vadd.f32 %v13476_v44, %v5911_v29  ;;  %914 = vst [vmem:[#allocation3 + $0x5c] sm:$0xf] %v913_v61  ;;  %v7709_v29 = vshll.u32 %v13832_v22, 16  ;;  %v16171_v61 = vld [vmem:[#allocation21_spill] sm:$0xff] }
 0x5a3   : > { %v5987_v40 = vmax.f32 %v5951_v53, 0.0  ;;  %v8460_v53 = vrot.slane %v13832_v22, 1 }
 0x5a4   : > { %v5751_v14 = vpop.f32.mrf.mxu0 }
 0x5a5   : > { %v6023_v6 = vpack.c.bf16 %v5987_v40, %v5987_v40  ;;  %v5840_v30 = vadd.f32 %v5751_v14, %v5603_v59  ;;  %v13859_v20 = vld [vmem:[#allocation3 + $0x3c] sm:$0xff]   ;;  %v7708_v14 = vor.u32 %v7706_v45, %v7704_v35 }
 0x5a6   : > { %9524 = vmatmul.msk.bf16.gmra.mxu1 %vm3494_vm13, %v13859_v20  ;;  %v858_v35 = vld [vmem:[#allocation3 + $0x60] sm:$0x1] }
 0x5a7   : > { %v6150_v62 = vshrl.u32 %v6023_v6, 16  ;;  %v5912_v46 = vadd.f32 %v16169_v18, %v5840_v30  ;;  %v6153_v4 = vshll.u32 %v6023_v6, 16  ;;  %v7711_v30 = vrot.slane %v7709_v29, 1  ;;  %v6453_v29 = vld [vmem:[#allocation3 + $0x50] sm:$0x1] }
 0x5a8   : > { %v13871_v18 = vsel %vm5147_vm11, %v8458_v47, %v8460_v53  ;;  %v859_v47 = vsel %vm10823_vm8, 0, %v858_v35 }
 0x5a9   : > { %v6152_v2 = vrot.slane %v6150_v62, 7  ;;  %v5952_v0 = vadd.f32 %v13476_v44, %v5912_v46  ;;  %16170 = vst [vmem:[#allocation127_spill] sm:$0xff] %v13871_v18  ;;  %v13875_v62 = vld [vmem:[#allocation3 + $0x40] sm:$0xff]   ;;  %v13880_v15 = vsel %vm4133_vm4, %v7708_v14, %v7711_v30 }
 0x5aa   : > { %860 = vst [vmem:[#allocation3 + $0x60] sm:$0x1] %v859_v47 }
 0x5ab   : > { %v6155_v42 = vor.u32 %v6153_v4, %v6152_v2  ;;  %v5988_v59 = vmax.f32 %v5952_v0, 0.0  ;;  %v5607_v4 = vadd.f32 %v13303_v16, %v16171_v61  ;;  %v6156_v45 = vrot.slane %v6152_v2, 4 }
 0x5ac   : > { %v5754_v40 = vpop.f32.mrf.mxu0  ;;  %v7341_v16 = vshll.u32 %v13859_v20, 16  ;;  %v7338_v2 = vshrl.u32 %v13802_v32, 16 }
 0x5ad   : > { %v6450_v6 = vsel %vm10908_vm12, %v6155_v42, %v6449_v9  ;;  %v6024_v24 = vpack.c.bf16 %v5988_v59, %v5988_v59  ;;  %v7713_v42 = vshrl.u32 %v13832_v22, 16  ;;  %v7716_v59 = vshll.u32 %v13875_v62, 16 }
 0x5ae   : > { %6451 = vst [vmem:[#allocation3 + $0x48] sm:$0xf] %v6450_v6  ;;  %9579 = vmatmul.msk.bf16.gmra.mxu3 %vm3494_vm13, %v13875_v62  ;;  %v8221_v6 = vrot.slane %v13859_v20, 1 }
 0x5af   : > { %v6158_v46 = vshrl.u32 %v6024_v24, 16  ;;  %9509 = vmatmul.msk.bf16.gmra.mxu0 %vm3494_vm13, %v13351_v48  ;;  %v6161_v9 = vshll.u32 %v6024_v24, 16  ;;  %v15668_v48 = vrot.slane %v13875_v62, 1  ;;  %v7715_v35 = vor.u32 %v7713_v42, %v7711_v30 }
 0x5b0   : > { %9554 = vmatmul.msk.bf16.gmra.mxu2 %vm3494_vm13, %v13875_v62  ;;  %v13895_v61 = vrot.slane %v7716_v59, 1  ;;  %v16173_v30 = vrot.slane %v13802_v32, 1  ;;  %v7340_v59 = vor.u32 %v7338_v2, %v13845_v5 }
 0x5b1   : > { %v6160_v0 = vrot.slane %v6158_v46, 7  ;;  %v13901_v22 = vsel %vm5147_vm11, %v8460_v53, %v15668_v48 }
 0x5b2   : > { %16172 = vst [vmem:[#allocation59_spill] sm:$0xff] %v13901_v22  ;;  %v13912_v42 = vsel %vm5147_vm11, %v16173_v30, %v8221_v6  ;;  %v13917_v53 = vsel %vm4133_vm4, %v7715_v35, %v13895_v61 }
 0x5b3   : > { %v6163_v40 = vor.u32 %v6161_v9, %v6160_v0  ;;  %v6165_v14 = vrot.slane %v6160_v0, 4  ;;  %v7029_v24 = vpop.f32.mrf.mxu2  ;;  %16174 = vst [vmem:[#allocation88_spill] sm:$0xff] %v13917_v53 }
 0x5b4   : > { %v5755_v46 = vpop.f32.mrf.mxu0 }
 0x5b5   : > { %v6164_v47 = vsel %vm10637_vm6, %v6156_v45, %v6163_v40  ;;  %v6454_v0 = vsel %vm10823_vm8, %v6165_v14, %v6453_v29  ;;  %v5841_v9 = vadd.f32 %v5755_v46, %v5607_v4  ;;  %v13907_v18 = vld [vmem:[#allocation3 + $0x44] sm:$0xff]   ;;  %v7343_v45 = vrot.slane %v7341_v16, 1  ;;  %v16175_v40 = vld [vmem:[#allocation11_spill] sm:$0xff]  ;;  %v16177_v14 = vld [vmem:[#allocation54_spill] sm:$0xff] }
 0x5b6   : > { %6452 = vst.msk [vmem:[#allocation3 + $0x4c] sm:$0xf] %vm16101_vm0, %v6164_v47  ;;  %9525 = vmatmul.msk.bf16.gmra.mxu1 %vm3494_vm13, %v13907_v18  ;;  %v5610_v46 = vadd.f32 %v13321_v31, %v16177_v14  ;;  %v8223_v48 = vrot.slane %v13907_v18, 1  ;;  %v7348_v22 = vshll.u32 %v13907_v18, 16 }
 0x5b7   : > { %6455 = vst [vmem:[#allocation3 + $0x50] sm:$0x1] %v6454_v0  ;;  %v5913_v29 = vadd.f32 %v16175_v40, %v5841_v9  ;;  %v13924_v32 = vsel %vm4133_vm4, %v7340_v59, %v7343_v45  ;;  %v915_v0 = vld [vmem:[#allocation3 + $0x68] sm:$0xf] }
 0x5b8   : > { %16176 = vst [vmem:[#allocation91_spill] sm:$0xff] %v13924_v32  ;;  %v16178_v59 = vld [vmem:[#allocation104_spill] sm:$0xff]  ;;  %v916_v31 = vsel %vm10908_vm12, 0, %v915_v0 }
 0x5b9   : > { %v5953_v4 = vadd.f32 %v13476_v44, %v5913_v29  ;;  %917 = vst [vmem:[#allocation3 + $0x68] sm:$0xf] %v916_v31 }
 0x5bb   : > { %v5989_v47 = vmax.f32 %v5953_v4, 0.0  ;;  %v13929_v30 = vpop.f32.mrf.mxu2 }
 0x5bc   : > { %v5758_v35 = vpop.f32.mrf.mxu0 }
 0x5bd   : > { %v6025_v5 = vpack.c.bf16 %v5989_v47, %v5989_v47  ;;  %v5842_v16 = vadd.f32 %v5758_v35, %v5610_v46  ;;  %v13931_v2 = vld [vmem:[#allocation3 + $0x48] sm:$0xff]   ;;  %v6456_v46 = vld [vmem:[#allocation3 + $0x54] sm:$0xf] }
 0x5be   : > { %9580 = vmatmul.msk.bf16.gmra.mxu3 %vm3494_vm13, %v13931_v2 }
 0x5bf   : > { %v6167_v9 = vshrl.u32 %v6025_v5, 16  ;;  %v5914_v40 = vadd.f32 %v16178_v59, %v5842_v16  ;;  %9510 = vmatmul.msk.bf16.gmra.mxu0 %vm3494_vm13, %v13367_v63  ;;  %v6170_v4 = vshll.u32 %v6025_v5, 16  ;;  %v7345_v63 = vshrl.u32 %v13859_v20, 16  ;;  %v861_v20 = vld [vmem:[#allocation3 + $0x6c] sm:$0x1] }
 0x5c0   : > { %9555 = vmatmul.msk.bf16.gmra.mxu2 %vm3494_vm13, %v13931_v2 }
 0x5c1   : > { %v6169_v29 = vrot.slane %v6167_v9, 7  ;;  %v5954_v14 = vadd.f32 %v13476_v44, %v5914_v40  ;;  %v13948_v44 = vld [vmem:[#allocation3 + $0x4c] sm:$0xff]   ;;  %v13951_v40 = vsel %vm5147_vm11, %v8221_v6, %v8223_v48 }
 0x5c3   : > { %v6172_v47 = vor.u32 %v6170_v4, %v6169_v29  ;;  %v5990_v35 = vmax.f32 %v5954_v14, 0.0  ;;  %v7034_v59 = vpop.f32.mrf.mxu2  ;;  %v6811_v9 = vpop.f32.mrf.mxu1  ;;  %v7347_v4 = vor.u32 %v7345_v63, %v7343_v45  ;;  %v7350_v14 = vrot.slane %v7348_v22, 1  ;;  %v6460_v45 = vld [vmem:[#allocation3 + $0x5c] sm:$0x1] }
 0x5c4   : > { %v5760_v16 = vpop.f32.mrf.mxu0  ;;  %v13953_v31 = vadd.f32 %v7029_v24, %v6811_v9  ;;  %v6173_v24 = vrot.slane %v6169_v29, 4  ;;  %v7720_v22 = vshrl.u32 %v13875_v62, 16  ;;  %v7723_v63 = vshll.u32 %v13931_v2, 16 }
 0x5c5   : > { %v6457_v0 = vsel %vm10908_vm12, %v6172_v47, %v6456_v46  ;;  %v6026_v5 = vpack.c.bf16 %v5990_v35, %v5990_v35  ;;  %v862_v46 = vsel %vm10823_vm8, 0, %v861_v20  ;;  %v13960_v47 = vsel %vm4133_vm4, %v7347_v4, %v7350_v14  ;;  %v16180_v35 = vld [vmem:[#allocation62_spill] sm:$0xff] }
 0x5c6   : > { %6458 = vst [vmem:[#allocation3 + $0x54] sm:$0xf] %v6457_v0  ;;  %9526 = vmatmul.msk.bf16.gmra.mxu1 %vm3494_vm13, %v13948_v44  ;;  %v5614_v6 = vadd.f32 %v13337_v7, %v16180_v35  ;;  %v8464_v9 = vrot.slane %v13931_v2, 1  ;;  %v7355_v4 = vshll.u32 %v13948_v44, 16  ;;  %v7722_v7 = vor.u32 %v7720_v22, %v13895_v61 }
 0x5c7   : > { %v6175_v16 = vshrl.u32 %v6026_v5, 16  ;;  %16179 = vst [vmem:[#allocation42_spill] sm:$0xff] %v13960_v47  ;;  %v6178_v0 = vshll.u32 %v6026_v5, 16  ;;  %v7725_v5 = vrot.slane %v7723_v63, 1  ;;  %v7352_v29 = vshrl.u32 %v13907_v18, 16 }
 0x5c8   : > { %863 = vst [vmem:[#allocation3 + $0x6c] sm:$0x1] %v862_v46  ;;  %v16183_v61 = vrot.slane %v13948_v44, 1 }
 0x5c9   : > { %v6177_v59 = vrot.slane %v6175_v16, 7  ;;  %v16181_v16 = vrot.slane %v13875_v62, 1  ;;  %v7354_v62 = vor.u32 %v7352_v29, %v7350_v14  ;;  %v16187_v14 = vld [vmem:[#allocation33_spill] sm:$0xff] }
 0x5ca   : > { %v13985_v22 = vsel %vm5147_vm11, %v8223_v48, %v16183_v61 }
 0x5cb   : > { %v6180_v13 = vor.u32 %v6178_v0, %v6177_v59  ;;  %v6182_v32 = vrot.slane %v6177_v59, 4  ;;  %v7035_v53 = vpop.f32.mrf.mxu2  ;;  %v13974_v46 = vsel %vm5147_vm11, %v16181_v16, %v8464_v9  ;;  %v6813_v20 = vpop.f32.mrf.mxu1 }
 0x5cc   : > { %v5762_v47 = vpop.f32.mrf.mxu0  ;;  %16182 = vst [vmem:[#allocation23_spill] sm:$0xff] %v13974_v46  ;;  %v13989_v18 = vadd.f32 %v13929_v30, %v6813_v20  ;;  %v14008_v30 = vld [vmem:[%s15604_s7] ss:$0 sm:$0xff] }
 0x5cd   : > { %v6181_v35 = vsel %vm10637_vm6, %v6173_v24, %v6180_v13  ;;  %v6461_v59 = vsel %vm10823_vm8, %v6182_v32, %v6460_v45  ;;  %v5843_v0 = vadd.f32 %v5762_v47, %v5614_v6  ;;  %v13980_v56 = vld [vmem:[#allocation3 + $0x50] sm:$0xff]   ;;  %v13994_v13 = vsel %vm4133_vm4, %v7722_v7, %v7725_v5 }
 0x5ce   : > { %6459 = vst.msk [vmem:[#allocation3 + $0x58] sm:$0xf] %vm16184_vm1, %v6181_v35  ;;  %9581 = vmatmul.msk.bf16.gmra.mxu3 %vm3494_vm13, %v13980_v56  ;;  %v13996_v32 = vrot.slane %v7355_v4, 1  ;;  %v16185_v47 = vld [vmem:[#allocation25_spill] sm:$0xff]  ;;  %v5616_v45 = vadd.f32 %v13346_v25, %v16187_v14  ;;  %v918_v35 = vld [vmem:[#allocation3 + $0x74] sm:$0xf]  ;;  %vm16292_vm1 = vmmov %vm16101_vm0 }
 0x5cf   : > { %6462 = vst [vmem:[#allocation3 + $0x5c] sm:$0x1] %v6461_v59  ;;  %v5915_v6 = vadd.f32 %v16185_v47, %v5843_v0  ;;  %9511 = vmatmul.msk.bf16.gmra.mxu0 %vm3494_vm13, %v13385_v3  ;;  %v16188_v0 = vld [vmem:[#allocation107_spill] sm:$0xff]  ;;  %v7727_v14 = vshrl.u32 %v13931_v2, 16 }
 0x5d0   : > { %v14003_v48 = vsel %vm4133_vm4, %v7354_v62, %v13996_v32  ;;  %9556 = vmatmul.msk.bf16.gmra.mxu2 %vm3494_vm13, %v13980_v56  ;;  %v919_v62 = vsel %vm10908_vm12, 0, %v918_v35 }
 0x5d1   : > { %16186 = vst [vmem:[#allocation66_spill] sm:$0xff] %v14003_v48  ;;  %v5955_v24 = vadd.f32 %v14008_v30, %v5915_v6  ;;  %v7729_v46 = vor.u32 %v7727_v14, %v7725_v5 }
 0x5d2   : > { %920 = vst [vmem:[#allocation3 + $0x74] sm:$0xf] %v919_v62 }
 0x5d3   : > { %v5991_v63 = vmax.f32 %v5955_v24, 0.0  ;;  %v14015_v3 = vpop.f32.mrf.mxu2  ;;  %v6816_v29 = vpop.f32.mrf.mxu1  ;;  %v6463_v24 = vld [vmem:[#allocation3 + $0x60] sm:$0xf] }
 0x5d4   : > { %v5764_v20 = vpop.f32.mrf.mxu0 }
 0x5d5   : > { %v6027_v4 = vpack.c.bf16 %v5991_v63, %v5991_v63  ;;  %v5844_v7 = vadd.f32 %v5764_v20, %v5616_v45  ;;  %v14017_v16 = vld [vmem:[#allocation3 + $0x54] sm:$0xff]   ;;  %v7730_v45 = vshll.u32 %v13980_v56, 16  ;;  %v8466_v63 = vrot.slane %v13980_v56, 1 }
 0x5d6   : > { %9527 = vmatmul.msk.bf16.gmra.mxu1 %vm3494_vm13, %v14017_v16  ;;  %v14033_v62 = vld [vmem:[#allocation3 + $0x58] sm:$0xff]  }
 0x5d7   : > { %v6184_v59 = vshrl.u32 %v6027_v4, 16  ;;  %v5916_v61 = vadd.f32 %v16188_v0, %v5844_v7  ;;  %v6187_v47 = vshll.u32 %v6027_v4, 16  ;;  %v7732_v48 = vrot.slane %v7730_v45, 1 }
 0x5d8   : > { %v14029_v35 = vsel %vm5147_vm11, %v8464_v9, %v8466_v63  ;;  %v864_v9 = vld [vmem:[#allocation3 + $0x78] sm:$0x1] }
 0x5d9   : > { %v6186_v25 = vrot.slane %v6184_v59, 7  ;;  %v5956_v6 = vadd.f32 %v14008_v30, %v5916_v61  ;;  %16189 = vst [vmem:[#allocation92_spill] sm:$0xff] %v14029_v35 }
 0x5db   : > { %v6189_v20 = vor.u32 %v6187_v47, %v6186_v25  ;;  %v5992_v7 = vmax.f32 %v5956_v6, 0.0  ;;  %v7040_v0 = vpop.f32.mrf.mxu2  ;;  %v6817_v61 = vpop.f32.mrf.mxu1  ;;  %v14040_v47 = vsel %vm4133_vm4, %v7729_v46, %v7732_v48  ;;  %v865_v6 = vsel %vm10823_vm8, 0, %v864_v9 }
 0x5dc   : > { %v5767_v29 = vpop.f32.mrf.mxu0  ;;  %v14035_v2 = vadd.f32 %v7035_v53, %v6817_v61  ;;  %16190 = vst [vmem:[#allocation46_spill] sm:$0xff] %v14040_v47  ;;  %v7734_v46 = vshrl.u32 %v13980_v56, 16  ;;  %v7737_v0 = vshll.u32 %v14033_v62, 16  ;;  %v7359_v56 = vshrl.u32 %v13948_v44, 16 }
 0x5dd   : > { %v6464_v4 = vsel %vm10908_vm12, %v6189_v20, %v6463_v24  ;;  %v6028_v59 = vpack.c.bf16 %v5992_v7, %v5992_v7  ;;  %v16191_v24 = vld [vmem:[#allocation47_spill] sm:$0xff]  ;;  %866 = vst [vmem:[#allocation3 + $0x78] sm:$0x1] %v865_v6  ;;  %v6190_v7 = vrot.slane %v6186_v25, 4  ;;  %v6467_v29 = vld [vmem:[#allocation3 + $0x68] sm:$0x1] }
 0x5de   : > { %6465 = vst [vmem:[#allocation3 + $0x60] sm:$0xf] %v6464_v4  ;;  %9582 = vmatmul.msk.bf16.gmra.mxu3 %vm3494_vm13, %v14033_v62  ;;  %v5620_v14 = vadd.f32 %v13362_v54, %v16191_v24  ;;  %v15674_v4 = vrot.slane %v14033_v62, 1  ;;  %v7736_v6 = vor.u32 %v7734_v46, %v7732_v48  ;;  %v14058_v35 = vrot.slane %v7737_v0, 1  ;;  %v16197_v0 = vld [vmem:[#allocation22_spill] sm:$0xff] }
 0x5df   : > { %v6192_v5 = vshrl.u32 %v6028_v59, 16  ;;  %9512 = vmatmul.msk.bf16.gmra.mxu0 %vm3494_vm13, %v13415_v55  ;;  %v6195_v53 = vshll.u32 %v6028_v59, 16  ;;  %v8227_v59 = vrot.slane %v14017_v16, 1  ;;  %v16194_v48 = vrot.slane %v13948_v44, 1 }
 0x5e0   : > { %9557 = vmatmul.msk.bf16.gmra.mxu2 %vm3494_vm13, %v14033_v62 }
 0x5e1   : > { %v6194_v45 = vrot.slane %v6192_v5, 7  ;;  %v7163_v20 = vpop.f32.mrf.mxu3  ;;  %v7362_v5 = vshll.u32 %v14017_v16, 16  ;;  %v14075_v46 = vsel %vm5147_vm11, %v16194_v48, %v8227_v59 }
 0x5e2   : > { %v14052_v55 = vadd.f32 %v7163_v20, %v13953_v31  ;;  %v14064_v31 = vsel %vm5147_vm11, %v8466_v63, %v15674_v4 }
 0x5e3   : > { %v6197_v61 = vor.u32 %v6195_v53, %v6194_v45  ;;  %v6199_v54 = vrot.slane %v6194_v45, 4  ;;  %v7042_v24 = vpop.f32.mrf.mxu2  ;;  %16193 = vst [vmem:[#allocation68_spill] sm:$0xff] %v14064_v31  ;;  %v6820_v20 = vpop.f32.mrf.mxu1 }
 0x5e4   : > { %16192 = vst [vmem:[#allocation128_spill] sm:$0xff] %v14052_v55  ;;  %v5768_v9 = vpop.f32.mrf.mxu0  ;;  %v14079_v63 = vadd.f32 %v14015_v3, %v6820_v20 }
 0x5e5   : > { %v6198_v25 = vsel %vm10637_vm6, %v6190_v7, %v6197_v61  ;;  %v6468_v45 = vsel %vm10823_vm8, %v6199_v54, %v6467_v29  ;;  %v5845_v53 = vadd.f32 %v5768_v9, %v5620_v14  ;;  %v14070_v55 = vld [vmem:[#allocation3 + $0x5c] sm:$0xff]   ;;  %v14083_v7 = vsel %vm4133_vm4, %v7736_v6, %v14058_v35  ;;  %v16200_v6 = vld [vmem:[#allocation44_spill] sm:$0xff] }
 0x5e6   : > { %6466 = vst.msk [vmem:[#allocation3 + $0x64] sm:$0xf] %vm16195_vm2, %v6198_v25  ;;  %v7361_v29 = vor.u32 %v7359_v56, %v13996_v32  ;;  %v7364_v14 = vrot.slane %v7362_v5, 1  ;;  %9528 = vmatmul.msk.bf16.gmra.mxu1 %vm3494_vm13, %v14070_v55  ;;  %v5623_v25 = vadd.f32 %v13378_v58, %v16200_v6  ;;  %vm16296_vm2 = vmmov %vm16112_vm10 }
 0x5e7   : > { %16196 = vst [vmem:[#allocation95_spill] sm:$0xff] %v14083_v7  ;;  %v5917_v61 = vadd.f32 %v16197_v0, %v5845_v53 }
 0x5e8   : > { %6469 = vst [vmem:[#allocation3 + $0x68] sm:$0x1] %v6468_v45  ;;  %v14090_v44 = vsel %vm4133_vm4, %v7361_v29, %v7364_v14  ;;  %v921_v29 = vld [vmem:[#allocation3 + $0x80] sm:$0xf] }
 0x5e9   : > { %16198 = vst [vmem:[#allocation51_spill] sm:$0xff] %v14090_v44  ;;  %v5957_v54 = vadd.f32 %v14008_v30, %v5917_v61  ;;  %v7165_v3 = vpop.f32.mrf.mxu3  ;;  %v16201_v61 = vld [vmem:[#allocation20_spill] sm:$0xff]  ;;  %v922_v58 = vsel %vm10908_vm12, 0, %v921_v29 }
 0x5ea   : > { %v14094_v9 = vadd.f32 %v7165_v3, %v13989_v18  ;;  %923 = vst [vmem:[#allocation3 + $0x80] sm:$0xf] %v922_v58 }
 0x5eb   : > { %v5993_v32 = vmax.f32 %v5957_v54, 0.0  ;;  %v14098_v56 = vpop.f32.mrf.mxu2  ;;  %v6822_v20 = vpop.f32.mrf.mxu1 }
 0x5ec   : > { %16199 = vst [vmem:[#allocation39_spill] sm:$0xff] %v14094_v9  ;;  %v5771_v5 = vpop.f32.mrf.mxu0 }
 0x5ed   : > { %v6029_v45 = vpack.c.bf16 %v5993_v32, %v5993_v32  ;;  %v5846_v53 = vadd.f32 %v5771_v5, %v5623_v25  ;;  %v14100_v48 = vld [vmem:[#allocation3 + $0x60] sm:$0xff]   ;;  %v6470_v32 = vld [vmem:[#allocation3 + $0x6c] sm:$0xf] }
 0x5ee   : > { %9583 = vmatmul.msk.bf16.gmra.mxu3 %vm3494_vm13, %v14100_v48 }
 0x5ef   : > { %v6201_v0 = vshrl.u32 %v6029_v45, 16  ;;  %v5918_v18 = vadd.f32 %v16201_v61, %v5846_v53  ;;  %9513 = vmatmul.msk.bf16.gmra.mxu0 %vm3494_vm13, %v13439_v10  ;;  %v6204_v3 = vshll.u32 %v6029_v45, 16  ;;  %v8229_v53 = vrot.slane %v14070_v55, 1  ;;  %v14113_v10 = vld [vmem:[#allocation2 + $0xd8] sm:$0xff]   ;;  %v14120_v31 = vld [vmem:[#allocation3 + $0x64] sm:$0xff]  }
 0x5f0   : > { %9558 = vmatmul.msk.bf16.gmra.mxu2 %vm3494_vm13, %v14100_v48  ;;  %v7369_v45 = vshll.u32 %v14070_v55, 16 }
 0x5f1   : > { %v6203_v54 = vrot.slane %v6201_v0, 7  ;;  %v5958_v6 = vadd.f32 %v14008_v30, %v5918_v18  ;;  %v7168_v25 = vpop.f32.mrf.mxu3  ;;  %v7366_v0 = vshrl.u32 %v14017_v16, 16  ;;  %v16202_v16 = vld [vmem:[#allocation52_spill] sm:$0xff] }
 0x5f2   : > { %v5627_v9 = vadd.f32 %v13394_v33, %v16202_v16  ;;  %v15678_v16 = vrot.slane %v14100_v48, 1 }
 0x5f3   : > { %v6206_v5 = vor.u32 %v6204_v3, %v6203_v54  ;;  %v5994_v20 = vmax.f32 %v5958_v6, 0.0  ;;  %v7047_v4 = vpop.f32.mrf.mxu2  ;;  %v6824_v25 = vpop.f32.mrf.mxu1  ;;  %v14123_v3 = vsel %vm5147_vm11, %v8227_v59, %v8229_v53  ;;  %v7368_v6 = vor.u32 %v7366_v0, %v7364_v14  ;;  %v6474_v14 = vld [vmem:[#allocation3 + $0x74] sm:$0x1] }
 0x5f4   : > { %v5773_v61 = vpop.f32.mrf.mxu0  ;;  %v14125_v4 = vadd.f32 %v7042_v24, %v6824_v25  ;;  %v7741_v25 = vshrl.u32 %v14033_v62, 16  ;;  %v6207_v44 = vrot.slane %v6203_v54, 4  ;;  %v7373_v54 = vshrl.u32 %v14070_v55, 16 }
 0x5f5   : > { %v6471_v18 = vsel %vm10908_vm12, %v6206_v5, %v6470_v32  ;;  %v6030_v58 = vpack.c.bf16 %v5994_v20, %v5994_v20  ;;  %v7371_v61 = vrot.slane %v7369_v45, 1  ;;  %v16203_v32 = vrot.slane %v14113_v10, 1  ;;  %v867_v20 = vld [vmem:[#allocation3 + $0x84] sm:$0x1] }
 0x5f6   : > { %6472 = vst [vmem:[#allocation3 + $0x6c] sm:$0xf] %v6471_v18  ;;  %9529 = vmatmul.msk.bf16.gmra.mxu1 %vm3494_vm13, %v14120_v31  ;;  %v868_v45 = vsel %vm10823_vm8, 0, %v867_v20  ;;  %v7743_v20 = vor.u32 %v7741_v25, %v14058_v35  ;;  %v16208_v35 = vrot.slane %v14120_v31, 1 }
 0x5f7   : > { %v6209_v29 = vshrl.u32 %v6030_v58, 16  ;;  %v5679_v5 = vsel %vm5147_vm11, %v13433_v26, %v16203_v32  ;;  %v14136_v59 = vsel %vm4133_vm4, %v7368_v6, %v7371_v61  ;;  %v6212_v18 = vshll.u32 %v6030_v58, 16  ;;  %869 = vst [vmem:[#allocation3 + $0x84] sm:$0x1] %v868_v45 }
 0x5f8   : > { %16204 = vst [vmem:[#allocation73_spill] sm:$0xff] %v14136_v59  ;;  %v7744_v26 = vshll.u32 %v14100_v48, 16  ;;  %v7376_v58 = vshll.u32 %v14120_v31, 16  ;;  %v14166_v55 = vsel %vm5147_vm11, %v8229_v53, %v16208_v35  ;;  %v16214_v35 = vld [vmem:[#allocation24_spill] sm:$0xff] }
 0x5f9   : > { %v6211_v24 = vrot.slane %v6209_v29, 7  ;;  %v7169_v0 = vpop.f32.mrf.mxu3 }
 0x5fa   : > { %v14142_v33 = vadd.f32 %v7169_v0, %v14035_v2  ;;  %v7746_v47 = vrot.slane %v7744_v26, 1  ;;  %v16206_v2 = vrot.slane %v14033_v62, 1 }
 0x5fb   : > { %v6214_v6 = vor.u32 %v6212_v18, %v6211_v24  ;;  %v6216_v32 = vrot.slane %v6211_v24, 4  ;;  %v7048_v7 = vpop.f32.mrf.mxu2  ;;  %v6826_v29 = vpop.f32.mrf.mxu1 }
 0x5fc   : > { %16205 = vst [vmem:[#allocation97_spill] sm:$0xff] %v14142_v33  ;;  %v5775_v59 = vpop.f32.mrf.mxu0  ;;  %v14155_v0 = vsel %vm5147_vm11, %v16206_v2, %v15678_v16  ;;  %v14170_v62 = vadd.f32 %v14098_v56, %v6826_v29 }
 0x5fd   : > { %16207 = vst [vmem:[#allocation56_spill] sm:$0xff] %v14155_v0  ;;  %v6215_v24 = vsel %vm10637_vm6, %v6207_v44, %v6214_v6  ;;  %v6475_v18 = vsel %vm10823_vm8, %v6216_v32, %v6474_v14  ;;  %v5847_v45 = vadd.f32 %v5775_v59, %v5627_v9  ;;  %v14161_v33 = vld [vmem:[#allocation3 + $0x68] sm:$0xff]   ;;  %v14175_v44 = vsel %vm4133_vm4, %v7743_v20, %v7746_v47 }
 0x5fe   : > { %6473 = vst.msk [vmem:[#allocation3 + $0x70] sm:$0xf] %vm16209_vm3, %v6215_v24  ;;  %9584 = vmatmul.msk.bf16.gmra.mxu3 %vm3494_vm13, %v14161_v33  ;;  %v7375_v9 = vor.u32 %v7373_v54, %v7371_v61  ;;  %v14177_v59 = vrot.slane %v7376_v58, 1  ;;  %v16210_v14 = vld [vmem:[#allocation12_spill] sm:$0xff]  ;;  %v16213_v61 = vld [vmem:[#allocation50_spill] sm:$0xff]  ;;  %vm16298_vm3 = vmmov %vm16296_vm2 }
 0x5ff   : > { %6476 = vst [vmem:[#allocation3 + $0x74] sm:$0x1] %v6475_v18  ;;  %v5919_v25 = vadd.f32 %v16210_v14, %v5847_v45  ;;  %9514 = vmatmul.msk.bf16.gmra.mxu0 %vm3494_vm13, %v5679_v5  ;;  %v5629_v32 = vadd.f32 %v13403_v12, %v16213_v61  ;;  %v924_v18 = vld [vmem:[#allocation3 + $0x8c] sm:$0xf]  ;;  %v14202_v12 = vld [vmem:[#allocation2 + $0xe0] sm:$0xff]  }
 0x600   : > { %v14183_v53 = vsel %vm4133_vm4, %v7375_v9, %v14177_v59  ;;  %9559 = vmatmul.msk.bf16.gmra.mxu2 %vm3494_vm13, %v14161_v33  ;;  %v15680_v14 = vrot.slane %v14202_v12, 1 }
 0x601   : > { %16211 = vst [vmem:[#allocation130_spill] sm:$0xff] %v14183_v53  ;;  %v5959_v56 = vadd.f32 %v14008_v30, %v5919_v25  ;;  %v7172_v26 = vpop.f32.mrf.mxu3 }
 0x602   : > { %v14189_v6 = vadd.f32 %v7172_v26, %v14079_v63  ;;  %v925_v63 = vsel %vm10908_vm12, 0, %v924_v18 }
 0x603   : > { %v5995_v29 = vmax.f32 %v5959_v56, 0.0  ;;  %v14193_v20 = vpop.f32.mrf.mxu2  ;;  %v6829_v2 = vpop.f32.mrf.mxu1  ;;  %926 = vst [vmem:[#allocation3 + $0x8c] sm:$0xf] %v925_v63  ;;  %v16215_v63 = vrot.slane %v14113_v10, 1  ;;  %v16219_v10 = vld [vmem:[#allocation60_spill] sm:$0xff] }
 0x604   : > { %16212 = vst [vmem:[#allocation75_spill] sm:$0xff] %v14189_v6  ;;  %v5777_v58 = vpop.f32.mrf.mxu0 }
 0x605   : > { %v6031_v5 = vpack.c.bf16 %v5995_v29, %v5995_v29  ;;  %v5848_v54 = vadd.f32 %v5777_v58, %v5629_v32  ;;  %v14195_v24 = vld [vmem:[#allocation3 + $0x6c] sm:$0xff]   ;;  %v6477_v32 = vld [vmem:[#allocation3 + $0x78] sm:$0xf]  ;;  %v7748_v29 = vshrl.u32 %v14100_v48, 16  ;;  %v7751_v58 = vshll.u32 %v14161_v33, 16 }
 0x606   : > { %9530 = vmatmul.msk.bf16.gmra.mxu1 %vm3494_vm13, %v14195_v24 }
 0x607   : > { %v6218_v45 = vshrl.u32 %v6031_v5, 16  ;;  %v5920_v9 = vadd.f32 %v16214_v35, %v5848_v54  ;;  %v6221_v56 = vshll.u32 %v6031_v5, 16  ;;  %v8472_v54 = vrot.slane %v14161_v33, 1 }
 0x608   : > { %v5681_v5 = vsel %vm5147_vm11, %v16215_v63, %v15680_v14  ;;  %v7755_v63 = vshrl.u32 %v14161_v33, 16  ;;  %v7380_v33 = vshrl.u32 %v14120_v31, 16 }
 0x609   : > { %v6220_v25 = vrot.slane %v6218_v45, 7  ;;  %v5960_v26 = vadd.f32 %v14008_v30, %v5920_v9  ;;  %v7174_v61 = vpop.f32.mrf.mxu3  ;;  %v7750_v45 = vor.u32 %v7748_v29, %v7746_v47  ;;  %v7753_v9 = vrot.slane %v7751_v58, 1 }
 0x60a   : > { %v16216_v61 = vrot.slane %v14100_v48, 1  ;;  %v5633_v29 = vadd.f32 %v13431_v11, %v16219_v10  ;;  %v7383_v10 = vshll.u32 %v14195_v24, 16 }
 0x60b   : > { %v6223_v2 = vor.u32 %v6221_v56, %v6220_v25  ;;  %v5996_v35 = vmax.f32 %v5960_v26, 0.0  ;;  %v7053_v16 = vpop.f32.mrf.mxu2  ;;  %v6830_v26 = vpop.f32.mrf.mxu1  ;;  %v14228_v47 = vsel %vm4133_vm4, %v7750_v45, %v7753_v9  ;;  %v6224_v45 = vrot.slane %v6220_v25, 4 }
 0x60c   : > { %v5780_v18 = vpop.f32.mrf.mxu0  ;;  %v14217_v0 = vsel %vm5147_vm11, %v16216_v61, %v8472_v54  ;;  %v14223_v16 = vadd.f32 %v7048_v7, %v6830_v26  ;;  %16218 = vst [vmem:[#allocation63_spill] sm:$0xff] %v14228_v47 }
 0x60d   : > { %16217 = vst [vmem:[#allocation101_spill] sm:$0xff] %v14217_v0  ;;  %v6478_v6 = vsel %vm10908_vm12, %v6223_v2, %v6477_v32  ;;  %v6032_v56 = vpack.c.bf16 %v5996_v35, %v5996_v35  ;;  %v14221_v18 = vld [vmem:[#allocation3 + $0x70] sm:$0xff]   ;;  %v6481_v35 = vld [vmem:[#allocation3 + $0x80] sm:$0x1] }
 0x60e   : > { %6479 = vst [vmem:[#allocation3 + $0x78] sm:$0xf] %v6478_v6  ;;  %9585 = vmatmul.msk.bf16.gmra.mxu3 %vm3494_vm13, %v14221_v18  ;;  %v870_v32 = vld [vmem:[#allocation3 + $0x90] sm:$0x1]  ;;  %v7758_v11 = vshll.u32 %v14221_v18, 16 }
 0x60f   : > { %v6226_v48 = vshrl.u32 %v6032_v56, 16  ;;  %9515 = vmatmul.msk.bf16.gmra.mxu0 %vm3494_vm13, %v5681_v5  ;;  %v6229_v2 = vshll.u32 %v6032_v56, 16  ;;  %v871_v6 = vsel %vm10823_vm8, 0, %v870_v32  ;;  %v15682_v5 = vrot.slane %v14221_v18, 1 }
 0x610   : > { %9560 = vmatmul.msk.bf16.gmra.mxu2 %vm3494_vm13, %v14221_v18  ;;  %872 = vst [vmem:[#allocation3 + $0x90] sm:$0x1] %v871_v6  ;;  %v7757_v32 = vor.u32 %v7755_v63, %v7753_v9  ;;  %v14245_v53 = vrot.slane %v7758_v11, 1  ;;  %v16222_v9 = vrot.slane %v14120_v31, 1  ;;  %v14276_v31 = vld [vmem:[#allocation2 + $0xe8] sm:$0xff] }
 0x611   : > { %v6228_v58 = vrot.slane %v6226_v48, 7  ;;  %v7176_v7 = vpop.f32.mrf.mxu3  ;;  %v8233_v48 = vrot.slane %v14195_v24, 1 }
 0x612   : > { %v14239_v61 = vadd.f32 %v7176_v7, %v14125_v4  ;;  %v14251_v4 = vsel %vm5147_vm11, %v8472_v54, %v15682_v5 }
 0x613   : > { %v6231_v56 = vor.u32 %v6229_v2, %v6228_v58  ;;  %v6233_v26 = vrot.slane %v6228_v58, 4  ;;  %v7055_v0 = vpop.f32.mrf.mxu2  ;;  %16221 = vst [vmem:[#allocation102_spill] sm:$0xff] %v14251_v4  ;;  %v6833_v7 = vpop.f32.mrf.mxu1  ;;  %v14262_v63 = vsel %vm5147_vm11, %v16222_v9, %v8233_v48 }
 0x614   : > { %16220 = vst [vmem:[#allocation81_spill] sm:$0xff] %v14239_v61  ;;  %v5781_v14 = vpop.f32.mrf.mxu0  ;;  %v14266_v54 = vadd.f32 %v14193_v20, %v6833_v7  ;;  %v16229_v7 = vrot.slane %v14202_v12, 1 }
 0x615   : > { %v6232_v25 = vsel %vm10637_vm6, %v6224_v45, %v6231_v56  ;;  %v6482_v58 = vsel %vm10823_vm8, %v6233_v26, %v6481_v35  ;;  %v5849_v2 = vadd.f32 %v5781_v14, %v5633_v29  ;;  %v14257_v6 = vld [vmem:[#allocation3 + $0x74] sm:$0xff]   ;;  %v14270_v45 = vsel %vm4133_vm4, %v7757_v32, %v14245_v53  ;;  %v16225_v29 = vld [vmem:[#allocation43_spill] sm:$0xff] }
 0x616   : > { %6480 = vst.msk [vmem:[#allocation3 + $0x7c] sm:$0xf] %vm16223_vm9, %v6232_v25  ;;  %v7382_v35 = vor.u32 %v7380_v33, %v14177_v59  ;;  %v7385_v14 = vrot.slane %v7383_v10, 1  ;;  %9531 = vmatmul.msk.bf16.gmra.mxu1 %vm3494_vm13, %v14257_v6  ;;  %v15683_v56 = vrot.slane %v14276_v31, 1  ;;  %v16228_v59 = vld [vmem:[#allocation79_spill] sm:$0xff]  ;;  %v8235_v4 = vrot.slane %v14257_v6, 1  ;;  %vm16300_vm9 = vmmov %vm16296_vm2 }
 0x617   : > { %16224 = vst [vmem:[#allocation67_spill] sm:$0xff] %v14270_v45  ;;  %v5921_v11 = vadd.f32 %v16225_v29, %v5849_v2  ;;  %v5636_v10 = vadd.f32 %v13445_v57, %v16228_v59 }
 0x618   : > { %6483 = vst [vmem:[#allocation3 + $0x80] sm:$0x1] %v6482_v58  ;;  %v14280_v20 = vsel %vm4133_vm4, %v7382_v35, %v7385_v14  ;;  %v5683_v9 = vsel %vm5147_vm11, %v16229_v7, %v15683_v56 }
 0x619   : > { %16226 = vst [vmem:[#allocation83_spill] sm:$0xff] %v14280_v20  ;;  %v5961_v26 = vadd.f32 %v14008_v30, %v5921_v11  ;;  %v7178_v32 = vpop.f32.mrf.mxu3 }
 0x61a   : > { %v14284_v25 = vadd.f32 %v7178_v32, %v14170_v62  ;;  %v927_v62 = vld [vmem:[#allocation3 + $0x98] sm:$0xf] }
 0x61b   : > { %v5997_v33 = vmax.f32 %v5961_v26, 0.0  ;;  %v14288_v2 = vpop.f32.mrf.mxu2  ;;  %v6835_v11 = vpop.f32.mrf.mxu1  ;;  %v16230_v26 = vld [vmem:[#allocation65_spill] sm:$0xff]  ;;  %v928_v59 = vsel %vm10908_vm12, 0, %v927_v62  ;;  %v7390_v62 = vshll.u32 %v14257_v6, 16 }
 0x61c   : > { %16227 = vst [vmem:[#allocation106_spill] sm:$0xff] %v14284_v25  ;;  %v5784_v58 = vpop.f32.mrf.mxu0 }
 0x61d   : > { %v6033_v35 = vpack.c.bf16 %v5997_v33, %v5997_v33  ;;  %v5850_v29 = vadd.f32 %v5784_v58, %v5636_v10  ;;  %v14295_v5 = vld [vmem:[#allocation3 + $0x78] sm:$0xff]   ;;  %929 = vst [vmem:[#allocation3 + $0x98] sm:$0xf] %v928_v59  ;;  %v6484_v58 = vld [vmem:[#allocation3 + $0x84] sm:$0xf] }
 0x61e   : > { %9586 = vmatmul.msk.bf16.gmra.mxu3 %vm3494_vm13, %v14295_v5 }
 0x61f   : > { %v6235_v57 = vshrl.u32 %v6033_v35, 16  ;;  %v5922_v32 = vadd.f32 %v16230_v26, %v5850_v29  ;;  %9516 = vmatmul.msk.bf16.gmra.mxu0 %vm3494_vm13, %v5683_v9  ;;  %v6238_v7 = vshll.u32 %v6033_v35, 16  ;;  %v7387_v9 = vshrl.u32 %v14195_v24, 16  ;;  %v14311_v59 = vld [vmem:[#allocation3 + $0x7c] sm:$0xff]   ;;  %v6603_v24 = vld [vmem:[%s15605_s8 + $0x14] sm:$0xf] }
 0x620   : > { %9561 = vmatmul.msk.bf16.gmra.mxu2 %vm3494_vm13, %v14295_v5 }
 0x621   : > { %v6237_v12 = vrot.slane %v6235_v57, 7  ;;  %v5962_v10 = vadd.f32 %v14008_v30, %v5922_v32  ;;  %v7181_v33 = vpop.f32.mrf.mxu3 }
 0x622   : > { %v14314_v33 = vsel %vm5147_vm11, %v8233_v48, %v8235_v4  ;;  %v16232_v48 = vld [vmem:[#allocation28_spill] sm:$0xff] }
 0x623   : > { %v6240_v11 = vor.u32 %v6238_v7, %v6237_v12  ;;  %v5998_v56 = vmax.f32 %v5962_v10, 0.0  ;;  %v7060_v26 = vpop.f32.mrf.mxu2  ;;  %v6837_v32 = vpop.f32.mrf.mxu1  ;;  %v7389_v10 = vor.u32 %v7387_v9, %v7385_v14  ;;  %v5684_v25 = vrot.slane %v16232_v48, 1 }
 0x624   : > { %v5786_v29 = vpop.f32.mrf.mxu0  ;;  %v14316_v7 = vadd.f32 %v7055_v0, %v6837_v32  ;;  %v8332_v0 = vsel %vm16112_vm10, %v6603_v24, 0  ;;  %v6488_v32 = vld [vmem:[#allocation3 + $0x8c] sm:$0x1]  ;;  %v6241_v47 = vrot.slane %v6237_v12, 4  ;;  %v7765_v24 = vshll.u32 %v14295_v5, 16  ;;  %vm16302_vm10 = vmmov %vm16101_vm0 }
 0x625   : > { %v6485_v35 = vsel %vm10908_vm12, %v6240_v11, %v6484_v58  ;;  %v6034_v57 = vpack.c.bf16 %v5998_v56, %v5998_v56  ;;  %v7392_v29 = vrot.slane %v7390_v62, 1  ;;  %v7762_v56 = vshrl.u32 %v14221_v18, 16  ;;  %v16231_v58 = vld [vmem:[#allocation71_spill] sm:$0xff]  ;;  %8341 = vmatpush.bf16.msra.mxu0 %v8332_v0 }
 0x626   : > { %6486 = vst [vmem:[#allocation3 + $0x84] sm:$0xf] %v6485_v35  ;;  %9532 = vmatmul.msk.bf16.gmra.mxu1 %vm3494_vm13, %v14311_v59  ;;  %v5640_v11 = vadd.f32 %v13459_v17, %v16231_v58  ;;  %v873_v35 = vld [vmem:[#allocation3 + $0x9c] sm:$0x1]  ;;  %v7397_v48 = vshll.u32 %v14311_v59, 16  ;;  %v7767_v12 = vrot.slane %v7765_v24, 1 }
 0x627   : > { %v6243_v26 = vshrl.u32 %v6034_v57, 16  ;;  %v14329_v14 = vsel %vm4133_vm4, %v7389_v10, %v7392_v29  ;;  %v6246_v62 = vshll.u32 %v6034_v57, 16  ;;  %v874_v20 = vsel %vm10823_vm8, 0, %v873_v35 }
 0x628   : > { %16233 = vst [vmem:[#allocation70_spill] sm:$0xff] %v14329_v14  ;;  %v7764_v45 = vor.u32 %v7762_v56, %v14245_v53  ;;  %v8476_v10 = vrot.slane %v14295_v5, 1  ;;  %v16235_v35 = vrot.slane %v14276_v31, 1  ;;  %v16238_v31 = vrot.slane %v14311_v59, 1 }
 0x629   : > { %v6245_v9 = vrot.slane %v6243_v26, 7  ;;  %v7182_v61 = vpop.f32.mrf.mxu3  ;;  %875 = vst [vmem:[#allocation3 + $0x9c] sm:$0x1] %v874_v20 }
 0x62a   : > { %v14335_v17 = vadd.f32 %v7182_v61, %v14223_v16  ;;  %v5685_v53 = vsel %vm5147_vm11, %v16235_v35, %v5684_v25  ;;  %v7394_v16 = vshrl.u32 %v14257_v6, 16  ;;  %v16236_v61 = vrot.slane %v14221_v18, 1 }
 0x62b   : > { %v6248_v58 = vor.u32 %v6246_v62, %v6245_v9  ;;  %v6250_v26 = vrot.slane %v6245_v9, 4  ;;  %v7061_v14 = vpop.f32.mrf.mxu2  ;;  %v6839_v57 = vpop.f32.mrf.mxu1  ;;  %v14359_v25 = vsel %vm5147_vm11, %v8235_v4, %v16238_v31 }
 0x62c   : > { %16234 = vst [vmem:[#allocation89_spill] sm:$0xff] %v14335_v17  ;;  %v5788_v0 = vpop.f32.mrf.mxu0  ;;  %v14348_v20 = vsel %vm5147_vm11, %v16236_v61, %v8476_v10  ;;  %v14363_v18 = vadd.f32 %v14288_v2, %v6839_v57  ;;  %v7396_v6 = vor.u32 %v7394_v16, %v7392_v29  ;;  %v16241_v29 = vld [vmem:[#allocation76_spill] sm:$0xff] }
 0x62d   : > { %16237 = vst [vmem:[#allocation108_spill] sm:$0xff] %v14348_v20  ;;  %v6249_v56 = vsel %vm10637_vm6, %v6241_v47, %v6248_v58  ;;  %v6489_v9 = vsel %vm10823_vm8, %v6250_v26, %v6488_v32  ;;  %v5851_v62 = vadd.f32 %v5788_v0, %v5640_v11  ;;  %v14354_v17 = vld [vmem:[#allocation3 + $0x80] sm:$0xff]   ;;  %v14368_v47 = vsel %vm4133_vm4, %v7764_v45, %v7767_v12 }
 0x62e   : > { %6487 = vst.msk [vmem:[#allocation3 + $0x88] sm:$0xf] %vm16239_vm14, %v6249_v56  ;;  %9587 = vmatmul.msk.bf16.gmra.mxu3 %vm3494_vm13, %v14354_v17  ;;  %v14370_v11 = vrot.slane %v7397_v48, 1  ;;  %v16240_v32 = vld [vmem:[#allocation48_spill] sm:$0xff]  ;;  %v5642_v26 = vadd.f32 %v13464_v39, %v16241_v29  ;;  %v7772_v29 = vshll.u32 %v14354_v17, 16  ;;  %vm16306_vm14 = vmmov %vm16101_vm0 }
 0x62f   : > { %6490 = vst [vmem:[#allocation3 + $0x8c] sm:$0x1] %v6489_v9  ;;  %v5923_v24 = vadd.f32 %v16240_v32, %v5851_v62  ;;  %9517 = vmatmul.msk.bf16.gmra.mxu0 %vm3494_vm13, %v5685_v53  ;;  %v930_v56 = vld [vmem:[#allocation3 + $0xa4] sm:$0xf]  ;;  %v16242_v62 = vld [vmem:[#allocation122_spill] sm:$0xff] }
 0x630   : > { %v14376_v4 = vsel %vm4133_vm4, %v7396_v6, %v14370_v11  ;;  %9562 = vmatmul.msk.bf16.gmra.mxu2 %vm3494_vm13, %v14354_v17  ;;  %v7774_v20 = vrot.slane %v7772_v29, 1 }
 0x631   : > { %v5963_v2 = vadd.f32 %v14008_v30, %v5923_v24  ;;  %v7185_v58 = vpop.f32.mrf.mxu3 }
 0x632   : > { %v14382_v45 = vadd.f32 %v7185_v58, %v14266_v54  ;;  %v931_v54 = vsel %vm10908_vm12, 0, %v930_v56  ;;  %v7769_v58 = vshrl.u32 %v14295_v5, 16 }
 0x633   : > { %v5999_v57 = vmax.f32 %v5963_v2, 0.0  ;;  %v14386_v0 = vpop.f32.mrf.mxu2  ;;  %v6842_v16 = vpop.f32.mrf.mxu1  ;;  %932 = vst [vmem:[#allocation3 + $0xa4] sm:$0xf] %v931_v54  ;;  %v6491_v2 = vld [vmem:[#allocation3 + $0x90] sm:$0xf] }
 0x634   : > { %v5790_v48 = vpop.f32.mrf.mxu0 }
 0x635   : > { %v6035_v35 = vpack.c.bf16 %v5999_v57, %v5999_v57  ;;  %v5852_v53 = vadd.f32 %v5790_v48, %v5642_v26  ;;  %v14388_v61 = vld [vmem:[#allocation3 + $0x84] sm:$0xff]   ;;  %v8478_v26 = vrot.slane %v14354_v17, 1 }
 0x636   : > { %9533 = vmatmul.msk.bf16.gmra.mxu1 %vm3494_vm13, %v14388_v61  ;;  %v14404_v54 = vld [vmem:[#allocation3 + $0x88] sm:$0xff]  }
 0x637   : > { %v6252_v9 = vshrl.u32 %v6035_v35, 16  ;;  %v5924_v31 = vadd.f32 %v16242_v62, %v5852_v53  ;;  %v6255_v6 = vshll.u32 %v6035_v35, 16  ;;  %v7771_v62 = vor.u32 %v7769_v58, %v7767_v12 }
 0x638   : > { %v14400_v56 = vsel %vm5147_vm11, %v8476_v10, %v8478_v26  ;;  %v876_v10 = vld [vmem:[#allocation3 + $0xa8] sm:$0x1] }
 0x639   : > { %v6254_v39 = vrot.slane %v6252_v9, 7  ;;  %v5964_v32 = vadd.f32 %v14008_v30, %v5924_v31  ;;  %v7187_v24 = vpop.f32.mrf.mxu3  ;;  %16243 = vst [vmem:[#allocation74_spill] sm:$0xff] %v14400_v56 }
 0x63a   : > { %v16244_v24 = vld [vmem:[#allocation132_spill] sm:$0xff] }
 0x63b   : > { %v6257_v57 = vor.u32 %v6255_v6, %v6254_v39  ;;  %v6000_v48 = vmax.f32 %v5964_v32, 0.0  ;;  %v7066_v16 = vpop.f32.mrf.mxu2  ;;  %v6843_v31 = vpop.f32.mrf.mxu1  ;;  %v14411_v6 = vsel %vm4133_vm4, %v7771_v62, %v7774_v20  ;;  %v877_v32 = vsel %vm10823_vm8, 0, %v876_v10 }
 0x63c   : > { %v5793_v53 = vpop.f32.mrf.mxu0  ;;  %v14406_v5 = vadd.f32 %v7061_v14, %v6843_v31  ;;  %878 = vst [vmem:[#allocation3 + $0xa8] sm:$0x1] %v877_v32  ;;  %v7779_v16 = vshll.u32 %v14404_v54, 16  ;;  %v15689_v62 = vrot.slane %v14404_v54, 1  ;;  %v7404_v31 = vshll.u32 %v14388_v61, 16 }
 0x63d   : > { %v6492_v35 = vsel %vm10908_vm12, %v6257_v57, %v6491_v2  ;;  %v6036_v9 = vpack.c.bf16 %v6000_v48, %v6000_v48  ;;  %v5646_v2 = vadd.f32 %v13489_v60, %v16244_v24  ;;  %v7776_v57 = vshrl.u32 %v14354_v17, 16  ;;  %v6495_v53 = vld [vmem:[#allocation3 + $0x98] sm:$0x1] }
 0x63e   : > { %6493 = vst [vmem:[#allocation3 + $0x90] sm:$0xf] %v6492_v35  ;;  %9588 = vmatmul.msk.bf16.gmra.mxu3 %vm3494_vm13, %v14404_v54  ;;  %v6258_v48 = vrot.slane %v6254_v39, 4  ;;  %v14429_v24 = vrot.slane %v7779_v16, 1  ;;  %v7401_v17 = vshrl.u32 %v14311_v59, 16 }
 0x63f   : > { %v6260_v12 = vshrl.u32 %v6036_v9, 16  ;;  %9670 = vmatmul.msk.bf16.vlgmr.msra.gmra.mxu0 %vm3494_vm13, %v13652_v49  ;;  %v6263_v14 = vshll.u32 %v6036_v9, 16  ;;  %v8239_v9 = vrot.slane %v14388_v61, 1  ;;  %v7778_v32 = vor.u32 %v7776_v57, %v7774_v20 }
 0x640   : > { %9563 = vmatmul.msk.bf16.gmra.mxu2 %vm3494_vm13, %v14404_v54  ;;  %v16247_v20 = vrot.slane %v14311_v59, 1 }
 0x641   : > { %v6262_v58 = vrot.slane %v6260_v12, 7  ;;  %v7189_v29 = vpop.f32.mrf.mxu3 }
 0x642   : > { %v14423_v49 = vadd.f32 %v7189_v29, %v14316_v7  ;;  %v14435_v7 = vsel %vm5147_vm11, %v8478_v26, %v15689_v62  ;;  %v14446_v57 = vsel %vm5147_vm11, %v16247_v20, %v8239_v9 }
 0x643   : > { %v6265_v35 = vor.u32 %v6263_v14, %v6262_v58  ;;  %v6267_v60 = vrot.slane %v6262_v58, 4  ;;  %v7068_v10 = vpop.f32.mrf.mxu2  ;;  %16246 = vst [vmem:[#allocation90_spill] sm:$0xff] %v14435_v7  ;;  %v6846_v29 = vpop.f32.mrf.mxu1 }
 0x644   : > { %16245 = vst [vmem:[#allocation40_spill] sm:$0xff] %v14423_v49  ;;  %v5794_v12 = vpop.f32.mrf.mxu0  ;;  %v14450_v26 = vadd.f32 %v14386_v0, %v6846_v29  ;;  %v933_v29 = vld [vmem:[#allocation3 + $0xb0] sm:$0xf] }
 0x645   : > { %v6266_v39 = vsel %vm10637_vm6, %v6258_v48, %v6265_v35  ;;  %v6496_v58 = vsel %vm10823_vm8, %v6267_v60, %v6495_v53  ;;  %v5853_v14 = vadd.f32 %v5794_v12, %v5646_v2  ;;  %v14441_v56 = vld [vmem:[#allocation3 + $0x8c] sm:$0xff]   ;;  %v14454_v48 = vsel %vm4133_vm4, %v7778_v32, %v14429_v24  ;;  %v16250_v12 = vld [vmem:[#allocation134_spill] sm:$0xff] }
 0x646   : > { %6494 = vst.msk [vmem:[#allocation3 + $0x94] sm:$0xf] %vm16248_vm15, %v6266_v39  ;;  %v7403_v53 = vor.u32 %v7401_v17, %v14370_v11  ;;  %v7406_v2 = vrot.slane %v7404_v31, 1  ;;  %9534 = vmatmul.msk.bf16.gmra.mxu1 %vm3494_vm13, %v14441_v56  ;;  %v5649_v32 = vadd.f32 %v13500_v28, %v16250_v12  ;;  %v934_v28 = vsel %vm10908_vm12, 0, %v933_v29  ;;  %v6498_v12 = vld [vmem:[#allocation3 + $0x9c] sm:$0xf]  ;;  %vm16309_vm15 = vmmov %vm16101_vm0 }
 0x647   : > { %6497 = vst [vmem:[#allocation3 + $0x98] sm:$0x1] %v6496_v58  ;;  %v5925_v16 = vadd.f32 %v13342_v27, %v5853_v14 }
 0x648   : > { %v14461_v59 = vsel %vm4133_vm4, %v7403_v53, %v7406_v2  ;;  %935 = vst [vmem:[#allocation3 + $0xb0] sm:$0xf] %v934_v28 }
 0x649   : > { %v5965_v35 = vadd.f32 %v14008_v30, %v5925_v16  ;;  %v7191_v0 = vpop.f32.mrf.mxu3 }
 0x64a   : > { %v14465_v60 = vadd.f32 %v7191_v0, %v14363_v18 }
 0x64b   : > { %v6001_v11 = vmax.f32 %v5965_v35, 0.0  ;;  %v14469_v17 = vpop.f32.mrf.mxu2  ;;  %v6848_v58 = vpop.f32.mrf.mxu1 }
 0x64c   : > { %16249 = vst [vmem:[#allocation113_spill] sm:$0xff] %v14465_v60  ;;  %v5797_v31 = vpop.f32.mrf.mxu0  ;;  %v7411_v58 = vshll.u32 %v14441_v56, 16 }
 0x64d   : > { %v6037_v27 = vpack.c.bf16 %v6001_v11, %v6001_v11  ;;  %v5854_v39 = vadd.f32 %v5797_v31, %v5649_v32  ;;  %v14471_v14 = vld [vmem:[#allocation3 + $0x90] sm:$0xff]  }
 0x64e   : > { %9589 = vmatmul.msk.bf16.gmra.mxu3 %vm3494_vm13, %v14471_v14  ;;  %v7786_v62 = vshll.u32 %v14471_v14, 16 }
 0x64f   : > { %v6269_v20 = vshrl.u32 %v6037_v27, 16  ;;  %v5926_v18 = vadd.f32 %v13353_v36, %v5854_v39  ;;  %9671 = vmatmul.msk.bf16.gmra.mxu0 %vm3494_vm13, %v13682_v38  ;;  %v6272_v16 = vshll.u32 %v6037_v27, 16  ;;  %v8241_v36 = vrot.slane %v14441_v56, 1 }
 0x650   : > { %9564 = vmatmul.msk.bf16.gmra.mxu2 %vm3494_vm13, %v14471_v14  ;;  %v7408_v38 = vshrl.u32 %v14388_v61, 16  ;;  %v879_v61 = vld [vmem:[#allocation3 + $0xb4] sm:$0x1] }
 0x651   : > { %v6271_v53 = vrot.slane %v6269_v20, 7  ;;  %v5966_v35 = vadd.f32 %v14008_v30, %v5926_v18  ;;  %v7194_v0 = vpop.f32.mrf.mxu3  ;;  %v14488_v18 = vld [vmem:[#allocation3 + $0x94] sm:$0xff]   ;;  %v14491_v28 = vsel %vm5147_vm11, %v8239_v9, %v8241_v36 }
 0x652   : > { %v7413_v0 = vrot.slane %v7411_v58, 1  ;;  %v6502_v58 = vld [vmem:[#allocation3 + $0xa4] sm:$0x1] }
 0x653   : > { %v6274_v32 = vor.u32 %v6272_v16, %v6271_v53  ;;  %v6002_v11 = vmax.f32 %v5966_v35, 0.0  ;;  %v7073_v39 = vpop.f32.mrf.mxu2  ;;  %v6850_v20 = vpop.f32.mrf.mxu1  ;;  %v7410_v35 = vor.u32 %v7408_v38, %v7406_v2  ;;  %v7783_v2 = vshrl.u32 %v14404_v54, 16 }
 0x654   : > { %v5799_v31 = vpop.f32.mrf.mxu0  ;;  %v14493_v16 = vadd.f32 %v7068_v10, %v6850_v20  ;;  %v6275_v38 = vrot.slane %v6271_v53, 4  ;;  %v7788_v53 = vrot.slane %v7786_v62, 1 }
 0x655   : > { %v6499_v27 = vsel %vm10908_vm12, %v6274_v32, %v6498_v12  ;;  %v6038_v29 = vpack.c.bf16 %v6002_v11, %v6002_v11  ;;  %v880_v12 = vsel %vm10823_vm8, 0, %v879_v61  ;;  %v14500_v32 = vsel %vm4133_vm4, %v7410_v35, %v7413_v0  ;;  %v16251_v11 = vld [vmem:[#allocation136_spill] sm:$0xff] }
 0x656   : > { %6500 = vst [vmem:[#allocation3 + $0x9c] sm:$0xf] %v6499_v27  ;;  %9535 = vmatmul.msk.bf16.gmra.mxu1 %vm3494_vm13, %v14488_v18  ;;  %v5653_v9 = vadd.f32 %v13524_v8, %v16251_v11  ;;  %v8482_v61 = vrot.slane %v14471_v14, 1  ;;  %v7418_v8 = vshll.u32 %v14488_v18, 16  ;;  %v7415_v11 = vshrl.u32 %v14441_v56, 16 }
 0x657   : > { %v6277_v31 = vshrl.u32 %v6038_v29, 16  ;;  %v6280_v27 = vshll.u32 %v6038_v29, 16  ;;  %881 = vst [vmem:[#allocation3 + $0xb4] sm:$0x1] %v880_v12  ;;  %v7785_v12 = vor.u32 %v7783_v2, %v14429_v24  ;;  %v16255_v24 = vrot.slane %v14488_v18, 1 }
 0x659   : > { %v6279_v39 = vrot.slane %v6277_v31, 7  ;;  %v7195_v10 = vpop.f32.mrf.mxu3  ;;  %v14530_v62 = vsel %vm5147_vm11, %v8241_v36, %v16255_v24 }
 0x65a   : > { %v14506_v20 = vadd.f32 %v7195_v10, %v14406_v5  ;;  %v16253_v5 = vrot.slane %v14404_v54, 1  ;;  %v14539_v54 = vsel %vm4133_vm4, %v7785_v12, %v7788_v53 }
 0x65b   : > { %v6282_v35 = vor.u32 %v6280_v27, %v6279_v39  ;;  %v6284_v7 = vrot.slane %v6279_v39, 4  ;;  %v14512_v31 = vpop.f32.mrf.mxu2 }
 0x65c   : > { %16252 = vst [vmem:[#allocation78_spill] sm:$0xff] %v14506_v20  ;;  %v5801_v29 = vpop.f32.mrf.mxu0  ;;  %v14519_v10 = vsel %vm5147_vm11, %v16253_v5, %v8482_v61  ;;  %v6852_v20 = vpop.f32.mrf.mxu1 }
 0x65d   : > { %16254 = vst [vmem:[#allocation93_spill] sm:$0xff] %v14519_v10  ;;  %v6283_v39 = vsel %vm10637_vm6, %v6275_v38, %v6282_v35  ;;  %v6503_v27 = vsel %vm10823_vm8, %v6284_v7, %v6502_v58  ;;  %v5855_v60 = vadd.f32 %v5801_v29, %v5653_v9  ;;  %v14525_v49 = vld [vmem:[#allocation3 + $0x98] sm:$0xff]   ;;  %v14534_v56 = vadd.f32 %v14469_v17, %v6852_v20 }
 0x65e   : > { %6501 = vst.msk [vmem:[#allocation3 + $0xa0] sm:$0xf] %vm16256_vm5, %v6283_v39  ;;  %9590 = vmatmul.msk.bf16.gmra.mxu3 %vm3494_vm13, %v14525_v49  ;;  %v7417_v7 = vor.u32 %v7415_v11, %v7413_v0  ;;  %v14541_v9 = vrot.slane %v7418_v8, 1  ;;  %v16258_v58 = vld [vmem:[#allocation138_spill] sm:$0xff] }
 0x65f   : > { %6504 = vst [vmem:[#allocation3 + $0xa4] sm:$0x1] %v6503_v27  ;;  %v5927_v2 = vadd.f32 %v13370_v21, %v5855_v60  ;;  %9672 = vmatmul.msk.bf16.gmra.mxu0 %vm3494_vm13, %v13768_v52  ;;  %v5655_v20 = vadd.f32 %v13533_v37, %v16258_v58  ;;  %v14570_v27 = vld [vmem:[%s15604_s7] ss:$0 sm:$0xff] }
 0x660   : > { %v14548_v36 = vsel %vm4133_vm4, %v7417_v7, %v14541_v9  ;;  %9565 = vmatmul.msk.bf16.gmra.mxu2 %vm3494_vm13, %v14525_v49 }
 0x661   : > { %v5967_v17 = vadd.f32 %v14008_v30, %v5927_v2  ;;  %v7198_v38 = vpop.f32.mrf.mxu3  ;;  %v936_v30 = vld [vmem:[#allocation3 + $0xbc] sm:$0xf]  ;;  %v6505_v2 = vld [vmem:[#allocation3 + $0xa8] sm:$0xf] }
 0x662   : > { %v14554_v0 = vadd.f32 %v7198_v38, %v14450_v26  ;;  %v937_v26 = vsel %vm10908_vm12, 0, %v936_v30  ;;  %v8484_v38 = vrot.slane %v14525_v49, 1 }
 0x663   : > { %v6003_v21 = vmax.f32 %v5967_v17, 0.0  ;;  %v14558_v35 = vpop.f32.mrf.mxu2  ;;  %938 = vst [vmem:[#allocation3 + $0xbc] sm:$0xf] %v937_v26  ;;  %v7793_v17 = vshll.u32 %v14525_v49, 16 }
 0x664   : > { %16257 = vst [vmem:[#allocation115_spill] sm:$0xff] %v14554_v0  ;;  %v5803_v60 = vpop.f32.mrf.mxu0  ;;  %v6855_v29 = vpop.f32.mrf.mxu1 }
 0x665   : > { %v6039_v52 = vpack.c.bf16 %v6003_v21, %v6003_v21  ;;  %v5856_v8 = vadd.f32 %v5803_v60, %v5655_v20  ;;  %v14560_v12 = vld [vmem:[#allocation3 + $0x9c] sm:$0xff]   ;;  %v14577_v29 = vsel %vm5147_vm11, %v8482_v61, %v8484_v38 }
 0x666   : > { %9536 = vmatmul.msk.bf16.gmra.mxu1 %vm3494_vm13, %v14560_v12  ;;  %16259 = vst [vmem:[#allocation82_spill] sm:$0xff] %v14577_v29  ;;  %v882_v61 = vld [vmem:[#allocation3 + $0xc0] sm:$0x1] }
 0x667   : > { %v6286_v11 = vshrl.u32 %v6039_v52, 16  ;;  %v5928_v5 = vadd.f32 %v13382_v19, %v5856_v8  ;;  %v6289_v39 = vshll.u32 %v6039_v52, 16  ;;  %v7790_v19 = vshrl.u32 %v14471_v14, 16  ;;  %v14583_v14 = vld [vmem:[#allocation3 + $0xa0] sm:$0xff]  }
 0x668   : > { %v7795_v8 = vrot.slane %v7793_v17, 1 }
 0x669   : > { %v6288_v37 = vrot.slane %v6286_v11, 7  ;;  %v5968_v24 = vadd.f32 %v14570_v27, %v5928_v5  ;;  %v7200_v7 = vpop.f32.mrf.mxu3  ;;  %v7792_v52 = vor.u32 %v7790_v19, %v7788_v53 }
 0x66b   : > { %v6291_v58 = vor.u32 %v6289_v39, %v6288_v37  ;;  %v6004_v20 = vmax.f32 %v5968_v24, 0.0  ;;  %v7079_v60 = vpop.f32.mrf.mxu2  ;;  %v14588_v26 = vsel %vm4133_vm4, %v7792_v52, %v7795_v8  ;;  %v883_v39 = vsel %vm10823_vm8, 0, %v882_v61  ;;  %v16260_v24 = vld [vmem:[#allocation140_spill] sm:$0xff] }
 0x66c   : > { %v5806_v21 = vpop.f32.mrf.mxu0  ;;  %v14581_v5 = vpop.f32.mrf.mxu1  ;;  %v5659_v7 = vadd.f32 %v13564_v23, %v16260_v24  ;;  %884 = vst [vmem:[#allocation3 + $0xc0] sm:$0x1] %v883_v39  ;;  %v7800_v60 = vshll.u32 %v14583_v14, 16  ;;  %v15693_v52 = vrot.slane %v14583_v14, 1 }
 0x66d   : > { %v6506_v30 = vsel %vm10908_vm12, %v6291_v58, %v6505_v2  ;;  %v6040_v11 = vpack.c.bf16 %v6004_v20, %v6004_v20  ;;  %v7797_v58 = vshrl.u32 %v14525_v49, 16  ;;  %v6292_v20 = vrot.slane %v6288_v37, 4  ;;  %v6509_v21 = vld [vmem:[#allocation3 + $0xb0] sm:$0x1] }
 0x66e   : > { %6507 = vst [vmem:[#allocation3 + $0xa8] sm:$0xf] %v6506_v30  ;;  %9591 = vmatmul.msk.bf16.gmra.mxu3 %vm3494_vm13, %v14583_v14  ;;  %v14606_v29 = vrot.slane %v7800_v60, 1  ;;  %v7422_v49 = vshrl.u32 %v14488_v18, 16  ;;  %v16265_v60 = vld [vmem:[#allocation123_spill] sm:$0xff] }
 0x66f   : > { %v6294_v53 = vshrl.u32 %v6040_v11, 16  ;;  %9673 = vmatmul.msk.bf16.gmra.mxu0 %vm3494_vm13, %v13805_v43  ;;  %v6297_v19 = vshll.u32 %v6040_v11, 16  ;;  %v8245_v11 = vrot.slane %v14560_v12, 1  ;;  %v7799_v39 = vor.u32 %v7797_v58, %v7795_v8 }
 0x670   : > { %9566 = vmatmul.msk.bf16.gmra.mxu2 %vm3494_vm13, %v14583_v14  ;;  %v16263_v8 = vrot.slane %v14488_v18, 1 }
 0x671   : > { %v6296_v2 = vrot.slane %v6294_v53, 7  ;;  %v7202_v17 = vpop.f32.mrf.mxu3  ;;  %v7425_v53 = vshll.u32 %v14560_v12, 16 }
 0x672   : > { %v14600_v43 = vadd.f32 %v7202_v17, %v14493_v16  ;;  %v14612_v16 = vsel %vm5147_vm11, %v8484_v38, %v15693_v52  ;;  %v14623_v58 = vsel %vm5147_vm11, %v16263_v8, %v8245_v11  ;;  %v16270_v52 = vld [vmem:[#allocation69_spill] sm:$0xff] }
 0x673   : > { %v6299_v30 = vor.u32 %v6297_v19, %v6296_v2  ;;  %v6301_v23 = vrot.slane %v6296_v2, 4  ;;  %v7081_v24 = vpop.f32.mrf.mxu2  ;;  %16262 = vst [vmem:[#allocation120_spill] sm:$0xff] %v14612_v16 }
 0x674   : > { %16261 = vst [vmem:[#allocation94_spill] sm:$0xff] %v14600_v43  ;;  %v5807_v61 = vpop.f32.mrf.mxu0  ;;  %v6859_v17 = vpop.f32.mrf.mxu1  ;;  %v6516_v43 = vld [vmem:[#allocation3 + $0xbc] sm:$0x1] }
 0x675   : > { %v6300_v37 = vsel %vm10637_vm6, %v6292_v20, %v6299_v30  ;;  %v6510_v2 = vsel %vm10823_vm8, %v6301_v23, %v6509_v21  ;;  %v5857_v19 = vadd.f32 %v5807_v61, %v5659_v7  ;;  %v14618_v10 = vld [vmem:[#allocation3 + $0xa4] sm:$0xff]   ;;  %v14627_v38 = vadd.f32 %v14558_v35, %v6859_v17 }
 0x676   : > { %6508 = vst.msk [vmem:[#allocation3 + $0xac] sm:$0xf] %vm16264_vm7, %v6300_v37  ;;  %v14631_v20 = vsel %vm4133_vm4, %v7799_v39, %v14606_v29  ;;  %v7424_v21 = vor.u32 %v7422_v49, %v14541_v9  ;;  %v7427_v7 = vrot.slane %v7425_v53, 1  ;;  %9537 = vmatmul.msk.bf16.gmra.mxu1 %vm3494_vm13, %v14618_v10  ;;  %v16268_v39 = vld [vmem:[#allocation142_spill] sm:$0xff]  ;;  %v16269_v37 = vld [vmem:[#allocation9_spill] sm:$0xff] }
 0x677   : > { %6511 = vst [vmem:[#allocation3 + $0xb0] sm:$0x1] %v6510_v2  ;;  %v5929_v30 = vadd.f32 %v16265_v60, %v5857_v19  ;;  %v5662_v17 = vadd.f32 %v16269_v37, %v16268_v39 }
 0x678   : > { %v14638_v18 = vsel %vm4133_vm4, %v7424_v21, %v7427_v7  ;;  %v939_v21 = vld [vmem:[#allocation3 + $0xc8] sm:$0xf] }
 0x679   : > { %16266 = vst [vmem:[#allocation86_spill] sm:$0xff] %v14638_v18  ;;  %v5969_v23 = vadd.f32 %v14570_v27, %v5929_v30  ;;  %v7204_v35 = vpop.f32.mrf.mxu3 }
 0x67a   : > { %v14642_v61 = vadd.f32 %v7204_v35, %v14534_v56 }
 0x67b   : > { %v6005_v9 = vmax.f32 %v5969_v23, 0.0  ;;  %v14646_v49 = vpop.f32.mrf.mxu2  ;;  %v940_v23 = vsel %vm10908_vm12, 0, %v939_v21  ;;  %v7432_v21 = vshll.u32 %v14618_v10, 16 }
 0x67c   : > { %16267 = vst [vmem:[#allocation98_spill] sm:$0xff] %v14642_v61  ;;  %v5810_v53 = vpop.f32.mrf.mxu0  ;;  %v6861_v8 = vpop.f32.mrf.mxu1 }
 0x67d   : > { %v6041_v2 = vpack.c.bf16 %v6005_v9, %v6005_v9  ;;  %v5858_v19 = vadd.f32 %v5810_v53, %v5662_v17  ;;  %v14648_v60 = vld [vmem:[#allocation3 + $0xa8] sm:$0xff]   ;;  %941 = vst [vmem:[#allocation3 + $0xc8] sm:$0xf] %v940_v23  ;;  %v6512_v9 = vld [vmem:[#allocation3 + $0xb4] sm:$0xf] }
 0x67e   : > { %9592 = vmatmul.msk.bf16.gmra.mxu3 %vm3494_vm13, %v14648_v60  ;;  %v14665_v23 = vld [vmem:[#allocation3 + $0xac] sm:$0xff]  }
 0x67f   : > { %v6303_v30 = vshrl.u32 %v6041_v2, 16  ;;  %v5930_v56 = vadd.f32 %v16270_v52, %v5858_v19  ;;  %9674 = vmatmul.msk.bf16.gmra.mxu0 %vm3494_vm13, %v13837_v50  ;;  %v6306_v39 = vshll.u32 %v6041_v2, 16  ;;  %v8247_v52 = vrot.slane %v14618_v10, 1 }
 0x680   : > { %9567 = vmatmul.msk.bf16.gmra.mxu2 %vm3494_vm13, %v14648_v60  ;;  %v7429_v50 = vshrl.u32 %v14560_v12, 16  ;;  %v885_v12 = vld [vmem:[#allocation3 + $0xcc] sm:$0x1] }
 0x681   : > { %v6305_v35 = vrot.slane %v6303_v30, 7  ;;  %v5970_v37 = vadd.f32 %v14570_v27, %v5930_v56  ;;  %v7207_v17 = vpop.f32.mrf.mxu3 }
 0x682   : > { %v14668_v17 = vsel %vm5147_vm11, %v8245_v11, %v8247_v52  ;;  %v16272_v11 = vld [vmem:[#allocation143_spill] sm:$0xff] }
 0x683   : > { %v6308_v53 = vor.u32 %v6306_v39, %v6305_v35  ;;  %v6006_v8 = vmax.f32 %v5970_v37, 0.0  ;;  %v7086_v16 = vpop.f32.mrf.mxu2  ;;  %v7431_v37 = vor.u32 %v7429_v50, %v7427_v7  ;;  %v6309_v61 = vrot.slane %v6305_v35, 4 }
 0x684   : > { %v5812_v19 = vpop.f32.mrf.mxu0  ;;  %v6863_v56 = vpop.f32.mrf.mxu1  ;;  %v7436_v35 = vshrl.u32 %v14618_v10, 16 }
 0x685   : > { %v6513_v2 = vsel %vm10908_vm12, %v6308_v53, %v6512_v9  ;;  %v6042_v30 = vpack.c.bf16 %v6006_v8, %v6006_v8  ;;  %v14670_v39 = vadd.f32 %v7081_v24, %v6863_v56  ;;  %v7434_v19 = vrot.slane %v7432_v21, 1 }
 0x686   : > { %6514 = vst [vmem:[#allocation3 + $0xb4] sm:$0xf] %v6513_v2  ;;  %9538 = vmatmul.msk.bf16.gmra.mxu1 %vm3494_vm13, %v14665_v23  ;;  %v7075_v9 = vadd.f32 %v14512_v31, %v14581_v5  ;;  %v886_v53 = vsel %vm10823_vm8, 0, %v885_v12  ;;  %v16273_v2 = vld [vmem:[#allocation34_spill] sm:$0xff]  ;;  %v7804_v21 = vshrl.u32 %v14583_v14, 16  ;;  %v7807_v31 = vshll.u32 %v14648_v60, 16 }
 0x687   : > { %v6311_v16 = vshrl.u32 %v6042_v30, 16  ;;  %v14679_v8 = vsel %vm4133_vm4, %v7431_v37, %v7434_v19  ;;  %v5666_v24 = vadd.f32 %v16273_v2, %v16272_v11  ;;  %v6314_v7 = vshll.u32 %v6042_v30, 16  ;;  %887 = vst [vmem:[#allocation3 + $0xcc] sm:$0x1] %v886_v53 }
 0x688   : > { %16271 = vst [vmem:[#allocation85_spill] sm:$0xff] %v14679_v8  ;;  %v8488_v5 = vrot.slane %v14648_v60, 1  ;;  %v7439_v11 = vshll.u32 %v14665_v23, 16  ;;  %v7806_v53 = vor.u32 %v7804_v21, %v14606_v29  ;;  %v7809_v2 = vrot.slane %v7807_v31, 1 }
 0x689   : > { %v6313_v56 = vrot.slane %v6311_v16, 7  ;;  %v7208_v50 = vpop.f32.mrf.mxu3  ;;  %v16277_v29 = vrot.slane %v14665_v23, 1 }
 0x68a   : > { %v14684_v0 = vadd.f32 %v7208_v50, %v7075_v9  ;;  %v16275_v9 = vrot.slane %v14583_v14, 1  ;;  %v14716_v14 = vsel %vm4133_vm4, %v7806_v53, %v7809_v2 }
 0x68b   : > { %v6316_v12 = vor.u32 %v6314_v7, %v6313_v56  ;;  %v6318_v37 = vrot.slane %v6313_v56, 4  ;;  %v14690_v30 = vpop.f32.mrf.mxu2  ;;  %v14710_v10 = vsel %vm5147_vm11, %v8247_v52, %v16277_v29  ;;  %16278 = vst [vmem:[#allocation105_spill] sm:$0xff] %v14716_v14 }
 0x68c   : > { %16274 = vst [vmem:[#allocation103_spill] sm:$0xff] %v14684_v0  ;;  %v5814_v16 = vpop.f32.mrf.mxu0  ;;  %v14697_v50 = vsel %vm5147_vm11, %v16275_v9, %v8488_v5  ;;  %v14703_v0 = vpop.f32.mrf.mxu1 }
 0x68d   : > { %16276 = vst [vmem:[#allocation99_spill] sm:$0xff] %v14697_v50  ;;  %v6317_v56 = vsel %vm10637_vm6, %v6309_v61, %v6316_v12  ;;  %v6517_v7 = vsel %vm10823_vm8, %v6318_v37, %v6516_v43  ;;  %v5859_v8 = vadd.f32 %v5814_v16, %v5666_v24  ;;  %v14705_v18 = vld [vmem:[#allocation3 + $0xb0] sm:$0xff]   ;;  %v7438_v61 = vor.u32 %v7436_v35, %v7434_v19  ;;  %v16279_v24 = vld [vmem:[#allocation35_spill] sm:$0xff]  ;;  %v16282_v37 = vld [vmem:[#allocation100_spill] sm:$0xff] }
 0x68e   : > { %6515 = vst.msk [vmem:[#allocation3 + $0xb8] sm:$0xf] %vm16101_vm0, %v6317_v56  ;;  %9593 = vmatmul.msk.bf16.gmra.mxu3 %vm3494_vm13, %v14705_v18  ;;  %v14718_v43 = vrot.slane %v7439_v11, 1  ;;  %v16283_v11 = vld [vmem:[#allocation31_spill] sm:$0xff] }
 0x68f   : > { %6518 = vst [vmem:[#allocation3 + $0xbc] sm:$0x1] %v6517_v7  ;;  %v5931_v21 = vadd.f32 %v16279_v24, %v5859_v8  ;;  %9675 = vmatmul.msk.bf16.gmra.mxu0 %vm3494_vm13, %v13912_v42  ;;  %v5668_v16 = vadd.f32 %v16283_v11, %v16282_v37 }
 0x690   : > { %v14725_v52 = vsel %vm4133_vm4, %v7438_v61, %v14718_v43  ;;  %9568 = vmatmul.msk.bf16.gmra.mxu2 %vm3494_vm13, %v14705_v18  ;;  %v16284_v61 = vld [vmem:[#allocation26_spill] sm:$0xff] }
 0x691   : > { %16280 = vst [vmem:[#allocation109_spill] sm:$0xff] %v14725_v52  ;;  %v5971_v31 = vadd.f32 %v14570_v27, %v5931_v21  ;;  %v7211_v12 = vpop.f32.mrf.mxu3  ;;  %v942_v21 = vld [vmem:[#allocation3 + $0xd4] sm:$0xf] }
 0x692   : > { %v14731_v19 = vadd.f32 %v7211_v12, %v14627_v38  ;;  %v943_v38 = vsel %vm10908_vm12, 0, %v942_v21 }
 0x693   : > { %v6007_v8 = vmax.f32 %v5971_v31, 0.0  ;;  %v7090_v35 = vpop.f32.mrf.mxu2  ;;  %944 = vst [vmem:[#allocation3 + $0xd4] sm:$0xf] %v943_v38 }
 0x694   : > { %16281 = vst [vmem:[#allocation4_spill] sm:$0xff] %v14731_v19  ;;  %v5816_v53 = vpop.f32.mrf.mxu0  ;;  %v6868_v56 = vpop.f32.mrf.mxu1 }
 0x695   : > { %v6043_v42 = vpack.c.bf16 %v6007_v8, %v6007_v8  ;;  %v5860_v9 = vadd.f32 %v5816_v53, %v5668_v16  ;;  %v14735_v7 = vld [vmem:[#allocation3 + $0xb4] sm:$0xff]   ;;  %v6519_v16 = vld [vmem:[#allocation3 + $0xc0] sm:$0xf]  ;;  %v7811_v8 = vshrl.u32 %v14648_v60, 16  ;;  %v7814_v53 = vshll.u32 %v14705_v18, 16 }
 0x696   : > { %9539 = vmatmul.msk.bf16.gmra.mxu1 %vm3494_vm13, %v14735_v7  ;;  %v14753_v60 = vld [vmem:[#allocation3 + $0xb8] sm:$0xff]   ;;  %v7450_v41 = vshrl.u32 %v14735_v7, 16 }
 0x697   : > { %v6320_v29 = vshrl.u32 %v6043_v42, 16  ;;  %v5932_v24 = vadd.f32 %v16284_v61, %v5860_v9  ;;  %v6323_v37 = vshll.u32 %v6043_v42, 16  ;;  %v8490_v9 = vrot.slane %v14705_v18, 1 }
 0x698   : > { %v7813_v52 = vor.u32 %v7811_v8, %v7809_v2  ;;  %v7816_v14 = vrot.slane %v7814_v53, 1  ;;  %v6523_v53 = vld [vmem:[#allocation3 + $0xc8] sm:$0x1] }
 0x699   : > { %v6322_v12 = vrot.slane %v6320_v29, 7  ;;  %v5972_v31 = vadd.f32 %v14570_v27, %v5932_v24  ;;  %v7213_v11 = vpop.f32.mrf.mxu3  ;;  %v14747_v29 = vsel %vm5147_vm11, %v8488_v5, %v8490_v9  ;;  %v16286_v5 = vld [vmem:[#allocation45_spill] sm:$0xff] }
 0x69a   : > { %16285 = vst [vmem:[#allocation110_spill] sm:$0xff] %v14747_v29 }
 0x69b   : > { %v6325_v56 = vor.u32 %v6323_v37, %v6322_v12  ;;  %v6008_v61 = vmax.f32 %v5972_v31, 0.0  ;;  %v7092_v19 = vpop.f32.mrf.mxu2  ;;  %v6326_v8 = vrot.slane %v6322_v12, 4  ;;  %v7443_v12 = vshrl.u32 %v14665_v23, 16 }
 0x69c   : > { %v5819_v50 = vpop.f32.mrf.mxu0  ;;  %v14751_v21 = vpop.f32.mrf.mxu1  ;;  %v16287_v19 = vld [vmem:[#allocation129_spill] sm:$0xff] }
 0x69d   : > { %v6520_v42 = vsel %vm10908_vm12, %v6325_v56, %v6519_v16  ;;  %v6044_v24 = vpack.c.bf16 %v6008_v61, %v6008_v61  ;;  %v14758_v50 = vsel %vm4133_vm4, %v7813_v52, %v7816_v14  ;;  %v5672_v38 = vadd.f32 %v16287_v19, %v16286_v5 }
 0x69e   : > { %6521 = vst [vmem:[#allocation3 + $0xc0] sm:$0xf] %v6520_v42  ;;  %9594 = vmatmul.msk.bf16.gmra.mxu3 %vm3494_vm13, %v14753_v60  ;;  %v7818_v16 = vshrl.u32 %v14705_v18, 16  ;;  %v7821_v56 = vshll.u32 %v14753_v60, 16 }
 0x69f   : > { %v6328_v2 = vshrl.u32 %v6044_v24, 16  ;;  %9676 = vmatmul.msk.bf16.gmra.mxu0 %vm3494_vm13, %v13951_v40  ;;  %v6331_v31 = vshll.u32 %v6044_v24, 16  ;;  %v14772_v40 = vrot.slane %v14753_v60, 1 }
 0x6a0   : > { %9569 = vmatmul.msk.bf16.gmra.mxu2 %vm3494_vm13, %v14753_v60  ;;  %v7820_v29 = vor.u32 %v7818_v16, %v7816_v14  ;;  %v14776_v18 = vrot.slane %v7821_v56, 1  ;;  %v16291_v14 = vrot.slane %v14665_v23, 1  ;;  %v7084_v23 = vadd.f32 %v14646_v49, %v14703_v0 }
 0x6a1   : > { %v6330_v37 = vrot.slane %v6328_v2, 7  ;;  %v7215_v11 = vpop.f32.mrf.mxu3  ;;  %v7446_v2 = vshll.u32 %v14735_v7, 16 }
 0x6a2   : > { %v14768_v52 = vadd.f32 %v7215_v11, %v14670_v39  ;;  %v14781_v39 = vsel %vm5147_vm11, %v8490_v9, %v14772_v40  ;;  %v14799_v9 = vsel %vm4133_vm4, %v7820_v29, %v14776_v18 }
 0x6a3   : > { %v6333_v61 = vor.u32 %v6331_v31, %v6330_v37  ;;  %v6335_v42 = vrot.slane %v6330_v37, 4  ;;  %v7094_v19 = vpop.f32.mrf.mxu2  ;;  %16289 = vst [vmem:[#allocation119_spill] sm:$0xff] %v14781_v39  ;;  %v16299_v39 = vld [vmem:[#allocation32_spill] sm:$0xff] }
 0x6a4   : > { %16288 = vst [vmem:[#allocation116_spill] sm:$0xff] %v14768_v52  ;;  %v5820_v5 = vpop.f32.mrf.mxu0  ;;  %v6872_v24 = vpop.f32.mrf.mxu1  ;;  %v16290_v52 = vrot.slane %v14735_v7, 1 }
 0x6a5   : > { %v6334_v11 = vsel %vm10637_vm6, %v6326_v8, %v6333_v61  ;;  %v6524_v37 = vsel %vm10823_vm8, %v6335_v42, %v6523_v53  ;;  %v5861_v31 = vadd.f32 %v5820_v5, %v5672_v38  ;;  %v14795_v56 = vadd.f32 %v7090_v35, %v6872_v24  ;;  %v16293_v38 = vld [vmem:[#allocation124_spill] sm:$0xff] }
 0x6a6   : > { %v14792_v16 = vsel %vm5147_vm11, %v16291_v14, %v16290_v52  ;;  %6522 = vst.msk [vmem:[#allocation3 + $0xc4] sm:$0xf] %vm16292_vm1, %v6334_v11  ;;  %v7445_v8 = vor.u32 %v7443_v12, %v14718_v43  ;;  %v14802_v53 = vrot.slane %v7446_v2, 1  ;;  %v6605_v2 = vld [vmem:[%s15605_s8 + $0x1c] sm:$0xf]  ;;  %v9960_v14 = vunpack.c.h.b16 %v14753_v60 }
 0x6a7   : > { %6525 = vst [vmem:[#allocation3 + $0xc8] sm:$0x1] %v6524_v37  ;;  %v5933_v61 = vadd.f32 %v16293_v38, %v5861_v31  ;;  %v16295_v11 = vld [vmem:[#allocation125_spill] sm:$0xff]  ;;  %v8063_v31 = vsel %vm16296_vm2, %v6605_v2, 0  ;;  %v6606_v38 = vld [vmem:[%s15605_s8 + $0x20] sm:$0xf] }
 0x6a8   : > { %v14809_v52 = vsel %vm4133_vm4, %v7445_v8, %v14802_v53  ;;  %8072 = vmatpush.bf16.msrb.mxu3 %v8063_v31 }
 0x6a9   : > { %v5973_v35 = vadd.f32 %v14570_v27, %v5933_v61  ;;  %v7217_v42 = vpop.f32.mrf.mxu3 }
 0x6aa   : > { %v14812_v24 = vadd.f32 %v7217_v42, %v7084_v23  ;;  %v16297_v23 = vld [vmem:[#allocation72_spill] sm:$0xff]  ;;  %v8705_v42 = vsel %vm16298_vm3, %v6606_v38, 0 }
 0x6ab   : > { %v6009_v29 = vmax.f32 %v5973_v35, 0.0  ;;  %v14814_v43 = vpop.f32.mrf.mxu2  ;;  %8714 = vmatpush.bf16.msra.mxu2 %v8705_v42 }
 0x6ac   : > { %16294 = vst [vmem:[#allocation118_spill] sm:$0xff] %v14812_v24  ;;  %v5823_v5 = vpop.f32.mrf.mxu0  ;;  %v6874_v49 = vpop.f32.mrf.mxu1  ;;  %v6526_v24 = vld [vmem:[#allocation3 + $0xcc] sm:$0xf] }
 0x6ad   : > { %v6045_v12 = vpack.c.bf16 %v6009_v29, %v6009_v29  ;;  %v5862_v0 = vadd.f32 %v5823_v5, %v16295_v11  ;;  %v14820_v37 = vld [vmem:[#allocation3 + $0xc0] sm:$0xff]  }
 0x6ae   : > { %9595 = vmatmul.msk.bf16.gmra.mxu3 %vm3494_vm13, %v14820_v37  ;;  %v9963_v8 = vunpack.c.l.b16 %v14820_v37 }
 0x6af   : > { %v6337_v61 = vshrl.u32 %v6045_v12, 16  ;;  %v5934_v35 = vadd.f32 %v16297_v23, %v5862_v0  ;;  %9677 = vmatmul.msk.bf16.gmra.mxu0 %vm3494_vm13, %v13985_v22  ;;  %v6340_v2 = vshll.u32 %v6045_v12, 16  ;;  %v6600_v22 = vld [vmem:[%s15605_s8 + $0x8] sm:$0xf] }
 0x6b0   : > { %v14834_v29 = vpack.c.b16 %v9963_v8, %v9960_v14  ;;  %9622 = vmatmul.msk.bf16.vlgmr.msrb.gmra.mxu2 %vm3494_vm13, %v16299_v39  ;;  %v8569_v14 = vsel %vm16300_vm9, %v6600_v22, 0 }
 0x6b1   : > { %v6339_v5 = vrot.slane %v6337_v61, 7  ;;  %v5974_v11 = vadd.f32 %v14570_v27, %v5934_v35  ;;  %v7220_v49 = vpop.f32.mrf.mxu3  ;;  %8578 = vmatpush.bf16.msra.mxu1 %v8569_v14  ;;  %v16301_v35 = vmov 0  }
 0x6b2   : > { %9540 = vmatmul.msk.bf16.gmra.mxu1 %vm3494_vm13, %v14834_v29 }
 0x6b3   : > { %v6342_v0 = vor.u32 %v6340_v2, %v6339_v5  ;;  %v6010_v31 = vmax.f32 %v5974_v11, 0.0  ;;  %v7099_v12 = vpop.f32.mrf.mxu2  ;;  %v7088_v2 = vadd.f32 %v14690_v30, %v14751_v21 }
 0x6b4   : > { %v5825_v38 = vpop.f32.mrf.mxu0  ;;  %v6876_v39 = vpop.f32.mrf.mxu1  ;;  %v14855_v12 = vld [vmem:[#allocation3 + $0xc4] sm:$0xff]  }
 0x6b5   : > { %v6527_v27 = vsel %vm10908_vm12, %v6342_v0, %v6526_v24  ;;  %v6046_v61 = vpack.c.bf16 %v6010_v31, %v6010_v31  ;;  %v14847_v23 = vadd.f32 %v7094_v19, %v6876_v39  ;;  %v6530_v38 = vld [vmem:[#allocation3 + $0xd4] sm:$0x1]  ;;  %v7825_v24 = vshrl.u32 %v14753_v60, 16 }
 0x6b6   : > { %6528 = vst [vmem:[#allocation3 + $0xcc] sm:$0xf] %v6527_v27  ;;  %v8024_v19 = vshll.u32 %v14820_v37, 16  ;;  %v8684_v0 = vrot.slane %v14820_v37, 1  ;;  %v6343_v31 = vrot.slane %v6339_v5, 4 }
 0x6b7   : > { %6540 = vst.msk [vmem:[#allocation3 + $0xcc] sm:$0xf] %vm16302_vm10, %v16301_v35  ;;  %v6345_v42 = vshrl.u32 %v6046_v61, 16  ;;  %v6348_v49 = vshll.u32 %v6046_v61, 16  ;;  %v7827_v21 = vor.u32 %v7825_v24, %v14776_v18  ;;  %v8253_v18 = vrot.slane %v14834_v29, 1 }
 0x6b8   : > { %v8026_v61 = vrot.slane %v8024_v19, 1  ;;  %v7460_v19 = vshll.u32 %v14855_v12, 16 }
 0x6b9   : > { %v6347_v11 = vrot.slane %v6345_v42, 7  ;;  %v7221_v22 = vpop.f32.mrf.mxu3  ;;  %v7660_v42 = vpack.c.b16 %v9963_v8, %v9963_v8  ;;  %v8255_v8 = vrot.slane %v14855_v12, 1 }
 0x6ba   : > { %v14853_v14 = vadd.f32 %v7221_v22, %v7088_v2  ;;  %v14867_v2 = vsel %vm5147_vm11, %v14772_v40, %v8684_v0  ;;  %v14881_v22 = vsel %vm4133_vm4, %v7827_v21, %v8026_v61 }
 0x6bb   : > { %v6350_v27 = vor.u32 %v6348_v49, %v6347_v11  ;;  %v6352_v39 = vrot.slane %v6347_v11, 4  ;;  %v14860_v1 = vpop.f32.mrf.mxu2  ;;  %16305 = vst [vmem:[#allocation53_spill] sm:$0xff] %v14867_v2  ;;  %v7829_v24 = vshll.u32 %v7660_v42, 16  ;;  %v16310_v2 = vld [vmem:[#allocation77_spill] sm:$0xff] }
 0x6bc   : > { %16303 = vst [vmem:[#allocation58_spill] sm:$0xff] %v14853_v14  ;;  %v14862_v30 = vpop.f32.mrf.mxu0  ;;  %v14873_v49 = vpop.f32.mrf.mxu1 }
 0x6bd   : > { %16304 = vst [vmem:[#allocation133_spill] sm:$0xff] %v14862_v30  ;;  %v6351_v60 = vsel %vm10637_vm6, %v6343_v31, %v6350_v27  ;;  %v6531_v5 = vsel %vm10823_vm8, %v6352_v39, %v6530_v38  ;;  %v7453_v38 = vshll.u32 %v14834_v29, 16  ;;  %vm16307_vm6 = vmmov %vm16101_vm0  ;;  %v16308_v31 = vrot.slane %v14735_v7, 1 }
 0x6be   : > { %6529 = vst.msk [vmem:[#allocation3 + $0xd0] sm:$0xf] %vm16306_vm14, %v6351_v60  ;;  %v14876_v11 = vld [vmem:[#allocation3 + $0xc8] sm:$0xff]   ;;  %v14898_v39 = vsel %vm5147_vm11, %v8253_v18, %v8255_v8  ;;  %v7831_v60 = vrot.slane %v7829_v24, 1  ;;  %v7452_v30 = vor.u32 %v7450_v41, %v14802_v53  ;;  %v7457_v7 = vshrl.u32 %v14834_v29, 16 }
 0x6bf   : > { %6532 = vst [vmem:[#allocation3 + $0xd4] sm:$0x1] %v6531_v5  ;;  %9596 = vmatmul.msk.bf16.gmra.mxu3 %vm3494_vm13, %v14876_v11  ;;  %9678 = vmatmul.msk.bf16.gmra.mxu0 %vm3494_vm13, %v14075_v46  ;;  %v14895_v27 = vsel %vm5147_vm11, %v16308_v31, %v8253_v18  ;;  %v8494_v5 = vrot.slane %v7660_v42, 1  ;;  %v7455_v14 = vrot.slane %v7453_v38, 1  ;;  %v7462_v18 = vrot.slane %v7460_v19, 1 }
 0x6c0   : > { %6541 = vst.msk [vmem:[#allocation3 + $0xd0] sm:$0xf] %vm16307_vm6, %v16301_v35  ;;  %9623 = vmatmul.msk.bf16.gmra.mxu2 %vm3494_vm13, %v16310_v2  ;;  %v14912_v42 = vsel %vm4133_vm4, %v7827_v21, %v7831_v60  ;;  %v9968_v21 = vunpack.c.h.b16 %v14876_v11  ;;  %v8028_v60 = vshrl.u32 %v14820_v37, 16  ;;  %v8035_v51 = vshrl.u32 %v14876_v11, 16 }
 0x6c1   : > { %6542 = vst.msk [vmem:[#allocation3 + $0xd4] sm:$0xf] %vm16309_vm15, %v16301_v35  ;;  %v7224_v46 = vpop.f32.mrf.mxu3  ;;  %v14916_v35 = vsel %vm5147_vm11, %v14772_v40, %v8494_v5  ;;  %v14919_v2 = vsel %vm4133_vm4, %v7452_v30, %v7455_v14  ;;  %v7459_v53 = vor.u32 %v7457_v7, %v7455_v14  ;;  %v8031_v40 = vshll.u32 %v14876_v11, 16 }
 0x6c2   : > { %v14907_v31 = vadd.f32 %v7224_v46, %v14795_v56  ;;  %9541 = vmatmul.msk.bf16.gmra.mxu1 %vm3494_vm13, %v14855_v12  ;;  %16311 = vst [vmem:[#allocation10_spill] sm:$0xff] %v14916_v35  ;;  %v15700_v5 = vrot.slane %v14876_v11, 1  ;;  %v7299_v7 = vpack.c.b16 %v9968_v21, %v9968_v21  ;;  %v8030_v35 = vor.u32 %v8028_v60, %v8026_v61 }
 0x6c3   : > { %v7103_v24 = vpop.f32.mrf.mxu2  ;;  %v14924_v41 = vsel %vm4133_vm4, %v7459_v53, %v7462_v18  ;;  %v7464_v61 = vshrl.u32 %v14855_v12, 16 }
 0x6c4   : > { %v14921_v29 = vpop.f32.mrf.mxu0  ;;  %v6881_v56 = vpop.f32.mrf.mxu1  ;;  %v14937_v53 = vsel %vm5147_vm11, %v8684_v0, %v15700_v5  ;;  %v8257_v37 = vrot.slane %v7299_v7, 1  ;;  %v7468_v21 = vshll.u32 %v7299_v7, 16 }
 0x6c5   : > { %16312 = vst [vmem:[#allocation114_spill] sm:$0xff] %v14921_v29  ;;  %v14932_v56 = vrot.slane %v8031_v40, 1  ;;  %v16314_v40 = vld [vmem:[#allocation126_spill] sm:$0xff] }
 0x6c6   : > { %16313 = vst [vmem:[#allocation135_spill] sm:$0xff] %v14937_v53  ;;  %v14951_v0 = vsel %vm5147_vm11, %v8255_v8, %v8257_v37  ;;  %v7097_v8 = vadd.f32 %v14814_v43, %v14873_v49 }
 0x6c8   : > { %v14930_v19 = vld [vmem:[#allocation3 + $0xd0] sm:$0xff] }
 0x6c9   : > { %v7226_v38 = vpop.f32.mrf.mxu3 }
 0x6ca   : > { %v14945_v38 = vsel %vm4133_vm4, %v8030_v35, %v14932_v56 }
 0x6cb   : > { %v7105_v30 = vpop.f32.mrf.mxu2 }
 0x6cc   : > { %v8348_v46 = vpop.f32.mrf.mxu0  ;;  %v6882_v14 = vpop.f32.mrf.mxu1  ;;  %v7466_v30 = vor.u32 %v7464_v61, %v7462_v18 }
 0x6cd   : > { %v7470_v46 = vrot.slane %v7468_v21, 1 }
 0x6cf   : > { %9597 = vmatmul.msk.bf16.gmra.mxu3 %vm3494_vm13, %v14930_v19  ;;  %9679 = vmatmul.msk.bf16.gmra.mxu0 %vm3494_vm13, %v14123_v3  ;;  %v16315_v3 = vld [vmem:[#allocation29_spill] sm:$0xff]  ;;  %v14959_v35 = vsel %vm4133_vm4, %v7466_v30, %v7470_v46  ;;  %v7101_v46 = vadd.f32 %v14860_v1, %v6882_v14  ;;  %v16321_v1 = vld [vmem:[#allocation55_spill] sm:$0xff] }
 0x6d0   : > { %9624 = vmatmul.msk.bf16.gmra.mxu2 %vm3494_vm13, %v16314_v40 }
 0x6d1   : > { %v7228_v60 = vpop.f32.mrf.mxu3 }
 0x6d2   : > { %v14954_v5 = vadd.f32 %v7228_v60, %v14847_v23  ;;  %9598 = vmatmul.msk.bf16.vlgmr.msrb.gmra.mxu1 %vm3494_vm13, %v16315_v3  ;;  %v16317_v60 = vld [vmem:[#allocation30_spill] sm:$0xff] }
 0x6d3   : > { %v7107_v12 = vpop.f32.mrf.mxu2 }
 0x6d4   : > { %v14961_v7 = vpop.f32.mrf.mxu0  ;;  %v6885_v53 = vpop.f32.mrf.mxu1 }
 0x6d5   : > { %v7104_v29 = vadd.f32 %v7103_v24, %v6885_v53  ;;  %v16318_v24 = vld [vmem:[#allocation80_spill] sm:$0xff] }
 0x6d9   : > { %v7230_v37 = vpop.f32.mrf.mxu3 }
 0x6da   : > { %v14965_v18 = vadd.f32 %v7230_v37, %v7097_v8 }
 0x6db   : > { %v7109_v61 = vpop.f32.mrf.mxu2 }
 0x6dc   : > { %v14967_v23 = vpop.f32.mrf.mxu0  ;;  %v6887_v21 = vpop.f32.mrf.mxu1 }
 0x6dd   : > { %16316 = vst [vmem:[#allocation37_spill] sm:$0xff] %v14967_v23 }
 0x6df   : > { %9646 = vmatmul.msk.bf16.vlgmr.msrb.gmra.mxu3 %vm3494_vm13, %v16317_v60  ;;  %9680 = vmatmul.msk.bf16.gmra.mxu0 %vm3494_vm13, %v14166_v55 }
 0x6e0   : > { %9625 = vmatmul.msk.bf16.gmra.mxu2 %vm3494_vm13, %v16317_v60 }
 0x6e1   : > { %v7233_v40 = vpop.f32.mrf.mxu3 }
 0x6e2   : > { %9599 = vmatmul.msk.bf16.gmra.mxu1 %vm3494_vm13, %v16318_v24  ;;  %v16320_v40 = vld [vmem:[#allocation5_spill] sm:$0xff] }
 0x6e3   : > { %v7112_v43 = vpop.f32.mrf.mxu2 }
 0x6e4   : > { %v8354_v49 = vpop.f32.mrf.mxu0  ;;  %v6889_v53 = vpop.f32.mrf.mxu1 }
 0x6e5   : > { %v7108_v30 = vadd.f32 %v7107_v12, %v6889_v53 }
 0x6e9   : > { %v7234_v3 = vpop.f32.mrf.mxu3 }
 0x6ea   : > { %v14978_v8 = vadd.f32 %v7234_v3, %v7101_v46 }
 0x6eb   : > { %v7113_v37 = vpop.f32.mrf.mxu2 }
 0x6ec   : > { %v14980_v21 = vpop.f32.mrf.mxu0  ;;  %v6891_v55 = vpop.f32.mrf.mxu1 }
 0x6ed   : > { %16319 = vst [vmem:[#allocation27_spill] sm:$0xff] %v14980_v21 }
 0x6ef   : > { %9647 = vmatmul.msk.bf16.gmra.mxu3 %vm3494_vm13, %v16320_v40  ;;  %9681 = vmatmul.msk.bf16.gmra.mxu0 %vm3494_vm13, %v14262_v63 }
 0x6f0   : > { %9626 = vmatmul.msk.bf16.gmra.mxu2 %vm3494_vm13, %v16320_v40  ;;  %v16323_v40 = vld [vmem:[#allocation131_spill] sm:$0xff] }
 0x6f1   : > { %v7237_v60 = vpop.f32.mrf.mxu3 }
 0x6f2   : > { %v14988_v12 = vadd.f32 %v7237_v60, %v7104_v29  ;;  %9600 = vmatmul.msk.bf16.gmra.mxu1 %vm3494_vm13, %v16321_v1 }
 0x6f3   : > { %v7116_v14 = vpop.f32.mrf.mxu2 }
 0x6f4   : > { %v14992_v24 = vpop.f32.mrf.mxu0  ;;  %v6894_v43 = vpop.f32.mrf.mxu1 }
 0x6f5   : > { %16322 = vst [vmem:[#allocation137_spill] sm:$0xff] %v14992_v24 }
 0x6f9   : > { %v7239_v49 = vpop.f32.mrf.mxu3 }
 0x6fb   : > { %v7118_v53 = vpop.f32.mrf.mxu2 }
 0x6fc   : > { %v8361_v46 = vpop.f32.mrf.mxu0  ;;  %v6895_v3 = vpop.f32.mrf.mxu1  ;;  %v7110_v53 = vadd.f32 %v7109_v61, %v6891_v55 }
 0x6ff   : > { %9648 = vmatmul.msk.bf16.gmra.mxu3 %vm3494_vm13, %v13843_v34  ;;  %9682 = vmatmul.msk.bf16.gmra.mxu0 %vm3494_vm13, %v14314_v33 }
 0x700   : > { %9627 = vmatmul.msk.bf16.gmra.mxu2 %vm3494_vm13, %v13843_v34 }
 0x701   : > { %v7241_v63 = vpop.f32.mrf.mxu3 }
 0x702   : > { %v15000_v29 = vadd.f32 %v7241_v63, %v7108_v30  ;;  %9601 = vmatmul.msk.bf16.gmra.mxu1 %vm3494_vm13, %v16323_v40  ;;  %v16325_v30 = vld [vmem:[#allocation36_spill] sm:$0xff]  ;;  %v7114_v40 = vadd.f32 %v7113_v37, %v6895_v3 }
 0x703   : > { %v7120_v60 = vpop.f32.mrf.mxu2 }
 0x704   : > { %v15004_v1 = vpop.f32.mrf.mxu0  ;;  %v6898_v43 = vpop.f32.mrf.mxu1 }
 0x705   : > { %v7117_v49 = vadd.f32 %v7116_v14, %v6898_v43 }
 0x709   : > { %v7243_v46 = vpop.f32.mrf.mxu3 }
 0x70a   : > { %v15006_v24 = vadd.f32 %v7243_v46, %v7110_v53 }
 0x70b   : > { %v7122_v21 = vpop.f32.mrf.mxu2 }
 0x70c   : > { %v15008_v33 = vpop.f32.mrf.mxu0  ;;  %v6900_v23 = vpop.f32.mrf.mxu1 }
 0x70d   : > { %16324 = vst [vmem:[#allocation64_spill] sm:$0xff] %v15008_v33  ;;  %v16327_v33 = vld [vmem:[#allocation88_spill] sm:$0xff] }
 0x70f   : > { %9649 = vmatmul.msk.bf16.gmra.mxu3 %vm3494_vm13, %v13880_v15  ;;  %9683 = vmatmul.msk.bf16.gmra.mxu0 %vm3494_vm13, %v14359_v25 }
 0x710   : > { %9628 = vmatmul.msk.bf16.gmra.mxu2 %vm3494_vm13, %v13880_v15 }
 0x711   : > { %v7246_v34 = vpop.f32.mrf.mxu3 }
 0x712   : > { %9602 = vmatmul.msk.bf16.gmra.mxu1 %vm3494_vm13, %v16325_v30 }
 0x713   : > { %v7125_v61 = vpop.f32.mrf.mxu2 }
 0x714   : > { %v8367_v55 = vpop.f32.mrf.mxu0  ;;  %v6902_v14 = vpop.f32.mrf.mxu1 }
 0x715   : > { %v7121_v63 = vadd.f32 %v7120_v60, %v6902_v14  ;;  %v16328_v60 = vld [vmem:[#allocation91_spill] sm:$0xff] }
 0x719   : > { %v7247_v43 = vpop.f32.mrf.mxu3 }
 0x71a   : > { %v15018_v23 = vadd.f32 %v7247_v43, %v7114_v40 }
 0x71b   : > { %v7126_v53 = vpop.f32.mrf.mxu2 }
 0x71c   : > { %v15020_v46 = vpop.f32.mrf.mxu0  ;;  %v6904_v34 = vpop.f32.mrf.mxu1 }
 0x71d   : > { %16326 = vst [vmem:[#allocation13_spill] sm:$0xff] %v15020_v46  ;;  %v16333_v46 = vld [vmem:[#allocation46_spill] sm:$0xff] }
 0x71f   : > { %9650 = vmatmul.msk.bf16.gmra.mxu3 %vm3494_vm13, %v16327_v33  ;;  %9684 = vmatmul.msk.bf16.gmra.mxu0 %vm3494_vm13, %v14446_v57 }
 0x720   : > { %9629 = vmatmul.msk.bf16.gmra.mxu2 %vm3494_vm13, %v16327_v33  ;;  %v16330_v33 = vld [vmem:[#allocation42_spill] sm:$0xff] }
 0x721   : > { %v7250_v15 = vpop.f32.mrf.mxu3 }
 0x722   : > { %v15028_v25 = vadd.f32 %v7250_v15, %v7117_v49  ;;  %9603 = vmatmul.msk.bf16.gmra.mxu1 %vm3494_vm13, %v16328_v60  ;;  %v7123_v60 = vadd.f32 %v7122_v21, %v6904_v34  ;;  %v16334_v21 = vld [vmem:[#allocation66_spill] sm:$0xff] }
 0x723   : > { %v7129_v37 = vpop.f32.mrf.mxu2 }
 0x724   : > { %v15032_v3 = vpop.f32.mrf.mxu0 }
 0x725   : > { %16329 = vst [vmem:[#allocation57_spill] sm:$0xff] %v15032_v3 }
 0x729   : > { %v7252_v30 = vpop.f32.mrf.mxu3 }
 0x72b   : > { %v7131_v61 = vpop.f32.mrf.mxu2 }
 0x72c   : > { %v8374_v55 = vpop.f32.mrf.mxu0 }
 0x72f   : > { %v6907_v14 = vpop.f32.mrf.mxu1  ;;  %9651 = vmatmul.msk.bf16.gmra.mxu3 %vm3494_vm13, %v13994_v13  ;;  %9685 = vmatmul.msk.bf16.gmra.mxu0 %vm3494_vm13, %v14491_v28 }
 0x730   : > { %9630 = vmatmul.msk.bf16.gmra.mxu2 %vm3494_vm13, %v13994_v13 }
 0x731   : > { %v7254_v57 = vpop.f32.mrf.mxu3 }
 0x732   : > { %v15040_v49 = vadd.f32 %v7254_v57, %v7121_v63  ;;  %9604 = vmatmul.msk.bf16.gmra.mxu1 %vm3494_vm13, %v16330_v33 }
 0x733   : > { %v7917_v40 = vpop.f32.mrf.mxu2 }
 0x734   : > { %v15044_v43 = vpop.f32.mrf.mxu0 }
 0x735   : > { %16331 = vst [vmem:[#allocation139_spill] sm:$0xff] %v15044_v43  ;;  %v16336_v43 = vld [vmem:[#allocation95_spill] sm:$0xff] }
 0x737   : > { %v6908_v15 = vpop.f32.mrf.mxu1 }
 0x738   : > { %v7127_v30 = vadd.f32 %v7126_v53, %v6908_v15 }
 0x739   : > { %v7256_v61 = vpop.f32.mrf.mxu3 }
 0x73a   : > { %v15046_v55 = vadd.f32 %v7256_v61, %v7123_v60 }
 0x73b   : > { %v7919_v14 = vpop.f32.mrf.mxu2 }
 0x73c   : > { %v15048_v28 = vpop.f32.mrf.mxu0 }
 0x73d   : > { %16332 = vst [vmem:[#allocation17_spill] sm:$0xff] %v15048_v28 }
 0x73f   : > { %v6911_v3 = vpop.f32.mrf.mxu1  ;;  %9652 = vmatmul.msk.bf16.gmra.mxu3 %vm3494_vm13, %v16333_v46  ;;  %9686 = vmatmul.msk.bf16.gmra.mxu0 %vm3494_vm13, %v14530_v62 }
 0x740   : > { %v7130_v13 = vadd.f32 %v7129_v37, %v6911_v3  ;;  %9631 = vmatmul.msk.bf16.gmra.mxu2 %vm3494_vm13, %v16333_v46  ;;  %v16337_v37 = vld [vmem:[#allocation51_spill] sm:$0xff] }
 0x742   : > { %v7259_v63 = vpop.f32.mrf.mxu3  ;;  %9605 = vmatmul.msk.bf16.gmra.mxu1 %vm3494_vm13, %v16334_v21 }
 0x743   : > { %v7922_v53 = vpop.f32.mrf.mxu2 }
 0x744   : > { %v8380_v34 = vpop.f32.mrf.mxu0 }
 0x747   : > { %v6913_v57 = vpop.f32.mrf.mxu1 }
 0x74a   : > { %v7260_v33 = vpop.f32.mrf.mxu3 }
 0x74b   : > { %v15058_v15 = vadd.f32 %v7260_v33, %v7127_v30  ;;  %v7923_v60 = vpop.f32.mrf.mxu2 }
 0x74c   : > { %v15060_v61 = vpop.f32.mrf.mxu0 }
 0x74d   : > { %16335 = vst [vmem:[#allocation14_spill] sm:$0xff] %v15060_v61 }
 0x74f   : > { %v7556_v28 = vpop.f32.mrf.mxu1  ;;  %9653 = vmatmul.msk.bf16.gmra.mxu3 %vm3494_vm13, %v16336_v43  ;;  %9687 = vmatmul.msk.bf16.gmra.mxu0 %vm3494_vm13, %v14623_v58  ;;  %v16339_v58 = vld [vmem:[#allocation73_spill] sm:$0xff] }
 0x750   : > { %v7918_v62 = vadd.f32 %v7917_v40, %v7556_v28  ;;  %9632 = vmatmul.msk.bf16.gmra.mxu2 %vm3494_vm13, %v16336_v43 }
 0x752   : > { %v7263_v46 = vpop.f32.mrf.mxu3  ;;  %9606 = vmatmul.msk.bf16.gmra.mxu1 %vm3494_vm13, %v16337_v37 }
 0x753   : > { %v15070_v3 = vadd.f32 %v7263_v46, %v7130_v13  ;;  %v7926_v30 = vpop.f32.mrf.mxu2  ;;  %v16341_v13 = vld [vmem:[#allocation128_spill] sm:$0xff] }
 0x754   : > { %v15072_v63 = vpop.f32.mrf.mxu0 }
 0x755   : > { %16338 = vst [vmem:[#allocation121_spill] sm:$0xff] %v15072_v63 }
 0x757   : > { %v7558_v21 = vpop.f32.mrf.mxu1 }
 0x758   : > { %v7920_v53 = vadd.f32 %v7919_v14, %v7558_v21 }
 0x75a   : > { %v7265_v34 = vpop.f32.mrf.mxu3 }
 0x75b   : > { %v7928_v57 = vpop.f32.mrf.mxu2 }
 0x75c   : > { %v8387_v33 = vpop.f32.mrf.mxu0 }
 0x75d   : > { %v16343_v33 = vld [vmem:[#allocation39_spill] sm:$0xff] }
 0x75f   : > { %v7561_v61 = vpop.f32.mrf.mxu1  ;;  %9654 = vmatmul.msk.bf16.gmra.mxu3 %vm3494_vm13, %v14175_v44  ;;  %9688 = vmatmul.msk.bf16.gmra.mxu0 %vm3494_vm13, %v14668_v17 }
 0x760   : > { %9633 = vmatmul.msk.bf16.gmra.mxu2 %vm3494_vm13, %v14175_v44 }
 0x762   : > { %9607 = vmatmul.msk.bf16.gmra.mxu1 %vm3494_vm13, %v16339_v58  ;;  %v8074_v40 = vpop.f32.mrf.mxu3  ;;  %v16344_v58 = vld [vmem:[#allocation63_spill] sm:$0xff] }
 0x763   : > { %v8178_v43 = vadd.f32 %v8074_v40, %v7918_v62  ;;  %v7930_v28 = vpop.f32.mrf.mxu2 }
 0x764   : > { %v15082_v14 = vpop.f32.mrf.mxu0 }
 0x765   : > { %16340 = vst [vmem:[#allocation141_spill] sm:$0xff] %v15082_v14  ;;  %v15085_v46 = vadd.f32 %v8178_v43, %v16341_v13 }
 0x767   : > { %v7562_v61 = vpop.f32.mrf.mxu1 }
 0x768   : > { %v7924_v37 = vadd.f32 %v7923_v60, %v7562_v61  ;;  %v16345_v60 = vld [vmem:[#allocation130_spill] sm:$0xff] }
 0x76a   : > { %v8076_v21 = vpop.f32.mrf.mxu3 }
 0x76b   : > { %v8179_v34 = vadd.f32 %v8076_v21, %v7920_v53  ;;  %v7932_v57 = vpop.f32.mrf.mxu2 }
 0x76c   : > { %v15087_v17 = vpop.f32.mrf.mxu0 }
 0x76d   : > { %16342 = vst [vmem:[#allocation15_spill] sm:$0xff] %v15087_v17  ;;  %v15090_v44 = vadd.f32 %v8179_v34, %v16343_v33  ;;  %v16347_v17 = vld [vmem:[#allocation97_spill] sm:$0xff] }
 0x76f   : > { %v7565_v63 = vpop.f32.mrf.mxu1  ;;  %9655 = vmatmul.msk.bf16.gmra.mxu3 %vm3494_vm13, %v16344_v58  ;;  %9689 = vmatmul.msk.bf16.gmra.mxu0 %vm3494_vm13, %v14710_v10 }
 0x770   : > { %v7927_v62 = vadd.f32 %v7926_v30, %v7565_v63  ;;  %9634 = vmatmul.msk.bf16.gmra.mxu2 %vm3494_vm13, %v16344_v58  ;;  %v16348_v30 = vld [vmem:[#allocation67_spill] sm:$0xff] }
 0x771   : > { %v16349_v58 = vld [vmem:[#allocation83_spill] sm:$0xff] }
 0x772   : > { %9608 = vmatmul.msk.bf16.gmra.mxu1 %vm3494_vm13, %v16345_v60  ;;  %v8079_v53 = vpop.f32.mrf.mxu3 }
 0x773   : > { %v7935_v40 = vpop.f32.mrf.mxu2 }
 0x774   : > { %v8393_v43 = vpop.f32.mrf.mxu0 }
 0x777   : > { %v7567_v13 = vpop.f32.mrf.mxu1 }
 0x77a   : > { %v8080_v61 = vpop.f32.mrf.mxu3 }
 0x77b   : > { %v8180_v21 = vadd.f32 %v8080_v61, %v7924_v37  ;;  %v7936_v34 = vpop.f32.mrf.mxu2 }
 0x77c   : > { %v15100_v33 = vpop.f32.mrf.mxu0 }
 0x77d   : > { %16346 = vst [vmem:[#allocation112_spill] sm:$0xff] %v15100_v33  ;;  %v15103_v14 = vadd.f32 %v8180_v21, %v16347_v17  ;;  %v16351_v17 = vld [vmem:[#allocation75_spill] sm:$0xff] }
 0x77f   : > { %v7569_v10 = vpop.f32.mrf.mxu1  ;;  %9656 = vmatmul.msk.bf16.gmra.mxu3 %vm3494_vm13, %v16348_v30  ;;  %9690 = vmatmul.msk.bf16.gmra.mxu0 %vm3494_vm13, %v14792_v16 }
 0x780   : > { %v7931_v63 = vadd.f32 %v7930_v28, %v7569_v10  ;;  %9635 = vmatmul.msk.bf16.gmra.mxu2 %vm3494_vm13, %v16348_v30 }
 0x782   : > { %9609 = vmatmul.msk.bf16.gmra.mxu1 %vm3494_vm13, %v16349_v58  ;;  %v8083_v37 = vpop.f32.mrf.mxu3 }
 0x783   : > { %v8181_v60 = vadd.f32 %v8083_v37, %v7927_v62  ;;  %v7939_v53 = vpop.f32.mrf.mxu2  ;;  %v16352_v62 = vld [vmem:[#allocation70_spill] sm:$0xff] }
 0x784   : > { %v15113_v40 = vpop.f32.mrf.mxu0 }
 0x785   : > { %16350 = vst [vmem:[#allocation96_spill] sm:$0xff] %v15113_v40  ;;  %v15116_v43 = vadd.f32 %v8181_v60, %v16351_v17 }
 0x787   : > { %v7571_v13 = vpop.f32.mrf.mxu1 }
 0x788   : > { %v7933_v61 = vadd.f32 %v7932_v57, %v7571_v13 }
 0x78a   : > { %v8085_v21 = vpop.f32.mrf.mxu3 }
 0x78b   : > { %v7941_v33 = vpop.f32.mrf.mxu2 }
 0x78c   : > { %v8400_v16 = vpop.f32.mrf.mxu0  ;;  %v16353_v33 = vld [vmem:[#allocation81_spill] sm:$0xff] }
 0x78f   : > { %v7574_v28 = vpop.f32.mrf.mxu1  ;;  %9657 = vmatmul.msk.bf16.gmra.mxu3 %vm3494_vm13, %v14368_v47  ;;  %9691 = vmatmul.msk.bf16.gmra.mxu0 %vm3494_vm13, %v14895_v27 }
 0x790   : > { %9636 = vmatmul.msk.bf16.gmra.mxu2 %vm3494_vm13, %v14368_v47  ;;  %v16354_v28 = vld [vmem:[#allocation106_spill] sm:$0xff] }
 0x792   : > { %9610 = vmatmul.msk.bf16.gmra.mxu1 %vm3494_vm13, %v16352_v62  ;;  %v8087_v10 = vpop.f32.mrf.mxu3 }
 0x793   : > { %v8182_v30 = vadd.f32 %v8087_v10, %v7931_v63  ;;  %v7943_v58 = vpop.f32.mrf.mxu2 }
 0x794   : > { %v15126_v57 = vpop.f32.mrf.mxu0 }
 0x795   : > { %v15129_v37 = vadd.f32 %v8182_v30, %v16353_v33 }
 0x797   : > { %v7575_v60 = vpop.f32.mrf.mxu1 }
 0x798   : > { %v7937_v17 = vadd.f32 %v7936_v34, %v7575_v60 }
 0x79a   : > { %v8089_v13 = vpop.f32.mrf.mxu3 }
 0x79b   : > { %v8183_v21 = vadd.f32 %v8089_v13, %v7933_v61  ;;  %v7945_v16 = vpop.f32.mrf.mxu2 }
 0x79c   : > { %v15131_v27 = vpop.f32.mrf.mxu0 }
 0x79d   : > { %v15134_v47 = vadd.f32 %v8183_v21, %v16354_v28  ;;  %v16355_v21 = vld [vmem:[#allocation89_spill] sm:$0xff] }
 0x79f   : > { %v7578_v40 = vpop.f32.mrf.mxu1  ;;  %9658 = vmatmul.msk.bf16.gmra.mxu3 %vm3494_vm13, %v14411_v6  ;;  %9692 = vmatmul.msk.bf16.gmra.mxu0 %vm3494_vm13, %v14898_v39 }
 0x7a0   : > { %v7940_v63 = vadd.f32 %v7939_v53, %v7578_v40  ;;  %9637 = vmatmul.msk.bf16.gmra.mxu2 %vm3494_vm13, %v14411_v6 }
 0x7a2   : > { %9611 = vmatmul.msk.bf16.gmra.mxu1 %vm3494_vm13, %v14376_v4  ;;  %v8092_v34 = vpop.f32.mrf.mxu3 }
 0x7a3   : > { %v7948_v61 = vpop.f32.mrf.mxu2 }
 0x7a4   : > { %v8406_v62 = vpop.f32.mrf.mxu0 }
 0x7a7   : > { %v7580_v10 = vpop.f32.mrf.mxu1 }
 0x7aa   : > { %v8093_v30 = vpop.f32.mrf.mxu3 }
 0x7ab   : > { %v8184_v33 = vadd.f32 %v8093_v30, %v7937_v17  ;;  %v7949_v60 = vpop.f32.mrf.mxu2 }
 0x7ac   : > { %v15144_v13 = vpop.f32.mrf.mxu0 }
 0x7ad   : > { %v15147_v28 = vadd.f32 %v8184_v33, %v16355_v21  ;;  %v16357_v33 = vld [vmem:[#allocation40_spill] sm:$0xff] }
 0x7af   : > { %v7582_v39 = vpop.f32.mrf.mxu1  ;;  %9659 = vmatmul.msk.bf16.gmra.mxu3 %vm3494_vm13, %v14454_v48  ;;  %9693 = vmatmul.msk.bf16.gmra.mxu0 %vm3494_vm13, %v14951_v0 }
 0x7b0   : > { %v7944_v4 = vadd.f32 %v7943_v58, %v7582_v39  ;;  %9638 = vmatmul.msk.bf16.gmra.mxu2 %vm3494_vm13, %v14454_v48 }
 0x7b2   : > { %9612 = vmatmul.msk.bf16.gmra.mxu1 %vm3494_vm13, %v14461_v59  ;;  %v8096_v6 = vpop.f32.mrf.mxu3 }
 0x7b3   : > { %v8185_v53 = vadd.f32 %v8096_v6, %v7940_v63  ;;  %v7952_v40 = vpop.f32.mrf.mxu2 }
 0x7b4   : > { %v15157_v17 = vpop.f32.mrf.mxu0 }
 0x7b5   : > { %v15160_v34 = vadd.f32 %v8185_v53, %v14382_v45 }
 0x7b7   : > { %v7584_v61 = vpop.f32.mrf.mxu1 }
 0x7b8   : > { %v7946_v62 = vadd.f32 %v7945_v16, %v7584_v61 }
 0x7ba   : > { %v8098_v10 = vpop.f32.mrf.mxu3 }
 0x7bb   : > { %v7954_v30 = vpop.f32.mrf.mxu2 }
 0x7bc   : > { %v8413_v0 = vpop.f32.mrf.mxu0  ;;  %v16359_v30 = vld [vmem:[#allocation113_spill] sm:$0xff] }
 0x7bf   : > { %v7587_v58 = vpop.f32.mrf.mxu1  ;;  %9660 = vmatmul.msk.bf16.gmra.mxu3 %vm3494_vm13, %v14539_v54 }
 0x7c0   : > { %9639 = vmatmul.msk.bf16.gmra.mxu2 %vm3494_vm13, %v14539_v54 }
 0x7c2   : > { %9613 = vmatmul.msk.bf16.gmra.mxu1 %vm3494_vm13, %v14500_v32  ;;  %v8100_v48 = vpop.f32.mrf.mxu3 }
 0x7c3   : > { %v8186_v59 = vadd.f32 %v8100_v48, %v7944_v4  ;;  %v7956_v63 = vpop.f32.mrf.mxu2 }
 0x7c4   : > { %v15168_v45 = vpop.f32.mrf.mxu0 }
 0x7c5   : > { %16356 = vst [vmem:[#allocation7_spill] sm:$0xff] %v15168_v45  ;;  %v15171_v16 = vadd.f32 %v8186_v59, %v16357_v33 }
 0x7c7   : > { %v7588_v21 = vpop.f32.mrf.mxu1 }
 0x7c8   : > { %v7950_v39 = vadd.f32 %v7949_v60, %v7588_v21 }
 0x7ca   : > { %v8102_v6 = vpop.f32.mrf.mxu3 }
 0x7cb   : > { %v8187_v53 = vadd.f32 %v8102_v6, %v7946_v62  ;;  %v7958_v61 = vpop.f32.mrf.mxu2  ;;  %v16361_v6 = vld [vmem:[#allocation78_spill] sm:$0xff] }
 0x7cc   : > { %v15173_v10 = vpop.f32.mrf.mxu0 }
 0x7cd   : > { %16358 = vst [vmem:[#allocation61_spill] sm:$0xff] %v15173_v10  ;;  %v15176_v54 = vadd.f32 %v8187_v53, %v16359_v30  ;;  %v16370_v10 = vld [vmem:[#allocation98_spill] sm:$0xff] }
 0x7cf   : > { %v7591_v0 = vpop.f32.mrf.mxu1  ;;  %9661 = vmatmul.msk.bf16.gmra.mxu3 %vm3494_vm13, %v14588_v26 }
 0x7d0   : > { %v7953_v32 = vadd.f32 %v7952_v40, %v7591_v0  ;;  %9640 = vmatmul.msk.bf16.gmra.mxu2 %vm3494_vm13, %v14588_v26 }
 0x7d2   : > { %9614 = vmatmul.msk.bf16.gmra.mxu1 %vm3494_vm13, %v14548_v36  ;;  %v8105_v60 = vpop.f32.mrf.mxu3  ;;  %v16362_v36 = vld [vmem:[#allocation86_spill] sm:$0xff] }
 0x7d3   : > { %v7961_v4 = vpop.f32.mrf.mxu2 }
 0x7d4   : > { %v8419_v62 = vpop.f32.mrf.mxu0  ;;  %v16364_v4 = vld [vmem:[#allocation115_spill] sm:$0xff] }
 0x7d7   : > { %v7593_v58 = vpop.f32.mrf.mxu1 }
 0x7da   : > { %v8106_v48 = vpop.f32.mrf.mxu3 }
 0x7db   : > { %v8188_v59 = vadd.f32 %v8106_v48, %v7950_v39  ;;  %v7962_v33 = vpop.f32.mrf.mxu2 }
 0x7dc   : > { %v15184_v21 = vpop.f32.mrf.mxu0 }
 0x7dd   : > { %16360 = vst [vmem:[#allocation144_spill] sm:$0xff] %v15184_v21  ;;  %v15187_v53 = vadd.f32 %v8188_v59, %v16361_v6 }
 0x7df   : > { %v7595_v30 = vpop.f32.mrf.mxu1  ;;  %9662 = vmatmul.msk.bf16.gmra.mxu3 %vm3494_vm13, %v14631_v20 }
 0x7e0   : > { %v7957_v26 = vadd.f32 %v7956_v63, %v7595_v30  ;;  %9641 = vmatmul.msk.bf16.gmra.mxu2 %vm3494_vm13, %v14631_v20  ;;  %v16365_v30 = vld [vmem:[#allocation105_spill] sm:$0xff] }
 0x7e1   : > { %v16366_v20 = vld [vmem:[#allocation85_spill] sm:$0xff] }
 0x7e2   : > { %9615 = vmatmul.msk.bf16.gmra.mxu1 %vm3494_vm13, %v16362_v36  ;;  %v8109_v40 = vpop.f32.mrf.mxu3 }
 0x7e3   : > { %v8189_v0 = vadd.f32 %v8109_v40, %v7953_v32  ;;  %v7965_v39 = vpop.f32.mrf.mxu2 }
 0x7e4   : > { %v15195_v60 = vpop.f32.mrf.mxu0 }
 0x7e5   : > { %16363 = vst [vmem:[#allocation41_spill] sm:$0xff] %v15195_v60  ;;  %v15198_v62 = vadd.f32 %v8189_v0, %v16364_v4  ;;  %v16368_v4 = vld [vmem:[#allocation94_spill] sm:$0xff] }
 0x7e7   : > { %v7597_v58 = vpop.f32.mrf.mxu1 }
 0x7e8   : > { %v7959_v48 = vadd.f32 %v7958_v61, %v7597_v58 }
 0x7ea   : > { %v8111_v59 = vpop.f32.mrf.mxu3 }
 0x7eb   : > { %v7967_v6 = vpop.f32.mrf.mxu2 }
 0x7ec   : > { %v8426_v21 = vpop.f32.mrf.mxu0 }
 0x7ef   : > { %v7600_v63 = vpop.f32.mrf.mxu1  ;;  %9663 = vmatmul.msk.bf16.gmra.mxu3 %vm3494_vm13, %v16365_v30 }
 0x7f0   : > { %9642 = vmatmul.msk.bf16.gmra.mxu2 %vm3494_vm13, %v16365_v30 }
 0x7f2   : > { %9616 = vmatmul.msk.bf16.gmra.mxu1 %vm3494_vm13, %v16366_v20  ;;  %v8113_v32 = vpop.f32.mrf.mxu3  ;;  %v16371_v20 = vld [vmem:[#allocation109_spill] sm:$0xff] }
 0x7f3   : > { %v8190_v36 = vadd.f32 %v8113_v32, %v7957_v26  ;;  %v7969_v40 = vpop.f32.mrf.mxu2 }
 0x7f4   : > { %v15206_v0 = vpop.f32.mrf.mxu0 }
 0x7f5   : > { %16367 = vst [vmem:[#allocation117_spill] sm:$0xff] %v15206_v0  ;;  %v15209_v61 = vadd.f32 %v8190_v36, %v16368_v4 }
 0x7f7   : > { %v7601_v58 = vpop.f32.mrf.mxu1 }
 0x7f8   : > { %v7963_v21 = vadd.f32 %v7962_v33, %v7601_v58 }
 0x7fa   : > { %v8115_v59 = vpop.f32.mrf.mxu3 }
 0x7fb   : > { %v8191_v6 = vadd.f32 %v8115_v59, %v7959_v48  ;;  %v7971_v63 = vpop.f32.mrf.mxu2 }
 0x7fc   : > { %v15211_v60 = vpop.f32.mrf.mxu0 }
 0x7fd   : > { %16369 = vst [vmem:[#allocation19_spill] sm:$0xff] %v15211_v60  ;;  %v15214_v30 = vadd.f32 %v8191_v6, %v16370_v10  ;;  %v16373_v6 = vld [vmem:[#allocation103_spill] sm:$0xff] }
 0x7ff   : > { %v7604_v45 = vpop.f32.mrf.mxu1  ;;  %9664 = vmatmul.msk.bf16.gmra.mxu3 %vm3494_vm13, %v14758_v50 }
 0x800   : > { %v7966_v26 = vadd.f32 %v7965_v39, %v7604_v45  ;;  %9643 = vmatmul.msk.bf16.gmra.mxu2 %vm3494_vm13, %v14758_v50 }
 0x802   : > { %9617 = vmatmul.msk.bf16.gmra.mxu1 %vm3494_vm13, %v16371_v20  ;;  %v8118_v33 = vpop.f32.mrf.mxu3 }
 0x803   : > { %v7974_v32 = vpop.f32.mrf.mxu2  ;;  %v16375_v33 = vld [vmem:[#allocation4_spill] sm:$0xff] }
 0x804   : > { %v8432_v48 = vpop.f32.mrf.mxu0 }
 0x807   : > { %v7606_v36 = vpop.f32.mrf.mxu1 }
 0x80a   : > { %v8119_v4 = vpop.f32.mrf.mxu3 }
 0x80b   : > { %v8192_v58 = vadd.f32 %v8119_v4, %v7963_v21  ;;  %v7975_v59 = vpop.f32.mrf.mxu2 }
 0x80c   : > { %v15222_v10 = vpop.f32.mrf.mxu0 }
 0x80d   : > { %16372 = vst [vmem:[#allocation18_spill] sm:$0xff] %v15222_v10  ;;  %v15225_v60 = vadd.f32 %v8192_v58, %v16373_v6 }
 0x80f   : > { %v7608_v0 = vpop.f32.mrf.mxu1  ;;  %9665 = vmatmul.msk.bf16.gmra.mxu3 %vm3494_vm13, %v14799_v9 }
 0x810   : > { %v7970_v50 = vadd.f32 %v7969_v40, %v7608_v0  ;;  %9644 = vmatmul.msk.bf16.gmra.mxu2 %vm3494_vm13, %v14799_v9 }
 0x812   : > { %9618 = vmatmul.msk.bf16.gmra.mxu1 %vm3494_vm13, %v14809_v52  ;;  %v8122_v45 = vpop.f32.mrf.mxu3 }
 0x813   : > { %v8193_v39 = vadd.f32 %v8122_v45, %v7966_v26  ;;  %v7978_v21 = vpop.f32.mrf.mxu2  ;;  %v16377_v45 = vld [vmem:[#allocation116_spill] sm:$0xff] }
 0x814   : > { %v15233_v20 = vpop.f32.mrf.mxu0 }
 0x815   : > { %16374 = vst [vmem:[#allocation111_spill] sm:$0xff] %v15233_v20  ;;  %v15236_v32 = vadd.f32 %v8193_v39, %v16375_v33 }
 0x817   : > { %v7610_v48 = vpop.f32.mrf.mxu1 }
 0x818   : > { %v7972_v36 = vadd.f32 %v7971_v63, %v7610_v48 }
 0x81a   : > { %v8124_v4 = vpop.f32.mrf.mxu3 }
 0x81b   : > { %v7980_v58 = vpop.f32.mrf.mxu2 }
 0x81c   : > { %v8439_v6 = vpop.f32.mrf.mxu0 }
 0x81d   : > { %v16379_v6 = vld [vmem:[#allocation118_spill] sm:$0xff] }
 0x81f   : > { %v7613_v40 = vpop.f32.mrf.mxu1  ;;  %9666 = vmatmul.msk.bf16.gmra.mxu3 %vm3494_vm13, %v14881_v22 }
 0x820   : > { %9645 = vmatmul.msk.bf16.gmra.mxu2 %vm3494_vm13, %v14912_v42 }
 0x822   : > { %9619 = vmatmul.msk.bf16.gmra.mxu1 %vm3494_vm13, %v14919_v2  ;;  %v8126_v9 = vpop.f32.mrf.mxu3  ;;  %v888_v2 = vld [vmem:[#allocation3 + $0xd8] sm:$0x1] }
 0x823   : > { %v8194_v52 = vadd.f32 %v8126_v9, %v7970_v50  ;;  %v7982_v0 = vpop.f32.mrf.mxu2  ;;  %v889_v9 = vsel %vm10823_vm8, 0, %v888_v2 }
 0x824   : > { %v15244_v26 = vpop.f32.mrf.mxu0  ;;  %890 = vst [vmem:[#allocation3 + $0xd8] sm:$0x1] %v889_v9 }
 0x825   : > { %16376 = vst [vmem:[#allocation21_spill] sm:$0xff] %v15244_v26  ;;  %v15247_v63 = vadd.f32 %v8194_v52, %v16377_v45  ;;  %v16380_v52 = vld [vmem:[#allocation84_spill] sm:$0xff] }
 0x827   : > { %v7614_v39 = vpop.f32.mrf.mxu1 }
 0x828   : > { %v7976_v33 = vadd.f32 %v7975_v59, %v7614_v39  ;;  %v8038_v39 = vshll.u32 %v14930_v19, 16 }
 0x82a   : > { %v8128_v48 = vpop.f32.mrf.mxu3 }
 0x82b   : > { %v8195_v4 = vadd.f32 %v8128_v48, %v7972_v36  ;;  %v7984_v58 = vpop.f32.mrf.mxu2 }
 0x82c   : > { %v15249_v22 = vpop.f32.mrf.mxu0 }
 0x82d   : > { %16378 = vst [vmem:[#allocation11_spill] sm:$0xff] %v15249_v22  ;;  %v15252_v42 = vadd.f32 %v8195_v4, %v16379_v6  ;;  %v949_v4 = vld [vmem:[#allocation3 + $0xd8] sm:$0xf]  ;;  %v8037_v22 = vor.u32 %v8035_v51, %v14932_v56  ;;  %v8042_v51 = vshrl.u32 %v14930_v19, 16 }
 0x82f   : > { %v7617_v40 = vpop.f32.mrf.mxu1  ;;  %9667 = vmatmul.msk.bf16.gmra.mxu3 %vm3494_vm13, %v14945_v38  ;;  %v16383_v38 = vld [vmem:[#allocation8_spill] sm:$0xff] }
 0x830   : > { %v7979_v50 = vadd.f32 %v7978_v21, %v7617_v40  ;;  %9718 = vmatmul.msk.bf16.vlgmr.msra.gmra.mxu2 %vm3494_vm13, %v16380_v52  ;;  %v950_v21 = vsel %vm10908_vm12, 0, %v949_v4  ;;  %v8040_v40 = vrot.slane %v8038_v39, 1 }
 0x831   : > { %951 = vst [vmem:[#allocation3 + $0xd8] sm:$0xf] %v950_v21 }
 0x832   : > { %9620 = vmatmul.msk.bf16.gmra.mxu1 %vm3494_vm13, %v14924_v41  ;;  %v8131_v59 = vpop.f32.mrf.mxu3  ;;  %v16382_v41 = vld [vmem:[#allocation58_spill] sm:$0xff] }
 0x833   : > { %v7987_v36 = vpop.f32.mrf.mxu2 }
 0x834   : > { %v8445_v45 = vpop.f32.mrf.mxu0  ;;  %v8041_v36 = vsel %vm4133_vm4, %v8037_v22, %v8040_v40 }
 0x837   : > { %v7619_v48 = vpop.f32.mrf.mxu1 }
 0x838   : > { %v6597_v4 = vld [vmem:[#allocation3 + $0xd8] sm:$0xf] }
 0x839   : > { %v8022_v39 = vunpack.c.l.b16 %v6597_v4 }
 0x83a   : > { %v8132_v6 = vpop.f32.mrf.mxu3 }
 0x83b   : > { %v8196_v2 = vadd.f32 %v8132_v6, %v7976_v33  ;;  %v7988_v9 = vpop.f32.mrf.mxu2  ;;  %v15276_v6 = vpack.c.b16 %v8022_v39, %v8022_v39 }
 0x83d   : > { %v15268_v59 = vadd.f32 %v8196_v2, %v16382_v41 }
 0x83f   : > { %v7621_v45 = vpop.f32.mrf.mxu1  ;;  %9668 = vmatmul.msk.bf16.gmra.mxu3 %vm3494_vm13, %v8041_v36  ;;  %v8044_v36 = vor.u32 %v8042_v51, %v8040_v40 }
 0x840   : > { %v7983_v48 = vadd.f32 %v7982_v0, %v7621_v45  ;;  %9719 = vmatmul.msk.bf16.gmra.mxu2 %vm3494_vm13, %v16383_v38  ;;  %v8046_v0 = vshll.u32 %v15276_v6, 16 }
 0x842   : > { %9621 = vmatmul.msk.bf16.gmra.mxu1 %vm3494_vm13, %v14959_v35  ;;  %v8135_v33 = vpop.f32.mrf.mxu3  ;;  %v8048_v45 = vrot.slane %v8046_v0, 1 }
 0x843   : > { %v8197_v21 = vadd.f32 %v8135_v33, %v7979_v50  ;;  %v7991_v56 = vpop.f32.mrf.mxu2  ;;  %v16384_v50 = vld [vmem:[#allocation87_spill] sm:$0xff]  ;;  %v16385_v33 = vld [vmem:[#allocation38_spill] sm:$0xff] }
 0x844   : > { %v8049_v35 = vsel %vm4133_vm4, %v8044_v36, %v8048_v45  ;;  %v16386_v45 = vld [vmem:[#allocation127_spill] sm:$0xff] }
 0x845   : > { %v15280_v22 = vadd.f32 %v8197_v21, %v14907_v31 }
 0x847   : > { %v7623_v2 = vpop.f32.mrf.mxu1 }
 0x848   : > { %v7985_v41 = vadd.f32 %v7984_v58, %v7623_v2 }
 0x84a   : > { %v8137_v26 = vpop.f32.mrf.mxu3 }
 0x84b   : > { %v7993_v20 = vpop.f32.mrf.mxu2 }
 0x84f   : > { %v7626_v4 = vpop.f32.mrf.mxu1  ;;  %9669 = vmatmul.msk.bf16.gmra.mxu3 %vm3494_vm13, %v8049_v35 }
 0x850   : > { %9720 = vmatmul.msk.bf16.gmra.mxu2 %vm3494_vm13, %v16384_v50  ;;  %v16387_v4 = vld [vmem:[#allocation16_spill] sm:$0xff] }
 0x852   : > { %v8139_v19 = vpop.f32.mrf.mxu3  ;;  %9694 = vmatmul.msk.bf16.vlgmr.msra.gmra.mxu1 %vm3494_vm13, %v16385_v33 }
 0x853   : > { %v8198_v31 = vadd.f32 %v8139_v19, %v7983_v48  ;;  %v7995_v39 = vpop.f32.mrf.mxu2 }
 0x855   : > { %v15290_v58 = vadd.f32 %v8198_v31, %v14954_v5 }
 0x857   : > { %v7627_v40 = vpop.f32.mrf.mxu1 }
 0x858   : > { %v7989_v26 = vadd.f32 %v7988_v9, %v7627_v40  ;;  %v16388_v40 = vld [vmem:[#allocation59_spill] sm:$0xff] }
 0x85a   : > { %v8141_v20 = vpop.f32.mrf.mxu3 }
 0x85b   : > { %v8199_v21 = vadd.f32 %v8141_v20, %v7985_v41  ;;  %v7997_v51 = vpop.f32.mrf.mxu2  ;;  %v16389_v20 = vld [vmem:[#allocation49_spill] sm:$0xff] }
 0x85d   : > { %v15293_v0 = vadd.f32 %v8199_v21, %v14965_v18 }
 0x85f   : > { %v7630_v2 = vpop.f32.mrf.mxu1 }
 0x860   : > { %v7992_v36 = vadd.f32 %v7991_v56, %v7630_v2  ;;  %9721 = vmatmul.msk.bf16.gmra.mxu2 %vm3494_vm13, %v16386_v45 }
 0x862   : > { %v8144_v35 = vpop.f32.mrf.mxu3  ;;  %9695 = vmatmul.msk.bf16.gmra.mxu1 %vm3494_vm13, %v16387_v4 }
 0x863   : > { %v8000_v48 = vpop.f32.mrf.mxu2 }
 0x867   : > { %v7632_v5 = vpop.f32.mrf.mxu1 }
 0x86a   : > { %v8145_v19 = vpop.f32.mrf.mxu3 }
 0x86b   : > { %v8200_v33 = vadd.f32 %v8145_v19, %v7989_v26  ;;  %v8001_v9 = vpop.f32.mrf.mxu2  ;;  %v16390_v19 = vld [vmem:[#allocation23_spill] sm:$0xff] }
 0x86d   : > { %v15300_v41 = vadd.f32 %v8200_v33, %v14978_v8 }
 0x86f   : > { %v7634_v31 = vpop.f32.mrf.mxu1 }
 0x870   : > { %v7996_v18 = vadd.f32 %v7995_v39, %v7634_v31  ;;  %9722 = vmatmul.msk.bf16.gmra.mxu2 %vm3494_vm13, %v16388_v40 }
 0x872   : > { %v8148_v56 = vpop.f32.mrf.mxu3  ;;  %9696 = vmatmul.msk.bf16.gmra.mxu1 %vm3494_vm13, %v16389_v20 }
 0x873   : > { %v8201_v21 = vadd.f32 %v8148_v56, %v7992_v36  ;;  %v8004_v2 = vpop.f32.mrf.mxu2 }
 0x875   : > { %v15307_v35 = vadd.f32 %v8201_v21, %v14988_v12 }
 0x877   : > { %v7636_v4 = vpop.f32.mrf.mxu1 }
 0x878   : > { %v7998_v26 = vadd.f32 %v7997_v51, %v7636_v4 }
 0x87a   : > { %v8150_v48 = vpop.f32.mrf.mxu3 }
 0x87b   : > { %v8006_v5 = vpop.f32.mrf.mxu2 }
 0x87f   : > { %v7639_v8 = vpop.f32.mrf.mxu1 }
 0x880   : > { %9723 = vmatmul.msk.bf16.gmra.mxu2 %vm3494_vm13, %v16390_v19  ;;  %v16391_v8 = vld [vmem:[#allocation92_spill] sm:$0xff] }
 0x882   : > { %v8152_v39 = vpop.f32.mrf.mxu3  ;;  %9697 = vmatmul.msk.bf16.gmra.mxu1 %vm3494_vm13, %v16380_v52 }
 0x883   : > { %v8202_v33 = vadd.f32 %v8152_v39, %v7996_v18  ;;  %v8008_v31 = vpop.f32.mrf.mxu2 }
 0x885   : > { %v15314_v36 = vadd.f32 %v8202_v33, %v15000_v29 }
 0x887   : > { %v7640_v56 = vpop.f32.mrf.mxu1 }
 0x888   : > { %v8002_v12 = vadd.f32 %v8001_v9, %v7640_v56  ;;  %v16392_v56 = vld [vmem:[#allocation68_spill] sm:$0xff] }
 0x88a   : > { %v8154_v20 = vpop.f32.mrf.mxu3 }
 0x88b   : > { %v8203_v21 = vadd.f32 %v8154_v20, %v7998_v26  ;;  %v8010_v51 = vpop.f32.mrf.mxu2 }
 0x88d   : > { %v15317_v4 = vadd.f32 %v8203_v21, %v15006_v24 }
 0x88f   : > { %v7643_v48 = vpop.f32.mrf.mxu1 }
 0x890   : > { %v8005_v5 = vadd.f32 %v8004_v2, %v7643_v48  ;;  %9724 = vmatmul.msk.bf16.gmra.mxu2 %vm3494_vm13, %v16391_v8 }
 0x892   : > { %v8157_v10 = vpop.f32.mrf.mxu3  ;;  %9698 = vmatmul.msk.bf16.gmra.mxu1 %vm3494_vm13, %v16383_v38 }
 0x893   : > { %v8013_v52 = vpop.f32.mrf.mxu2 }
 0x897   : > { %v7645_v29 = vpop.f32.mrf.mxu1 }
 0x898   : > { %v16393_v29 = vld [vmem:[#allocation56_spill] sm:$0xff] }
 0x89a   : > { %v8158_v18 = vpop.f32.mrf.mxu3 }
 0x89b   : > { %v8204_v39 = vadd.f32 %v8158_v18, %v8002_v12  ;;  %v8014_v9 = vpop.f32.mrf.mxu2 }
 0x89d   : > { %v15324_v26 = vadd.f32 %v8204_v39, %v15018_v23 }
 0x89f   : > { %v7647_v33 = vpop.f32.mrf.mxu1 }
 0x8a0   : > { %v8009_v24 = vadd.f32 %v8008_v31, %v7647_v33  ;;  %9725 = vmatmul.msk.bf16.gmra.mxu2 %vm3494_vm13, %v16392_v56 }
 0x8a2   : > { %v8161_v2 = vpop.f32.mrf.mxu3  ;;  %9699 = vmatmul.msk.bf16.gmra.mxu1 %vm3494_vm13, %v16384_v50 }
 0x8a3   : > { %v8205_v10 = vadd.f32 %v8161_v2, %v8005_v5  ;;  %v8017_v20 = vpop.f32.mrf.mxu2 }
 0x8a5   : > { %v15331_v38 = vadd.f32 %v8205_v10, %v15028_v25 }
 0x8a7   : > { %v7649_v21 = vpop.f32.mrf.mxu1 }
 0x8a8   : > { %v8011_v12 = vadd.f32 %v8010_v51, %v7649_v21 }
 0x8aa   : > { %v8163_v48 = vpop.f32.mrf.mxu3 }
 0x8ab   : > { %v8019_v52 = vpop.f32.mrf.mxu2 }
 0x8ac   : > { %v16394_v52 = vld [vmem:[#allocation101_spill] sm:$0xff] }
 0x8af   : > { %v7652_v23 = vpop.f32.mrf.mxu1 }
 0x8b0   : > { %9726 = vmatmul.msk.bf16.gmra.mxu2 %vm3494_vm13, %v16393_v29 }
 0x8b2   : > { %v8165_v31 = vpop.f32.mrf.mxu3  ;;  %9700 = vmatmul.msk.bf16.gmra.mxu1 %vm3494_vm13, %v16386_v45 }
 0x8b3   : > { %v8206_v18 = vadd.f32 %v8165_v31, %v8009_v24  ;;  %v8716_v39 = vpop.f32.mrf.mxu2 }
 0x8b5   : > { %v15338_v50 = vadd.f32 %v8206_v18, %v15040_v49  ;;  %v16395_v18 = vld [vmem:[#allocation133_spill] sm:$0xff] }
 0x8b7   : > { %v7653_v5 = vpop.f32.mrf.mxu1 }
 0x8b8   : > { %v8015_v25 = vadd.f32 %v8014_v9, %v7653_v5 }
 0x8ba   : > { %v8167_v33 = vpop.f32.mrf.mxu3 }
 0x8bb   : > { %v8207_v2 = vadd.f32 %v8167_v33, %v8011_v12  ;;  %v8718_v51 = vpop.f32.mrf.mxu2 }
 0x8bd   : > { %v15341_v10 = vadd.f32 %v8207_v2, %v15046_v55 }
 0x8bf   : > { %v7656_v21 = vpop.f32.mrf.mxu1 }
 0x8c0   : > { %v8018_v48 = vadd.f32 %v8017_v20, %v7656_v21  ;;  %9727 = vmatmul.msk.bf16.gmra.mxu2 %vm3494_vm13, %v16394_v52  ;;  %v16396_v20 = vld [vmem:[#allocation102_spill] sm:$0xff] }
 0x8c2   : > { %v8170_v23 = vpop.f32.mrf.mxu3  ;;  %9701 = vmatmul.msk.bf16.gmra.mxu1 %vm3494_vm13, %v16388_v40  ;;  %v15356_v40 = vld [vmem:[%s15606_s9] ss:$0 sm:$0xff] }
 0x8c3   : > { %v8721_v45 = vpop.f32.mrf.mxu2 }
 0x8c7   : > { %v7658_v49 = vpop.f32.mrf.mxu1 }
 0x8ca   : > { %v8171_v24 = vpop.f32.mrf.mxu3 }
 0x8cb   : > { %v8208_v9 = vadd.f32 %v8171_v24, %v8015_v25  ;;  %v8722_v31 = vpop.f32.mrf.mxu2 }
 0x8cd   : > { %v15348_v12 = vadd.f32 %v8208_v9, %v15058_v15 }
 0x8cf   : > { %v8580_v55 = vpop.f32.mrf.mxu1 }
 0x8d0   : > { %v8581_v5 = vadd.f32 %v8580_v55, %v16395_v18  ;;  %9728 = vmatmul.msk.bf16.gmra.mxu2 %vm3494_vm13, %v16396_v20 }
 0x8d2   : > { %v8820_v33 = vadd.f32 %v8716_v39, %v8581_v5  ;;  %v8174_v2 = vpop.f32.mrf.mxu3  ;;  %9702 = vmatmul.msk.bf16.gmra.mxu1 %vm3494_vm13, %v16390_v19  ;;  %v16397_v19 = vld [vmem:[#allocation114_spill] sm:$0xff] }
 0x8d3   : > { %v8209_v25 = vadd.f32 %v8174_v2, %v8018_v48  ;;  %v8725_v21 = vpop.f32.mrf.mxu2 }
 0x8d4   : > { %v8884_v15 = vadd.f32 %v15085_v46, %v8820_v33  ;;  %v16398_v33 = vld [vmem:[#allocation108_spill] sm:$0xff] }
 0x8d5   : > { %v15362_v23 = vadd.f32 %v8209_v25, %v15070_v3 }
 0x8d6   : > { %v8920_v45 = vadd.f32 %v15356_v40, %v8884_v15 }
 0x8d7   : > { %v8582_v39 = vpop.f32.mrf.mxu1 }
 0x8d8   : > { %v8952_v49 = vmax.f32 %v8920_v45, 0.0  ;;  %v8583_v48 = vadd.f32 %v8582_v39, %v16397_v19 }
 0x8da   : > { %8984 = vst.msk [vmem:[%s15370_s2] sm:$0xff] %vm3494_vm13, %v8952_v49  ;;  %v8821_v46 = vadd.f32 %v8718_v51, %v8583_v48  ;;  %v8176_v24 = vpop.f32.mrf.mxu3  ;;  %v16399_v48 = vld [vmem:[#allocation37_spill] sm:$0xff] }
 0x8db   : > { %v8727_v9 = vpop.f32.mrf.mxu2  ;;  %v16400_v24 = vld [vmem:[#allocation74_spill] sm:$0xff] }
 0x8dc   : > { %v8885_v3 = vadd.f32 %v15090_v44, %v8821_v46 }
 0x8de   : > { %v8921_v55 = vadd.f32 %v15356_v40, %v8885_v3 }
 0x8df   : > { %v8585_v18 = vpop.f32.mrf.mxu1 }
 0x8e0   : > { %v8953_v5 = vmax.f32 %v8921_v55, 0.0  ;;  %9729 = vmatmul.msk.bf16.gmra.mxu2 %vm3494_vm13, %v16398_v33 }
 0x8e2   : > { %8985 = vst.msk [vmem:[%s15370_s2 + $0x8] sm:$0xff] %vm3494_vm13, %v8953_v5  ;;  %9703 = vmatmul.msk.bf16.gmra.mxu1 %vm3494_vm13, %v16391_v8  ;;  %v16401_v5 = vld [vmem:[#allocation27_spill] sm:$0xff] }
 0x8e3   : > { %v8729_v2 = vpop.f32.mrf.mxu2 }
 0x8e7   : > { %v8586_v25 = vpop.f32.mrf.mxu1 }
 0x8e8   : > { %v8587_v51 = vadd.f32 %v8586_v25, %v14961_v7 }
 0x8ea   : > { %v8822_v15 = vadd.f32 %v8722_v31, %v8587_v51  ;;  %v16402_v51 = vld [vmem:[#allocation90_spill] sm:$0xff] }
 0x8eb   : > { %v8731_v45 = vpop.f32.mrf.mxu2 }
 0x8ec   : > { %v8886_v44 = vadd.f32 %v15103_v14, %v8822_v15 }
 0x8ee   : > { %v8922_v39 = vadd.f32 %v15356_v40, %v8886_v44 }
 0x8ef   : > { %v8589_v49 = vpop.f32.mrf.mxu1 }
 0x8f0   : > { %v8954_v19 = vmax.f32 %v8922_v39, 0.0  ;;  %v8590_v46 = vadd.f32 %v8589_v49, %v16399_v48  ;;  %9730 = vmatmul.msk.bf16.gmra.mxu2 %vm3494_vm13, %v16400_v24  ;;  %v16403_v49 = vld [vmem:[#allocation137_spill] sm:$0xff] }
 0x8f2   : > { %8986 = vst.msk [vmem:[%s15370_s2 + $0x10] sm:$0xff] %vm3494_vm13, %v8954_v19  ;;  %v8823_v8 = vadd.f32 %v8725_v21, %v8590_v46  ;;  %9704 = vmatmul.msk.bf16.gmra.mxu1 %vm3494_vm13, %v16392_v56 }
 0x8f3   : > { %v8734_v31 = vpop.f32.mrf.mxu2 }
 0x8f4   : > { %v8887_v7 = vadd.f32 %v15116_v43, %v8823_v8  ;;  %v16404_v31 = vld [vmem:[#allocation93_spill] sm:$0xff] }
 0x8f6   : > { %v8923_v14 = vadd.f32 %v15356_v40, %v8887_v7 }
 0x8f7   : > { %v8591_v3 = vpop.f32.mrf.mxu1 }
 0x8f8   : > { %v8955_v9 = vmax.f32 %v8923_v14, 0.0 }
 0x8fa   : > { %8987 = vst.msk [vmem:[%s15370_s2 + $0x18] sm:$0xff] %vm3494_vm13, %v8955_v9 }
 0x8fb   : > { %v8735_v55 = vpop.f32.mrf.mxu2 }
 0x8ff   : > { %v8593_v18 = vpop.f32.mrf.mxu1 }
 0x900   : > { %v8594_v25 = vadd.f32 %v8593_v18, %v16401_v5  ;;  %9731 = vmatmul.msk.bf16.gmra.mxu2 %vm3494_vm13, %v16402_v51 }
 0x902   : > { %v8824_v21 = vadd.f32 %v8729_v2, %v8594_v25  ;;  %9705 = vmatmul.msk.bf16.gmra.mxu1 %vm3494_vm13, %v16393_v29 }
 0x903   : > { %v8738_v56 = vpop.f32.mrf.mxu2 }
 0x904   : > { %v8888_v43 = vadd.f32 %v15129_v37, %v8824_v21  ;;  %v16405_v21 = vld [vmem:[#allocation64_spill] sm:$0xff] }
 0x906   : > { %v8924_v15 = vadd.f32 %v15356_v40, %v8888_v43 }
 0x907   : > { %v8595_v44 = vpop.f32.mrf.mxu1 }
 0x908   : > { %v8956_v39 = vmax.f32 %v8924_v15, 0.0  ;;  %v8596_v19 = vadd.f32 %v8595_v44, %v16403_v49  ;;  %v16406_v15 = vld [vmem:[#allocation82_spill] sm:$0xff] }
 0x90a   : > { %8988 = vst.msk [vmem:[%s15370_s2 + $0x20] sm:$0xff] %vm3494_vm13, %v8956_v39  ;;  %v8825_v48 = vadd.f32 %v8731_v45, %v8596_v19 }
 0x90b   : > { %v8740_v8 = vpop.f32.mrf.mxu2 }
 0x90c   : > { %v8889_v46 = vadd.f32 %v15134_v47, %v8825_v48  ;;  %v16407_v48 = vld [vmem:[#allocation13_spill] sm:$0xff]  ;;  %v16408_v8 = vld [vmem:[#allocation120_spill] sm:$0xff] }
 0x90e   : > { %v8925_v2 = vadd.f32 %v15356_v40, %v8889_v46 }
 0x90f   : > { %v8598_v7 = vpop.f32.mrf.mxu1 }
 0x910   : > { %v8957_v29 = vmax.f32 %v8925_v2, 0.0  ;;  %9732 = vmatmul.msk.bf16.gmra.mxu2 %vm3494_vm13, %v16404_v31 }
 0x912   : > { %8989 = vst.msk [vmem:[%s15370_s2 + $0x28] sm:$0xff] %vm3494_vm13, %v8957_v29  ;;  %9706 = vmatmul.msk.bf16.gmra.mxu1 %vm3494_vm13, %v16394_v52 }
 0x913   : > { %v8742_v37 = vpop.f32.mrf.mxu2 }
 0x917   : > { %v8599_v14 = vpop.f32.mrf.mxu1 }
 0x918   : > { %v8600_v45 = vadd.f32 %v8599_v14, %v15004_v1  ;;  %v16409_v14 = vld [vmem:[#allocation57_spill] sm:$0xff] }
 0x91a   : > { %v8826_v3 = vadd.f32 %v8735_v55, %v8600_v45 }
 0x91b   : > { %v8744_v9 = vpop.f32.mrf.mxu2 }
 0x91c   : > { %v8890_v47 = vadd.f32 %v15147_v28, %v8826_v3 }
 0x91e   : > { %v8926_v18 = vadd.f32 %v15356_v40, %v8890_v47 }
 0x91f   : > { %v8602_v5 = vpop.f32.mrf.mxu1 }
 0x920   : > { %v8958_v25 = vmax.f32 %v8926_v18, 0.0  ;;  %v8603_v43 = vadd.f32 %v8602_v5, %v16405_v21  ;;  %9733 = vmatmul.msk.bf16.gmra.mxu2 %vm3494_vm13, %v16406_v15 }
 0x922   : > { %8990 = vst.msk [vmem:[%s15370_s2 + $0x30] sm:$0xff] %vm3494_vm13, %v8958_v25  ;;  %v8827_v52 = vadd.f32 %v8738_v56, %v8603_v43  ;;  %9707 = vmatmul.msk.bf16.gmra.mxu1 %vm3494_vm13, %v16396_v20  ;;  %v16410_v25 = vld [vmem:[#allocation99_spill] sm:$0xff] }
 0x923   : > { %v8747_v55 = vpop.f32.mrf.mxu2  ;;  %v16411_v43 = vld [vmem:[#allocation139_spill] sm:$0xff] }
 0x924   : > { %v8891_v1 = vadd.f32 %v15160_v34, %v8827_v52 }
 0x926   : > { %v8927_v28 = vadd.f32 %v15356_v40, %v8891_v1 }
 0x927   : > { %v8604_v44 = vpop.f32.mrf.mxu1 }
 0x928   : > { %v8959_v39 = vmax.f32 %v8927_v28, 0.0 }
 0x92a   : > { %8991 = vst.msk [vmem:[%s15370_s2 + $0x38] sm:$0xff] %vm3494_vm13, %v8959_v39  ;;  %v16412_v39 = vld [vmem:[#allocation17_spill] sm:$0xff] }
 0x92b   : > { %v8748_v49 = vpop.f32.mrf.mxu2 }
 0x92f   : > { %v8606_v19 = vpop.f32.mrf.mxu1 }
 0x930   : > { %v8607_v46 = vadd.f32 %v8606_v19, %v16407_v48  ;;  %9734 = vmatmul.msk.bf16.gmra.mxu2 %vm3494_vm13, %v16408_v8  ;;  %v16413_v48 = vld [vmem:[#allocation110_spill] sm:$0xff] }
 0x932   : > { %v8828_v56 = vadd.f32 %v8742_v37, %v8607_v46  ;;  %9708 = vmatmul.msk.bf16.gmra.mxu1 %vm3494_vm13, %v16398_v33 }
 0x933   : > { %v8751_v20 = vpop.f32.mrf.mxu2 }
 0x934   : > { %v8892_v34 = vadd.f32 %v15171_v16, %v8828_v56 }
 0x936   : > { %v8928_v2 = vadd.f32 %v15356_v40, %v8892_v34 }
 0x937   : > { %v8608_v7 = vpop.f32.mrf.mxu1 }
 0x938   : > { %v8960_v29 = vmax.f32 %v8928_v2, 0.0  ;;  %v8609_v45 = vadd.f32 %v8608_v7, %v16409_v14 }
 0x93a   : > { %8992 = vst.msk [vmem:[%s15370_s2 + $0x40] sm:$0xff] %vm3494_vm13, %v8960_v29  ;;  %v8829_v3 = vadd.f32 %v8744_v9, %v8609_v45  ;;  %v16414_v29 = vld [vmem:[#allocation14_spill] sm:$0xff]  ;;  %v16415_v45 = vld [vmem:[#allocation119_spill] sm:$0xff] }
 0x93b   : > { %v8753_v18 = vpop.f32.mrf.mxu2 }
 0x93c   : > { %v8893_v47 = vadd.f32 %v15176_v54, %v8829_v3 }
 0x93e   : > { %v8929_v37 = vadd.f32 %v15356_v40, %v8893_v47 }
 0x93f   : > { %v8611_v5 = vpop.f32.mrf.mxu1 }
 0x940   : > { %v8961_v33 = vmax.f32 %v8929_v37, 0.0  ;;  %9735 = vmatmul.msk.bf16.gmra.mxu2 %vm3494_vm13, %v16410_v25  ;;  %v16416_v37 = vld [vmem:[#allocation121_spill] sm:$0xff] }
 0x942   : > { %8993 = vst.msk [vmem:[%s15370_s2 + $0x48] sm:$0xff] %vm3494_vm13, %v8961_v33  ;;  %9709 = vmatmul.msk.bf16.gmra.mxu1 %vm3494_vm13, %v16400_v24 }
 0x943   : > { %v8755_v16 = vpop.f32.mrf.mxu2 }
 0x947   : > { %v8612_v21 = vpop.f32.mrf.mxu1 }
 0x948   : > { %v8613_v9 = vadd.f32 %v8612_v21, %v16411_v43 }
 0x94a   : > { %v8830_v52 = vadd.f32 %v8748_v49, %v8613_v9 }
 0x94b   : > { %v8757_v1 = vpop.f32.mrf.mxu2 }
 0x94c   : > { %v8894_v54 = vadd.f32 %v15187_v53, %v8830_v52  ;;  %v16417_v52 = vld [vmem:[#allocation53_spill] sm:$0xff] }
 0x94e   : > { %v8930_v55 = vadd.f32 %v15356_v40, %v8894_v54 }
 0x94f   : > { %v8615_v28 = vpop.f32.mrf.mxu1 }
 0x950   : > { %v8962_v44 = vmax.f32 %v8930_v55, 0.0  ;;  %v8616_v19 = vadd.f32 %v8615_v28, %v16412_v39  ;;  %9736 = vmatmul.msk.bf16.gmra.mxu2 %vm3494_vm13, %v16413_v48  ;;  %v16418_v55 = vld [vmem:[#allocation141_spill] sm:$0xff] }
 0x952   : > { %8994 = vst.msk [vmem:[%s15370_s2 + $0x50] sm:$0xff] %vm3494_vm13, %v8962_v44  ;;  %v8831_v24 = vadd.f32 %v8751_v20, %v8616_v19  ;;  %9710 = vmatmul.msk.bf16.gmra.mxu1 %vm3494_vm13, %v16402_v51 }
 0x953   : > { %v8760_v46 = vpop.f32.mrf.mxu2 }
 0x954   : > { %v8895_v49 = vadd.f32 %v15198_v62, %v8831_v24 }
 0x956   : > { %v8931_v53 = vadd.f32 %v15356_v40, %v8895_v49  ;;  %v16419_v49 = vld [vmem:[#allocation15_spill] sm:$0xff] }
 0x957   : > { %v8617_v56 = vpop.f32.mrf.mxu1 }
 0x958   : > { %v8963_v34 = vmax.f32 %v8931_v53, 0.0  ;;  %v16420_v53 = vld [vmem:[#allocation135_spill] sm:$0xff] }
 0x95a   : > { %8995 = vst.msk [vmem:[%s15370_s2 + $0x58] sm:$0xff] %vm3494_vm13, %v8963_v34 }
 0x95b   : > { %v8761_v2 = vpop.f32.mrf.mxu2 }
 0x95f   : > { %v8619_v7 = vpop.f32.mrf.mxu1 }
 0x960   : > { %v8620_v14 = vadd.f32 %v8619_v7, %v16414_v29  ;;  %9737 = vmatmul.msk.bf16.gmra.mxu2 %vm3494_vm13, %v16415_v45 }
 0x962   : > { %v8832_v20 = vadd.f32 %v8755_v16, %v8620_v14  ;;  %9711 = vmatmul.msk.bf16.gmra.mxu1 %vm3494_vm13, %v16404_v31  ;;  %v10450_v14 = vld [vmem:[#allocation3 + $0xd0] sm:$0xff] }
 0x963   : > { %v8764_v51 = vpop.f32.mrf.mxu2 }
 0x964   : > { %v8896_v62 = vadd.f32 %v15209_v61, %v8832_v20  ;;  %v8688_v20 = vrot.slane %v10450_v14, 1 }
 0x966   : > { %v8932_v3 = vadd.f32 %v15356_v40, %v8896_v62 }
 0x967   : > { %v8621_v47 = vpop.f32.mrf.mxu1 }
 0x968   : > { %v8964_v18 = vmax.f32 %v8932_v3, 0.0  ;;  %v8622_v5 = vadd.f32 %v8621_v47, %v16416_v37  ;;  %v16421_v3 = vld [vmem:[#allocation112_spill] sm:$0xff] }
 0x96a   : > { %8996 = vst.msk [vmem:[%s15370_s2 + $0x60] sm:$0xff] %vm3494_vm13, %v8964_v18  ;;  %v8833_v33 = vadd.f32 %v8757_v1, %v8622_v5 }
 0x96b   : > { %v8766_v43 = vpop.f32.mrf.mxu2 }
 0x96c   : > { %v8897_v21 = vadd.f32 %v15214_v30, %v8833_v33  ;;  %v16423_v43 = vld [vmem:[#allocation96_spill] sm:$0xff] }
 0x96e   : > { %v8933_v16 = vadd.f32 %v15356_v40, %v8897_v21 }
 0x96f   : > { %v8624_v9 = vpop.f32.mrf.mxu1 }
 0x970   : > { %v8965_v31 = vmax.f32 %v8933_v16, 0.0  ;;  %9738 = vmatmul.msk.bf16.gmra.mxu2 %vm3494_vm13, %v16417_v52  ;;  %v8690_v9 = vrot.slane %v15276_v6, 1 }
 0x972   : > { %8997 = vst.msk [vmem:[%s15370_s2 + $0x68] sm:$0xff] %vm3494_vm13, %v8965_v31  ;;  %9712 = vmatmul.msk.bf16.gmra.mxu1 %vm3494_vm13, %v16406_v15 }
 0x973   : > { %v8768_v61 = vpop.f32.mrf.mxu2 }
 0x977   : > { %v8625_v54 = vpop.f32.mrf.mxu1 }
 0x978   : > { %v8626_v1 = vadd.f32 %v8625_v54, %v16418_v55 }
 0x97a   : > { %v8834_v28 = vadd.f32 %v8761_v2, %v8626_v1 }
 0x97b   : > { %v8770_v44 = vpop.f32.mrf.mxu2 }
 0x97c   : > { %v8898_v30 = vadd.f32 %v15225_v60, %v8834_v28 }
 0x97e   : > { %v8934_v39 = vadd.f32 %v15356_v40, %v8898_v30 }
 0x97f   : > { %v8628_v19 = vpop.f32.mrf.mxu1 }
 0x980   : > { %v8966_v24 = vmax.f32 %v8934_v39, 0.0  ;;  %v8629_v46 = vadd.f32 %v8628_v19, %v16419_v49  ;;  %9739 = vmatmul.msk.bf16.gmra.mxu2 %vm3494_vm13, %v16420_v53 }
 0x982   : > { %8998 = vst.msk [vmem:[%s15370_s2 + $0x70] sm:$0xff] %vm3494_vm13, %v8966_v24  ;;  %v8835_v15 = vadd.f32 %v8764_v51, %v8629_v46  ;;  %9713 = vmatmul.msk.bf16.gmra.mxu1 %vm3494_vm13, %v16408_v8  ;;  %v16422_v51 = vrot.slane %v14876_v11, 1 }
 0x983   : > { %v8773_v34 = vpop.f32.mrf.mxu2 }
 0x984   : > { %v8899_v56 = vadd.f32 %v15236_v32, %v8835_v15  ;;  %v8689_v8 = vsel %vm5147_vm11, %v16422_v51, %v8688_v20 }
 0x986   : > { %v8935_v60 = vadd.f32 %v15356_v40, %v8899_v56 }
 0x987   : > { %v8630_v2 = vpop.f32.mrf.mxu1 }
 0x988   : > { %v8967_v7 = vmax.f32 %v8935_v60, 0.0  ;;  %v16424_v60 = vld [vmem:[#allocation10_spill] sm:$0xff] }
 0x98a   : > { %8999 = vst.msk [vmem:[%s15370_s2 + $0x78] sm:$0xff] %vm3494_vm13, %v8967_v7 }
 0x98b   : > { %v8774_v29 = vpop.f32.mrf.mxu2 }
 0x98f   : > { %v8632_v62 = vpop.f32.mrf.mxu1 }
 0x990   : > { %v8633_v47 = vadd.f32 %v8632_v62, %v16421_v3  ;;  %9740 = vmatmul.msk.bf16.gmra.mxu2 %vm3494_vm13, %v8689_v8 }
 0x992   : > { %v8836_v32 = vadd.f32 %v8768_v61, %v8633_v47  ;;  %9714 = vmatmul.msk.bf16.gmra.mxu1 %vm3494_vm13, %v16410_v25 }
 0x993   : > { %v8777_v37 = vpop.f32.mrf.mxu2 }
 0x994   : > { %v8900_v18 = vadd.f32 %v15247_v63, %v8836_v32  ;;  %v8691_v63 = vsel %vm5147_vm11, %v8688_v20, %v8690_v9  ;;  %v16425_v32 = vld [vmem:[#allocation7_spill] sm:$0xff] }
 0x996   : > { %v8936_v5 = vadd.f32 %v15356_v40, %v8900_v18 }
 0x997   : > { %v8634_v33 = vpop.f32.mrf.mxu1 }
 0x998   : > { %v8968_v21 = vmax.f32 %v8936_v5, 0.0  ;;  %v8635_v16 = vadd.f32 %v8634_v33, %v16423_v43  ;;  %v16426_v43 = vld [vmem:[#allocation61_spill] sm:$0xff] }
 0x99a   : > { %9000 = vst.msk [vmem:[%s15370_s2 + $0x80] sm:$0xff] %vm3494_vm13, %v8968_v21  ;;  %v8837_v11 = vadd.f32 %v8770_v44, %v8635_v16 }
 0x99b   : > { %v8779_v52 = vpop.f32.mrf.mxu2 }
 0x99c   : > { %v8901_v31 = vadd.f32 %v15252_v42, %v8837_v11 }
 0x99e   : > { %v8937_v25 = vadd.f32 %v15356_v40, %v8901_v31 }
 0x99f   : > { %v8637_v61 = vpop.f32.mrf.mxu1 }
 0x9a0   : > { %v8969_v54 = vmax.f32 %v8937_v25, 0.0  ;;  %9741 = vmatmul.msk.bf16.gmra.mxu2 %vm3494_vm13, %v8691_v63 }
 0x9a2   : > { %9001 = vst.msk [vmem:[%s15370_s2 + $0x88] sm:$0xff] %vm3494_vm13, %v8969_v54  ;;  %9715 = vmatmul.msk.bf16.gmra.mxu1 %vm3494_vm13, %v16413_v48  ;;  %v16427_v54 = vld [vmem:[#allocation144_spill] sm:$0xff] }
 0x9a3   : > { %v8781_v55 = vpop.f32.mrf.mxu2 }
 0x9a7   : > { %v8638_v1 = vpop.f32.mrf.mxu1 }
 0x9a8   : > { %v8639_v6 = vadd.f32 %v8638_v1, %v15126_v57 }
 0x9aa   : > { %v8838_v42 = vadd.f32 %v8774_v29, %v8639_v6 }
 0x9ab   : > { %v8783_v30 = vpop.f32.mrf.mxu2 }
 0x9ac   : > { %v8902_v28 = vadd.f32 %v15268_v59, %v8838_v42 }
 0x9ae   : > { %v8938_v44 = vadd.f32 %v15356_v40, %v8902_v28 }
 0x9af   : > { %v8641_v39 = vpop.f32.mrf.mxu1 }
 0x9b0   : > { %v8970_v19 = vmax.f32 %v8938_v44, 0.0  ;;  %v8642_v24 = vadd.f32 %v8641_v39, %v15131_v27  ;;  %v16428_v44 = vld [vmem:[#allocation41_spill] sm:$0xff] }
 0x9b2   : > { %9002 = vst.msk [vmem:[%s15370_s2 + $0x90] sm:$0xff] %vm3494_vm13, %v8970_v19  ;;  %v8839_v49 = vadd.f32 %v8777_v37, %v8642_v24  ;;  %9716 = vmatmul.msk.bf16.gmra.mxu1 %vm3494_vm13, %v16415_v45 }
 0x9b3   : > { %v8786_v57 = vpop.f32.mrf.mxu2 }
 0x9b4   : > { %v8903_v48 = vadd.f32 %v15280_v22, %v8839_v49 }
 0x9b6   : > { %v8939_v46 = vadd.f32 %v15356_v40, %v8903_v48 }
 0x9b7   : > { %v8643_v59 = vpop.f32.mrf.mxu1 }
 0x9b8   : > { %v8971_v53 = vmax.f32 %v8939_v46, 0.0 }
 0x9ba   : > { %9003 = vst.msk [vmem:[%s15370_s2 + $0x98] sm:$0xff] %vm3494_vm13, %v8971_v53  ;;  %v16429_v53 = vld [vmem:[#allocation117_spill] sm:$0xff] }
 0x9bb   : > { %v8787_v15 = vpop.f32.mrf.mxu2 }
 0x9bf   : > { %v8645_v56 = vpop.f32.mrf.mxu1 }
 0x9c0   : > { %v8646_v27 = vadd.f32 %v8645_v56, %v15144_v13 }
 0x9c2   : > { %v8840_v34 = vadd.f32 %v8781_v55, %v8646_v27  ;;  %9717 = vmatmul.msk.bf16.gmra.mxu1 %vm3494_vm13, %v16424_v60 }
 0x9c3   : > { %v8790_v22 = vpop.f32.mrf.mxu2 }
 0x9c4   : > { %v8904_v45 = vadd.f32 %v15290_v58, %v8840_v34 }
 0x9c6   : > { %v8940_v2 = vadd.f32 %v15356_v40, %v8904_v45 }
 0x9c7   : > { %v8647_v7 = vpop.f32.mrf.mxu1 }
 0x9c8   : > { %v8972_v29 = vmax.f32 %v8940_v2, 0.0  ;;  %v8648_v14 = vadd.f32 %v8647_v7, %v15157_v17 }
 0x9ca   : > { %9004 = vst.msk [vmem:[%s15370_s2 + $0xa0] sm:$0xff] %vm3494_vm13, %v8972_v29  ;;  %v8841_v20 = vadd.f32 %v8783_v30, %v8648_v14 }
 0x9cb   : > { %v8792_v13 = vpop.f32.mrf.mxu2 }
 0x9cc   : > { %v8905_v62 = vadd.f32 %v15293_v0, %v8841_v20 }
 0x9ce   : > { %v8941_v3 = vadd.f32 %v15356_v40, %v8905_v62 }
 0x9cf   : > { %v8650_v47 = vpop.f32.mrf.mxu1 }
 0x9d0   : > { %v8973_v51 = vmax.f32 %v8941_v3, 0.0  ;;  %v16431_v47 = vld [vmem:[#allocation18_spill] sm:$0xff] }
 0x9d2   : > { %9005 = vst.msk [vmem:[%s15370_s2 + $0xa8] sm:$0xff] %vm3494_vm13, %v8973_v51 }
 0x9d3   : > { %v8794_v58 = vpop.f32.mrf.mxu2 }
 0x9d7   : > { %v8651_v8 = vpop.f32.mrf.mxu1 }
 0x9d8   : > { %v8652_v18 = vadd.f32 %v8651_v8, %v16425_v32 }
 0x9da   : > { %v8842_v37 = vadd.f32 %v8787_v15, %v8652_v18 }
 0x9db   : > { %v8796_v5 = vpop.f32.mrf.mxu2 }
 0x9dc   : > { %v8906_v17 = vadd.f32 %v15300_v41, %v8842_v37 }
 0x9de   : > { %v8942_v33 = vadd.f32 %v15356_v40, %v8906_v17  ;;  %v16432_v17 = vld [vmem:[#allocation111_spill] sm:$0xff] }
 0x9df   : > { %v8654_v0 = vpop.f32.mrf.mxu1 }
 0x9e0   : > { %v8974_v21 = vmax.f32 %v8942_v33, 0.0  ;;  %v8655_v16 = vadd.f32 %v8654_v0, %v16426_v43 }
 0x9e2   : > { %9006 = vst.msk [vmem:[%s15370_s2 + $0xb0] sm:$0xff] %vm3494_vm13, %v8974_v21  ;;  %v8843_v11 = vadd.f32 %v8790_v22, %v8655_v16  ;;  %v16430_v22 = vld [vmem:[#allocation19_spill] sm:$0xff] }
 0x9e3   : > { %v8799_v31 = vpop.f32.mrf.mxu2 }
 0x9e4   : > { %v8907_v9 = vadd.f32 %v15307_v35, %v8843_v11 }
 0x9e6   : > { %v8943_v52 = vadd.f32 %v15356_v40, %v8907_v9  ;;  %v16433_v9 = vld [vmem:[#allocation21_spill] sm:$0xff] }
 0x9e7   : > { %v8656_v25 = vpop.f32.mrf.mxu1 }
 0x9e8   : > { %v8975_v63 = vmax.f32 %v8943_v52, 0.0 }
 0x9ea   : > { %9007 = vst.msk [vmem:[%s15370_s2 + $0xb8] sm:$0xff] %vm3494_vm13, %v8975_v63 }
 0x9eb   : > { %v8800_v41 = vpop.f32.mrf.mxu2 }
 0x9ef   : > { %v8658_v61 = vpop.f32.mrf.mxu1 }
 0x9f0   : > { %v8659_v55 = vadd.f32 %v8658_v61, %v16427_v54  ;;  %v16434_v54 = vld [vmem:[#allocation11_spill] sm:$0xff] }
 0x9f2   : > { %v8844_v1 = vadd.f32 %v8794_v58, %v8659_v55 }
 0x9f3   : > { %v8803_v42 = vpop.f32.mrf.mxu2 }
 0x9f4   : > { %v8908_v6 = vadd.f32 %v15314_v36, %v8844_v1 }
 0x9f6   : > { %v8944_v28 = vadd.f32 %v15356_v40, %v8908_v6 }
 0x9f7   : > { %v8660_v35 = vpop.f32.mrf.mxu1 }
 0x9f8   : > { %v8976_v30 = vmax.f32 %v8944_v28, 0.0  ;;  %v8661_v39 = vadd.f32 %v8660_v35, %v16428_v44 }
 0x9fa   : > { %9008 = vst.msk [vmem:[%s15370_s2 + $0xc0] sm:$0xff] %vm3494_vm13, %v8976_v30  ;;  %v8845_v19 = vadd.f32 %v8796_v5, %v8661_v39 }
 0x9fb   : > { %v8805_v49 = vpop.f32.mrf.mxu2 }
 0x9fc   : > { %v8909_v24 = vadd.f32 %v15317_v4, %v8845_v19 }
 0x9fe   : > { %v8945_v48 = vadd.f32 %v15356_v40, %v8909_v24 }
 0x9ff   : > { %v8663_v57 = vpop.f32.mrf.mxu1 }
 0xa00   : > { %v8977_v46 = vmax.f32 %v8945_v48, 0.0 }
 0xa02   : > { %9009 = vst.msk [vmem:[%s15370_s2 + $0xc8] sm:$0xff] %vm3494_vm13, %v8977_v46 }
 0xa03   : > { %v8807_v36 = vpop.f32.mrf.mxu2 }
 0xa07   : > { %v8664_v59 = vpop.f32.mrf.mxu1 }
 0xa08   : > { %v8665_v15 = vadd.f32 %v8664_v59, %v16429_v53 }
 0xa0a   : > { %v8846_v56 = vadd.f32 %v8800_v41, %v8665_v15 }
 0xa0b   : > { %v8809_v34 = vpop.f32.mrf.mxu2 }
 0xa0c   : > { %v8910_v27 = vadd.f32 %v15324_v26, %v8846_v56 }
 0xa0e   : > { %v8946_v60 = vadd.f32 %v15356_v40, %v8910_v27 }
 0xa0f   : > { %v8667_v4 = vpop.f32.mrf.mxu1 }
 0xa10   : > { %v8978_v45 = vmax.f32 %v8946_v60, 0.0  ;;  %v8668_v2 = vadd.f32 %v8667_v4, %v16430_v22 }
 0xa12   : > { %9010 = vst.msk [vmem:[%s15370_s2 + $0xd0] sm:$0xff] %vm3494_vm13, %v8978_v45  ;;  %v8847_v7 = vadd.f32 %v8803_v42, %v8668_v2 }
 0xa13   : > { %v8812_v14 = vpop.f32.mrf.mxu2 }
 0xa14   : > { %v8911_v29 = vadd.f32 %v15331_v38, %v8847_v7 }
 0xa16   : > { %v8947_v20 = vadd.f32 %v15356_v40, %v8911_v29 }
 0xa17   : > { %v8669_v62 = vpop.f32.mrf.mxu1 }
 0xa18   : > { %v8979_v13 = vmax.f32 %v8947_v20, 0.0 }
 0xa1a   : > { %9011 = vst.msk [vmem:[%s15370_s2 + $0xd8] sm:$0xff] %vm3494_vm13, %v8979_v13 }
 0xa1b   : > { %v8813_v26 = vpop.f32.mrf.mxu2 }
 0xa1f   : > { %v8671_v3 = vpop.f32.mrf.mxu1 }
 0xa20   : > { %v8672_v51 = vadd.f32 %v8671_v3, %v16431_v47 }
 0xa22   : > { %v8848_v58 = vadd.f32 %v8807_v36, %v8672_v51 }
 0xa23   : > { %v8816_v32 = vpop.f32.mrf.mxu2 }
 0xa24   : > { %v8912_v8 = vadd.f32 %v15338_v50, %v8848_v58 }
 0xa26   : > { %v8948_v18 = vadd.f32 %v15356_v40, %v8912_v8 }
 0xa27   : > { %v8673_v38 = vpop.f32.mrf.mxu1 }
 0xa28   : > { %v8980_v37 = vmax.f32 %v8948_v18, 0.0  ;;  %v8674_v5 = vadd.f32 %v8673_v38, %v16432_v17 }
 0xa2a   : > { %9012 = vst.msk [vmem:[%s15370_s2 + $0xe0] sm:$0xff] %vm3494_vm13, %v8980_v37  ;;  %v8849_v33 = vadd.f32 %v8809_v34, %v8674_v5 }
 0xa2b   : > { %v8818_v21 = vpop.f32.mrf.mxu2 }
 0xa2c   : > { %v8913_v0 = vadd.f32 %v15341_v10, %v8849_v33 }
 0xa2e   : > { %v8949_v43 = vadd.f32 %v15356_v40, %v8913_v0 }
 0xa2f   : > { %v8676_v16 = vpop.f32.mrf.mxu1 }
 0xa30   : > { %v8981_v11 = vmax.f32 %v8949_v43, 0.0 }
 0xa32   : > { %9013 = vst.msk [vmem:[%s15370_s2 + $0xe8] sm:$0xff] %vm3494_vm13, %v8981_v11 }
 0xa37   : > { %v8677_v50 = vpop.f32.mrf.mxu1 }
 0xa38   : > { %v8678_v31 = vadd.f32 %v8677_v50, %v16433_v9 }
 0xa3a   : > { %v8850_v52 = vadd.f32 %v8813_v26, %v8678_v31 }
 0xa3c   : > { %v8914_v25 = vadd.f32 %v15348_v12, %v8850_v52 }
 0xa3e   : > { %v8950_v63 = vadd.f32 %v15356_v40, %v8914_v25 }
 0xa3f   : > { %v8680_v41 = vpop.f32.mrf.mxu1 }
 0xa40   : > { %v8982_v61 = vmax.f32 %v8950_v63, 0.0  ;;  %v8681_v10 = vadd.f32 %v8680_v41, %v16434_v54 }
 0xa42   : > { %9014 = vst.msk [vmem:[%s15370_s2 + $0xf0] sm:$0xff] %vm3494_vm13, %v8982_v61  ;;  %v8851_v55 = vadd.f32 %v8816_v32, %v8681_v10 }
 0xa44   : > { %v8915_v1 = vadd.f32 %v15362_v23, %v8851_v55 }
 0xa46   : > { %v8951_v6 = vadd.f32 %v15356_v40, %v8915_v1 }
 0xa47   : > { %v8682_v42 = vpop.f32.mrf.mxu1 }
 0xa48   : > { %v8983_v28 = vmax.f32 %v8951_v6, 0.0 }
 0xa4a   : > { %9015 = vst.msk [vmem:[%s15370_s2 + $0xf8] sm:$0xff] %vm3494_vm13, %v8983_v28 }
 0xa4b PF: > { %s20_s5 = sadd.s32 1, %s10473_s5   ;;  %s16435_s11 = smov %s10469_s4 }
 0xa4c   : > { %p17_p5 = scmp.ge.s32.totalorder %s20_s5, 4   ;;  %s16436_s4 = smov %s16438_s12 }
 0xa4e   :  { %19 = sbr.rel (!%p17_p5) target bundleno = 2 (0x2), region = 152 }

</bundles_post_ra>
